<compile_context>
chip_gen: v6e
topology: v6e:2x2x1
jax: 0.10.0
libtpu: 0.0.40
codegen_flags: <defaults>
</compile_context>

<pallas_src>
import functools
import math

import jax
import jax.numpy as jnp
from jax.experimental import pallas as pl
from jax.experimental.pallas import tpu as pltpu


# ------------------------- fused Conv5x5(p=2) + MaxPool2 kernel -------------------------

def _conv5x5_pool_kernel(x_ref, w_ref, b_ref, o_ref, acc_ref, *, B, H, W, Cin, Cout):
    """Processes a batch tile of B images per grid step.

    x_ref:   (B, H+4, W, 5*Cin) bf16  dx-packed, height-padded NHWC images:
             x_ref[b, y, x, dx*Cin + c] == x_padded[b, y, x + dx, c]
    w_ref:   (5, 5*Cin, Cout)   bf16  per-dy taps; contraction index = dx*Cin + c
    b_ref:   (1, Cout)          f32
    o_ref:   (B*Ho*Wo, Cout)    f32   pooled conv output, row = (b*Ho + y)*Wo + xo
    acc_ref: (B*H*W, Cout)      f32   conv accumulator,   row = (b*H + h)*W + x
    """
    Ho, Wo = H // 2, W // 2
    K = 5 * Cin

    def tap(dy):
        # dy-shifted window over the whole batch tile. W % 8 == 0 keeps the flatten
        # layout-trivial (no relayout copies); the dy offset is on a major dim.
        return x_ref[:, dy:dy + H, :, :].reshape(B * H * W, K)

    # dy = 0 folds into the accumulator init (saves one zero-fill + one RMW pass).
    acc_ref[...] = jnp.dot(tap(0), w_ref[0], preferred_element_type=jnp.float32)
    for dy in range(1, 5):
        acc_ref[...] += jnp.dot(tap(dy), w_ref[dy], preferred_element_type=jnp.float32)

    # ---- fused MaxPool2d(2) + bias epilogue (whole-array ops, no per-row loop) ----
    # Rows first: split the flat row dim (layout-trivial since W % 8 == 0) and max the
    # even/odd conv rows of each image.
    a4 = acc_ref[...].reshape(B * Ho, 2, W, Cout)
    rmax = jnp.maximum(a4[:, 0], a4[:, 1])                        # (B*Ho, W, Cout)
    # Columns second: write back and use whole-array stride-2 sublane reads to pick
    # even/odd x (flat row parity == x parity because W is even).
    acc_ref[pl.ds(0, B * Ho * W), :] = rmax.reshape(B * Ho * W, Cout)
    pooled = jnp.maximum(acc_ref[pl.ds(0, B * Ho * Wo, 2), :],
                         acc_ref[pl.ds(1, B * Ho * Wo, 2), :])    # (B*Ho*Wo, Cout)
    # NOTE: adding bias after the max-pool is valid only because bias is a per-channel
    # constant and max is monotone; don't insert per-pixel ops before the pool here.
    o_ref[...] = pooled + b_ref[...]


def _conv_batch_tile(n):
    # <= 8 images per step keeps peak VMEM ~11-22 MiB (safe on v7x's 64 MiB VMEM as well
    # as v5e/v6e's 128 MiB); keep >= 2 grid steps when possible for megacore balance.
    target = 8 if n >= 16 else max(1, n // 2)
    b = min(target, n)
    while n % b:
        b -= 1
    return b


def conv5x5_pool(x, w_packed, bias):
    """Fused Conv2d(k=5, s=1, p=2) + MaxPool2d(2) on an NHWC activation.

    x: (N, H, W, Cin) f32; w_packed: (5, 5*Cin, Cout) bf16; bias: (1, Cout) f32.
    Returns (N, H//2, W//2, Cout) f32.
    """
    n, h, w, cin = x.shape
    k, cout = w_packed.shape[1], w_packed.shape[2]
    assert k == 5 * cin and h % 2 == 0 and w % 8 == 0, (x.shape, w_packed.shape)
    ho, wo = h // 2, w // 2
    b = _conv_batch_tile(n)

    # dx-packed, height-padded, bf16 input (built once per layer by XLA). The 5 dx shifts
    # land in the lane dim so the kernel never slices a sublane-unaligned window.
    xp = jnp.pad(x, ((0, 0), (2, 2), (2, 2), (0, 0)))
    xpk = jnp.concatenate([xp[:, :, dx:dx + w, :] for dx in range(5)], axis=-1)
    xpk = xpk.astype(jnp.bfloat16)                                 # (N, H+4, W, 5*Cin)

    kernel = functools.partial(_conv5x5_pool_kernel, B=b, H=h, W=w, Cin=cin, Cout=cout)
    flops = 2 * n * h * w * 25 * cin * cout
    bytes_accessed = (xpk.size * 2 + w_packed.size * 2 + bias.size * 4
                      + n * ho * wo * cout * 4)

    out_flat = pl.pallas_call(
        kernel,
        out_shape=jax.ShapeDtypeStruct((n * ho * wo, cout), jnp.float32),
        grid=(n // b,),
        in_specs=[
            pl.BlockSpec((b, h + 4, w, k), lambda i: (i, 0, 0, 0)),
            pl.BlockSpec((5, k, cout), lambda i: (0, 0, 0)),
            pl.BlockSpec((1, cout), lambda i: (0, 0)),
        ],
        out_specs=pl.BlockSpec((b * ho * wo, cout), lambda i: (i, 0)),
        scratch_shapes=[pltpu.VMEM((b * h * w, cout), jnp.float32)],
        compiler_params=pltpu.CompilerParams(
            dimension_semantics=("parallel",),
            vmem_limit_bytes=64 * 1024 * 1024,
        ),
        cost_estimate=pl.CostEstimate(
            flops=flops, transcendentals=0, bytes_accessed=bytes_accessed),
    )(xpk, w_packed, bias)
    return out_flat.reshape(n, ho, wo, cout)


# ----------------------------- fused Linear -> Linear head ------------------------------

def _mlp_head_kernel(x_ref, w1_ref, b1_ref, w2_ref, b2_ref, o_ref):
    h1 = jnp.dot(x_ref[...], w1_ref[...], preferred_element_type=jnp.float32) + b1_ref[...]
    o_ref[...] = (jnp.dot(h1.astype(jnp.bfloat16), w2_ref[...],
                          preferred_element_type=jnp.float32) + b2_ref[...])


def _mlp_row_tile(n, target=512):
    if n <= target:
        return n
    bm = (target // 8) * 8
    while bm > 8 and n % bm:
        bm -= 8
    return bm if n % bm == 0 else n


def mlp_head(x, w1, b1, w2, b2):
    """x: (N, 1024) bf16; w1: (1024, 64) bf16; w2: (64, 10) bf16 -> (N, 10) f32.
    Both Linears fused; grid-tiled over batch rows (keeps VMEM bounded for large N)."""
    n, k1 = x.shape
    d1, d2 = w1.shape[1], w2.shape[1]
    bm = _mlp_row_tile(n)
    flops = 2 * n * (k1 * d1 + d1 * d2)
    bytes_accessed = 2 * (n * k1 + k1 * d1 + d1 * d2) + 4 * (d1 + d2 + n * d2)
    return pl.pallas_call(
        _mlp_head_kernel,
        out_shape=jax.ShapeDtypeStruct((n, d2), jnp.float32),
        grid=(n // bm,),
        in_specs=[
            pl.BlockSpec((bm, k1), lambda i: (i, 0)),
            pl.BlockSpec((k1, d1), lambda i: (0, 0)),
            pl.BlockSpec((1, d1), lambda i: (0, 0)),
            pl.BlockSpec((d1, d2), lambda i: (0, 0)),
            pl.BlockSpec((1, d2), lambda i: (0, 0)),
        ],
        out_specs=pl.BlockSpec((bm, d2), lambda i: (i, 0)),
        compiler_params=pltpu.CompilerParams(dimension_semantics=("parallel",)),
        cost_estimate=pl.CostEstimate(
            flops=flops, transcendentals=0, bytes_accessed=bytes_accessed),
    )(x, w1, b1, w2, b2)


# --------------------------------- parameter init ---------------------------------------

def _uniform(key, shape, bound):
    return jax.random.uniform(key, shape, jnp.float32, -bound, bound)


def init_params(key):
    """PyTorch-style init, then ONE-TIME preprocessing into kernel-ready layouts
    (done here, not inside the forward pass)."""
    ks = jax.random.split(key, 10)
    params = {}
    conv_shapes = [(32, 3, 5, 5), (32, 32, 5, 5), (64, 32, 5, 5)]
    for i, (cout, cin, kh, kw) in enumerate(conv_shapes):
        bound = 1.0 / math.sqrt(cin * kh * kw)
        wt = _uniform(ks[2 * i], (cout, cin, kh, kw), bound)
        bs = _uniform(ks[2 * i + 1], (cout,), bound)
        # (Cout, Cin, 5, 5) -> (dy, dx, Cin, Cout) -> (5, 5*Cin, Cout) bf16
        params[f"conv{i + 1}_w"] = (wt.transpose(2, 3, 1, 0)
                                    .reshape(kh, kw * cin, cout).astype(jnp.bfloat16))
        params[f"conv{i + 1}_b"] = bs.reshape(1, cout).astype(jnp.float32)

    # linear1: PyTorch flatten order is (c, y, x); ours is NHWC (y, x, c) -> pre-permute.
    bound = 1.0 / math.sqrt(1024)
    w1 = _uniform(ks[6], (64, 1024), bound)
    b1 = _uniform(ks[7], (64,), bound)
    params["lin1_w"] = (w1.reshape(64, 64, 4, 4).transpose(2, 3, 1, 0)
                        .reshape(1024, 64).astype(jnp.bfloat16))
    params["lin1_b"] = b1.reshape(1, 64).astype(jnp.float32)

    bound = 1.0 / math.sqrt(64)
    w2 = _uniform(ks[8], (10, 64), bound)
    b2 = _uniform(ks[9], (10,), bound)
    params["lin2_w"] = w2.T.astype(jnp.bfloat16)
    params["lin2_b"] = b2.reshape(1, 10).astype(jnp.float32)
    return params


# -------------------------------------- forward -----------------------------------------

@jax.jit
def forward(params, x):
    """x: (N, 3, 32, 32) f32 NCHW -> logits (N, 10) f32."""
    h = jnp.transpose(x, (0, 2, 3, 1))                              # NCHW -> NHWC once
    h = conv5x5_pool(h, params["conv1_w"], params["conv1_b"])       # (N, 16, 16, 32)
    h = conv5x5_pool(h, params["conv2_w"], params["conv2_b"])       # (N,  8,  8, 32)
    h = conv5x5_pool(h, params["conv3_w"], params["conv3_b"])       # (N,  4,  4, 64)
    n = h.shape[0]
    hflat = h.reshape(n, -1).astype(jnp.bfloat16)                   # NHWC flatten (N, 1024)
    return mlp_head(hflat, params["lin1_w"], params["lin1_b"],
                    params["lin2_w"], params["lin2_b"])


if __name__ == "__main__":
    key = jax.random.PRNGKey(0)
    pkey, xkey = jax.random.split(key)
    params = init_params(pkey)
    # Linear(1024, 64) after three 2x pools of a 64-channel map implies a 32x32 input.
    x = jax.random.normal(xkey, (2, 3, 32, 32), dtype=jnp.float32)
    out = jax.block_until_ready(forward(params, x))
    assert out.shape == (2, 10), out.shape
    print("KERNEL_OK")
</pallas_src>

<mosaic_0001>
module attributes {stable_mosaic.version = 11 : i64} {
  func.func @_conv5x5_pool_kernel(%arg0: i32, %arg1: memref<1x36x32x15xbf16, #tpu.memory_space<vmem>>, %arg2: memref<5x15x32xbf16, #tpu.memory_space<vmem>>, %arg3: memref<1x32xf32, #tpu.memory_space<vmem>>, %arg4: memref<256x32xf32, #tpu.memory_space<vmem>>, %arg5: memref<1024x32xf32, #tpu.memory_space<vmem>>) attributes {dimension_semantics = [#tpu.dimension_semantics<parallel>], iteration_bounds = array<i64: 2>, scalar_prefetch = 0 : i64, scratch_operands = 1 : i64, tpu.core_type = #tpu.core_type<tc>, window_params = [{transform_indices = @transform_0, window_bounds = array<i64: 1, 36, 32, 15>}, {pipeline_mode = #tpu.pipeline_mode<synchronous>, transform_indices = @transform_1, window_bounds = array<i64: 5, 15, 32>}, {pipeline_mode = #tpu.pipeline_mode<synchronous>, transform_indices = @transform_2, window_bounds = array<i64: 1, 32>}, {transform_indices = @transform_3, window_bounds = array<i64: 256, 32>}]} {
    %c0 = arith.constant 0 : index
    %c0_0 = arith.constant 0 : index
    %c0_1 = arith.constant 0 : index
    %c0_2 = arith.constant 0 : index
    %0 = vector.load %arg1[%c0, %c0_0, %c0_1, %c0_2] : memref<1x36x32x15xbf16, #tpu.memory_space<vmem>>, vector<1x32x32x15xbf16>
    %1 = vector.shape_cast %0 : vector<1x32x32x15xbf16> to vector<1024x15xbf16>
    %c0_3 = arith.constant 0 : index
    %c0_4 = arith.constant 0 : index
    %c0_5 = arith.constant 0 : index
    %2 = vector.load %arg2[%c0_3, %c0_4, %c0_5] : memref<5x15x32xbf16, #tpu.memory_space<vmem>>, vector<1x15x32xbf16>
    %3 = vector.shape_cast %2 : vector<1x15x32xbf16> to vector<15x32xbf16>
    %cst = arith.constant dense<0.000000e+00> : vector<1024x32xf32>
    %4 = tpu.matmul %1, %3, %cst {dimension_numbers = #tpu.dot_dimension_numbers<[1], [0], [0], [1], [0, 0, 1, 1], [], []>} : vector<1024x15xbf16>, vector<15x32xbf16>, vector<1024x32xf32> -> vector<1024x32xf32>
    %c0_6 = arith.constant 0 : index
    %c0_7 = arith.constant 0 : index
    %5 = vector.load %arg5[%c0_6, %c0_7] : memref<1024x32xf32, #tpu.memory_space<vmem>>, vector<1024x32xf32>
    tpu.vector_store %arg5[%c0_6, %c0_7], %4 {strides = array<i32>} : memref<1024x32xf32, #tpu.memory_space<vmem>>, vector<1024x32xf32>,
    %c0_8 = arith.constant 0 : index
    %c0_9 = arith.constant 0 : index
    %6 = vector.load %arg5[%c0_8, %c0_9] : memref<1024x32xf32, #tpu.memory_space<vmem>>, vector<1024x32xf32>
    %c0_10 = arith.constant 0 : index
    %c1 = arith.constant 1 : index
    %c0_11 = arith.constant 0 : index
    %c0_12 = arith.constant 0 : index
    %7 = vector.load %arg1[%c0_10, %c1, %c0_11, %c0_12] : memref<1x36x32x15xbf16, #tpu.memory_space<vmem>>, vector<1x32x32x15xbf16>
    %8 = vector.shape_cast %7 : vector<1x32x32x15xbf16> to vector<1024x15xbf16>
    %c1_13 = arith.constant 1 : index
    %c0_14 = arith.constant 0 : index
    %c0_15 = arith.constant 0 : index
    %9 = vector.load %arg2[%c1_13, %c0_14, %c0_15] : memref<5x15x32xbf16, #tpu.memory_space<vmem>>, vector<1x15x32xbf16>
    %10 = vector.shape_cast %9 : vector<1x15x32xbf16> to vector<15x32xbf16>
    %cst_16 = arith.constant dense<0.000000e+00> : vector<1024x32xf32>
    %11 = tpu.matmul %8, %10, %cst_16 {dimension_numbers = #tpu.dot_dimension_numbers<[1], [0], [0], [1], [0, 0, 1, 1], [], []>} : vector<1024x15xbf16>, vector<15x32xbf16>, vector<1024x32xf32> -> vector<1024x32xf32>
    %12 = arith.addf %6, %11 : vector<1024x32xf32>
    %c0_17 = arith.constant 0 : index
    %c0_18 = arith.constant 0 : index
    %13 = vector.load %arg5[%c0_17, %c0_18] : memref<1024x32xf32, #tpu.memory_space<vmem>>, vector<1024x32xf32>
    tpu.vector_store %arg5[%c0_17, %c0_18], %12 {strides = array<i32>} : memref<1024x32xf32, #tpu.memory_space<vmem>>, vector<1024x32xf32>,
    %c0_19 = arith.constant 0 : index
    %c0_20 = arith.constant 0 : index
    %14 = vector.load %arg5[%c0_19, %c0_20] : memref<1024x32xf32, #tpu.memory_space<vmem>>, vector<1024x32xf32>
    %c0_21 = arith.constant 0 : index
    %c2 = arith.constant 2 : index
    %c0_22 = arith.constant 0 : index
    %c0_23 = arith.constant 0 : index
    %15 = vector.load %arg1[%c0_21, %c2, %c0_22, %c0_23] : memref<1x36x32x15xbf16, #tpu.memory_space<vmem>>, vector<1x32x32x15xbf16>
    %16 = vector.shape_cast %15 : vector<1x32x32x15xbf16> to vector<1024x15xbf16>
    %c2_24 = arith.constant 2 : index
    %c0_25 = arith.constant 0 : index
    %c0_26 = arith.constant 0 : index
    %17 = vector.load %arg2[%c2_24, %c0_25, %c0_26] : memref<5x15x32xbf16, #tpu.memory_space<vmem>>, vector<1x15x32xbf16>
    %18 = vector.shape_cast %17 : vector<1x15x32xbf16> to vector<15x32xbf16>
    %cst_27 = arith.constant dense<0.000000e+00> : vector<1024x32xf32>
    %19 = tpu.matmul %16, %18, %cst_27 {dimension_numbers = #tpu.dot_dimension_numbers<[1], [0], [0], [1], [0, 0, 1, 1], [], []>} : vector<1024x15xbf16>, vector<15x32xbf16>, vector<1024x32xf32> -> vector<1024x32xf32>
    %20 = arith.addf %14, %19 : vector<1024x32xf32>
    %c0_28 = arith.constant 0 : index
    %c0_29 = arith.constant 0 : index
    %21 = vector.load %arg5[%c0_28, %c0_29] : memref<1024x32xf32, #tpu.memory_space<vmem>>, vector<1024x32xf32>
    tpu.vector_store %arg5[%c0_28, %c0_29], %20 {strides = array<i32>} : memref<1024x32xf32, #tpu.memory_space<vmem>>, vector<1024x32xf32>,
    %c0_30 = arith.constant 0 : index
    %c0_31 = arith.constant 0 : index
    %22 = vector.load %arg5[%c0_30, %c0_31] : memref<1024x32xf32, #tpu.memory_space<vmem>>, vector<1024x32xf32>
    %c0_32 = arith.constant 0 : index
    %c3 = arith.constant 3 : index
    %c0_33 = arith.constant 0 : index
    %c0_34 = arith.constant 0 : index
    %23 = vector.load %arg1[%c0_32, %c3, %c0_33, %c0_34] : memref<1x36x32x15xbf16, #tpu.memory_space<vmem>>, vector<1x32x32x15xbf16>
    %24 = vector.shape_cast %23 : vector<1x32x32x15xbf16> to vector<1024x15xbf16>
    %c3_35 = arith.constant 3 : index
    %c0_36 = arith.constant 0 : index
    %c0_37 = arith.constant 0 : index
    %25 = vector.load %arg2[%c3_35, %c0_36, %c0_37] : memref<5x15x32xbf16, #tpu.memory_space<vmem>>, vector<1x15x32xbf16>
    %26 = vector.shape_cast %25 : vector<1x15x32xbf16> to vector<15x32xbf16>
    %cst_38 = arith.constant dense<0.000000e+00> : vector<1024x32xf32>
    %27 = tpu.matmul %24, %26, %cst_38 {dimension_numbers = #tpu.dot_dimension_numbers<[1], [0], [0], [1], [0, 0, 1, 1], [], []>} : vector<1024x15xbf16>, vector<15x32xbf16>, vector<1024x32xf32> -> vector<1024x32xf32>
    %28 = arith.addf %22, %27 : vector<1024x32xf32>
    %c0_39 = arith.constant 0 : index
    %c0_40 = arith.constant 0 : index
    %29 = vector.load %arg5[%c0_39, %c0_40] : memref<1024x32xf32, #tpu.memory_space<vmem>>, vector<1024x32xf32>
    tpu.vector_store %arg5[%c0_39, %c0_40], %28 {strides = array<i32>} : memref<1024x32xf32, #tpu.memory_space<vmem>>, vector<1024x32xf32>,
    %c0_41 = arith.constant 0 : index
    %c0_42 = arith.constant 0 : index
    %30 = vector.load %arg5[%c0_41, %c0_42] : memref<1024x32xf32, #tpu.memory_space<vmem>>, vector<1024x32xf32>
    %c0_43 = arith.constant 0 : index
    %c4 = arith.constant 4 : index
    %c0_44 = arith.constant 0 : index
    %c0_45 = arith.constant 0 : index
    %31 = vector.load %arg1[%c0_43, %c4, %c0_44, %c0_45] : memref<1x36x32x15xbf16, #tpu.memory_space<vmem>>, vector<1x32x32x15xbf16>
    %32 = vector.shape_cast %31 : vector<1x32x32x15xbf16> to vector<1024x15xbf16>
    %c4_46 = arith.constant 4 : index
    %c0_47 = arith.constant 0 : index
    %c0_48 = arith.constant 0 : index
    %33 = vector.load %arg2[%c4_46, %c0_47, %c0_48] : memref<5x15x32xbf16, #tpu.memory_space<vmem>>, vector<1x15x32xbf16>
    %34 = vector.shape_cast %33 : vector<1x15x32xbf16> to vector<15x32xbf16>
    %cst_49 = arith.constant dense<0.000000e+00> : vector<1024x32xf32>
    %35 = tpu.matmul %32, %34, %cst_49 {dimension_numbers = #tpu.dot_dimension_numbers<[1], [0], [0], [1], [0, 0, 1, 1], [], []>} : vector<1024x15xbf16>, vector<15x32xbf16>, vector<1024x32xf32> -> vector<1024x32xf32>
    %36 = arith.addf %30, %35 : vector<1024x32xf32>
    %c0_50 = arith.constant 0 : index
    %c0_51 = arith.constant 0 : index
    %37 = vector.load %arg5[%c0_50, %c0_51] : memref<1024x32xf32, #tpu.memory_space<vmem>>, vector<1024x32xf32>
    tpu.vector_store %arg5[%c0_50, %c0_51], %36 {strides = array<i32>} : memref<1024x32xf32, #tpu.memory_space<vmem>>, vector<1024x32xf32>,
    %c0_52 = arith.constant 0 : index
    %c0_53 = arith.constant 0 : index
    %38 = vector.load %arg5[%c0_52, %c0_53] : memref<1024x32xf32, #tpu.memory_space<vmem>>, vector<1024x32xf32>
    %39 = vector.shape_cast %38 : vector<1024x32xf32> to vector<16x2x32x32xf32>
    %40 = vector.extract_strided_slice %39 {offsets = [0, 0, 0, 0], sizes = [16, 1, 32, 32], strides = [1, 1, 1, 1]} : vector<16x2x32x32xf32> to vector<16x1x32x32xf32>
    %41 = vector.shape_cast %40 : vector<16x1x32x32xf32> to vector<16x32x32xf32>
    %42 = vector.extract_strided_slice %39 {offsets = [0, 1, 0, 0], sizes = [16, 1, 32, 32], strides = [1, 1, 1, 1]} : vector<16x2x32x32xf32> to vector<16x1x32x32xf32>
    %43 = vector.shape_cast %42 : vector<16x1x32x32xf32> to vector<16x32x32xf32>
    %44 = arith.maximumf %41, %43 : vector<16x32x32xf32>
    %45 = vector.shape_cast %44 : vector<16x32x32xf32> to vector<512x32xf32>
    %c0_54 = arith.constant 0 : index
    %c0_55 = arith.constant 0 : index
    %46 = vector.load %arg5[%c0_54, %c0_55] : memref<1024x32xf32, #tpu.memory_space<vmem>>, vector<512x32xf32>
    tpu.vector_store %arg5[%c0_54, %c0_55], %45 {strides = array<i32>} : memref<1024x32xf32, #tpu.memory_space<vmem>>, vector<512x32xf32>,
    %c0_56 = arith.constant 0 : index
    %c0_57 = arith.constant 0 : index
    %47 = tpu.strided_load %arg5[%c0_56, %c0_57] {strides = array<i32: 2, 1>} : memref<1024x32xf32, #tpu.memory_space<vmem>>, vector<256x32xf32>
    %c1_58 = arith.constant 1 : index
    %c0_59 = arith.constant 0 : index
    %48 = tpu.strided_load %arg5[%c1_58, %c0_59] {strides = array<i32: 2, 1>} : memref<1024x32xf32, #tpu.memory_space<vmem>>, vector<256x32xf32>
    %49 = arith.maximumf %47, %48 : vector<256x32xf32>
    %c0_60 = arith.constant 0 : index
    %c0_61 = arith.constant 0 : index
    %50 = vector.load %arg3[%c0_60, %c0_61] : memref<1x32xf32, #tpu.memory_space<vmem>>, vector<1x32xf32>
    %51 = vector.broadcast %50 : vector<1x32xf32> to vector<256x32xf32>
    %52 = arith.addf %49, %51 : vector<256x32xf32>
    %c0_62 = arith.constant 0 : index
    %c0_63 = arith.constant 0 : index
    %53 = vector.load %arg4[%c0_62, %c0_63] : memref<256x32xf32, #tpu.memory_space<vmem>>, vector<256x32xf32>
    tpu.vector_store %arg4[%c0_62, %c0_63], %52 {strides = array<i32>} : memref<256x32xf32, #tpu.memory_space<vmem>>, vector<256x32xf32>,
    return
  }
  func.func @transform_0(%arg0: i32) -> (i32, i32, i32, i32) {
    %c0_i32 = arith.constant 0 : i32
    %c0_i32_0 = arith.constant 0 : i32
    %c0_i32_1 = arith.constant 0 : i32
    %c0_i32_2 = arith.constant 0 : i32
    return %arg0, %c0_i32, %c0_i32_0, %c0_i32_1 : i32, i32, i32, i32
  }
  func.func @transform_1(%arg0: i32) -> (i32, i32, i32) {
    %c0_i32 = arith.constant 0 : i32
    %c0_i32_0 = arith.constant 0 : i32
    %c0_i32_1 = arith.constant 0 : i32
    %c0_i32_2 = arith.constant 0 : i32
    return %c0_i32, %c0_i32_0, %c0_i32_1 : i32, i32, i32
  }
  func.func @transform_2(%arg0: i32) -> (i32, i32) {
    %c0_i32 = arith.constant 0 : i32
    %c0_i32_0 = arith.constant 0 : i32
    %c0_i32_1 = arith.constant 0 : i32
    return %c0_i32, %c0_i32_0 : i32, i32
  }
  func.func @transform_3(%arg0: i32) -> (i32, i32) {
    %c0_i32 = arith.constant 0 : i32
    %c0_i32_0 = arith.constant 0 : i32
    return %arg0, %c0_i32 : i32, i32
  }
}

module attributes {stable_mosaic.version = 11 : i64} {
  func.func @_conv5x5_pool_kernel(%arg0: i32, %arg1: memref<1x20x16x160xbf16, #tpu.memory_space<vmem>>, %arg2: memref<5x160x32xbf16, #tpu.memory_space<vmem>>, %arg3: memref<1x32xf32, #tpu.memory_space<vmem>>, %arg4: memref<64x32xf32, #tpu.memory_space<vmem>>, %arg5: memref<256x32xf32, #tpu.memory_space<vmem>>) attributes {dimension_semantics = [#tpu.dimension_semantics<parallel>], iteration_bounds = array<i64: 2>, scalar_prefetch = 0 : i64, scratch_operands = 1 : i64, tpu.core_type = #tpu.core_type<tc>, window_params = [{transform_indices = @transform_0, window_bounds = array<i64: 1, 20, 16, 160>}, {pipeline_mode = #tpu.pipeline_mode<synchronous>, transform_indices = @transform_1, window_bounds = array<i64: 5, 160, 32>}, {pipeline_mode = #tpu.pipeline_mode<synchronous>, transform_indices = @transform_2, window_bounds = array<i64: 1, 32>}, {transform_indices = @transform_3, window_bounds = array<i64: 64, 32>}]} {
    %c0 = arith.constant 0 : index
    %c0_0 = arith.constant 0 : index
    %c0_1 = arith.constant 0 : index
    %c0_2 = arith.constant 0 : index
    %0 = vector.load %arg1[%c0, %c0_0, %c0_1, %c0_2] : memref<1x20x16x160xbf16, #tpu.memory_space<vmem>>, vector<1x16x16x160xbf16>
    %1 = vector.shape_cast %0 : vector<1x16x16x160xbf16> to vector<256x160xbf16>
    %c0_3 = arith.constant 0 : index
    %c0_4 = arith.constant 0 : index
    %c0_5 = arith.constant 0 : index
    %2 = vector.load %arg2[%c0_3, %c0_4, %c0_5] : memref<5x160x32xbf16, #tpu.memory_space<vmem>>, vector<1x160x32xbf16>
    %3 = vector.shape_cast %2 : vector<1x160x32xbf16> to vector<160x32xbf16>
    %cst = arith.constant dense<0.000000e+00> : vector<256x32xf32>
    %4 = tpu.matmul %1, %3, %cst {dimension_numbers = #tpu.dot_dimension_numbers<[1], [0], [0], [1], [0, 0, 1, 1], [], []>} : vector<256x160xbf16>, vector<160x32xbf16>, vector<256x32xf32> -> vector<256x32xf32>
    %c0_6 = arith.constant 0 : index
    %c0_7 = arith.constant 0 : index
    %5 = vector.load %arg5[%c0_6, %c0_7] : memref<256x32xf32, #tpu.memory_space<vmem>>, vector<256x32xf32>
    tpu.vector_store %arg5[%c0_6, %c0_7], %4 {strides = array<i32>} : memref<256x32xf32, #tpu.memory_space<vmem>>, vector<256x32xf32>,
    %c0_8 = arith.constant 0 : index
    %c0_9 = arith.constant 0 : index
    %6 = vector.load %arg5[%c0_8, %c0_9] : memref<256x32xf32, #tpu.memory_space<vmem>>, vector<256x32xf32>
    %c0_10 = arith.constant 0 : index
    %c1 = arith.constant 1 : index
    %c0_11 = arith.constant 0 : index
    %c0_12 = arith.constant 0 : index
    %7 = vector.load %arg1[%c0_10, %c1, %c0_11, %c0_12] : memref<1x20x16x160xbf16, #tpu.memory_space<vmem>>, vector<1x16x16x160xbf16>
    %8 = vector.shape_cast %7 : vector<1x16x16x160xbf16> to vector<256x160xbf16>
    %c1_13 = arith.constant 1 : index
    %c0_14 = arith.constant 0 : index
    %c0_15 = arith.constant 0 : index
    %9 = vector.load %arg2[%c1_13, %c0_14, %c0_15] : memref<5x160x32xbf16, #tpu.memory_space<vmem>>, vector<1x160x32xbf16>
    %10 = vector.shape_cast %9 : vector<1x160x32xbf16> to vector<160x32xbf16>
    %cst_16 = arith.constant dense<0.000000e+00> : vector<256x32xf32>
    %11 = tpu.matmul %8, %10, %cst_16 {dimension_numbers = #tpu.dot_dimension_numbers<[1], [0], [0], [1], [0, 0, 1, 1], [], []>} : vector<256x160xbf16>, vector<160x32xbf16>, vector<256x32xf32> -> vector<256x32xf32>
    %12 = arith.addf %6, %11 : vector<256x32xf32>
    %c0_17 = arith.constant 0 : index
    %c0_18 = arith.constant 0 : index
    %13 = vector.load %arg5[%c0_17, %c0_18] : memref<256x32xf32, #tpu.memory_space<vmem>>, vector<256x32xf32>
    tpu.vector_store %arg5[%c0_17, %c0_18], %12 {strides = array<i32>} : memref<256x32xf32, #tpu.memory_space<vmem>>, vector<256x32xf32>,
    %c0_19 = arith.constant 0 : index
    %c0_20 = arith.constant 0 : index
    %14 = vector.load %arg5[%c0_19, %c0_20] : memref<256x32xf32, #tpu.memory_space<vmem>>, vector<256x32xf32>
    %c0_21 = arith.constant 0 : index
    %c2 = arith.constant 2 : index
    %c0_22 = arith.constant 0 : index
    %c0_23 = arith.constant 0 : index
    %15 = vector.load %arg1[%c0_21, %c2, %c0_22, %c0_23] : memref<1x20x16x160xbf16, #tpu.memory_space<vmem>>, vector<1x16x16x160xbf16>
    %16 = vector.shape_cast %15 : vector<1x16x16x160xbf16> to vector<256x160xbf16>
    %c2_24 = arith.constant 2 : index
    %c0_25 = arith.constant 0 : index
    %c0_26 = arith.constant 0 : index
    %17 = vector.load %arg2[%c2_24, %c0_25, %c0_26] : memref<5x160x32xbf16, #tpu.memory_space<vmem>>, vector<1x160x32xbf16>
    %18 = vector.shape_cast %17 : vector<1x160x32xbf16> to vector<160x32xbf16>
    %cst_27 = arith.constant dense<0.000000e+00> : vector<256x32xf32>
    %19 = tpu.matmul %16, %18, %cst_27 {dimension_numbers = #tpu.dot_dimension_numbers<[1], [0], [0], [1], [0, 0, 1, 1], [], []>} : vector<256x160xbf16>, vector<160x32xbf16>, vector<256x32xf32> -> vector<256x32xf32>
    %20 = arith.addf %14, %19 : vector<256x32xf32>
    %c0_28 = arith.constant 0 : index
    %c0_29 = arith.constant 0 : index
    %21 = vector.load %arg5[%c0_28, %c0_29] : memref<256x32xf32, #tpu.memory_space<vmem>>, vector<256x32xf32>
    tpu.vector_store %arg5[%c0_28, %c0_29], %20 {strides = array<i32>} : memref<256x32xf32, #tpu.memory_space<vmem>>, vector<256x32xf32>,
    %c0_30 = arith.constant 0 : index
    %c0_31 = arith.constant 0 : index
    %22 = vector.load %arg5[%c0_30, %c0_31] : memref<256x32xf32, #tpu.memory_space<vmem>>, vector<256x32xf32>
    %c0_32 = arith.constant 0 : index
    %c3 = arith.constant 3 : index
    %c0_33 = arith.constant 0 : index
    %c0_34 = arith.constant 0 : index
    %23 = vector.load %arg1[%c0_32, %c3, %c0_33, %c0_34] : memref<1x20x16x160xbf16, #tpu.memory_space<vmem>>, vector<1x16x16x160xbf16>
    %24 = vector.shape_cast %23 : vector<1x16x16x160xbf16> to vector<256x160xbf16>
    %c3_35 = arith.constant 3 : index
    %c0_36 = arith.constant 0 : index
    %c0_37 = arith.constant 0 : index
    %25 = vector.load %arg2[%c3_35, %c0_36, %c0_37] : memref<5x160x32xbf16, #tpu.memory_space<vmem>>, vector<1x160x32xbf16>
    %26 = vector.shape_cast %25 : vector<1x160x32xbf16> to vector<160x32xbf16>
    %cst_38 = arith.constant dense<0.000000e+00> : vector<256x32xf32>
    %27 = tpu.matmul %24, %26, %cst_38 {dimension_numbers = #tpu.dot_dimension_numbers<[1], [0], [0], [1], [0, 0, 1, 1], [], []>} : vector<256x160xbf16>, vector<160x32xbf16>, vector<256x32xf32> -> vector<256x32xf32>
    %28 = arith.addf %22, %27 : vector<256x32xf32>
    %c0_39 = arith.constant 0 : index
    %c0_40 = arith.constant 0 : index
    %29 = vector.load %arg5[%c0_39, %c0_40] : memref<256x32xf32, #tpu.memory_space<vmem>>, vector<256x32xf32>
    tpu.vector_store %arg5[%c0_39, %c0_40], %28 {strides = array<i32>} : memref<256x32xf32, #tpu.memory_space<vmem>>, vector<256x32xf32>,
    %c0_41 = arith.constant 0 : index
    %c0_42 = arith.constant 0 : index
    %30 = vector.load %arg5[%c0_41, %c0_42] : memref<256x32xf32, #tpu.memory_space<vmem>>, vector<256x32xf32>
    %c0_43 = arith.constant 0 : index
    %c4 = arith.constant 4 : index
    %c0_44 = arith.constant 0 : index
    %c0_45 = arith.constant 0 : index
    %31 = vector.load %arg1[%c0_43, %c4, %c0_44, %c0_45] : memref<1x20x16x160xbf16, #tpu.memory_space<vmem>>, vector<1x16x16x160xbf16>
    %32 = vector.shape_cast %31 : vector<1x16x16x160xbf16> to vector<256x160xbf16>
    %c4_46 = arith.constant 4 : index
    %c0_47 = arith.constant 0 : index
    %c0_48 = arith.constant 0 : index
    %33 = vector.load %arg2[%c4_46, %c0_47, %c0_48] : memref<5x160x32xbf16, #tpu.memory_space<vmem>>, vector<1x160x32xbf16>
    %34 = vector.shape_cast %33 : vector<1x160x32xbf16> to vector<160x32xbf16>
    %cst_49 = arith.constant dense<0.000000e+00> : vector<256x32xf32>
    %35 = tpu.matmul %32, %34, %cst_49 {dimension_numbers = #tpu.dot_dimension_numbers<[1], [0], [0], [1], [0, 0, 1, 1], [], []>} : vector<256x160xbf16>, vector<160x32xbf16>, vector<256x32xf32> -> vector<256x32xf32>
    %36 = arith.addf %30, %35 : vector<256x32xf32>
    %c0_50 = arith.constant 0 : index
    %c0_51 = arith.constant 0 : index
    %37 = vector.load %arg5[%c0_50, %c0_51] : memref<256x32xf32, #tpu.memory_space<vmem>>, vector<256x32xf32>
    tpu.vector_store %arg5[%c0_50, %c0_51], %36 {strides = array<i32>} : memref<256x32xf32, #tpu.memory_space<vmem>>, vector<256x32xf32>,
    %c0_52 = arith.constant 0 : index
    %c0_53 = arith.constant 0 : index
    %38 = vector.load %arg5[%c0_52, %c0_53] : memref<256x32xf32, #tpu.memory_space<vmem>>, vector<256x32xf32>
    %39 = vector.shape_cast %38 : vector<256x32xf32> to vector<8x2x16x32xf32>
    %40 = vector.extract_strided_slice %39 {offsets = [0, 0, 0, 0], sizes = [8, 1, 16, 32], strides = [1, 1, 1, 1]} : vector<8x2x16x32xf32> to vector<8x1x16x32xf32>
    %41 = vector.shape_cast %40 : vector<8x1x16x32xf32> to vector<8x16x32xf32>
    %42 = vector.extract_strided_slice %39 {offsets = [0, 1, 0, 0], sizes = [8, 1, 16, 32], strides = [1, 1, 1, 1]} : vector<8x2x16x32xf32> to vector<8x1x16x32xf32>
    %43 = vector.shape_cast %42 : vector<8x1x16x32xf32> to vector<8x16x32xf32>
    %44 = arith.maximumf %41, %43 : vector<8x16x32xf32>
    %45 = vector.shape_cast %44 : vector<8x16x32xf32> to vector<128x32xf32>
    %c0_54 = arith.constant 0 : index
    %c0_55 = arith.constant 0 : index
    %46 = vector.load %arg5[%c0_54, %c0_55] : memref<256x32xf32, #tpu.memory_space<vmem>>, vector<128x32xf32>
    tpu.vector_store %arg5[%c0_54, %c0_55], %45 {strides = array<i32>} : memref<256x32xf32, #tpu.memory_space<vmem>>, vector<128x32xf32>,
    %c0_56 = arith.constant 0 : index
    %c0_57 = arith.constant 0 : index
    %47 = tpu.strided_load %arg5[%c0_56, %c0_57] {strides = array<i32: 2, 1>} : memref<256x32xf32, #tpu.memory_space<vmem>>, vector<64x32xf32>
    %c1_58 = arith.constant 1 : index
    %c0_59 = arith.constant 0 : index
    %48 = tpu.strided_load %arg5[%c1_58, %c0_59] {strides = array<i32: 2, 1>} : memref<256x32xf32, #tpu.memory_space<vmem>>, vector<64x32xf32>
    %49 = arith.maximumf %47, %48 : vector<64x32xf32>
    %c0_60 = arith.constant 0 : index
    %c0_61 = arith.constant 0 : index
    %50 = vector.load %arg3[%c0_60, %c0_61] : memref<1x32xf32, #tpu.memory_space<vmem>>, vector<1x32xf32>
    %51 = vector.broadcast %50 : vector<1x32xf32> to vector<64x32xf32>
    %52 = arith.addf %49, %51 : vector<64x32xf32>
    %c0_62 = arith.constant 0 : index
    %c0_63 = arith.constant 0 : index
    %53 = vector.load %arg4[%c0_62, %c0_63] : memref<64x32xf32, #tpu.memory_space<vmem>>, vector<64x32xf32>
    tpu.vector_store %arg4[%c0_62, %c0_63], %52 {strides = array<i32>} : memref<64x32xf32, #tpu.memory_space<vmem>>, vector<64x32xf32>,
    return
  }
  func.func @transform_0(%arg0: i32) -> (i32, i32, i32, i32) {
    %c0_i32 = arith.constant 0 : i32
    %c0_i32_0 = arith.constant 0 : i32
    %c0_i32_1 = arith.constant 0 : i32
    %c0_i32_2 = arith.constant 0 : i32
    return %arg0, %c0_i32, %c0_i32_0, %c0_i32_1 : i32, i32, i32, i32
  }
  func.func @transform_1(%arg0: i32) -> (i32, i32, i32) {
    %c0_i32 = arith.constant 0 : i32
    %c0_i32_0 = arith.constant 0 : i32
    %c0_i32_1 = arith.constant 0 : i32
    %c0_i32_2 = arith.constant 0 : i32
    return %c0_i32, %c0_i32_0, %c0_i32_1 : i32, i32, i32
  }
  func.func @transform_2(%arg0: i32) -> (i32, i32) {
    %c0_i32 = arith.constant 0 : i32
    %c0_i32_0 = arith.constant 0 : i32
    %c0_i32_1 = arith.constant 0 : i32
    return %c0_i32, %c0_i32_0 : i32, i32
  }
  func.func @transform_3(%arg0: i32) -> (i32, i32) {
    %c0_i32 = arith.constant 0 : i32
    %c0_i32_0 = arith.constant 0 : i32
    return %arg0, %c0_i32 : i32, i32
  }
}

module attributes {stable_mosaic.version = 11 : i64} {
  func.func @_conv5x5_pool_kernel(%arg0: i32, %arg1: memref<1x12x8x160xbf16, #tpu.memory_space<vmem>>, %arg2: memref<5x160x64xbf16, #tpu.memory_space<vmem>>, %arg3: memref<1x64xf32, #tpu.memory_space<vmem>>, %arg4: memref<16x64xf32, #tpu.memory_space<vmem>>, %arg5: memref<64x64xf32, #tpu.memory_space<vmem>>) attributes {dimension_semantics = [#tpu.dimension_semantics<parallel>], iteration_bounds = array<i64: 2>, scalar_prefetch = 0 : i64, scratch_operands = 1 : i64, tpu.core_type = #tpu.core_type<tc>, window_params = [{transform_indices = @transform_0, window_bounds = array<i64: 1, 12, 8, 160>}, {pipeline_mode = #tpu.pipeline_mode<synchronous>, transform_indices = @transform_1, window_bounds = array<i64: 5, 160, 64>}, {pipeline_mode = #tpu.pipeline_mode<synchronous>, transform_indices = @transform_2, window_bounds = array<i64: 1, 64>}, {transform_indices = @transform_3, window_bounds = array<i64: 16, 64>}]} {
    %c0 = arith.constant 0 : index
    %c0_0 = arith.constant 0 : index
    %c0_1 = arith.constant 0 : index
    %c0_2 = arith.constant 0 : index
    %0 = vector.load %arg1[%c0, %c0_0, %c0_1, %c0_2] : memref<1x12x8x160xbf16, #tpu.memory_space<vmem>>, vector<1x8x8x160xbf16>
    %1 = vector.shape_cast %0 : vector<1x8x8x160xbf16> to vector<64x160xbf16>
    %c0_3 = arith.constant 0 : index
    %c0_4 = arith.constant 0 : index
    %c0_5 = arith.constant 0 : index
    %2 = vector.load %arg2[%c0_3, %c0_4, %c0_5] : memref<5x160x64xbf16, #tpu.memory_space<vmem>>, vector<1x160x64xbf16>
    %3 = vector.shape_cast %2 : vector<1x160x64xbf16> to vector<160x64xbf16>
    %cst = arith.constant dense<0.000000e+00> : vector<64x64xf32>
    %4 = tpu.matmul %1, %3, %cst {dimension_numbers = #tpu.dot_dimension_numbers<[1], [0], [0], [1], [0, 0, 1, 1], [], []>} : vector<64x160xbf16>, vector<160x64xbf16>, vector<64x64xf32> -> vector<64x64xf32>
    %c0_6 = arith.constant 0 : index
    %c0_7 = arith.constant 0 : index
    %5 = vector.load %arg5[%c0_6, %c0_7] : memref<64x64xf32, #tpu.memory_space<vmem>>, vector<64x64xf32>
    tpu.vector_store %arg5[%c0_6, %c0_7], %4 {strides = array<i32>} : memref<64x64xf32, #tpu.memory_space<vmem>>, vector<64x64xf32>,
    %c0_8 = arith.constant 0 : index
    %c0_9 = arith.constant 0 : index
    %6 = vector.load %arg5[%c0_8, %c0_9] : memref<64x64xf32, #tpu.memory_space<vmem>>, vector<64x64xf32>
    %c0_10 = arith.constant 0 : index
    %c1 = arith.constant 1 : index
    %c0_11 = arith.constant 0 : index
    %c0_12 = arith.constant 0 : index
    %7 = vector.load %arg1[%c0_10, %c1, %c0_11, %c0_12] : memref<1x12x8x160xbf16, #tpu.memory_space<vmem>>, vector<1x8x8x160xbf16>
    %8 = vector.shape_cast %7 : vector<1x8x8x160xbf16> to vector<64x160xbf16>
    %c1_13 = arith.constant 1 : index
    %c0_14 = arith.constant 0 : index
    %c0_15 = arith.constant 0 : index
    %9 = vector.load %arg2[%c1_13, %c0_14, %c0_15] : memref<5x160x64xbf16, #tpu.memory_space<vmem>>, vector<1x160x64xbf16>
    %10 = vector.shape_cast %9 : vector<1x160x64xbf16> to vector<160x64xbf16>
    %cst_16 = arith.constant dense<0.000000e+00> : vector<64x64xf32>
    %11 = tpu.matmul %8, %10, %cst_16 {dimension_numbers = #tpu.dot_dimension_numbers<[1], [0], [0], [1], [0, 0, 1, 1], [], []>} : vector<64x160xbf16>, vector<160x64xbf16>, vector<64x64xf32> -> vector<64x64xf32>
    %12 = arith.addf %6, %11 : vector<64x64xf32>
    %c0_17 = arith.constant 0 : index
    %c0_18 = arith.constant 0 : index
    %13 = vector.load %arg5[%c0_17, %c0_18] : memref<64x64xf32, #tpu.memory_space<vmem>>, vector<64x64xf32>
    tpu.vector_store %arg5[%c0_17, %c0_18], %12 {strides = array<i32>} : memref<64x64xf32, #tpu.memory_space<vmem>>, vector<64x64xf32>,
    %c0_19 = arith.constant 0 : index
    %c0_20 = arith.constant 0 : index
    %14 = vector.load %arg5[%c0_19, %c0_20] : memref<64x64xf32, #tpu.memory_space<vmem>>, vector<64x64xf32>
    %c0_21 = arith.constant 0 : index
    %c2 = arith.constant 2 : index
    %c0_22 = arith.constant 0 : index
    %c0_23 = arith.constant 0 : index
    %15 = vector.load %arg1[%c0_21, %c2, %c0_22, %c0_23] : memref<1x12x8x160xbf16, #tpu.memory_space<vmem>>, vector<1x8x8x160xbf16>
    %16 = vector.shape_cast %15 : vector<1x8x8x160xbf16> to vector<64x160xbf16>
    %c2_24 = arith.constant 2 : index
    %c0_25 = arith.constant 0 : index
    %c0_26 = arith.constant 0 : index
    %17 = vector.load %arg2[%c2_24, %c0_25, %c0_26] : memref<5x160x64xbf16, #tpu.memory_space<vmem>>, vector<1x160x64xbf16>
    %18 = vector.shape_cast %17 : vector<1x160x64xbf16> to vector<160x64xbf16>
    %cst_27 = arith.constant dense<0.000000e+00> : vector<64x64xf32>
    %19 = tpu.matmul %16, %18, %cst_27 {dimension_numbers = #tpu.dot_dimension_numbers<[1], [0], [0], [1], [0, 0, 1, 1], [], []>} : vector<64x160xbf16>, vector<160x64xbf16>, vector<64x64xf32> -> vector<64x64xf32>
    %20 = arith.addf %14, %19 : vector<64x64xf32>
    %c0_28 = arith.constant 0 : index
    %c0_29 = arith.constant 0 : index
    %21 = vector.load %arg5[%c0_28, %c0_29] : memref<64x64xf32, #tpu.memory_space<vmem>>, vector<64x64xf32>
    tpu.vector_store %arg5[%c0_28, %c0_29], %20 {strides = array<i32>} : memref<64x64xf32, #tpu.memory_space<vmem>>, vector<64x64xf32>,
    %c0_30 = arith.constant 0 : index
    %c0_31 = arith.constant 0 : index
    %22 = vector.load %arg5[%c0_30, %c0_31] : memref<64x64xf32, #tpu.memory_space<vmem>>, vector<64x64xf32>
    %c0_32 = arith.constant 0 : index
    %c3 = arith.constant 3 : index
    %c0_33 = arith.constant 0 : index
    %c0_34 = arith.constant 0 : index
    %23 = vector.load %arg1[%c0_32, %c3, %c0_33, %c0_34] : memref<1x12x8x160xbf16, #tpu.memory_space<vmem>>, vector<1x8x8x160xbf16>
    %24 = vector.shape_cast %23 : vector<1x8x8x160xbf16> to vector<64x160xbf16>
    %c3_35 = arith.constant 3 : index
    %c0_36 = arith.constant 0 : index
    %c0_37 = arith.constant 0 : index
    %25 = vector.load %arg2[%c3_35, %c0_36, %c0_37] : memref<5x160x64xbf16, #tpu.memory_space<vmem>>, vector<1x160x64xbf16>
    %26 = vector.shape_cast %25 : vector<1x160x64xbf16> to vector<160x64xbf16>
    %cst_38 = arith.constant dense<0.000000e+00> : vector<64x64xf32>
    %27 = tpu.matmul %24, %26, %cst_38 {dimension_numbers = #tpu.dot_dimension_numbers<[1], [0], [0], [1], [0, 0, 1, 1], [], []>} : vector<64x160xbf16>, vector<160x64xbf16>, vector<64x64xf32> -> vector<64x64xf32>
    %28 = arith.addf %22, %27 : vector<64x64xf32>
    %c0_39 = arith.constant 0 : index
    %c0_40 = arith.constant 0 : index
    %29 = vector.load %arg5[%c0_39, %c0_40] : memref<64x64xf32, #tpu.memory_space<vmem>>, vector<64x64xf32>
    tpu.vector_store %arg5[%c0_39, %c0_40], %28 {strides = array<i32>} : memref<64x64xf32, #tpu.memory_space<vmem>>, vector<64x64xf32>,
    %c0_41 = arith.constant 0 : index
    %c0_42 = arith.constant 0 : index
    %30 = vector.load %arg5[%c0_41, %c0_42] : memref<64x64xf32, #tpu.memory_space<vmem>>, vector<64x64xf32>
    %c0_43 = arith.constant 0 : index
    %c4 = arith.constant 4 : index
    %c0_44 = arith.constant 0 : index
    %c0_45 = arith.constant 0 : index
    %31 = vector.load %arg1[%c0_43, %c4, %c0_44, %c0_45] : memref<1x12x8x160xbf16, #tpu.memory_space<vmem>>, vector<1x8x8x160xbf16>
    %32 = vector.shape_cast %31 : vector<1x8x8x160xbf16> to vector<64x160xbf16>
    %c4_46 = arith.constant 4 : index
    %c0_47 = arith.constant 0 : index
    %c0_48 = arith.constant 0 : index
    %33 = vector.load %arg2[%c4_46, %c0_47, %c0_48] : memref<5x160x64xbf16, #tpu.memory_space<vmem>>, vector<1x160x64xbf16>
    %34 = vector.shape_cast %33 : vector<1x160x64xbf16> to vector<160x64xbf16>
    %cst_49 = arith.constant dense<0.000000e+00> : vector<64x64xf32>
    %35 = tpu.matmul %32, %34, %cst_49 {dimension_numbers = #tpu.dot_dimension_numbers<[1], [0], [0], [1], [0, 0, 1, 1], [], []>} : vector<64x160xbf16>, vector<160x64xbf16>, vector<64x64xf32> -> vector<64x64xf32>
    %36 = arith.addf %30, %35 : vector<64x64xf32>
    %c0_50 = arith.constant 0 : index
    %c0_51 = arith.constant 0 : index
    %37 = vector.load %arg5[%c0_50, %c0_51] : memref<64x64xf32, #tpu.memory_space<vmem>>, vector<64x64xf32>
    tpu.vector_store %arg5[%c0_50, %c0_51], %36 {strides = array<i32>} : memref<64x64xf32, #tpu.memory_space<vmem>>, vector<64x64xf32>,
    %c0_52 = arith.constant 0 : index
    %c0_53 = arith.constant 0 : index
    %38 = vector.load %arg5[%c0_52, %c0_53] : memref<64x64xf32, #tpu.memory_space<vmem>>, vector<64x64xf32>
    %39 = vector.shape_cast %38 : vector<64x64xf32> to vector<4x2x8x64xf32>
    %40 = vector.extract_strided_slice %39 {offsets = [0, 0, 0, 0], sizes = [4, 1, 8, 64], strides = [1, 1, 1, 1]} : vector<4x2x8x64xf32> to vector<4x1x8x64xf32>
    %41 = vector.shape_cast %40 : vector<4x1x8x64xf32> to vector<4x8x64xf32>
    %42 = vector.extract_strided_slice %39 {offsets = [0, 1, 0, 0], sizes = [4, 1, 8, 64], strides = [1, 1, 1, 1]} : vector<4x2x8x64xf32> to vector<4x1x8x64xf32>
    %43 = vector.shape_cast %42 : vector<4x1x8x64xf32> to vector<4x8x64xf32>
    %44 = arith.maximumf %41, %43 : vector<4x8x64xf32>
    %45 = vector.shape_cast %44 : vector<4x8x64xf32> to vector<32x64xf32>
    %c0_54 = arith.constant 0 : index
    %c0_55 = arith.constant 0 : index
    %46 = vector.load %arg5[%c0_54, %c0_55] : memref<64x64xf32, #tpu.memory_space<vmem>>, vector<32x64xf32>
    tpu.vector_store %arg5[%c0_54, %c0_55], %45 {strides = array<i32>} : memref<64x64xf32, #tpu.memory_space<vmem>>, vector<32x64xf32>,
    %c0_56 = arith.constant 0 : index
    %c0_57 = arith.constant 0 : index
    %47 = tpu.strided_load %arg5[%c0_56, %c0_57] {strides = array<i32: 2, 1>} : memref<64x64xf32, #tpu.memory_space<vmem>>, vector<16x64xf32>
    %c1_58 = arith.constant 1 : index
    %c0_59 = arith.constant 0 : index
    %48 = tpu.strided_load %arg5[%c1_58, %c0_59] {strides = array<i32: 2, 1>} : memref<64x64xf32, #tpu.memory_space<vmem>>, vector<16x64xf32>
    %49 = arith.maximumf %47, %48 : vector<16x64xf32>
    %c0_60 = arith.constant 0 : index
    %c0_61 = arith.constant 0 : index
    %50 = vector.load %arg3[%c0_60, %c0_61] : memref<1x64xf32, #tpu.memory_space<vmem>>, vector<1x64xf32>
    %51 = vector.broadcast %50 : vector<1x64xf32> to vector<16x64xf32>
    %52 = arith.addf %49, %51 : vector<16x64xf32>
    %c0_62 = arith.constant 0 : index
    %c0_63 = arith.constant 0 : index
    %53 = vector.load %arg4[%c0_62, %c0_63] : memref<16x64xf32, #tpu.memory_space<vmem>>, vector<16x64xf32>
    tpu.vector_store %arg4[%c0_62, %c0_63], %52 {strides = array<i32>} : memref<16x64xf32, #tpu.memory_space<vmem>>, vector<16x64xf32>,
    return
  }
  func.func @transform_0(%arg0: i32) -> (i32, i32, i32, i32) {
    %c0_i32 = arith.constant 0 : i32
    %c0_i32_0 = arith.constant 0 : i32
    %c0_i32_1 = arith.constant 0 : i32
    %c0_i32_2 = arith.constant 0 : i32
    return %arg0, %c0_i32, %c0_i32_0, %c0_i32_1 : i32, i32, i32, i32
  }
  func.func @transform_1(%arg0: i32) -> (i32, i32, i32) {
    %c0_i32 = arith.constant 0 : i32
    %c0_i32_0 = arith.constant 0 : i32
    %c0_i32_1 = arith.constant 0 : i32
    %c0_i32_2 = arith.constant 0 : i32
    return %c0_i32, %c0_i32_0, %c0_i32_1 : i32, i32, i32
  }
  func.func @transform_2(%arg0: i32) -> (i32, i32) {
    %c0_i32 = arith.constant 0 : i32
    %c0_i32_0 = arith.constant 0 : i32
    %c0_i32_1 = arith.constant 0 : i32
    return %c0_i32, %c0_i32_0 : i32, i32
  }
  func.func @transform_3(%arg0: i32) -> (i32, i32) {
    %c0_i32 = arith.constant 0 : i32
    %c0_i32_0 = arith.constant 0 : i32
    return %arg0, %c0_i32 : i32, i32
  }
}

module attributes {stable_mosaic.version = 11 : i64} {
  func.func @_mlp_head_kernel(%arg0: i32, %arg1: memref<2x1024xbf16, #tpu.memory_space<vmem>>, %arg2: memref<1024x64xbf16, #tpu.memory_space<vmem>>, %arg3: memref<1x64xf32, #tpu.memory_space<vmem>>, %arg4: memref<64x10xbf16, #tpu.memory_space<vmem>>, %arg5: memref<1x10xf32, #tpu.memory_space<vmem>>, %arg6: memref<2x10xf32, #tpu.memory_space<vmem>>) attributes {dimension_semantics = [#tpu.dimension_semantics<parallel>], iteration_bounds = array<i64: 1>, scalar_prefetch = 0 : i64, scratch_operands = 0 : i64, tpu.core_type = #tpu.core_type<tc>, window_params = [{transform_indices = @transform_0, window_bounds = array<i64: 2, 1024>}, {pipeline_mode = #tpu.pipeline_mode<synchronous>, transform_indices = @transform_1, window_bounds = array<i64: 1024, 64>}, {pipeline_mode = #tpu.pipeline_mode<synchronous>, transform_indices = @transform_2, window_bounds = array<i64: 1, 64>}, {pipeline_mode = #tpu.pipeline_mode<synchronous>, transform_indices = @transform_3, window_bounds = array<i64: 64, 10>}, {pipeline_mode = #tpu.pipeline_mode<synchronous>, transform_indices = @transform_4, window_bounds = array<i64: 1, 10>}, {transform_indices = @transform_5, window_bounds = array<i64: 2, 10>}]} {
    %c0 = arith.constant 0 : index
    %c0_0 = arith.constant 0 : index
    %0 = vector.load %arg1[%c0, %c0_0] : memref<2x1024xbf16, #tpu.memory_space<vmem>>, vector<2x1024xbf16>
    %c0_1 = arith.constant 0 : index
    %c0_2 = arith.constant 0 : index
    %1 = vector.load %arg2[%c0_1, %c0_2] : memref<1024x64xbf16, #tpu.memory_space<vmem>>, vector<1024x64xbf16>
    %cst = arith.constant dense<0.000000e+00> : vector<2x64xf32>
    %2 = tpu.matmul %0, %1, %cst {dimension_numbers = #tpu.dot_dimension_numbers<[1], [0], [0], [1], [0, 0, 1, 1], [], []>} : vector<2x1024xbf16>, vector<1024x64xbf16>, vector<2x64xf32> -> vector<2x64xf32>
    %c0_3 = arith.constant 0 : index
    %c0_4 = arith.constant 0 : index
    %3 = vector.load %arg3[%c0_3, %c0_4] : memref<1x64xf32, #tpu.memory_space<vmem>>, vector<1x64xf32>
    %4 = vector.broadcast %3 : vector<1x64xf32> to vector<2x64xf32>
    %5 = arith.addf %2, %4 : vector<2x64xf32>
    %6 = arith.truncf %5 : vector<2x64xf32> to vector<2x64xbf16>
    %c0_5 = arith.constant 0 : index
    %c0_6 = arith.constant 0 : index
    %7 = vector.load %arg4[%c0_5, %c0_6] : memref<64x10xbf16, #tpu.memory_space<vmem>>, vector<64x10xbf16>
    %cst_7 = arith.constant dense<0.000000e+00> : vector<2x10xf32>
    %8 = tpu.matmul %6, %7, %cst_7 {dimension_numbers = #tpu.dot_dimension_numbers<[1], [0], [0], [1], [0, 0, 1, 1], [], []>} : vector<2x64xbf16>, vector<64x10xbf16>, vector<2x10xf32> -> vector<2x10xf32>
    %c0_8 = arith.constant 0 : index
    %c0_9 = arith.constant 0 : index
    %9 = vector.load %arg5[%c0_8, %c0_9] : memref<1x10xf32, #tpu.memory_space<vmem>>, vector<1x10xf32>
    %10 = vector.broadcast %9 : vector<1x10xf32> to vector<2x10xf32>
    %11 = arith.addf %8, %10 : vector<2x10xf32>
    %c0_10 = arith.constant 0 : index
    %c0_11 = arith.constant 0 : index
    %12 = vector.load %arg6[%c0_10, %c0_11] : memref<2x10xf32, #tpu.memory_space<vmem>>, vector<2x10xf32>
    tpu.vector_store %arg6[%c0_10, %c0_11], %11 {strides = array<i32>} : memref<2x10xf32, #tpu.memory_space<vmem>>, vector<2x10xf32>,
    return
  }
  func.func @transform_0(%arg0: i32) -> (i32, i32) {
    %c0_i32 = arith.constant 0 : i32
    %c0_i32_0 = arith.constant 0 : i32
    return %arg0, %c0_i32 : i32, i32
  }
  func.func @transform_1(%arg0: i32) -> (i32, i32) {
    %c0_i32 = arith.constant 0 : i32
    %c0_i32_0 = arith.constant 0 : i32
    %c0_i32_1 = arith.constant 0 : i32
    return %c0_i32, %c0_i32_0 : i32, i32
  }
  func.func @transform_2(%arg0: i32) -> (i32, i32) {
    %c0_i32 = arith.constant 0 : i32
    %c0_i32_0 = arith.constant 0 : i32
    %c0_i32_1 = arith.constant 0 : i32
    return %c0_i32, %c0_i32_0 : i32, i32
  }
  func.func @transform_3(%arg0: i32) -> (i32, i32) {
    %c0_i32 = arith.constant 0 : i32
    %c0_i32_0 = arith.constant 0 : i32
    %c0_i32_1 = arith.constant 0 : i32
    return %c0_i32, %c0_i32_0 : i32, i32
  }
  func.func @transform_4(%arg0: i32) -> (i32, i32) {
    %c0_i32 = arith.constant 0 : i32
    %c0_i32_0 = arith.constant 0 : i32
    %c0_i32_1 = arith.constant 0 : i32
    return %c0_i32, %c0_i32_0 : i32, i32
  }
  func.func @transform_5(%arg0: i32) -> (i32, i32) {
    %c0_i32 = arith.constant 0 : i32
    %c0_i32_0 = arith.constant 0 : i32
    return %arg0, %c0_i32 : i32, i32
  }
}

</mosaic_0001>

<bundles_post_ra>
// kernel: forward.5
= control target key start
LH: loop header
LB: loop body
LE: loop exit
PB: predicated region body
PF: predicated region fallthrough
CT: control target
= control target key end

     0   :  { %s3797_s12 = smov 0   ;;  %s4572_s0 = inlined_call_operand.vmem [shape: bf16[2,20,16,160], index: 0, kind: input, shape index: {}]   ;;  %s4573_s1 = inlined_call_operand.vmem [shape: bf16[5,160,32], index: 1, kind: input, shape index: {}]   ;;  %s4574_s2 = inlined_call_operand.vmem [shape: f32[1,32], index: 2, kind: input, shape index: {}]   ;;  %s4575_s3 = inlined_call_operand.vmem [shape: f32[128,32], index: 3, kind: output, shape index: {}]  }
   0x1 LB: > { %s3803_s13 = sadd.s32 4294967295, %s3774_s12   ;;  %p3109_p0 = scmp.ge.s32.totalorder %s3774_s12, 1  ;;  %s3774_s12 = sphi %s3797_s12, %s13_s12  }
   0x2   : > { %p137_p1 = scmp.lt.s32.totalorder %s3774_s12, 3 }
   0x4   : > { %p138_p2 = pnand %p3109_p0, %p137_p1 }
   0x5   : > { %p161_p3 = scmp.lt.s32.totalorder (!%p138_p2), %s3803_s13, 1 }
   0x6   : > { %141 = sbr.rel (%p138_p2) target bundleno = 597 (0x255), region = 32 }
   0xb   : > { %v3644_v0 = vld [vmem:[%s4573_s1 + $0x38] sm:$0xff]   ;;  %v3776_v1 = vmov 0   ;;  %v3645_v2 = vld [vmem:[%s4573_s1 + $0x30] sm:$0xff]   ;;  %s162_s18 = scalar_select %p161_p3, %s3803_s13, 1  ;;  %v3646_v3 = vld [vmem:[%s4573_s1 + $0x28] sm:$0xff]   ;;  %vm429_vm0 = vcmask 261120  }
   0xc   : > { %3614 = vmatprep.subr.bf16.mxu1 %v3776_v1  ;;  %478 = vmatprep.subr.bf16.mxu0 %v3776_v1  ;;  %v3647_v4 = vld [vmem:[%s4573_s1 + $0x20] sm:$0xff]   ;;  %v3648_v7 = vld [vmem:[%s4573_s1 + $0x18] sm:$0xff]   ;;  %v3649_v8 = vld [vmem:[%s4573_s1 + $0x10] sm:$0xff]  }
   0xd   : > { %3624 = vmatpush1.bf16.msra.mxu1 %v3644_v0  ;;  %479 = vmatpush1.bf16.msra.mxu0 %v3644_v0  ;;  %s3634_s19 = smul.u32 320, %s162_s18  ;;  %v3650_v9 = vld [vmem:[%s4573_s1 + $0x8] sm:$0xff]   ;;  %v3651_v10 = vld [vmem:[%s4573_s1] sm:$0xff]   ;;  %v3665_v17 = vld [vmem:[%s4573_s1 + $0xd8] sm:$0xff]  }
   0xe   : > { %3615 = vmatprep.subr.bf16.mxu1 %v3776_v1  ;;  %480 = vmatprep.subr.bf16.mxu0 %v3776_v1  ;;  %v3652_v11 = vld [vmem:[%s4573_s1 + $0x48] sm:$0xff]   ;;  %v3653_v12 = vld [vmem:[%s4573_s1 + $0x40] sm:$0xff]   ;;  %v3673_v20 = vld [vmem:[%s4573_s1 + $0xd0] sm:$0xff]  }
   0xf   : > { %s3827_s24 = scalar_lea.vmem %s4572_s0, %s3634_s19  ;;  %v3657_v15 = vld [vmem:[%s4573_s1 + $0x88] sm:$0xff]   ;;  %v3664_v19 = vld [vmem:[%s4573_s1 + $0x80] sm:$0xff]   ;;  %v3669_v23 = vld [vmem:[%s4573_s1 + $0x78] sm:$0xff]  }
  0x10   : > { %v3835_v5 = vld [vmem:[%s3827_s24 + $0x84] ss:$8 sps:$4 sm:$0xff]   ;;  %v3872_v13 = vld [vmem:[%s3827_s24 + $0x80] ss:$8 sps:$4 sm:$0xff]   ;;  %v3879_v16 = vld [vmem:[%s3827_s24 + $0x94] ss:$8 sps:$4 sm:$0xff]  }
  0x11   : > { %3625 = vmatpush1.bf16.msra.mxu1 %v3645_v2  ;;  %481 = vmatpush1.bf16.msra.mxu0 %v3645_v2  ;;  %v3660_v6 = vld [vmem:[%s3827_s24 + $0x4] ss:$8 sps:$4 sm:$0xff]   ;;  %v3658_v14 = vld [vmem:[%s3827_s24] ss:$8 sps:$4 sm:$0xff]   ;;  %v3887_v18 = vld [vmem:[%s3827_s24 + $0x14] ss:$8 sps:$4 sm:$0xff]  }
  0x12   : > { %3616 = vmatprep.subr.bf16.mxu1 %v3776_v1  ;;  %482 = vmatprep.subr.bf16.mxu0 %v3776_v1  ;;  %v3900_v21 = vld [vmem:[%s3827_s24 + $0x90] ss:$8 sps:$4 sm:$0xff]   ;;  %v3912_v24 = vld [vmem:[%s3827_s24 + $0xa4] ss:$8 sps:$4 sm:$0xff]   ;;  %v3930_v28 = vld [vmem:[%s3827_s24 + $0xa0] ss:$8 sps:$4 sm:$0xff]  }
  0x13   : > { %3163 = vmatprep.mubr.msk.bf16.mxu1 %vm429_vm0, %v3835_v5  ;;  %3155 = vmatprep.mubr.msk.bf16.mxu0 %vm429_vm0, %v3660_v6  ;;  %v3906_v22 = vld [vmem:[%s3827_s24 + $0x10] ss:$8 sps:$4 sm:$0xff]   ;;  %v3916_v25 = vld [vmem:[%s3827_s24 + $0x24] ss:$8 sps:$4 sm:$0xff]   ;;  %v3936_v29 = vld [vmem:[%s3827_s24 + $0x20] ss:$8 sps:$4 sm:$0xff]  }
  0x14   : > { %v3681_v26 = vld [vmem:[%s4573_s1 + $0xc8] sm:$0xff]   ;;  %v3677_v27 = vld [vmem:[%s4573_s1 + $0x70] sm:$0xff]   ;;  %v3688_v30 = vld [vmem:[%s4573_s1 + $0xc0] sm:$0xff]  }
  0x15   : > { %3626 = vmatpush1.bf16.msra.mxu1 %v3646_v3  ;;  %483 = vmatpush1.bf16.msra.mxu0 %v3646_v3  ;;  %v3942_v31 = vld [vmem:[%s3827_s24 + $0xb4] ss:$8 sps:$4 sm:$0xff]   ;;  %v3682_v32 = vld [vmem:[%s4573_s1 + $0x68] sm:$0xff]   ;;  %v3690_v35 = vld [vmem:[%s4573_s1 + $0x60] sm:$0xff]  }
  0x16   : > { %3617 = vmatprep.subr.bf16.mxu1 %v3776_v1  ;;  %484 = vmatprep.subr.bf16.mxu0 %v3776_v1  ;;  %v3950_v33 = vld [vmem:[%s3827_s24 + $0x34] ss:$8 sps:$4 sm:$0xff]   ;;  %v3963_v36 = vld [vmem:[%s3827_s24 + $0xb0] ss:$8 sps:$4 sm:$0xff]   ;;  %v3972_v38 = vld [vmem:[%s3827_s24 + $0xc4] ss:$8 sps:$4 sm:$0xff]  }
  0x17   : > { %v3694_v34 = vld [vmem:[%s4573_s1 + $0xb8] sm:$0xff]   ;;  %v3976_v39 = vld [vmem:[%s3827_s24 + $0x44] ss:$8 sps:$4 sm:$0xff]   ;;  %v3699_v41 = vld [vmem:[%s4573_s1 + $0xb0] sm:$0xff]  }
  0x18   : > { %v3968_v37 = vld [vmem:[%s3827_s24 + $0x30] ss:$8 sps:$4 sm:$0xff]   ;;  %v3707_v43 = vld [vmem:[%s4573_s1 + $0xa8] sm:$0xff]   ;;  %v4005_v46 = vld [vmem:[%s3827_s24 + $0xd4] ss:$8 sps:$4 sm:$0xff]  }
  0x19   : > { %3627 = vmatpush1.bf16.msra.mxu1 %v3647_v4  ;;  %485 = vmatpush1.bf16.msra.mxu0 %v3647_v4  ;;  %v3698_v40 = vld [vmem:[%s4573_s1 + $0x58] sm:$0xff]   ;;  %v3703_v42 = vld [vmem:[%s4573_s1 + $0x50] sm:$0xff]   ;;  %v3999_v44 = vld [vmem:[%s3827_s24 + $0xc0] ss:$8 sps:$4 sm:$0xff]  }
  0x1a   : > { %3618 = vmatprep.subr.bf16.mxu1 %v3776_v1  ;;  %486 = vmatprep.subr.bf16.mxu0 %v3776_v1  ;;  %v4002_v45 = vld [vmem:[%s3827_s24 + $0x40] ss:$8 sps:$4 sm:$0xff]   ;;  %v4008_v47 = vld [vmem:[%s3827_s24 + $0x54] ss:$8 sps:$4 sm:$0xff]   ;;  %v4035_v52 = vld [vmem:[%s3827_s24 + $0xd0] ss:$8 sps:$4 sm:$0xff]  }
  0x1b   : > { %v3711_v48 = vld [vmem:[%s4573_s1 + $0x98] sm:$0xff]   ;;  %v3715_v49 = vld [vmem:[%s4573_s1 + $0xa0] sm:$0xff]   ;;  %v3716_v50 = vld [vmem:[%s4573_s1 + $0x90] sm:$0xff]  }
  0x1c   : > { %v3720_v51 = vld [vmem:[%s4573_s1 + $0xe8] sm:$0xff]   ;;  %v4038_v53 = vld [vmem:[%s3827_s24 + $0x50] ss:$8 sps:$4 sm:$0xff]   ;;  %v3722_v56 = vld [vmem:[%s4573_s1 + $0xe0] sm:$0xff]  }
  0x1d   : > { %3628 = vmatpush1.bf16.msra.mxu1 %v3648_v7  ;;  %487 = vmatpush1.bf16.msra.mxu0 %v3648_v7  ;;  %v4041_v54 = vld [vmem:[%s3827_s24 + $0xe4] ss:$8 sps:$4 sm:$0xff]   ;;  %v4059_v57 = vld [vmem:[%s3827_s24 + $0xe0] ss:$8 sps:$4 sm:$0xff]   ;;  %v4065_v59 = vld [vmem:[%s3827_s24 + $0xf4] ss:$8 sps:$4 sm:$0xff]  }
  0x1e   : > { %3619 = vmatprep.subr.bf16.mxu1 %v3776_v1  ;;  %488 = vmatprep.subr.bf16.mxu0 %v3776_v1  ;;  %v4044_v55 = vld [vmem:[%s3827_s24 + $0x64] ss:$8 sps:$4 sm:$0xff]   ;;  %v4062_v58 = vld [vmem:[%s3827_s24 + $0x60] ss:$8 sps:$4 sm:$0xff]   ;;  %v4068_v60 = vld [vmem:[%s3827_s24 + $0x74] ss:$8 sps:$4 sm:$0xff]  }
  0x1f   : > { %v4077_v61 = vld [vmem:[%s3827_s24 + $0xf0] ss:$8 sps:$4 sm:$0xff]   ;;  %v3721_v63 = vld [vmem:[%s4573_s1 + $0x128] sm:$0xff]   ;;  %v3724_v2 = vld [vmem:[%s4573_s1 + $0x120] sm:$0xff]  }
  0x20   : > { %v4080_v62 = vld [vmem:[%s3827_s24 + $0x70] ss:$8 sps:$4 sm:$0xff]   ;;  %v3727_v6 = vld [vmem:[%s4573_s1 + $0x168] sm:$0xff]  }
  0x21   : > { %3629 = vmatpush1.bf16.msra.mxu1 %v3649_v8  ;;  %489 = vmatpush1.bf16.msra.mxu0 %v3649_v8  ;;  %v3723_v0 = vld [vmem:[%s4573_s1 + $0x178] sm:$0xff]   ;;  %v3725_v3 = vld [vmem:[%s4573_s1 + $0x170] sm:$0xff]   ;;  %v3729_v8 = vld [vmem:[%s4573_s1 + $0x160] sm:$0xff]  }
  0x22   : > { %3620 = vmatprep.subr.bf16.mxu1 %v3776_v1  ;;  %490 = vmatprep.subr.bf16.mxu0 %v3776_v1  ;;  %v3726_v4 = vld [vmem:[%s4573_s1 + $0x118] sm:$0xff]   ;;  %v3728_v7 = vld [vmem:[%s4573_s1 + $0x110] sm:$0xff]  }
  0x25   : > { %3630 = vmatpush1.bf16.msra.mxu1 %v3650_v9  ;;  %491 = vmatpush1.bf16.msra.mxu0 %v3650_v9  ;;  %v3730_v9 = vld [vmem:[%s4573_s1 + $0x108] sm:$0xff]  }
  0x26   : > { %3621 = vmatprep.subr.bf16.mxu1 %v3776_v1  ;;  %492 = vmatprep.subr.bf16.mxu0 %v3776_v1 }
  0x29   : > { %3631 = vmatpush1.bf16.msra.mxu1 %v3651_v10  ;;  %493 = vmatpush1.bf16.msra.mxu0 %v3651_v10  ;;  %v3731_v10 = vld [vmem:[%s4573_s1 + $0x158] sm:$0xff]  }
  0x2a   : > { %3622 = vmatprep.subr.bf16.mxu1 %v3776_v1  ;;  %506 = vmatprep.subr.bf16.mxu0 %v3776_v1 }
  0x2d   : > { %3632 = vmatpush2.bf16.msra.mxu1 %v3652_v11  ;;  %507 = vmatpush2.bf16.msra.mxu0 %v3652_v11  ;;  %v3732_v11 = vld [vmem:[%s4573_s1 + $0x100] sm:$0xff]  }
  0x2e   : > { %3623 = vmatprep.subr.bf16.mxu1 %v3776_v1  ;;  %508 = vmatprep.subr.bf16.mxu0 %v3776_v1 }
  0x31   : > { %3633 = vmatpush2.bf16.msra.mxu1 %v3653_v12  ;;  %509 = vmatpush2.bf16.msra.mxu0 %v3653_v12  ;;  %v3733_v12 = vld [vmem:[%s4573_s1 + $0x150] sm:$0xff]  }
  0x32   : > { %1009 = vmatprep.subr.bf16.mxu1 %v3776_v1  ;;  %1572 = vmatprep.subr.bf16.mxu0 %v3776_v1 }
  0x34   : > { %575 = vmatmul.mubr.bf16.vlgmr.msra.gmra.mxu1 %v3872_v13  ;;  %511 = vmatmul.mubr.bf16.vlgmr.msra.gmra.mxu0 %v3658_v14  ;;  %v3734_v14 = vld [vmem:[%s4573_s1 + $0xf8] sm:$0xff]  }
  0x35   : > { %1010 = vmatpush1.bf16.msra.mxu1 %v3657_v15  ;;  %3164 = vmatprep.mubr.msk.bf16.mxu1 %vm429_vm0, %v3879_v16  ;;  %v3735_v15 = vld [vmem:[%s4573_s1 + $0x148] sm:$0xff]  }
  0x36   : > { %1011 = vmatprep.subr.bf16.mxu1 %v3776_v1  ;;  %1573 = vmatpush1.bf16.msra.mxu0 %v3665_v17  ;;  %v3736_v17 = vld [vmem:[%s4573_s1 + $0xf0] sm:$0xff]  }
  0x37   : > { %3156 = vmatprep.mubr.msk.bf16.mxu0 %vm429_vm0, %v3887_v18  ;;  %1574 = vmatprep.subr.bf16.mxu0 %v3776_v1 }
  0x39   : > { %1012 = vmatpush1.bf16.msra.mxu1 %v3664_v19  ;;  %v3738_v19 = vld [vmem:[%s4573_s1 + $0x138] sm:$0xff]  }
  0x3a   : > { %1013 = vmatprep.subr.bf16.mxu1 %v3776_v1  ;;  %1575 = vmatpush1.bf16.msra.mxu0 %v3673_v20  ;;  %v3739_v20 = vld [vmem:[%s4573_s1 + $0x188] sm:$0xff]  }
  0x3b   : > { %1576 = vmatprep.subr.bf16.mxu0 %v3776_v1 }
  0x3c   : > { %583 = vmatmul.mubr.bf16.gmra.mxu1 %v3900_v21  ;;  %519 = vmatmul.mubr.bf16.gmra.mxu0 %v3906_v22 }
  0x3d   : > { %1014 = vmatpush1.bf16.msra.mxu1 %v3669_v23  ;;  %3165 = vmatprep.mubr.msk.bf16.mxu1 %vm429_vm0, %v3912_v24  ;;  %v3747_v23 = vld [vmem:[%s4573_s1 + $0x180] sm:$0xff]  }
  0x3e   : > { %3157 = vmatprep.mubr.msk.bf16.mxu0 %vm429_vm0, %v3916_v25  ;;  %1015 = vmatprep.subr.bf16.mxu1 %v3776_v1 }
  0x3f   : > { %1577 = vmatpush1.bf16.msra.mxu0 %v3681_v26 }
  0x40   : > { %1578 = vmatprep.subr.bf16.mxu0 %v3776_v1 }
  0x41   : > { %1016 = vmatpush1.bf16.msra.mxu1 %v3677_v27 }
  0x42   : > { %1017 = vmatprep.subr.bf16.mxu1 %v3776_v1 }
  0x43   : > { %1579 = vmatpush1.bf16.msra.mxu0 %v3688_v30 }
  0x44   : > { %591 = vmatmul.mubr.bf16.gmra.mxu1 %v3930_v28  ;;  %527 = vmatmul.mubr.bf16.gmra.mxu0 %v3936_v29 }
  0x45   : > { %3166 = vmatprep.mubr.msk.bf16.mxu1 %vm429_vm0, %v3942_v31  ;;  %1018 = vmatpush1.bf16.msra.mxu1 %v3682_v32 }
  0x46   : > { %3158 = vmatprep.mubr.msk.bf16.mxu0 %vm429_vm0, %v3950_v33  ;;  %1019 = vmatprep.subr.bf16.mxu1 %v3776_v1 }
  0x47   : > { %1580 = vmatprep.subr.bf16.mxu0 %v3776_v1 }
  0x48   : > { %1581 = vmatpush1.bf16.msra.mxu0 %v3694_v34 }
  0x49   : > { %1020 = vmatpush1.bf16.msra.mxu1 %v3690_v35  ;;  %1582 = vmatprep.subr.bf16.mxu0 %v3776_v1 }
  0x4a   : > { %1021 = vmatprep.subr.bf16.mxu1 %v3776_v1 }
  0x4c   : > { %599 = vmatmul.mubr.bf16.gmra.mxu1 %v3963_v36  ;;  %535 = vmatmul.mubr.bf16.gmra.mxu0 %v3968_v37 }
  0x4d   : > { %3167 = vmatprep.mubr.msk.bf16.mxu1 %vm429_vm0, %v3972_v38  ;;  %3159 = vmatprep.mubr.msk.bf16.mxu0 %vm429_vm0, %v3976_v39 }
  0x4e   : > { %1022 = vmatpush1.bf16.msra.mxu1 %v3698_v40  ;;  %1583 = vmatpush1.bf16.msra.mxu0 %v3699_v41 }
  0x4f   : > { %1023 = vmatprep.subr.bf16.mxu1 %v3776_v1  ;;  %1584 = vmatprep.subr.bf16.mxu0 %v3776_v1 }
  0x52   : > { %1024 = vmatpush1.bf16.msra.mxu1 %v3703_v42  ;;  %1585 = vmatpush1.bf16.msra.mxu0 %v3707_v43 }
  0x53   : > { %1037 = vmatprep.subr.bf16.mxu1 %v3776_v1  ;;  %1586 = vmatprep.subr.bf16.mxu0 %v3776_v1 }
  0x54   : > { %607 = vmatmul.mubr.bf16.gmra.mxu1 %v3999_v44  ;;  %543 = vmatmul.mubr.bf16.gmra.mxu0 %v4002_v45 }
  0x55   : > { %3168 = vmatprep.mubr.msk.bf16.mxu1 %vm429_vm0, %v4005_v46  ;;  %3160 = vmatprep.mubr.msk.bf16.mxu0 %vm429_vm0, %v4008_v47 }
  0x56   : > { %1038 = vmatpush2.bf16.msra.mxu1 %v3711_v48  ;;  %1587 = vmatpush1.bf16.msra.mxu0 %v3715_v49 }
  0x57   : > { %1039 = vmatprep.subr.bf16.mxu1 %v3776_v1  ;;  %1600 = vmatprep.subr.bf16.mxu0 %v3776_v1 }
  0x5a   : > { %1040 = vmatpush2.bf16.msra.mxu1 %v3716_v50  ;;  %1601 = vmatpush2.bf16.msra.mxu0 %v3720_v51  ;;  %v3509_v50 = vld [vmem:[%s3827_s24 + $0x80] sm:$0xff]  ;;  %v3510_v51 = vld [vmem:[%s3827_s24 + $0x88] sm:$0xff] }
  0x5b   : > { %2135 = vmatprep.subr.bf16.mxu1 %v3776_v1  ;;  %1602 = vmatprep.subr.bf16.mxu0 %v3776_v1 }
  0x5c   : > { %615 = vmatmul.mubr.bf16.gmra.mxu1 %v4035_v52  ;;  %551 = vmatmul.mubr.bf16.gmra.mxu0 %v4038_v53 }
  0x5d   : > { %3169 = vmatprep.mubr.msk.bf16.mxu1 %vm429_vm0, %v4041_v54  ;;  %3161 = vmatprep.mubr.msk.bf16.mxu0 %vm429_vm0, %v4044_v55 }
  0x5e   : > { %1603 = vmatpush2.bf16.msra.mxu0 %v3722_v56  ;;  %v3561_v56 = vcombine.low %v3509_v50, %v3510_v51 }
  0x5f   : > { %2698 = vmatprep.subr.bf16.mxu0 %v3776_v1 }
  0x64   : > { %623 = vmatmul.mubr.bf16.gmra.mxu1 %v4059_v57  ;;  %559 = vmatmul.mubr.bf16.gmra.mxu0 %v4062_v58 }
  0x65   : > { %3170 = vmatprep.mubr.msk.bf16.mxu1 %vm429_vm0, %v4065_v59  ;;  %3162 = vmatprep.mubr.msk.bf16.mxu0 %vm429_vm0, %v4068_v60 }
  0x6c   : > { %631 = vmatmul.mubr.bf16.gmra.mxu1 %v4077_v61  ;;  %567 = vmatmul.mubr.bf16.gmra.mxu0 %v4080_v62 }
  0x6d   : > { %3265 = vmatprep.mubr.msk.bf16.mxu1 %vm429_vm0, %v3887_v18  ;;  %3375 = vmatprep.mubr.msk.bf16.mxu0 %vm429_vm0, %v3916_v25  ;;  %v3737_v18 = vld [vmem:[%s4573_s1 + $0x140] sm:$0xff]  }
  0x74   : > { %1042 = vmatmul.mubr.bf16.vlgmr.msra.gmra.mxu1 %v3906_v22  ;;  %1605 = vmatmul.mubr.bf16.vlgmr.msra.gmra.mxu0 %v3936_v29  ;;  %v3743_v22 = vld [vmem:[%s4573_s1 + $0x130] sm:$0xff]  }
  0x75   : > { %2136 = vmatpush1.bf16.msra.mxu1 %v3721_v63  ;;  %3266 = vmatprep.mubr.msk.bf16.mxu1 %vm429_vm0, %v3916_v25  ;;  %v3511_v63 = vld [vmem:[%s3827_s24 + $0x90] sm:$0xff] }
  0x76   : > { %2699 = vmatpush1.bf16.msra.mxu0 %v3723_v0  ;;  %3376 = vmatprep.mubr.msk.bf16.mxu0 %vm429_vm0, %v3950_v33  ;;  %v3512_v0 = vld [vmem:[%s3827_s24 + $0x98] sm:$0xff] }
  0x77   : > { %2137 = vmatprep.subr.bf16.mxu1 %v3776_v1  ;;  %2700 = vmatprep.subr.bf16.mxu0 %v3776_v1 }
  0x79   : > { %2138 = vmatpush1.bf16.msra.mxu1 %v3724_v2 }
  0x7a   : > { %2701 = vmatpush1.bf16.msra.mxu0 %v3725_v3  ;;  %2139 = vmatprep.subr.bf16.mxu1 %v3776_v1 }
  0x7b   : > { %2702 = vmatprep.subr.bf16.mxu0 %v3776_v1 }
  0x7c   : > { %1050 = vmatmul.mubr.bf16.gmra.mxu1 %v3936_v29  ;;  %1613 = vmatmul.mubr.bf16.gmra.mxu0 %v3968_v37 }
  0x7d   : > { %3267 = vmatprep.mubr.msk.bf16.mxu1 %vm429_vm0, %v3950_v33  ;;  %3377 = vmatprep.mubr.msk.bf16.mxu0 %vm429_vm0, %v3976_v39 }
  0x7e   : > { %2140 = vmatpush1.bf16.msra.mxu1 %v3726_v4  ;;  %2703 = vmatpush1.bf16.msra.mxu0 %v3727_v6 }
  0x7f   : > { %2141 = vmatprep.subr.bf16.mxu1 %v3776_v1  ;;  %2704 = vmatprep.subr.bf16.mxu0 %v3776_v1 }
  0x82   : > { %2142 = vmatpush1.bf16.msra.mxu1 %v3728_v7  ;;  %2705 = vmatpush1.bf16.msra.mxu0 %v3729_v8  ;;  %v3752_v7 = vld [vmem:[%s3827_s24 + $0xa4] ss:$8 sps:$4 sm:$0xff]  }
  0x83   : > { %2143 = vmatprep.subr.bf16.mxu1 %v3776_v1  ;;  %2706 = vmatprep.subr.bf16.mxu0 %v3776_v1 }
  0x84   : > { %1058 = vmatmul.mubr.bf16.gmra.mxu1 %v3968_v37  ;;  %1621 = vmatmul.mubr.bf16.gmra.mxu0 %v4002_v45 }
  0x85   : > { %3268 = vmatprep.mubr.msk.bf16.mxu1 %vm429_vm0, %v3976_v39  ;;  %3378 = vmatprep.mubr.msk.bf16.mxu0 %vm429_vm0, %v4008_v47 }
  0x86   : > { %2144 = vmatpush1.bf16.msra.mxu1 %v3730_v9  ;;  %2707 = vmatpush1.bf16.msra.mxu0 %v3731_v10 }
  0x87   : > { %2145 = vmatprep.subr.bf16.mxu1 %v3776_v1  ;;  %2708 = vmatprep.subr.bf16.mxu0 %v3776_v1 }
  0x8a   : > { %2146 = vmatpush1.bf16.msra.mxu1 %v3732_v11  ;;  %2709 = vmatpush1.bf16.msra.mxu0 %v3733_v12  ;;  %v3513_v12 = vld [vmem:[%s3827_s24 + $0xa0] sm:$0xff] }
  0x8b   : > { %2147 = vmatprep.subr.bf16.mxu1 %v3776_v1  ;;  %2710 = vmatprep.subr.bf16.mxu0 %v3776_v1 }
  0x8c   : > { %1066 = vmatmul.mubr.bf16.gmra.mxu1 %v4002_v45  ;;  %1629 = vmatmul.mubr.bf16.gmra.mxu0 %v4038_v53 }
  0x8d   : > { %3269 = vmatprep.mubr.msk.bf16.mxu1 %vm429_vm0, %v4008_v47  ;;  %3379 = vmatprep.mubr.msk.bf16.mxu0 %vm429_vm0, %v4044_v55 }
  0x8e   : > { %2148 = vmatpush1.bf16.msra.mxu1 %v3734_v14  ;;  %2711 = vmatpush1.bf16.msra.mxu0 %v3735_v15  ;;  %v3514_v14 = vld [vmem:[%s3827_s24 + $0xa8] sm:$0xff] }
  0x8f   : > { %2149 = vmatprep.subr.bf16.mxu1 %v3776_v1  ;;  %2712 = vmatprep.subr.bf16.mxu0 %v3776_v1 }
  0x92   : > { %2150 = vmatpush1.bf16.msra.mxu1 %v3736_v17  ;;  %2713 = vmatpush1.bf16.msra.mxu0 %v3737_v18 }
  0x93   : > { %2163 = vmatprep.subr.bf16.mxu1 %v3776_v1  ;;  %2726 = vmatprep.subr.bf16.mxu0 %v3776_v1 }
  0x94   : > { %1074 = vmatmul.mubr.bf16.gmra.mxu1 %v4038_v53  ;;  %1637 = vmatmul.mubr.bf16.gmra.mxu0 %v4062_v58 }
  0x95   : > { %3270 = vmatprep.mubr.msk.bf16.mxu1 %vm429_vm0, %v4044_v55  ;;  %3380 = vmatprep.mubr.msk.bf16.mxu0 %vm429_vm0, %v4068_v60 }
  0x96   : > { %2164 = vmatpush2.bf16.msra.mxu1 %v3738_v19  ;;  %2727 = vmatpush2.bf16.msra.mxu0 %v3739_v20  ;;  %v3565_v20 = vcombine.low %v3513_v12, %v3514_v14 }
  0x97   : > { %2165 = vmatprep.subr.bf16.mxu1 %v3776_v1  ;;  %2728 = vmatprep.subr.bf16.mxu0 %v3776_v1  ;;  %v4245_v1 = vld [vmem:[%s3827_s24 + $0x104] ss:$8 sps:$4 sm:$0xff]  }
  0x9a   : > { %2166 = vmatpush2.bf16.msra.mxu1 %v3743_v22  ;;  %2729 = vmatpush2.bf16.msra.mxu0 %v3747_v23  ;;  %v3754_v22 = vld [vmem:[%s3827_s24 + $0xb4] ss:$8 sps:$4 sm:$0xff]  }
  0x9c   : > { %1082 = vmatmul.mubr.bf16.gmra.mxu1 %v4062_v58  ;;  %1645 = vmatmul.mubr.bf16.gmra.mxu0 %v4080_v62 }
  0x9d   : > { %3271 = vmatprep.mubr.msk.bf16.mxu1 %vm429_vm0, %v4068_v60  ;;  %3381 = vmatprep.mubr.msk.bf16.mxu0 %vm429_vm0, %v3835_v5 }
  0xa4   : > { %1090 = vmatmul.mubr.bf16.gmra.mxu1 %v4080_v62  ;;  %1653 = vmatmul.mubr.bf16.gmra.mxu0 %v3872_v13 }
  0xa5   : > { %3272 = vmatprep.mubr.msk.bf16.mxu1 %vm429_vm0, %v3835_v5  ;;  %3382 = vmatprep.mubr.msk.bf16.mxu0 %vm429_vm0, %v3879_v16  ;;  %v4254_v5 = vld [vmem:[%s3827_s24 + $0x100] ss:$8 sps:$4 sm:$0xff]  }
  0xac   : > { %1098 = vmatmul.mubr.bf16.gmra.mxu1 %v3872_v13  ;;  %1661 = vmatmul.mubr.bf16.gmra.mxu0 %v3900_v21  ;;  %v4257_v13 = vld [vmem:[%s3827_s24 + $0x114] ss:$8 sps:$4 sm:$0xff]  }
  0xad   : > { %3273 = vmatprep.mubr.msk.bf16.mxu1 %vm429_vm0, %v3879_v16  ;;  %3383 = vmatprep.mubr.msk.bf16.mxu0 %vm429_vm0, %v3912_v24  ;;  %v4266_v16 = vld [vmem:[%s3827_s24 + $0x110] ss:$8 sps:$4 sm:$0xff]  }
  0xb4   : > { %1106 = vmatmul.mubr.bf16.gmra.mxu1 %v3900_v21  ;;  %1669 = vmatmul.mubr.bf16.gmra.mxu0 %v3930_v28 }
  0xb5   : > { %3274 = vmatprep.mubr.msk.bf16.mxu1 %vm429_vm0, %v3912_v24  ;;  %3384 = vmatprep.mubr.msk.bf16.mxu0 %vm429_vm0, %v3942_v31 }
  0xbc   : > { %1114 = vmatmul.mubr.bf16.gmra.mxu1 %v3930_v28  ;;  %1677 = vmatmul.mubr.bf16.gmra.mxu0 %v3963_v36 }
  0xbd   : > { %3275 = vmatprep.mubr.msk.bf16.mxu1 %vm429_vm0, %v3942_v31  ;;  %3385 = vmatprep.mubr.msk.bf16.mxu0 %vm429_vm0, %v3972_v38 }
  0xc4   : > { %1122 = vmatmul.mubr.bf16.gmra.mxu1 %v3963_v36  ;;  %1685 = vmatmul.mubr.bf16.gmra.mxu0 %v3999_v44 }
  0xc5   : > { %3276 = vmatprep.mubr.msk.bf16.mxu1 %vm429_vm0, %v3972_v38  ;;  %3386 = vmatprep.mubr.msk.bf16.mxu0 %vm429_vm0, %v4005_v46 }
  0xcc   : > { %1130 = vmatmul.mubr.bf16.gmra.mxu1 %v3999_v44  ;;  %1693 = vmatmul.mubr.bf16.gmra.mxu0 %v4035_v52 }
  0xcd   : > { %3277 = vmatprep.mubr.msk.bf16.mxu1 %vm429_vm0, %v4005_v46  ;;  %3387 = vmatprep.mubr.msk.bf16.mxu0 %vm429_vm0, %v4041_v54 }
  0xd4   : > { %1138 = vmatmul.mubr.bf16.gmra.mxu1 %v4035_v52  ;;  %1701 = vmatmul.mubr.bf16.gmra.mxu0 %v4059_v57 }
  0xd5   : > { %3278 = vmatprep.mubr.msk.bf16.mxu1 %vm429_vm0, %v4041_v54  ;;  %3388 = vmatprep.mubr.msk.bf16.mxu0 %vm429_vm0, %v4065_v59 }
  0xdc   : > { %1146 = vmatmul.mubr.bf16.gmra.mxu1 %v4059_v57  ;;  %1709 = vmatmul.mubr.bf16.gmra.mxu0 %v4077_v61  ;;  %v3750_v57 = vld [vmem:[%s3827_s24 + $0x94] ss:$8 sps:$4 sm:$0xff]  }
  0xdd   : > { %3279 = vmatprep.mubr.msk.bf16.mxu1 %vm429_vm0, %v4065_v59  ;;  %3389 = vmatprep.mubr.msk.bf16.mxu0 %vm429_vm0, %v4245_v1 }
  0xe4   : > { %1154 = vmatmul.mubr.bf16.gmra.mxu1 %v4077_v61  ;;  %1717 = vmatmul.mubr.bf16.gmra.mxu0 %v4254_v5 }
  0xe5   : > { %3280 = vmatprep.mubr.msk.bf16.mxu1 %vm429_vm0, %v4245_v1  ;;  %3390 = vmatprep.mubr.msk.bf16.mxu0 %vm429_vm0, %v4257_v13 }
  0xec   : > { %1162 = vmatmul.mubr.bf16.gmra.mxu1 %v4254_v5  ;;  %1725 = vmatmul.mubr.bf16.gmra.mxu0 %v4266_v16 }
  0xed   : > { %3485 = vmatprep.mubr.msk.bf16.mxu1 %vm429_vm0, %v3950_v33  ;;  %3595 = vmatprep.mubr.msk.bf16.mxu0 %vm429_vm0, %v3976_v39 }
  0xf4   : > { %v576_v21 = vpop.f32.mrf.mxu1  ;;  %2168 = vmatmul.mubr.bf16.vlgmr.msra.gmra.mxu1 %v3968_v37  ;;  %v512_v24 = vpop.f32.mrf.mxu0  ;;  %2731 = vmatmul.mubr.bf16.vlgmr.msra.gmra.mxu0 %v4002_v45 }
  0xf5   : > { %655 = vst.msk [vmem:[#allocation2 + $0x80] sm:$0xff] %vm429_vm0, %v576_v21  ;;  %639 = vst.msk [vmem:[#allocation2] sm:$0xff] %vm429_vm0, %v512_v24  ;;  %3486 = vmatprep.mubr.msk.bf16.mxu1 %vm429_vm0, %v3976_v39  ;;  %3596 = vmatprep.mubr.msk.bf16.mxu0 %vm429_vm0, %v4008_v47 }
  0xf6   : > { %v578_v25 = vpop.f32.mrf.mxu1  ;;  %v514_v26 = vpop.f32.mrf.mxu0 }
  0xf7   : > { %v3515_v26 = vld [vmem:[%s3827_s24 + $0xb0] sm:$0xff] }
  0xf8   : > { %v579_v27 = vpop.f32.mrf.mxu1  ;;  %v515_v28 = vpop.f32.mrf.mxu0 }
  0xf9   : > { %656 = vst.msk [vmem:[#allocation2 + $0x88] sm:$0xff] %vm429_vm0, %v579_v27  ;;  %640 = vst.msk [vmem:[#allocation2 + $0x8] sm:$0xff] %vm429_vm0, %v515_v28  ;;  %v3516_v27 = vld [vmem:[%s3827_s24 + $0xb8] sm:$0xff] }
  0xfa   : > { %v581_v29 = vpop.f32.mrf.mxu1  ;;  %v517_v30 = vpop.f32.mrf.mxu0 }
  0xfc   : > { %v584_v31 = vpop.f32.mrf.mxu1  ;;  %2176 = vmatmul.mubr.bf16.gmra.mxu1 %v4002_v45  ;;  %v520_v32 = vpop.f32.mrf.mxu0  ;;  %2739 = vmatmul.mubr.bf16.gmra.mxu0 %v4038_v53  ;;  %v3748_v45 = vld [vmem:[%s3827_s24 + $0x84] ss:$8 sps:$4 sm:$0xff]  }
  0xfd   : > { %657 = vst.msk [vmem:[#allocation2 + $0x90] sm:$0xff] %vm429_vm0, %v584_v31  ;;  %641 = vst.msk [vmem:[#allocation2 + $0x10] sm:$0xff] %vm429_vm0, %v520_v32  ;;  %3487 = vmatprep.mubr.msk.bf16.mxu1 %vm429_vm0, %v4008_v47  ;;  %3597 = vmatprep.mubr.msk.bf16.mxu0 %vm429_vm0, %v4044_v55  ;;  %v3567_v32 = vcombine.low %v3515_v26, %v3516_v27 }
  0xfe   : > { %v586_v33 = vpop.f32.mrf.mxu1  ;;  %v522_v34 = vpop.f32.mrf.mxu0 }
  0xff   : > { %v3756_v33 = vld [vmem:[%s3827_s24 + $0xc4] ss:$8 sps:$4 sm:$0xff]  }
 0x100   : > { %v587_v35 = vpop.f32.mrf.mxu1  ;;  %v523_v36 = vpop.f32.mrf.mxu0 }
 0x101   : > { %658 = vst.msk [vmem:[#allocation2 + $0x98] sm:$0xff] %vm429_vm0, %v587_v35  ;;  %642 = vst.msk [vmem:[#allocation2 + $0x18] sm:$0xff] %vm429_vm0, %v523_v36 }
 0x102   : > { %v589_v37 = vpop.f32.mrf.mxu1  ;;  %v525_v38 = vpop.f32.mrf.mxu0 }
 0x103   : > { %v3517_v38 = vld [vmem:[%s3827_s24 + $0xc0] sm:$0xff] }
 0x104   : > { %v592_v39 = vpop.f32.mrf.mxu1  ;;  %2184 = vmatmul.mubr.bf16.gmra.mxu1 %v4038_v53  ;;  %v528_v40 = vpop.f32.mrf.mxu0  ;;  %2747 = vmatmul.mubr.bf16.gmra.mxu0 %v4062_v58 }
 0x105   : > { %659 = vst.msk [vmem:[#allocation2 + $0xa0] sm:$0xff] %vm429_vm0, %v592_v39  ;;  %643 = vst.msk [vmem:[#allocation2 + $0x20] sm:$0xff] %vm429_vm0, %v528_v40  ;;  %3488 = vmatprep.mubr.msk.bf16.mxu1 %vm429_vm0, %v4044_v55  ;;  %3598 = vmatprep.mubr.msk.bf16.mxu0 %vm429_vm0, %v4068_v60  ;;  %v3518_v39 = vld [vmem:[%s3827_s24 + $0xc8] sm:$0xff] }
 0x106   : > { %v594_v41 = vpop.f32.mrf.mxu1  ;;  %v530_v42 = vpop.f32.mrf.mxu0 }
 0x108   : > { %v595_v43 = vpop.f32.mrf.mxu1  ;;  %v531_v44 = vpop.f32.mrf.mxu0  ;;  %v674_v12 = vld [vmem:[#allocation2 + $0x18] sm:$0xff] }
 0x109   : > { %660 = vst.msk [vmem:[#allocation2 + $0xa8] sm:$0xff] %vm429_vm0, %v595_v43  ;;  %644 = vst.msk [vmem:[#allocation2 + $0x28] sm:$0xff] %vm429_vm0, %v531_v44  ;;  %v3569_v44 = vcombine.low %v3517_v38, %v3518_v39 }
 0x10a   : > { %v597_v46 = vpop.f32.mrf.mxu1  ;;  %v533_v47 = vpop.f32.mrf.mxu0 }
 0x10c   : > { %v600_v48 = vpop.f32.mrf.mxu1  ;;  %2192 = vmatmul.mubr.bf16.gmra.mxu1 %v4062_v58  ;;  %v536_v49 = vpop.f32.mrf.mxu0  ;;  %2755 = vmatmul.mubr.bf16.gmra.mxu0 %v4080_v62 }
 0x10d   : > { %661 = vst.msk [vmem:[#allocation2 + $0xb0] sm:$0xff] %vm429_vm0, %v600_v48  ;;  %645 = vst.msk [vmem:[#allocation2 + $0x30] sm:$0xff] %vm429_vm0, %v536_v49  ;;  %3489 = vmatprep.mubr.msk.bf16.mxu1 %vm429_vm0, %v4068_v60  ;;  %3599 = vmatprep.mubr.msk.bf16.mxu0 %vm429_vm0, %v3748_v45  ;;  %v671_v48 = vld [vmem:[#allocation2] sm:$0xff] }
 0x10e   : > { %v602_v52 = vpop.f32.mrf.mxu1  ;;  %v538_v53 = vpop.f32.mrf.mxu0 }
 0x10f   : > { %v3519_v52 = vld [vmem:[%s3827_s24 + $0xd0] sm:$0xff]  ;;  %v3520_v53 = vld [vmem:[%s3827_s24 + $0xd8] sm:$0xff] }
 0x110   : > { %v603_v54 = vpop.f32.mrf.mxu1  ;;  %v539_v55 = vpop.f32.mrf.mxu0 }
 0x111   : > { %662 = vst.msk [vmem:[#allocation2 + $0xb8] sm:$0xff] %vm429_vm0, %v603_v54  ;;  %646 = vst.msk [vmem:[#allocation2 + $0x38] sm:$0xff] %vm429_vm0, %v539_v55 }
 0x112   : > { %v605_v58 = vpop.f32.mrf.mxu1  ;;  %v541_v59 = vpop.f32.mrf.mxu0 }
 0x113   : > { %v3571_v59 = vcombine.low %v3519_v52, %v3520_v53 }
 0x114   : > { %v608_v61 = vpop.f32.mrf.mxu1  ;;  %2200 = vmatmul.mubr.bf16.gmra.mxu1 %v4080_v62  ;;  %v544_v60 = vpop.f32.mrf.mxu0  ;;  %2763 = vmatmul.mubr.bf16.gmra.mxu0 %v3561_v56  ;;  %v3563_v62 = vcombine.low %v3511_v63, %v3512_v0 }
 0x115   : > { %663 = vst.msk [vmem:[#allocation2 + $0xc0] sm:$0xff] %vm429_vm0, %v608_v61  ;;  %647 = vst.msk [vmem:[#allocation2 + $0x40] sm:$0xff] %vm429_vm0, %v544_v60  ;;  %3490 = vmatprep.mubr.msk.bf16.mxu1 %vm429_vm0, %v3748_v45  ;;  %3600 = vmatprep.mubr.msk.bf16.mxu0 %vm429_vm0, %v3750_v57  ;;  %v3758_v45 = vld [vmem:[%s3827_s24 + $0xd4] ss:$8 sps:$4 sm:$0xff]   ;;  %v3760_v60 = vld [vmem:[%s3827_s24 + $0xe4] ss:$8 sps:$4 sm:$0xff]  }
 0x116   : > { %v610_v2 = vpop.f32.mrf.mxu1  ;;  %v546_v3 = vpop.f32.mrf.mxu0 }
 0x117   : > { %v673_v2 = vld [vmem:[#allocation2 + $0x10] sm:$0xff] }
 0x118   : > { %v611_v4 = vpop.f32.mrf.mxu1  ;;  %v547_v6 = vpop.f32.mrf.mxu0 }
 0x119   : > { %664 = vst.msk [vmem:[#allocation2 + $0xc8] sm:$0xff] %vm429_vm0, %v611_v4  ;;  %648 = vst.msk [vmem:[#allocation2 + $0x48] sm:$0xff] %vm429_vm0, %v547_v6 }
 0x11a   : > { %v613_v8 = vpop.f32.mrf.mxu1  ;;  %v549_v9 = vpop.f32.mrf.mxu0 }
 0x11c   : > { %v616_v10 = vpop.f32.mrf.mxu1  ;;  %2208 = vmatmul.mubr.bf16.gmra.mxu1 %v3561_v56  ;;  %v552_v11 = vpop.f32.mrf.mxu0  ;;  %2771 = vmatmul.mubr.bf16.gmra.mxu0 %v3563_v62  ;;  %v672_v56 = vld [vmem:[#allocation2 + $0x8] sm:$0xff] }
 0x11d   : > { %665 = vst.msk [vmem:[#allocation2 + $0xd0] sm:$0xff] %vm429_vm0, %v616_v10  ;;  %649 = vst.msk [vmem:[#allocation2 + $0x50] sm:$0xff] %vm429_vm0, %v552_v11  ;;  %3491 = vmatprep.mubr.msk.bf16.mxu1 %vm429_vm0, %v3750_v57  ;;  %3601 = vmatprep.mubr.msk.bf16.mxu0 %vm429_vm0, %v3752_v7 }
 0x11e   : > { %v618_v15 = vpop.f32.mrf.mxu1  ;;  %v554_v17 = vpop.f32.mrf.mxu0 }
 0x120   : > { %v619_v18 = vpop.f32.mrf.mxu1  ;;  %v555_v19 = vpop.f32.mrf.mxu0 }
 0x121   : > { %666 = vst.msk [vmem:[#allocation2 + $0xd8] sm:$0xff] %vm429_vm0, %v619_v18  ;;  %650 = vst.msk [vmem:[#allocation2 + $0x58] sm:$0xff] %vm429_vm0, %v555_v19  ;;  %v3762_v19 = vld [vmem:[%s3827_s24 + $0xf4] ss:$8 sps:$4 sm:$0xff]  }
 0x122   : > { %v621_v23 = vpop.f32.mrf.mxu1  ;;  %v557_v21 = vpop.f32.mrf.mxu0 }
 0x124   : > { %v624_v24 = vpop.f32.mrf.mxu1  ;;  %2216 = vmatmul.mubr.bf16.gmra.mxu1 %v3563_v62  ;;  %v560_v25 = vpop.f32.mrf.mxu0  ;;  %2779 = vmatmul.mubr.bf16.gmra.mxu0 %v3565_v20  ;;  %v3521_v62 = vld [vmem:[%s3827_s24 + $0xe0] sm:$0xff] }
 0x125   : > { %667 = vst.msk [vmem:[#allocation2 + $0xe0] sm:$0xff] %vm429_vm0, %v624_v24  ;;  %651 = vst.msk [vmem:[#allocation2 + $0x60] sm:$0xff] %vm429_vm0, %v560_v25  ;;  %3492 = vmatprep.mubr.msk.bf16.mxu1 %vm429_vm0, %v3752_v7  ;;  %3602 = vmatprep.mubr.msk.bf16.mxu0 %vm429_vm0, %v3754_v22  ;;  %v3522_v7 = vld [vmem:[%s3827_s24 + $0xe8] sm:$0xff]  ;;  %v675_v24 = vld [vmem:[#allocation2 + $0x20] sm:$0xff] }
 0x126   : > { %v626_v28 = vpop.f32.mrf.mxu1  ;;  %v562_v29 = vpop.f32.mrf.mxu0  ;;  %v3573_v17 = vcombine.low %v3521_v62, %v3522_v7 }
 0x127   : > { %v3523_v28 = vld [vmem:[%s3827_s24 + $0xf0] sm:$0xff]  ;;  %v3524_v29 = vld [vmem:[%s3827_s24 + $0xf8] sm:$0xff] }
 0x128   : > { %v627_v30 = vpop.f32.mrf.mxu1  ;;  %v563_v31 = vpop.f32.mrf.mxu0 }
 0x129   : > { %668 = vst.msk [vmem:[#allocation2 + $0xe8] sm:$0xff] %vm429_vm0, %v627_v30  ;;  %652 = vst.msk [vmem:[#allocation2 + $0x68] sm:$0xff] %vm429_vm0, %v563_v31 }
 0x12a   : > { %v629_v34 = vpop.f32.mrf.mxu1  ;;  %v565_v35 = vpop.f32.mrf.mxu0 }
 0x12b   : > { %v676_v34 = vld [vmem:[#allocation2 + $0x28] sm:$0xff] }
 0x12c   : > { %v632_v36 = vpop.f32.mrf.mxu1  ;;  %2224 = vmatmul.mubr.bf16.gmra.mxu1 %v3565_v20  ;;  %v568_v37 = vpop.f32.mrf.mxu0  ;;  %2787 = vmatmul.mubr.bf16.gmra.mxu0 %v3567_v32 }
 0x12d   : > { %669 = vst.msk [vmem:[#allocation2 + $0xf0] sm:$0xff] %vm429_vm0, %v632_v36  ;;  %653 = vst.msk [vmem:[#allocation2 + $0x70] sm:$0xff] %vm429_vm0, %v568_v37  ;;  %3493 = vmatprep.mubr.msk.bf16.mxu1 %vm429_vm0, %v3754_v22  ;;  %3603 = vmatprep.mubr.msk.bf16.mxu0 %vm429_vm0, %v3756_v33  ;;  %v3575_v37 = vcombine.low %v3523_v28, %v3524_v29 }
 0x12e   : > { %v634_v40 = vpop.f32.mrf.mxu1  ;;  %v570_v41 = vpop.f32.mrf.mxu0 }
 0x130   : > { %v635_v42 = vpop.f32.mrf.mxu1  ;;  %v571_v43 = vpop.f32.mrf.mxu0 }
 0x131   : > { %670 = vst.msk [vmem:[#allocation2 + $0xf8] sm:$0xff] %vm429_vm0, %v635_v42  ;;  %654 = vst.msk [vmem:[#allocation2 + $0x78] sm:$0xff] %vm429_vm0, %v571_v43  ;;  %v677_v43 = vld [vmem:[#allocation2 + $0x30] sm:$0xff] }
 0x132   : > { %v637_v46 = vpop.f32.mrf.mxu1  ;;  %v573_v47 = vpop.f32.mrf.mxu0 }
 0x134   : > { %v1043_v49 = vpop.f32.mrf.mxu1  ;;  %2232 = vmatmul.mubr.bf16.gmra.mxu1 %v3567_v32  ;;  %v1606_v50 = vpop.f32.mrf.mxu0  ;;  %2795 = vmatmul.mubr.bf16.gmra.mxu0 %v3569_v44 }
 0x135   : > { %v1170_v51 = vadd.f32 %v1043_v49, %v671_v48  ;;  %3494 = vmatprep.mubr.msk.bf16.mxu1 %vm429_vm0, %v3756_v33  ;;  %3604 = vmatprep.mubr.msk.bf16.mxu0 %vm429_vm0, %v3758_v45 }
 0x136   : > { %v1045_v54 = vpop.f32.mrf.mxu1  ;;  %v1608_v55 = vpop.f32.mrf.mxu0 }
 0x137   : > { %1202 = vst.msk [vmem:[#allocation2] sm:$0xff] %vm429_vm0, %v1170_v51  ;;  %v678_v51 = vld [vmem:[#allocation2 + $0x38] sm:$0xff] }
 0x138   : > { %v1046_v57 = vpop.f32.mrf.mxu1  ;;  %v1609_v58 = vpop.f32.mrf.mxu0 }
 0x139   : > { %v1171_v61 = vadd.f32 %v1046_v57, %v672_v56 }
 0x13a   : > { %v1048_v63 = vpop.f32.mrf.mxu1  ;;  %v1611_v0 = vpop.f32.mrf.mxu0 }
 0x13b   : > { %1203 = vst.msk [vmem:[#allocation2 + $0x8] sm:$0xff] %vm429_vm0, %v1171_v61 }
 0x13c   : > { %v1051_v3 = vpop.f32.mrf.mxu1  ;;  %2240 = vmatmul.mubr.bf16.gmra.mxu1 %v3569_v44  ;;  %v1614_v4 = vpop.f32.mrf.mxu0  ;;  %2803 = vmatmul.mubr.bf16.gmra.mxu0 %v3571_v59 }
 0x13d   : > { %v1172_v6 = vadd.f32 %v1051_v3, %v673_v2  ;;  %3495 = vmatprep.mubr.msk.bf16.mxu1 %vm429_vm0, %v3758_v45  ;;  %3605 = vmatprep.mubr.msk.bf16.mxu0 %vm429_vm0, %v3760_v60 }
 0x13e   : > { %v1234_v8 = vld [vmem:[#allocation2] sm:$0xff]  ;;  %v1053_v9 = vpop.f32.mrf.mxu1  ;;  %v1616_v10 = vpop.f32.mrf.mxu0 }
 0x13f   : > { %v1733_v11 = vadd.f32 %v1606_v50, %v1234_v8  ;;  %1204 = vst.msk [vmem:[#allocation2 + $0x10] sm:$0xff] %vm429_vm0, %v1172_v6  ;;  %v680_v6 = vld [vmem:[#allocation2 + $0x48] sm:$0xff] }
 0x140   : > { %v1054_v14 = vpop.f32.mrf.mxu1  ;;  %v1617_v15 = vpop.f32.mrf.mxu0  ;;  %v3764_v9 = vld [vmem:[%s3827_s24 + $0x124] ss:$8 sps:$4 sm:$0xff]  }
 0x141   : > { %1765 = vst.msk [vmem:[#allocation2] sm:$0xff] %vm429_vm0, %v1733_v11  ;;  %v1173_v18 = vadd.f32 %v1054_v14, %v674_v12  ;;  %v681_v14 = vld [vmem:[#allocation2 + $0x50] sm:$0xff] }
 0x142   : > { %v1235_v20 = vld [vmem:[#allocation2 + $0x8] sm:$0xff]  ;;  %v1056_v22 = vpop.f32.mrf.mxu1  ;;  %v1619_v23 = vpop.f32.mrf.mxu0 }
 0x143   : > { %v1734_v21 = vadd.f32 %v1609_v58, %v1235_v20  ;;  %1205 = vst.msk [vmem:[#allocation2 + $0x18] sm:$0xff] %vm429_vm0, %v1173_v18  ;;  %v3530_v20 = vld [vmem:[%s3827_s24 + $0x128] sm:$0xff] }
 0x144   : > { %v1059_v25 = vpop.f32.mrf.mxu1  ;;  %2248 = vmatmul.mubr.bf16.gmra.mxu1 %v3571_v59  ;;  %v1622_v26 = vpop.f32.mrf.mxu0  ;;  %2811 = vmatmul.mubr.bf16.gmra.mxu0 %v3573_v17  ;;  %v679_v59 = vld [vmem:[#allocation2 + $0x40] sm:$0xff] }
 0x145   : > { %1766 = vst.msk [vmem:[#allocation2 + $0x8] sm:$0xff] %vm429_vm0, %v1734_v21  ;;  %v1174_v27 = vadd.f32 %v1059_v25, %v675_v24  ;;  %3496 = vmatprep.mubr.msk.bf16.mxu1 %vm429_vm0, %v3760_v60  ;;  %3606 = vmatprep.mubr.msk.bf16.mxu0 %vm429_vm0, %v3762_v19 }
 0x146   : > { %v1236_v30 = vld [vmem:[#allocation2 + $0x10] sm:$0xff]  ;;  %v1061_v31 = vpop.f32.mrf.mxu1  ;;  %v1624_v32 = vpop.f32.mrf.mxu0 }
 0x147   : > { %v1735_v33 = vadd.f32 %v1614_v4, %v1236_v30  ;;  %1206 = vst.msk [vmem:[#allocation2 + $0x20] sm:$0xff] %vm429_vm0, %v1174_v27 }
 0x148   : > { %v1062_v35 = vpop.f32.mrf.mxu1  ;;  %v1625_v36 = vpop.f32.mrf.mxu0 }
 0x149   : > { %1767 = vst.msk [vmem:[#allocation2 + $0x10] sm:$0xff] %vm429_vm0, %v1735_v33  ;;  %v1175_v38 = vadd.f32 %v1062_v35, %v676_v34  ;;  %v683_v33 = vld [vmem:[#allocation2 + $0x60] sm:$0xff] }
 0x14a   : > { %v1237_v39 = vld [vmem:[#allocation2 + $0x18] sm:$0xff]  ;;  %v1064_v40 = vpop.f32.mrf.mxu1  ;;  %v1627_v41 = vpop.f32.mrf.mxu0 }
 0x14b   : > { %v1736_v42 = vadd.f32 %v1617_v15, %v1237_v39  ;;  %1207 = vst.msk [vmem:[#allocation2 + $0x28] sm:$0xff] %vm429_vm0, %v1175_v38  ;;  %v3532_v38 = vld [vmem:[%s3827_s24 + $0x138] sm:$0xff] }
 0x14c   : > { %v1067_v44 = vpop.f32.mrf.mxu1  ;;  %2256 = vmatmul.mubr.bf16.gmra.mxu1 %v3573_v17  ;;  %v1630_v45 = vpop.f32.mrf.mxu0  ;;  %2819 = vmatmul.mubr.bf16.gmra.mxu0 %v3575_v37 }
 0x14d   : > { %1768 = vst.msk [vmem:[#allocation2 + $0x18] sm:$0xff] %vm429_vm0, %v1736_v42  ;;  %v1176_v46 = vadd.f32 %v1067_v44, %v677_v43  ;;  %3497 = vmatprep.mubr.msk.bf16.mxu1 %vm429_vm0, %v3762_v19  ;;  %3607 = vmatprep.mubr.msk.bf16.mxu0 %vm429_vm0, %v4245_v1  ;;  %v3529_v19 = vld [vmem:[%s3827_s24 + $0x120] sm:$0xff]  ;;  %v684_v43 = vld [vmem:[#allocation2 + $0x68] sm:$0xff] }
 0x14e   : > { %v1238_v47 = vld [vmem:[#allocation2 + $0x20] sm:$0xff]  ;;  %v1069_v48 = vpop.f32.mrf.mxu1  ;;  %v1632_v49 = vpop.f32.mrf.mxu0  ;;  %v3581_v27 = vcombine.low %v3529_v19, %v3530_v20 }
 0x14f   : > { %v1737_v50 = vadd.f32 %v1622_v26, %v1238_v47  ;;  %1208 = vst.msk [vmem:[#allocation2 + $0x30] sm:$0xff] %vm429_vm0, %v1176_v46 }
 0x150   : > { %v1070_v52 = vpop.f32.mrf.mxu1  ;;  %v1633_v53 = vpop.f32.mrf.mxu0 }
 0x151   : > { %1769 = vst.msk [vmem:[#allocation2 + $0x20] sm:$0xff] %vm429_vm0, %v1737_v50  ;;  %v1177_v54 = vadd.f32 %v1070_v52, %v678_v51  ;;  %v685_v51 = vld [vmem:[#allocation2 + $0x70] sm:$0xff] }
 0x152   : > { %v1239_v55 = vld [vmem:[#allocation2 + $0x28] sm:$0xff]  ;;  %v1072_v56 = vpop.f32.mrf.mxu1  ;;  %v1635_v57 = vpop.f32.mrf.mxu0 }
 0x153   : > { %v1738_v58 = vadd.f32 %v1625_v36, %v1239_v55  ;;  %1209 = vst.msk [vmem:[#allocation2 + $0x38] sm:$0xff] %vm429_vm0, %v1177_v54 }
 0x154   : > { %v1075_v61 = vpop.f32.mrf.mxu1  ;;  %2264 = vmatmul.mubr.bf16.gmra.mxu1 %v3575_v37  ;;  %v1638_v60 = vpop.f32.mrf.mxu0  ;;  %2827 = vmatmul.mubr.bf16.gmra.mxu0 %v4254_v5  ;;  %v3531_v37 = vld [vmem:[%s3827_s24 + $0x130] sm:$0xff] }
 0x155   : > { %1770 = vst.msk [vmem:[#allocation2 + $0x28] sm:$0xff] %vm429_vm0, %v1738_v58  ;;  %v1178_v63 = vadd.f32 %v1075_v61, %v679_v59  ;;  %3498 = vmatprep.mubr.msk.bf16.mxu1 %vm429_vm0, %v4245_v1  ;;  %3608 = vmatprep.mubr.msk.bf16.mxu0 %vm429_vm0, %v4257_v13  ;;  %v686_v59 = vld [vmem:[#allocation2 + $0x78] sm:$0xff] }
 0x156   : > { %v1240_v0 = vld [vmem:[#allocation2 + $0x30] sm:$0xff]  ;;  %v1077_v2 = vpop.f32.mrf.mxu1  ;;  %v1640_v3 = vpop.f32.mrf.mxu0 }
 0x157   : > { %v1739_v4 = vadd.f32 %v1630_v45, %v1240_v0  ;;  %1210 = vst.msk [vmem:[#allocation2 + $0x40] sm:$0xff] %vm429_vm0, %v1178_v63  ;;  %v3583_v45 = vcombine.low %v3531_v37, %v3532_v38 }
 0x158   : > { %v1078_v62 = vpop.f32.mrf.mxu1  ;;  %v1641_v7 = vpop.f32.mrf.mxu0 }
 0x159   : > { %1771 = vst.msk [vmem:[#allocation2 + $0x30] sm:$0xff] %vm429_vm0, %v1739_v4  ;;  %v1179_v8 = vadd.f32 %v1078_v62, %v680_v6  ;;  %v687_v6 = vld [vmem:[#allocation2 + $0x80] sm:$0xff] }
 0x15a   : > { %v1241_v10 = vld [vmem:[#allocation2 + $0x38] sm:$0xff]  ;;  %v1080_v1 = vpop.f32.mrf.mxu1  ;;  %v1643_v11 = vpop.f32.mrf.mxu0 }
 0x15b   : > { %v1740_v12 = vadd.f32 %v1633_v53, %v1241_v10  ;;  %1211 = vst.msk [vmem:[#allocation2 + $0x48] sm:$0xff] %vm429_vm0, %v1179_v8 }
 0x15c   : > { %v1083_v15 = vpop.f32.mrf.mxu1  ;;  %2272 = vmatmul.mubr.bf16.gmra.mxu1 %v4254_v5  ;;  %v1646_v17 = vpop.f32.mrf.mxu0  ;;  %2835 = vmatmul.mubr.bf16.gmra.mxu0 %v4266_v16  ;;  %v682_v5 = vld [vmem:[#allocation2 + $0x58] sm:$0xff] }
 0x15d   : > { %1772 = vst.msk [vmem:[#allocation2 + $0x38] sm:$0xff] %vm429_vm0, %v1740_v12  ;;  %v1180_v18 = vadd.f32 %v1083_v15, %v681_v14  ;;  %3499 = vmatprep.mubr.msk.bf16.mxu1 %vm429_vm0, %v4257_v13  ;;  %3609 = vmatprep.mubr.msk.bf16.mxu0 %vm429_vm0, %v3764_v9  ;;  %v3766_v13 = vld [vmem:[%s3827_s24 + $0x134] ss:$8 sps:$4 sm:$0xff]   ;;  %v688_v12 = vld [vmem:[#allocation2 + $0x88] sm:$0xff]  ;;  %s3111_s24 = sshll.u32 %s3803_s13, 3 }
 0x15e   : > { %v1242_v22 = vld [vmem:[#allocation2 + $0x40] sm:$0xff]  ;;  %v1085_v23 = vpop.f32.mrf.mxu1  ;;  %v1648_v21 = vpop.f32.mrf.mxu0  ;;  %p167_p4 = scmp.lt.s32.totalorder %s3111_s24, 15 }
 0x15f   : > { %v1741_v24 = vadd.f32 %v1638_v60, %v1242_v22  ;;  %1212 = vst.msk [vmem:[#allocation2 + $0x50] sm:$0xff] %vm429_vm0, %v1180_v18  ;;  %v689_v23 = vld [vmem:[#allocation2 + $0x90] sm:$0xff] }
 0x160   : > { %v1086_v25 = vpop.f32.mrf.mxu1  ;;  %v1649_v26 = vpop.f32.mrf.mxu0  ;;  %s4577_s24 = smov (!%p167_p4, %s3111_s24), 15 }
 0x161   : > { %1773 = vst.msk [vmem:[#allocation2 + $0x40] sm:$0xff] %vm429_vm0, %v1741_v24  ;;  %v1181_v28 = vadd.f32 %v1086_v25, %v682_v5  ;;  %s3112_s13 = sshll.u32 %s4577_s24, 3 }
 0x162   : > { %v1243_v29 = vld [vmem:[#allocation2 + $0x48] sm:$0xff]  ;;  %v1088_v30 = vpop.f32.mrf.mxu1  ;;  %v1651_v31 = vpop.f32.mrf.mxu0  ;;  %s4484_s27 = scalar_lea.vmem %s4575_s3, %s3112_s13 }
 0x163   : > { %v1742_v32 = vadd.f32 %v1641_v7, %v1243_v29  ;;  %1213 = vst.msk [vmem:[#allocation2 + $0x58] sm:$0xff] %vm429_vm0, %v1181_v28 }
 0x164   : > { %v1091_v34 = vpop.f32.mrf.mxu1  ;;  %2280 = vmatmul.mubr.bf16.gmra.mxu1 %v4266_v16  ;;  %v1654_v35 = vpop.f32.mrf.mxu0  ;;  %2843 = vmatmul.mubr.bf16.gmra.mxu0 %v3581_v27 }
 0x165   : > { %1774 = vst.msk [vmem:[#allocation2 + $0x48] sm:$0xff] %vm429_vm0, %v1742_v32  ;;  %v1182_v36 = vadd.f32 %v1091_v34, %v683_v33  ;;  %3500 = vmatprep.mubr.msk.bf16.mxu1 %vm429_vm0, %v3764_v9  ;;  %3610 = vmatprep.mubr.msk.bf16.mxu0 %vm429_vm0, %v3766_v13  ;;  %v690_v13 = vld [vmem:[#allocation2 + $0x98] sm:$0xff] }
 0x166   : > { %v1244_v39 = vld [vmem:[#allocation2 + $0x50] sm:$0xff]  ;;  %v1093_v40 = vpop.f32.mrf.mxu1  ;;  %v1656_v41 = vpop.f32.mrf.mxu0 }
 0x167   : > { %v1743_v42 = vadd.f32 %v1646_v17, %v1244_v39  ;;  %1214 = vst.msk [vmem:[#allocation2 + $0x60] sm:$0xff] %vm429_vm0, %v1182_v36  ;;  %v691_v36 = vld [vmem:[#allocation2 + $0xa0] sm:$0xff] }
 0x168   : > { %v1094_v44 = vpop.f32.mrf.mxu1  ;;  %v1657_v16 = vpop.f32.mrf.mxu0 }
 0x169   : > { %1775 = vst.msk [vmem:[#allocation2 + $0x50] sm:$0xff] %vm429_vm0, %v1743_v42  ;;  %v1183_v46 = vadd.f32 %v1094_v44, %v684_v43  ;;  %v692_v44 = vld [vmem:[#allocation2 + $0xa8] sm:$0xff] }
 0x16a   : > { %v1245_v47 = vld [vmem:[#allocation2 + $0x58] sm:$0xff]  ;;  %v1096_v48 = vpop.f32.mrf.mxu1  ;;  %v1659_v49 = vpop.f32.mrf.mxu0 }
 0x16b   : > { %v1744_v50 = vadd.f32 %v1649_v26, %v1245_v47  ;;  %1215 = vst.msk [vmem:[#allocation2 + $0x68] sm:$0xff] %vm429_vm0, %v1183_v46 }
 0x16c   : > { %v1099_v52 = vpop.f32.mrf.mxu1  ;;  %2288 = vmatmul.mubr.bf16.gmra.mxu1 %v3581_v27  ;;  %v1662_v53 = vpop.f32.mrf.mxu0  ;;  %2851 = vmatmul.mubr.bf16.gmra.mxu0 %v3583_v45 }
 0x16d   : > { %1776 = vst.msk [vmem:[#allocation2 + $0x58] sm:$0xff] %vm429_vm0, %v1744_v50  ;;  %v1184_v54 = vadd.f32 %v1099_v52, %v685_v51  ;;  %v693_v51 = vld [vmem:[#allocation2 + $0xb0] sm:$0xff] }
 0x16e   : > { %v1246_v55 = vld [vmem:[#allocation2 + $0x60] sm:$0xff]  ;;  %v1101_v56 = vpop.f32.mrf.mxu1  ;;  %v1664_v57 = vpop.f32.mrf.mxu0 }
 0x16f   : > { %v1745_v58 = vadd.f32 %v1654_v35, %v1246_v55  ;;  %1216 = vst.msk [vmem:[#allocation2 + $0x70] sm:$0xff] %vm429_vm0, %v1184_v54 }
 0x170   : > { %v1102_v61 = vpop.f32.mrf.mxu1  ;;  %v1665_v60 = vpop.f32.mrf.mxu0 }
 0x171   : > { %1777 = vst.msk [vmem:[#allocation2 + $0x60] sm:$0xff] %vm429_vm0, %v1745_v58  ;;  %v1185_v63 = vadd.f32 %v1102_v61, %v686_v59  ;;  %v694_v59 = vld [vmem:[#allocation2 + $0xb8] sm:$0xff] }
 0x172   : > { %v1247_v0 = vld [vmem:[#allocation2 + $0x68] sm:$0xff]  ;;  %v1104_v2 = vpop.f32.mrf.mxu1  ;;  %v1667_v3 = vpop.f32.mrf.mxu0 }
 0x173   : > { %v1746_v4 = vadd.f32 %v1657_v16, %v1247_v0  ;;  %1217 = vst.msk [vmem:[#allocation2 + $0x78] sm:$0xff] %vm429_vm0, %v1185_v63 }
 0x174   : > { %v1107_v62 = vpop.f32.mrf.mxu1  ;;  %v1670_v7 = vpop.f32.mrf.mxu0 }
 0x175   : > { %1778 = vst.msk [vmem:[#allocation2 + $0x68] sm:$0xff] %vm429_vm0, %v1746_v4  ;;  %v1186_v8 = vadd.f32 %v1107_v62, %v687_v6  ;;  %v695_v6 = vld [vmem:[#allocation2 + $0xc0] sm:$0xff] }
 0x176   : > { %v1248_v9 = vld [vmem:[#allocation2 + $0x70] sm:$0xff]  ;;  %v1109_v10 = vpop.f32.mrf.mxu1  ;;  %v1672_v1 = vpop.f32.mrf.mxu0 }
 0x177   : > { %v1747_v11 = vadd.f32 %v1662_v53, %v1248_v9  ;;  %1218 = vst.msk [vmem:[#allocation2 + $0x80] sm:$0xff] %vm429_vm0, %v1186_v8 }
 0x178   : > { %v1110_v14 = vpop.f32.mrf.mxu1  ;;  %v1673_v15 = vpop.f32.mrf.mxu0 }
 0x179   : > { %1779 = vst.msk [vmem:[#allocation2 + $0x70] sm:$0xff] %vm429_vm0, %v1747_v11  ;;  %v1187_v17 = vadd.f32 %v1110_v14, %v688_v12  ;;  %v696_v12 = vld [vmem:[#allocation2 + $0xc8] sm:$0xff] }
 0x17a   : > { %v1249_v18 = vld [vmem:[#allocation2 + $0x78] sm:$0xff]  ;;  %v1112_v19 = vpop.f32.mrf.mxu1  ;;  %v1675_v20 = vpop.f32.mrf.mxu0 }
 0x17b   : > { %v1748_v22 = vadd.f32 %v1665_v60, %v1249_v18  ;;  %1219 = vst.msk [vmem:[#allocation2 + $0x88] sm:$0xff] %vm429_vm0, %v1187_v17 }
 0x17c   : > { %v1115_v21 = vpop.f32.mrf.mxu1  ;;  %v1678_v24 = vpop.f32.mrf.mxu0 }
 0x17d   : > { %1780 = vst.msk [vmem:[#allocation2 + $0x78] sm:$0xff] %vm429_vm0, %v1748_v22  ;;  %v1188_v5 = vadd.f32 %v1115_v21, %v689_v23  ;;  %v697_v23 = vld [vmem:[#allocation2 + $0xd0] sm:$0xff] }
 0x17e   : > { %v1250_v25 = vld [vmem:[#allocation2 + $0x80] sm:$0xff]  ;;  %v1117_v26 = vpop.f32.mrf.mxu1  ;;  %v1680_v27 = vpop.f32.mrf.mxu0 }
 0x17f   : > { %v1749_v28 = vadd.f32 %v1670_v7, %v1250_v25  ;;  %1220 = vst.msk [vmem:[#allocation2 + $0x90] sm:$0xff] %vm429_vm0, %v1188_v5 }
 0x180   : > { %v1118_v29 = vpop.f32.mrf.mxu1  ;;  %v1681_v30 = vpop.f32.mrf.mxu0 }
 0x181   : > { %1781 = vst.msk [vmem:[#allocation2 + $0x80] sm:$0xff] %vm429_vm0, %v1749_v28  ;;  %v1189_v31 = vadd.f32 %v1118_v29, %v690_v13  ;;  %v698_v13 = vld [vmem:[#allocation2 + $0xd8] sm:$0xff] }
 0x182   : > { %v1251_v32 = vld [vmem:[#allocation2 + $0x88] sm:$0xff]  ;;  %v1120_v33 = vpop.f32.mrf.mxu1  ;;  %v1683_v34 = vpop.f32.mrf.mxu0 }
 0x183   : > { %v1750_v35 = vadd.f32 %v1673_v15, %v1251_v32  ;;  %1221 = vst.msk [vmem:[#allocation2 + $0x98] sm:$0xff] %vm429_vm0, %v1189_v31 }
 0x184   : > { %v1123_v37 = vpop.f32.mrf.mxu1  ;;  %v1686_v38 = vpop.f32.mrf.mxu0 }
 0x185   : > { %1782 = vst.msk [vmem:[#allocation2 + $0x88] sm:$0xff] %vm429_vm0, %v1750_v35  ;;  %v1190_v39 = vadd.f32 %v1123_v37, %v691_v36  ;;  %v699_v36 = vld [vmem:[#allocation2 + $0xe0] sm:$0xff] }
 0x186   : > { %v1252_v40 = vld [vmem:[#allocation2 + $0x90] sm:$0xff]  ;;  %v1125_v41 = vpop.f32.mrf.mxu1  ;;  %v1688_v42 = vpop.f32.mrf.mxu0 }
 0x187   : > { %v1751_v43 = vadd.f32 %v1678_v24, %v1252_v40  ;;  %1222 = vst.msk [vmem:[#allocation2 + $0xa0] sm:$0xff] %vm429_vm0, %v1190_v39 }
 0x188   : > { %v1126_v16 = vpop.f32.mrf.mxu1  ;;  %v1689_v45 = vpop.f32.mrf.mxu0 }
 0x189   : > { %1783 = vst.msk [vmem:[#allocation2 + $0x90] sm:$0xff] %vm429_vm0, %v1751_v43  ;;  %v1191_v46 = vadd.f32 %v1126_v16, %v692_v44  ;;  %v700_v44 = vld [vmem:[#allocation2 + $0xe8] sm:$0xff] }
 0x18a   : > { %v1253_v47 = vld [vmem:[#allocation2 + $0x98] sm:$0xff]  ;;  %v1128_v48 = vpop.f32.mrf.mxu1  ;;  %v1691_v49 = vpop.f32.mrf.mxu0 }
 0x18b   : > { %v1752_v50 = vadd.f32 %v1681_v30, %v1253_v47  ;;  %1223 = vst.msk [vmem:[#allocation2 + $0xa8] sm:$0xff] %vm429_vm0, %v1191_v46 }
 0x18c   : > { %v1131_v52 = vpop.f32.mrf.mxu1  ;;  %v1694_v53 = vpop.f32.mrf.mxu0 }
 0x18d   : > { %1784 = vst.msk [vmem:[#allocation2 + $0x98] sm:$0xff] %vm429_vm0, %v1752_v50  ;;  %v1192_v54 = vadd.f32 %v1131_v52, %v693_v51  ;;  %v701_v51 = vld [vmem:[#allocation2 + $0xf0] sm:$0xff] }
 0x18e   : > { %v1254_v55 = vld [vmem:[#allocation2 + $0xa0] sm:$0xff]  ;;  %v1133_v56 = vpop.f32.mrf.mxu1  ;;  %v1696_v57 = vpop.f32.mrf.mxu0 }
 0x18f   : > { %v1753_v58 = vadd.f32 %v1686_v38, %v1254_v55  ;;  %1224 = vst.msk [vmem:[#allocation2 + $0xb0] sm:$0xff] %vm429_vm0, %v1192_v54 }
 0x190   : > { %v1134_v61 = vpop.f32.mrf.mxu1  ;;  %v1697_v60 = vpop.f32.mrf.mxu0 }
 0x191   : > { %1785 = vst.msk [vmem:[#allocation2 + $0xa0] sm:$0xff] %vm429_vm0, %v1753_v58  ;;  %v1193_v63 = vadd.f32 %v1134_v61, %v694_v59  ;;  %v702_v59 = vld [vmem:[#allocation2 + $0xf8] sm:$0xff] }
 0x192   : > { %v1255_v0 = vld [vmem:[#allocation2 + $0xa8] sm:$0xff]  ;;  %v1136_v2 = vpop.f32.mrf.mxu1  ;;  %v1699_v3 = vpop.f32.mrf.mxu0 }
 0x193   : > { %v1754_v4 = vadd.f32 %v1689_v45, %v1255_v0  ;;  %1225 = vst.msk [vmem:[#allocation2 + $0xb8] sm:$0xff] %vm429_vm0, %v1193_v63 }
 0x194   : > { %v1139_v62 = vpop.f32.mrf.mxu1  ;;  %v1702_v7 = vpop.f32.mrf.mxu0 }
 0x195   : > { %1786 = vst.msk [vmem:[#allocation2 + $0xa8] sm:$0xff] %vm429_vm0, %v1754_v4  ;;  %v1194_v8 = vadd.f32 %v1139_v62, %v695_v6  ;;  %v1797_v6 = vld [vmem:[#allocation2] sm:$0xff] }
 0x196   : > { %v1256_v9 = vld [vmem:[#allocation2 + $0xb0] sm:$0xff]  ;;  %v1141_v10 = vpop.f32.mrf.mxu1  ;;  %v1704_v1 = vpop.f32.mrf.mxu0 }
 0x197   : > { %v1755_v11 = vadd.f32 %v1694_v53, %v1256_v9  ;;  %1226 = vst.msk [vmem:[#allocation2 + $0xc0] sm:$0xff] %vm429_vm0, %v1194_v8 }
 0x198   : > { %v1142_v14 = vpop.f32.mrf.mxu1  ;;  %v1705_v15 = vpop.f32.mrf.mxu0 }
 0x199   : > { %1787 = vst.msk [vmem:[#allocation2 + $0xb0] sm:$0xff] %vm429_vm0, %v1755_v11  ;;  %v1195_v17 = vadd.f32 %v1142_v14, %v696_v12  ;;  %v1798_v12 = vld [vmem:[#allocation2 + $0x8] sm:$0xff] }
 0x19a   : > { %v1257_v18 = vld [vmem:[#allocation2 + $0xb8] sm:$0xff]  ;;  %v1144_v19 = vpop.f32.mrf.mxu1  ;;  %v1707_v20 = vpop.f32.mrf.mxu0 }
 0x19b   : > { %v1756_v22 = vadd.f32 %v1697_v60, %v1257_v18  ;;  %1227 = vst.msk [vmem:[#allocation2 + $0xc8] sm:$0xff] %vm429_vm0, %v1195_v17 }
 0x19c   : > { %v1147_v21 = vpop.f32.mrf.mxu1  ;;  %v1710_v24 = vpop.f32.mrf.mxu0 }
 0x19d   : > { %1788 = vst.msk [vmem:[#allocation2 + $0xb8] sm:$0xff] %vm429_vm0, %v1756_v22  ;;  %v1196_v5 = vadd.f32 %v1147_v21, %v697_v23  ;;  %v1799_v23 = vld [vmem:[#allocation2 + $0x10] sm:$0xff] }
 0x19e   : > { %v1258_v25 = vld [vmem:[#allocation2 + $0xc0] sm:$0xff]  ;;  %v1149_v26 = vpop.f32.mrf.mxu1  ;;  %v1712_v27 = vpop.f32.mrf.mxu0 }
 0x19f   : > { %v1757_v28 = vadd.f32 %v1702_v7, %v1258_v25  ;;  %1228 = vst.msk [vmem:[#allocation2 + $0xd0] sm:$0xff] %vm429_vm0, %v1196_v5 }
 0x1a0   : > { %v1150_v29 = vpop.f32.mrf.mxu1  ;;  %v1713_v30 = vpop.f32.mrf.mxu0 }
 0x1a1   : > { %1789 = vst.msk [vmem:[#allocation2 + $0xc0] sm:$0xff] %vm429_vm0, %v1757_v28  ;;  %v1197_v31 = vadd.f32 %v1150_v29, %v698_v13  ;;  %v1800_v13 = vld [vmem:[#allocation2 + $0x18] sm:$0xff] }
 0x1a2   : > { %v1259_v32 = vld [vmem:[#allocation2 + $0xc8] sm:$0xff]  ;;  %v1152_v33 = vpop.f32.mrf.mxu1  ;;  %v1715_v34 = vpop.f32.mrf.mxu0 }
 0x1a3   : > { %v1758_v35 = vadd.f32 %v1705_v15, %v1259_v32  ;;  %1229 = vst.msk [vmem:[#allocation2 + $0xd8] sm:$0xff] %vm429_vm0, %v1197_v31 }
 0x1a4   : > { %v1155_v37 = vpop.f32.mrf.mxu1  ;;  %v1718_v38 = vpop.f32.mrf.mxu0 }
 0x1a5   : > { %1790 = vst.msk [vmem:[#allocation2 + $0xc8] sm:$0xff] %vm429_vm0, %v1758_v35  ;;  %v1198_v39 = vadd.f32 %v1155_v37, %v699_v36  ;;  %v1801_v36 = vld [vmem:[#allocation2 + $0x20] sm:$0xff] }
 0x1a6   : > { %v1260_v40 = vld [vmem:[#allocation2 + $0xd0] sm:$0xff]  ;;  %v1157_v41 = vpop.f32.mrf.mxu1  ;;  %v1720_v42 = vpop.f32.mrf.mxu0 }
 0x1a7   : > { %v1759_v43 = vadd.f32 %v1710_v24, %v1260_v40  ;;  %1230 = vst.msk [vmem:[#allocation2 + $0xe0] sm:$0xff] %vm429_vm0, %v1198_v39 }
 0x1a8   : > { %v1158_v16 = vpop.f32.mrf.mxu1  ;;  %v1721_v45 = vpop.f32.mrf.mxu0 }
 0x1a9   : > { %1791 = vst.msk [vmem:[#allocation2 + $0xd0] sm:$0xff] %vm429_vm0, %v1759_v43  ;;  %v1199_v46 = vadd.f32 %v1158_v16, %v700_v44  ;;  %v1802_v44 = vld [vmem:[#allocation2 + $0x28] sm:$0xff] }
 0x1aa   : > { %v1261_v47 = vld [vmem:[#allocation2 + $0xd8] sm:$0xff]  ;;  %v1160_v48 = vpop.f32.mrf.mxu1  ;;  %v1723_v49 = vpop.f32.mrf.mxu0 }
 0x1ab   : > { %v1760_v50 = vadd.f32 %v1713_v30, %v1261_v47  ;;  %1231 = vst.msk [vmem:[#allocation2 + $0xe8] sm:$0xff] %vm429_vm0, %v1199_v46 }
 0x1ac   : > { %v1163_v52 = vpop.f32.mrf.mxu1  ;;  %v1726_v53 = vpop.f32.mrf.mxu0 }
 0x1ad   : > { %1792 = vst.msk [vmem:[#allocation2 + $0xd8] sm:$0xff] %vm429_vm0, %v1760_v50  ;;  %v1200_v54 = vadd.f32 %v1163_v52, %v701_v51  ;;  %v1803_v51 = vld [vmem:[#allocation2 + $0x30] sm:$0xff] }
 0x1ae   : > { %v1262_v55 = vld [vmem:[#allocation2 + $0xe0] sm:$0xff]  ;;  %v1165_v56 = vpop.f32.mrf.mxu1  ;;  %v1728_v57 = vpop.f32.mrf.mxu0 }
 0x1af   : > { %v1761_v58 = vadd.f32 %v1718_v38, %v1262_v55  ;;  %1232 = vst.msk [vmem:[#allocation2 + $0xf0] sm:$0xff] %vm429_vm0, %v1200_v54 }
 0x1b0   : > { %v1166_v61 = vpop.f32.mrf.mxu1  ;;  %v1729_v60 = vpop.f32.mrf.mxu0 }
 0x1b1   : > { %1793 = vst.msk [vmem:[#allocation2 + $0xe0] sm:$0xff] %vm429_vm0, %v1761_v58  ;;  %v1201_v63 = vadd.f32 %v1166_v61, %v702_v59 }
 0x1b2   : > { %v1263_v0 = vld [vmem:[#allocation2 + $0xe8] sm:$0xff]  ;;  %v1168_v2 = vpop.f32.mrf.mxu1  ;;  %v1731_v3 = vpop.f32.mrf.mxu0 }
 0x1b3   : > { %v1762_v4 = vadd.f32 %v1721_v45, %v1263_v0  ;;  %1233 = vst.msk [vmem:[#allocation2 + $0xf8] sm:$0xff] %vm429_vm0, %v1201_v63 }
 0x1b4   : > { %v2169_v62 = vpop.f32.mrf.mxu1  ;;  %v2732_v7 = vpop.f32.mrf.mxu0 }
 0x1b5   : > { %1794 = vst.msk [vmem:[#allocation2 + $0xe8] sm:$0xff] %vm429_vm0, %v1762_v4  ;;  %v2296_v8 = vadd.f32 %v2169_v62, %v1797_v6 }
 0x1b6   : > { %v1264_v9 = vld [vmem:[#allocation2 + $0xf0] sm:$0xff]  ;;  %v2171_v10 = vpop.f32.mrf.mxu1  ;;  %v2734_v1 = vpop.f32.mrf.mxu0 }
 0x1b7   : > { %v1763_v11 = vadd.f32 %v1726_v53, %v1264_v9  ;;  %2328 = vst.msk [vmem:[#allocation2] sm:$0xff] %vm429_vm0, %v2296_v8  ;;  %v1805_v10 = vld [vmem:[#allocation2 + $0x40] sm:$0xff] }
 0x1b8   : > { %v2172_v14 = vpop.f32.mrf.mxu1  ;;  %v2735_v15 = vpop.f32.mrf.mxu0 }
 0x1b9   : > { %1795 = vst.msk [vmem:[#allocation2 + $0xf0] sm:$0xff] %vm429_vm0, %v1763_v11  ;;  %v2297_v17 = vadd.f32 %v2172_v14, %v1798_v12 }
 0x1ba   : > { %v1265_v18 = vld [vmem:[#allocation2 + $0xf8] sm:$0xff]  ;;  %v2174_v19 = vpop.f32.mrf.mxu1  ;;  %v2737_v20 = vpop.f32.mrf.mxu0 }
 0x1bb   : > { %v1764_v22 = vadd.f32 %v1729_v60, %v1265_v18  ;;  %2329 = vst.msk [vmem:[#allocation2 + $0x8] sm:$0xff] %vm429_vm0, %v2297_v17  ;;  %v1804_v60 = vld [vmem:[#allocation2 + $0x38] sm:$0xff]  ;;  %v1806_v20 = vld [vmem:[#allocation2 + $0x48] sm:$0xff] }
 0x1bc   : > { %v2177_v21 = vpop.f32.mrf.mxu1  ;;  %v2740_v24 = vpop.f32.mrf.mxu0 }
 0x1bd   : > { %1796 = vst.msk [vmem:[#allocation2 + $0xf8] sm:$0xff] %vm429_vm0, %v1764_v22  ;;  %v2298_v5 = vadd.f32 %v2177_v21, %v1799_v23 }
 0x1be   : > { %v2360_v25 = vld [vmem:[#allocation2] sm:$0xff]  ;;  %v2179_v26 = vpop.f32.mrf.mxu1  ;;  %v2742_v27 = vpop.f32.mrf.mxu0 }
 0x1bf   : > { %v2859_v28 = vadd.f32 %v2732_v7, %v2360_v25  ;;  %2330 = vst.msk [vmem:[#allocation2 + $0x10] sm:$0xff] %vm429_vm0, %v2298_v5  ;;  %v1807_v27 = vld [vmem:[#allocation2 + $0x50] sm:$0xff] }
 0x1c0   : > { %v2180_v29 = vpop.f32.mrf.mxu1  ;;  %v2743_v30 = vpop.f32.mrf.mxu0 }
 0x1c1   : > { %2891 = vst.msk [vmem:[#allocation2] sm:$0xff] %vm429_vm0, %v2859_v28  ;;  %v2299_v31 = vadd.f32 %v2180_v29, %v1800_v13  ;;  %v4477_v29 = vld [vmem:[%s4574_s2] ss:$0 sm:$0xff] }
 0x1c2   : > { %v2361_v32 = vld [vmem:[#allocation2 + $0x8] sm:$0xff]  ;;  %v2182_v33 = vpop.f32.mrf.mxu1  ;;  %v2745_v34 = vpop.f32.mrf.mxu0 }
 0x1c3   : > { %v2860_v35 = vadd.f32 %v2735_v15, %v2361_v32  ;;  %2331 = vst.msk [vmem:[#allocation2 + $0x18] sm:$0xff] %vm429_vm0, %v2299_v31 }
 0x1c4   : > { %v2185_v37 = vpop.f32.mrf.mxu1  ;;  %v2748_v38 = vpop.f32.mrf.mxu0 }
 0x1c5   : > { %2892 = vst.msk [vmem:[#allocation2 + $0x8] sm:$0xff] %vm429_vm0, %v2860_v35  ;;  %v2300_v39 = vadd.f32 %v2185_v37, %v1801_v36 }
 0x1c6   : > { %v2362_v40 = vld [vmem:[#allocation2 + $0x10] sm:$0xff]  ;;  %v2187_v41 = vpop.f32.mrf.mxu1  ;;  %v2750_v42 = vpop.f32.mrf.mxu0 }
 0x1c7   : > { %v2861_v43 = vadd.f32 %v2740_v24, %v2362_v40  ;;  %2332 = vst.msk [vmem:[#allocation2 + $0x20] sm:$0xff] %vm429_vm0, %v2300_v39  ;;  %v1808_v40 = vld [vmem:[#allocation2 + $0x58] sm:$0xff] }
 0x1c8   : > { %v2188_v16 = vpop.f32.mrf.mxu1  ;;  %v2751_v45 = vpop.f32.mrf.mxu0  ;;  %v2923_v59 = vld [vmem:[#allocation2] sm:$0xff] }
 0x1c9   : > { %2893 = vst.msk [vmem:[#allocation2 + $0x10] sm:$0xff] %vm429_vm0, %v2861_v43  ;;  %v2301_v46 = vadd.f32 %v2188_v16, %v1802_v44 }
 0x1ca   : > { %v2363_v47 = vld [vmem:[#allocation2 + $0x18] sm:$0xff]  ;;  %v2190_v48 = vpop.f32.mrf.mxu1  ;;  %v2753_v49 = vpop.f32.mrf.mxu0 }
 0x1cb   : > { %v2862_v50 = vadd.f32 %v2743_v30, %v2363_v47  ;;  %2333 = vst.msk [vmem:[#allocation2 + $0x28] sm:$0xff] %vm429_vm0, %v2301_v46 }
 0x1cc   : > { %v2193_v52 = vpop.f32.mrf.mxu1  ;;  %v2756_v53 = vpop.f32.mrf.mxu0  ;;  %v2924_v8 = vld [vmem:[#allocation2 + $0x8] sm:$0xff] }
 0x1cd   : > { %2894 = vst.msk [vmem:[#allocation2 + $0x18] sm:$0xff] %vm429_vm0, %v2862_v50  ;;  %v2302_v54 = vadd.f32 %v2193_v52, %v1803_v51  ;;  %v1809_v51 = vld [vmem:[#allocation2 + $0x60] sm:$0xff] }
 0x1ce   : > { %v2364_v55 = vld [vmem:[#allocation2 + $0x20] sm:$0xff]  ;;  %v2195_v56 = vpop.f32.mrf.mxu1  ;;  %v2758_v57 = vpop.f32.mrf.mxu0 }
 0x1cf   : > { %v2863_v58 = vadd.f32 %v2748_v38, %v2364_v55  ;;  %2334 = vst.msk [vmem:[#allocation2 + $0x30] sm:$0xff] %vm429_vm0, %v2302_v54 }
 0x1d0   : > { %v2925_v61 = vld [vmem:[#allocation2 + $0x10] sm:$0xff]  ;;  %v2196_v63 = vpop.f32.mrf.mxu1  ;;  %v2759_v0 = vpop.f32.mrf.mxu0 }
 0x1d1   : > { %v2955_v2 = vmax.f32 %v2923_v59, %v2925_v61  ;;  %2895 = vst.msk [vmem:[#allocation2 + $0x20] sm:$0xff] %vm429_vm0, %v2863_v58  ;;  %v2303_v3 = vadd.f32 %v2196_v63, %v1804_v60  ;;  %v1810_v61 = vld [vmem:[#allocation2 + $0x68] sm:$0xff] }
 0x1d2   : > { %v2365_v4 = vld [vmem:[#allocation2 + $0x28] sm:$0xff]  ;;  %v2198_v6 = vpop.f32.mrf.mxu1  ;;  %v2761_v62 = vpop.f32.mrf.mxu0 }
 0x1d3   : > { %2971 = vst.msk [vmem:[#allocation2] sm:$0xff] %vm429_vm0, %v2955_v2  ;;  %v2864_v7 = vadd.f32 %v2751_v45, %v2365_v4  ;;  %2335 = vst.msk [vmem:[#allocation2 + $0x38] sm:$0xff] %vm429_vm0, %v2303_v3  ;;  %v1811_v62 = vld [vmem:[#allocation2 + $0x70] sm:$0xff] }
 0x1d4   : > { %v2926_v9 = vld [vmem:[#allocation2 + $0x18] sm:$0xff]  ;;  %v2201_v1 = vpop.f32.mrf.mxu1  ;;  %v2764_v11 = vpop.f32.mrf.mxu0 }
 0x1d5   : > { %v2956_v12 = vmax.f32 %v2924_v8, %v2926_v9  ;;  %2896 = vst.msk [vmem:[#allocation2 + $0x28] sm:$0xff] %vm429_vm0, %v2864_v7  ;;  %v2304_v14 = vadd.f32 %v2201_v1, %v1805_v10 }
 0x1d6   : > { %v2366_v15 = vld [vmem:[#allocation2 + $0x30] sm:$0xff]  ;;  %v2203_v17 = vpop.f32.mrf.mxu1  ;;  %v2766_v18 = vpop.f32.mrf.mxu0 }
 0x1d7   : > { %2972 = vst.msk [vmem:[#allocation2 + $0x8] sm:$0xff] %vm429_vm0, %v2956_v12  ;;  %v2865_v19 = vadd.f32 %v2756_v53, %v2366_v15  ;;  %2336 = vst.msk [vmem:[#allocation2 + $0x40] sm:$0xff] %vm429_vm0, %v2304_v14 }
 0x1d8   : > { %v2204_v22 = vpop.f32.mrf.mxu1  ;;  %v2767_v23 = vpop.f32.mrf.mxu0  ;;  %v2927_v38 = vld [vmem:[#allocation2 + $0x20] sm:$0xff] }
 0x1d9   : > { %2897 = vst.msk [vmem:[#allocation2 + $0x30] sm:$0xff] %vm429_vm0, %v2865_v19  ;;  %v2305_v21 = vadd.f32 %v2204_v22, %v1806_v20  ;;  %v1812_v20 = vld [vmem:[#allocation2 + $0x78] sm:$0xff] }
 0x1da   : > { %v2367_v24 = vld [vmem:[#allocation2 + $0x38] sm:$0xff]  ;;  %v2206_v5 = vpop.f32.mrf.mxu1  ;;  %v2769_v25 = vpop.f32.mrf.mxu0 }
 0x1db   : > { %v2866_v26 = vadd.f32 %v2759_v0, %v2367_v24  ;;  %2337 = vst.msk [vmem:[#allocation2 + $0x48] sm:$0xff] %vm429_vm0, %v2305_v21 }
 0x1dc   : > { %v2209_v28 = vpop.f32.mrf.mxu1  ;;  %v2772_v13 = vpop.f32.mrf.mxu0  ;;  %v2928_v49 = vld [vmem:[#allocation2 + $0x28] sm:$0xff] }
 0x1dd   : > { %2898 = vst.msk [vmem:[#allocation2 + $0x38] sm:$0xff] %vm429_vm0, %v2866_v26  ;;  %v2306_v30 = vadd.f32 %v2209_v28, %v1807_v27 }
 0x1de   : > { %v2987_v31 = vld [vmem:[#allocation2] ss:$2 sm:$0xff]  ;;  %v3003_v32 = vld [vmem:[#allocation2 + $0x1] ss:$2 sm:$0xff]  ;;  %v2211_v34 = vpop.f32.mrf.mxu1  ;;  %v2774_v35 = vpop.f32.mrf.mxu0 }
 0x1df   : > { %v2368_v33 = vld [vmem:[#allocation2 + $0x40] sm:$0xff]  ;;  %v3018_v36 = vmax.f32 %v2987_v31, %v3003_v32  ;;  %2338 = vst.msk [vmem:[#allocation2 + $0x50] sm:$0xff] %vm429_vm0, %v2306_v30 }
 0x1e0   : > { %v2867_v37 = vadd.f32 %v2764_v11, %v2368_v33  ;;  %v2929_v39 = vld [vmem:[#allocation2 + $0x30] sm:$0xff]  ;;  %v2212_v41 = vpop.f32.mrf.mxu1  ;;  %v2775_v42 = vpop.f32.mrf.mxu0  ;;  %v1813_v31 = vld [vmem:[#allocation2 + $0x80] sm:$0xff] }
 0x1e1   : > { %v3033_v43 = vadd.f32 %v4477_v29, %v3018_v36  ;;  %v2957_v44 = vmax.f32 %v2927_v38, %v2929_v39  ;;  %v2307_v16 = vadd.f32 %v2212_v41, %v1808_v40  ;;  %v1814_v40 = vld [vmem:[#allocation2 + $0x88] sm:$0xff] }
 0x1e2   : > { %2899 = vst.msk [vmem:[#allocation2 + $0x40] sm:$0xff] %vm429_vm0, %v2867_v37  ;;  %v2369_v45 = vld [vmem:[#allocation2 + $0x48] sm:$0xff]  ;;  %v2214_v46 = vpop.f32.mrf.mxu1  ;;  %v2777_v47 = vpop.f32.mrf.mxu0 }
 0x1e3   : > { %3041 = vst.msk [vmem:[%s4484_s27] sm:$0xff] %vm429_vm0, %v3033_v43  ;;  %2973 = vst.msk [vmem:[#allocation2 + $0x10] sm:$0xff] %vm429_vm0, %v2957_v44  ;;  %v2868_v48 = vadd.f32 %v2767_v23, %v2369_v45  ;;  %v1815_v47 = vld [vmem:[#allocation2 + $0x90] sm:$0xff] }
 0x1e4   : > { %2339 = vst.msk [vmem:[#allocation2 + $0x58] sm:$0xff] %vm429_vm0, %v2307_v16  ;;  %v2930_v50 = vld [vmem:[#allocation2 + $0x38] sm:$0xff]  ;;  %v2217_v52 = vpop.f32.mrf.mxu1  ;;  %v2780_v53 = vpop.f32.mrf.mxu0 }
 0x1e5   : > { %v2958_v54 = vmax.f32 %v2928_v49, %v2930_v50  ;;  %2900 = vst.msk [vmem:[#allocation2 + $0x48] sm:$0xff] %vm429_vm0, %v2868_v48  ;;  %v2308_v55 = vadd.f32 %v2217_v52, %v1809_v51 }
 0x1e6   : > { %v2370_v56 = vld [vmem:[#allocation2 + $0x50] sm:$0xff]  ;;  %v2219_v57 = vpop.f32.mrf.mxu1  ;;  %v2782_v58 = vpop.f32.mrf.mxu0 }
 0x1e7   : > { %2974 = vst.msk [vmem:[#allocation2 + $0x18] sm:$0xff] %vm429_vm0, %v2958_v54  ;;  %v2869_v59 = vadd.f32 %v2772_v13, %v2370_v56  ;;  %2340 = vst.msk [vmem:[#allocation2 + $0x60] sm:$0xff] %vm429_vm0, %v2308_v55 }
 0x1e8   : > { %v2220_v60 = vpop.f32.mrf.mxu1  ;;  %v2783_v63 = vpop.f32.mrf.mxu0 }
 0x1e9   : > { %2901 = vst.msk [vmem:[#allocation2 + $0x50] sm:$0xff] %vm429_vm0, %v2869_v59  ;;  %v2309_v0 = vadd.f32 %v2220_v60, %v1810_v61  ;;  %v2931_v18 = vld [vmem:[#allocation2 + $0x40] sm:$0xff]  ;;  %v1816_v61 = vld [vmem:[#allocation2 + $0x98] sm:$0xff] }
 0x1ea   : > { %v2222_v3 = vpop.f32.mrf.mxu1  ;;  %v2785_v4 = vpop.f32.mrf.mxu0 }
 0x1eb   : > { %v2371_v2 = vld [vmem:[#allocation2 + $0x58] sm:$0xff]  ;;  %2341 = vst.msk [vmem:[#allocation2 + $0x68] sm:$0xff] %vm429_vm0, %v2309_v0 }
 0x1ec   : > { %v2870_v6 = vadd.f32 %v2775_v42, %v2371_v2  ;;  %v2225_v7 = vpop.f32.mrf.mxu1  ;;  %v2788_v8 = vpop.f32.mrf.mxu0  ;;  %v2932_v13 = vld [vmem:[#allocation2 + $0x48] sm:$0xff] }
 0x1ed   : > { %v2310_v9 = vadd.f32 %v2225_v7, %v1811_v62 }
 0x1ee   : > { %2902 = vst.msk [vmem:[#allocation2 + $0x58] sm:$0xff] %vm429_vm0, %v2870_v6  ;;  %v2989_v10 = vld [vmem:[#allocation2 + $0x10] ss:$2 sm:$0xff]  ;;  %v3005_v1 = vld [vmem:[#allocation2 + $0x11] ss:$2 sm:$0xff]  ;;  %v2372_v11 = vld [vmem:[#allocation2 + $0x60] sm:$0xff]  ;;  %v2227_v12 = vpop.f32.mrf.mxu1  ;;  %v2790_v14 = vpop.f32.mrf.mxu0 }
 0x1ef   : > { %v3019_v15 = vmax.f32 %v2989_v10, %v3005_v1  ;;  %v2871_v17 = vadd.f32 %v2780_v53, %v2372_v11  ;;  %2342 = vst.msk [vmem:[#allocation2 + $0x70] sm:$0xff] %vm429_vm0, %v2310_v9  ;;  %v1817_v10 = vld [vmem:[#allocation2 + $0xa0] sm:$0xff] }
 0x1f0   : > { %v2933_v19 = vld [vmem:[#allocation2 + $0x50] sm:$0xff]  ;;  %v2228_v22 = vpop.f32.mrf.mxu1  ;;  %v2791_v23 = vpop.f32.mrf.mxu0 }
 0x1f1   : > { %v3034_v21 = vadd.f32 %v4477_v29, %v3019_v15  ;;  %v2959_v24 = vmax.f32 %v2931_v18, %v2933_v19  ;;  %2903 = vst.msk [vmem:[#allocation2 + $0x60] sm:$0xff] %vm429_vm0, %v2871_v17  ;;  %v2311_v5 = vadd.f32 %v2228_v22, %v1812_v20  ;;  %v1818_v20 = vld [vmem:[#allocation2 + $0xa8] sm:$0xff] }
 0x1f2   : > { %v2373_v25 = vld [vmem:[#allocation2 + $0x68] sm:$0xff]  ;;  %v2230_v26 = vpop.f32.mrf.mxu1  ;;  %v2793_v27 = vpop.f32.mrf.mxu0 }
 0x1f3   : > { %3042 = vst.msk [vmem:[%s4484_s27 + $0x8] sm:$0xff] %vm429_vm0, %v3034_v21  ;;  %2975 = vst.msk [vmem:[#allocation2 + $0x20] sm:$0xff] %vm429_vm0, %v2959_v24  ;;  %v2872_v28 = vadd.f32 %v2783_v63, %v2373_v25  ;;  %v1819_v27 = vld [vmem:[#allocation2 + $0xb0] sm:$0xff] }
 0x1f4   : > { %2343 = vst.msk [vmem:[#allocation2 + $0x78] sm:$0xff] %vm429_vm0, %v2311_v5  ;;  %v2233_v32 = vpop.f32.mrf.mxu1  ;;  %v2796_v33 = vpop.f32.mrf.mxu0 }
 0x1f5   : > { %v2934_v30 = vld [vmem:[#allocation2 + $0x58] sm:$0xff]  ;;  %2904 = vst.msk [vmem:[#allocation2 + $0x68] sm:$0xff] %vm429_vm0, %v2872_v28  ;;  %v2312_v35 = vadd.f32 %v2233_v32, %v1813_v31 }
 0x1f6   : > { %v2960_v34 = vmax.f32 %v2932_v13, %v2934_v30  ;;  %v2374_v36 = vld [vmem:[#allocation2 + $0x70] sm:$0xff]  ;;  %v2235_v37 = vpop.f32.mrf.mxu1  ;;  %v2798_v38 = vpop.f32.mrf.mxu0 }
 0x1f7   : > { %v2873_v39 = vadd.f32 %v2788_v8, %v2374_v36  ;;  %2344 = vst.msk [vmem:[#allocation2 + $0x80] sm:$0xff] %vm429_vm0, %v2312_v35 }
 0x1f8   : > { %2976 = vst.msk [vmem:[#allocation2 + $0x28] sm:$0xff] %vm429_vm0, %v2960_v34  ;;  %v2236_v41 = vpop.f32.mrf.mxu1  ;;  %v2799_v42 = vpop.f32.mrf.mxu0  ;;  %v2935_v58 = vld [vmem:[#allocation2 + $0x60] sm:$0xff] }
 0x1f9   : > { %2905 = vst.msk [vmem:[#allocation2 + $0x70] sm:$0xff] %vm429_vm0, %v2873_v39  ;;  %v2313_v43 = vadd.f32 %v2236_v41, %v1814_v40  ;;  %v1820_v40 = vld [vmem:[#allocation2 + $0xb8] sm:$0xff] }
 0x1fa   : > { %v2238_v16 = vpop.f32.mrf.mxu1  ;;  %v2801_v45 = vpop.f32.mrf.mxu0 }
 0x1fb   : > { %v2375_v44 = vld [vmem:[#allocation2 + $0x78] sm:$0xff]  ;;  %2345 = vst.msk [vmem:[#allocation2 + $0x88] sm:$0xff] %vm429_vm0, %v2313_v43 }
 0x1fc   : > { %v2874_v46 = vadd.f32 %v2791_v23, %v2375_v44  ;;  %v2241_v48 = vpop.f32.mrf.mxu1  ;;  %v2804_v49 = vpop.f32.mrf.mxu0  ;;  %v2936_v8 = vld [vmem:[#allocation2 + $0x68] sm:$0xff] }
 0x1fd   : > { %v2314_v50 = vadd.f32 %v2241_v48, %v1815_v47 }
 0x1fe   : > { %2906 = vst.msk [vmem:[#allocation2 + $0x78] sm:$0xff] %vm429_vm0, %v2874_v46  ;;  %v2376_v53 = vld [vmem:[#allocation2 + $0x80] sm:$0xff]  ;;  %v2243_v54 = vpop.f32.mrf.mxu1  ;;  %v2806_v55 = vpop.f32.mrf.mxu0 }
 0x1ff   : > { %v2991_v51 = vld [vmem:[#allocation2 + $0x20] ss:$2 sm:$0xff]  ;;  %v3007_v52 = vld [vmem:[#allocation2 + $0x21] ss:$2 sm:$0xff]  ;;  %v2875_v57 = vadd.f32 %v2796_v33, %v2376_v53  ;;  %2346 = vst.msk [vmem:[#allocation2 + $0x90] sm:$0xff] %vm429_vm0, %v2314_v50 }
 0x200   : > { %v3020_v56 = vmax.f32 %v2991_v51, %v3007_v52  ;;  %v2937_v59 = vld [vmem:[#allocation2 + $0x70] sm:$0xff]  ;;  %v2244_v60 = vpop.f32.mrf.mxu1  ;;  %v2807_v63 = vpop.f32.mrf.mxu0  ;;  %v1821_v51 = vld [vmem:[#allocation2 + $0xc0] sm:$0xff] }
 0x201   : > { %v2961_v2 = vmax.f32 %v2935_v58, %v2937_v59  ;;  %2907 = vst.msk [vmem:[#allocation2 + $0x80] sm:$0xff] %vm429_vm0, %v2875_v57  ;;  %v2315_v3 = vadd.f32 %v2244_v60, %v1816_v61  ;;  %v1822_v61 = vld [vmem:[#allocation2 + $0xc8] sm:$0xff] }
 0x202   : > { %v3035_v0 = vadd.f32 %v4477_v29, %v3020_v56  ;;  %v2377_v4 = vld [vmem:[#allocation2 + $0x88] sm:$0xff]  ;;  %v2246_v6 = vpop.f32.mrf.mxu1  ;;  %v2809_v62 = vpop.f32.mrf.mxu0 }
 0x203   : > { %2977 = vst.msk [vmem:[#allocation2 + $0x30] sm:$0xff] %vm429_vm0, %v2961_v2  ;;  %v2876_v7 = vadd.f32 %v2799_v42, %v2377_v4  ;;  %2347 = vst.msk [vmem:[#allocation2 + $0x98] sm:$0xff] %vm429_vm0, %v2315_v3  ;;  %v1823_v62 = vld [vmem:[#allocation2 + $0xd0] sm:$0xff] }
 0x204   : > { %3043 = vst.msk [vmem:[%s4484_s27 + $0x10] sm:$0xff] %vm429_vm0, %v3035_v0  ;;  %v2249_v1 = vpop.f32.mrf.mxu1  ;;  %v2812_v11 = vpop.f32.mrf.mxu0 }
 0x205   : > { %v2938_v9 = vld [vmem:[#allocation2 + $0x78] sm:$0xff]  ;;  %2908 = vst.msk [vmem:[#allocation2 + $0x88] sm:$0xff] %vm429_vm0, %v2876_v7  ;;  %v2316_v14 = vadd.f32 %v2249_v1, %v1817_v10 }
 0x206   : > { %v2962_v12 = vmax.f32 %v2936_v8, %v2938_v9  ;;  %v2378_v15 = vld [vmem:[#allocation2 + $0x90] sm:$0xff]  ;;  %v2251_v17 = vpop.f32.mrf.mxu1  ;;  %v2814_v18 = vpop.f32.mrf.mxu0 }
 0x207   : > { %v2877_v19 = vadd.f32 %v2804_v49, %v2378_v15  ;;  %2348 = vst.msk [vmem:[#allocation2 + $0xa0] sm:$0xff] %vm429_vm0, %v2316_v14 }
 0x208   : > { %2978 = vst.msk [vmem:[#allocation2 + $0x38] sm:$0xff] %vm429_vm0, %v2962_v12  ;;  %v2252_v22 = vpop.f32.mrf.mxu1  ;;  %v2815_v23 = vpop.f32.mrf.mxu0  ;;  %v2939_v38 = vld [vmem:[#allocation2 + $0x80] sm:$0xff] }
 0x209   : > { %2909 = vst.msk [vmem:[#allocation2 + $0x90] sm:$0xff] %vm429_vm0, %v2877_v19  ;;  %v2317_v21 = vadd.f32 %v2252_v22, %v1818_v20  ;;  %v1824_v20 = vld [vmem:[#allocation2 + $0xd8] sm:$0xff] }
 0x20a   : > { %v2379_v24 = vld [vmem:[#allocation2 + $0x98] sm:$0xff]  ;;  %v2254_v5 = vpop.f32.mrf.mxu1  ;;  %v2817_v25 = vpop.f32.mrf.mxu0 }
 0x20b   : > { %v2878_v26 = vadd.f32 %v2807_v63, %v2379_v24  ;;  %2349 = vst.msk [vmem:[#allocation2 + $0xa8] sm:$0xff] %vm429_vm0, %v2317_v21 }
 0x20c   : > { %v2257_v28 = vpop.f32.mrf.mxu1  ;;  %v2820_v13 = vpop.f32.mrf.mxu0  ;;  %v2940_v49 = vld [vmem:[#allocation2 + $0x88] sm:$0xff] }
 0x20d   : > { %2910 = vst.msk [vmem:[#allocation2 + $0x98] sm:$0xff] %vm429_vm0, %v2878_v26  ;;  %v2318_v30 = vadd.f32 %v2257_v28, %v1819_v27 }
 0x20e   : > { %v2380_v33 = vld [vmem:[#allocation2 + $0xa0] sm:$0xff]  ;;  %v2259_v34 = vpop.f32.mrf.mxu1  ;;  %v2822_v35 = vpop.f32.mrf.mxu0 }
 0x20f   : > { %v2993_v31 = vld [vmem:[#allocation2 + $0x30] ss:$2 sm:$0xff]  ;;  %v3009_v32 = vld [vmem:[#allocation2 + $0x31] ss:$2 sm:$0xff]  ;;  %v2879_v37 = vadd.f32 %v2812_v11, %v2380_v33  ;;  %2350 = vst.msk [vmem:[#allocation2 + $0xb0] sm:$0xff] %vm429_vm0, %v2318_v30 }
 0x210   : > { %v3021_v36 = vmax.f32 %v2993_v31, %v3009_v32  ;;  %v2941_v39 = vld [vmem:[#allocation2 + $0x90] sm:$0xff]  ;;  %v2260_v41 = vpop.f32.mrf.mxu1  ;;  %v2823_v42 = vpop.f32.mrf.mxu0  ;;  %v1825_v31 = vld [vmem:[#allocation2 + $0xe0] sm:$0xff] }
 0x211   : > { %v2963_v44 = vmax.f32 %v2939_v38, %v2941_v39  ;;  %2911 = vst.msk [vmem:[#allocation2 + $0xa0] sm:$0xff] %vm429_vm0, %v2879_v37  ;;  %v2319_v16 = vadd.f32 %v2260_v41, %v1820_v40  ;;  %v1826_v40 = vld [vmem:[#allocation2 + $0xe8] sm:$0xff] }
 0x212   : > { %v3036_v43 = vadd.f32 %v4477_v29, %v3021_v36  ;;  %v2381_v45 = vld [vmem:[#allocation2 + $0xa8] sm:$0xff]  ;;  %v2262_v46 = vpop.f32.mrf.mxu1  ;;  %v2825_v47 = vpop.f32.mrf.mxu0 }
 0x213   : > { %2979 = vst.msk [vmem:[#allocation2 + $0x40] sm:$0xff] %vm429_vm0, %v2963_v44  ;;  %v2880_v48 = vadd.f32 %v2815_v23, %v2381_v45  ;;  %2351 = vst.msk [vmem:[#allocation2 + $0xb8] sm:$0xff] %vm429_vm0, %v2319_v16  ;;  %v1827_v47 = vld [vmem:[#allocation2 + $0xf0] sm:$0xff] }
 0x214   : > { %3044 = vst.msk [vmem:[%s4484_s27 + $0x18] sm:$0xff] %vm429_vm0, %v3036_v43  ;;  %v2942_v50 = vld [vmem:[#allocation2 + $0x98] sm:$0xff]  ;;  %v2265_v52 = vpop.f32.mrf.mxu1  ;;  %v2828_v53 = vpop.f32.mrf.mxu0 }
 0x215   : > { %v2964_v54 = vmax.f32 %v2940_v49, %v2942_v50  ;;  %2912 = vst.msk [vmem:[#allocation2 + $0xa8] sm:$0xff] %vm429_vm0, %v2880_v48  ;;  %v2320_v55 = vadd.f32 %v2265_v52, %v1821_v51 }
 0x216   : > { %v2382_v56 = vld [vmem:[#allocation2 + $0xb0] sm:$0xff]  ;;  %v2267_v57 = vpop.f32.mrf.mxu1  ;;  %v2830_v58 = vpop.f32.mrf.mxu0 }
 0x217   : > { %2980 = vst.msk [vmem:[#allocation2 + $0x48] sm:$0xff] %vm429_vm0, %v2964_v54  ;;  %v2881_v59 = vadd.f32 %v2820_v13, %v2382_v56  ;;  %2352 = vst.msk [vmem:[#allocation2 + $0xc0] sm:$0xff] %vm429_vm0, %v2320_v55 }
 0x218   : > { %v2268_v60 = vpop.f32.mrf.mxu1  ;;  %v2831_v63 = vpop.f32.mrf.mxu0  ;;  %v2943_v18 = vld [vmem:[#allocation2 + $0xa0] sm:$0xff] }
 0x219   : > { %2913 = vst.msk [vmem:[#allocation2 + $0xb0] sm:$0xff] %vm429_vm0, %v2881_v59  ;;  %v2321_v0 = vadd.f32 %v2268_v60, %v1822_v61  ;;  %v1828_v61 = vld [vmem:[#allocation2 + $0xf8] sm:$0xff] }
 0x21a   : > { %v2383_v2 = vld [vmem:[#allocation2 + $0xb8] sm:$0xff]  ;;  %v2270_v3 = vpop.f32.mrf.mxu1  ;;  %v2833_v4 = vpop.f32.mrf.mxu0 }
 0x21b   : > { %v2882_v6 = vadd.f32 %v2823_v42, %v2383_v2  ;;  %2353 = vst.msk [vmem:[#allocation2 + $0xc8] sm:$0xff] %vm429_vm0, %v2321_v0 }
 0x21c   : > { %v2273_v7 = vpop.f32.mrf.mxu1  ;;  %v2836_v8 = vpop.f32.mrf.mxu0  ;;  %v2944_v13 = vld [vmem:[#allocation2 + $0xa8] sm:$0xff] }
 0x21d   : > { %2914 = vst.msk [vmem:[#allocation2 + $0xb8] sm:$0xff] %vm429_vm0, %v2882_v6  ;;  %v2322_v9 = vadd.f32 %v2273_v7, %v1823_v62 }
 0x21e   : > { %v2995_v10 = vld [vmem:[#allocation2 + $0x40] ss:$2 sm:$0xff]  ;;  %v3011_v1 = vld [vmem:[#allocation2 + $0x41] ss:$2 sm:$0xff]  ;;  %v2275_v12 = vpop.f32.mrf.mxu1  ;;  %v2838_v14 = vpop.f32.mrf.mxu0 }
 0x21f   : > { %v2384_v11 = vld [vmem:[#allocation2 + $0xc0] sm:$0xff]  ;;  %v3022_v15 = vmax.f32 %v2995_v10, %v3011_v1  ;;  %2354 = vst.msk [vmem:[#allocation2 + $0xd0] sm:$0xff] %vm429_vm0, %v2322_v9 }
 0x220   : > { %v2883_v17 = vadd.f32 %v2828_v53, %v2384_v11  ;;  %v2945_v19 = vld [vmem:[#allocation2 + $0xb0] sm:$0xff]  ;;  %v2276_v22 = vpop.f32.mrf.mxu1  ;;  %v2839_v23 = vpop.f32.mrf.mxu0 }
 0x221   : > { %v3037_v21 = vadd.f32 %v4477_v29, %v3022_v15  ;;  %v2965_v24 = vmax.f32 %v2943_v18, %v2945_v19  ;;  %v2323_v5 = vadd.f32 %v2276_v22, %v1824_v20 }
 0x222   : > { %2915 = vst.msk [vmem:[#allocation2 + $0xc0] sm:$0xff] %vm429_vm0, %v2883_v17  ;;  %v2385_v25 = vld [vmem:[#allocation2 + $0xc8] sm:$0xff]  ;;  %v2278_v26 = vpop.f32.mrf.mxu1  ;;  %v2841_v27 = vpop.f32.mrf.mxu0 }
 0x223   : > { %3045 = vst.msk [vmem:[%s4484_s27 + $0x20] sm:$0xff] %vm429_vm0, %v3037_v21  ;;  %2981 = vst.msk [vmem:[#allocation2 + $0x50] sm:$0xff] %vm429_vm0, %v2965_v24  ;;  %v2884_v28 = vadd.f32 %v2831_v63, %v2385_v25 }
 0x224   : > { %2355 = vst.msk [vmem:[#allocation2 + $0xd8] sm:$0xff] %vm429_vm0, %v2323_v5  ;;  %v2946_v30 = vld [vmem:[#allocation2 + $0xb8] sm:$0xff]  ;;  %v2281_v32 = vpop.f32.mrf.mxu1  ;;  %v2844_v33 = vpop.f32.mrf.mxu0 }
 0x225   : > { %v2966_v34 = vmax.f32 %v2944_v13, %v2946_v30  ;;  %2916 = vst.msk [vmem:[#allocation2 + $0xc8] sm:$0xff] %vm429_vm0, %v2884_v28  ;;  %v2324_v35 = vadd.f32 %v2281_v32, %v1825_v31 }
 0x226   : > { %v2386_v36 = vld [vmem:[#allocation2 + $0xd0] sm:$0xff]  ;;  %v2283_v37 = vpop.f32.mrf.mxu1  ;;  %v2846_v38 = vpop.f32.mrf.mxu0 }
 0x227   : > { %2982 = vst.msk [vmem:[#allocation2 + $0x58] sm:$0xff] %vm429_vm0, %v2966_v34  ;;  %v2885_v39 = vadd.f32 %v2836_v8, %v2386_v36  ;;  %2356 = vst.msk [vmem:[#allocation2 + $0xe0] sm:$0xff] %vm429_vm0, %v2324_v35 }
 0x228   : > { %v2284_v41 = vpop.f32.mrf.mxu1  ;;  %v2847_v42 = vpop.f32.mrf.mxu0 }
 0x229   : > { %2917 = vst.msk [vmem:[#allocation2 + $0xd0] sm:$0xff] %vm429_vm0, %v2885_v39  ;;  %v2325_v43 = vadd.f32 %v2284_v41, %v1826_v40  ;;  %v2947_v58 = vld [vmem:[#allocation2 + $0xc0] sm:$0xff] }
 0x22a   : > { %v2286_v16 = vpop.f32.mrf.mxu1  ;;  %v2849_v45 = vpop.f32.mrf.mxu0 }
 0x22b   : > { %v2387_v44 = vld [vmem:[#allocation2 + $0xd8] sm:$0xff]  ;;  %2357 = vst.msk [vmem:[#allocation2 + $0xe8] sm:$0xff] %vm429_vm0, %v2325_v43 }
 0x22c   : > { %v2886_v46 = vadd.f32 %v2839_v23, %v2387_v44  ;;  %v2289_v48 = vpop.f32.mrf.mxu1  ;;  %v2852_v49 = vpop.f32.mrf.mxu0  ;;  %v2948_v8 = vld [vmem:[#allocation2 + $0xc8] sm:$0xff] }
 0x22d   : > { %v2326_v50 = vadd.f32 %v2289_v48, %v1827_v47 }
 0x22e   : > { %2918 = vst.msk [vmem:[#allocation2 + $0xd8] sm:$0xff] %vm429_vm0, %v2886_v46  ;;  %v2997_v51 = vld [vmem:[#allocation2 + $0x50] ss:$2 sm:$0xff]  ;;  %v3013_v52 = vld [vmem:[#allocation2 + $0x51] ss:$2 sm:$0xff]  ;;  %v2388_v53 = vld [vmem:[#allocation2 + $0xe0] sm:$0xff]  ;;  %v2291_v54 = vpop.f32.mrf.mxu1  ;;  %v2854_v55 = vpop.f32.mrf.mxu0 }
 0x22f   : > { %v3023_v56 = vmax.f32 %v2997_v51, %v3013_v52  ;;  %v2887_v57 = vadd.f32 %v2844_v33, %v2388_v53  ;;  %2358 = vst.msk [vmem:[#allocation2 + $0xf0] sm:$0xff] %vm429_vm0, %v2326_v50 }
 0x230   : > { %v2949_v59 = vld [vmem:[#allocation2 + $0xd0] sm:$0xff]  ;;  %v2292_v60 = vpop.f32.mrf.mxu1  ;;  %v2855_v63 = vpop.f32.mrf.mxu0 }
 0x231   : > { %v3038_v0 = vadd.f32 %v4477_v29, %v3023_v56  ;;  %v2967_v2 = vmax.f32 %v2947_v58, %v2949_v59  ;;  %2919 = vst.msk [vmem:[#allocation2 + $0xe0] sm:$0xff] %vm429_vm0, %v2887_v57  ;;  %v2327_v3 = vadd.f32 %v2292_v60, %v1828_v61 }
 0x232   : > { %v2389_v4 = vld [vmem:[#allocation2 + $0xe8] sm:$0xff]  ;;  %v2294_v6 = vpop.f32.mrf.mxu1  ;;  %v2857_v62 = vpop.f32.mrf.mxu0 }
 0x233   : > { %3046 = vst.msk [vmem:[%s4484_s27 + $0x28] sm:$0xff] %vm429_vm0, %v3038_v0  ;;  %2983 = vst.msk [vmem:[#allocation2 + $0x60] sm:$0xff] %vm429_vm0, %v2967_v2  ;;  %v2888_v7 = vadd.f32 %v2847_v42, %v2389_v4 }
 0x234   : > { %2359 = vst.msk [vmem:[#allocation2 + $0xf8] sm:$0xff] %vm429_vm0, %v2327_v3 }
 0x235   : > { %v2950_v9 = vld [vmem:[#allocation2 + $0xd8] sm:$0xff]  ;;  %2920 = vst.msk [vmem:[#allocation2 + $0xe8] sm:$0xff] %vm429_vm0, %v2888_v7 }
 0x236   : > { %v2968_v10 = vmax.f32 %v2948_v8, %v2950_v9  ;;  %v2390_v1 = vld [vmem:[#allocation2 + $0xf0] sm:$0xff] }
 0x237   : > { %v2889_v11 = vadd.f32 %v2852_v49, %v2390_v1 }
 0x238   : > { %2984 = vst.msk [vmem:[#allocation2 + $0x68] sm:$0xff] %vm429_vm0, %v2968_v10  ;;  %v2951_v19 = vld [vmem:[#allocation2 + $0xe0] sm:$0xff] }
 0x239   : > { %2921 = vst.msk [vmem:[#allocation2 + $0xf0] sm:$0xff] %vm429_vm0, %v2889_v11 }
 0x23b   : > { %v2391_v12 = vld [vmem:[#allocation2 + $0xf8] sm:$0xff] }
 0x23c   : > { %v2890_v14 = vadd.f32 %v2855_v63, %v2391_v12  ;;  %v2952_v21 = vld [vmem:[#allocation2 + $0xe8] sm:$0xff] }
 0x23e   : > { %2922 = vst.msk [vmem:[#allocation2 + $0xf8] sm:$0xff] %vm429_vm0, %v2890_v14 }
 0x23f   : > { %v2999_v15 = vld [vmem:[#allocation2 + $0x60] ss:$2 sm:$0xff]  ;;  %v3015_v17 = vld [vmem:[#allocation2 + $0x61] ss:$2 sm:$0xff] }
 0x240   : > { %v3024_v18 = vmax.f32 %v2999_v15, %v3015_v17  ;;  %v2953_v20 = vld [vmem:[#allocation2 + $0xf0] sm:$0xff] }
 0x241   : > { %v2969_v23 = vmax.f32 %v2951_v19, %v2953_v20 }
 0x242   : > { %v3039_v22 = vadd.f32 %v4477_v29, %v3024_v18 }
 0x243   : > { %2985 = vst.msk [vmem:[#allocation2 + $0x70] sm:$0xff] %vm429_vm0, %v2969_v23 }
 0x244   : > { %3047 = vst.msk [vmem:[%s4484_s27 + $0x30] sm:$0xff] %vm429_vm0, %v3039_v22 }
 0x245   : > { %v2954_v24 = vld [vmem:[#allocation2 + $0xf8] sm:$0xff] }
 0x246   : > { %v2970_v5 = vmax.f32 %v2952_v21, %v2954_v24 }
 0x248   : > { %2986 = vst.msk [vmem:[#allocation2 + $0x78] sm:$0xff] %vm429_vm0, %v2970_v5 }
 0x24f   : > { %v3001_v25 = vld [vmem:[#allocation2 + $0x70] ss:$2 sm:$0xff]  ;;  %v3017_v26 = vld [vmem:[#allocation2 + $0x71] ss:$2 sm:$0xff] }
 0x250   : > { %v3025_v27 = vmax.f32 %v3001_v25, %v3017_v26 }
 0x252   : > { %v3040_v28 = vadd.f32 %v4477_v29, %v3025_v27 }
 0x254   : > { %3048 = vst.msk [vmem:[%s4484_s27 + $0x38] sm:$0xff] %vm429_vm0, %v3040_v28 }
 0x255 PF: > { %s13_s12 = sadd.s32 1, %s3774_s12  }
 0x256   : > { %p10_p5 = scmp.ge.s32.totalorder %s13_s12, 4  }
 0x258   :  { %12 = sbr.rel (!%p10_p5) target bundleno = 1 (0x1), region = 85 }

// kernel: forward.6
= control target key start
LH: loop header
LB: loop body
LE: loop exit
PB: predicated region body
PF: predicated region fallthrough
CT: control target
= control target key end

     0   :  { %s1748_s12 = smov 0   ;;  %s2121_s0 = inlined_call_operand.vmem [shape: bf16[2,12,8,160], index: 0, kind: input, shape index: {}]   ;;  %s2122_s1 = inlined_call_operand.vmem [shape: bf16[5,160,64], index: 1, kind: input, shape index: {}]   ;;  %s2123_s2 = inlined_call_operand.vmem [shape: f32[1,64], index: 2, kind: input, shape index: {}]   ;;  %s2124_s3 = inlined_call_operand.vmem [shape: f32[32,64], index: 3, kind: output, shape index: {}]  }
   0x1 LB: > { %s1754_s13 = sadd.s32 4294967295, %s1725_s12   ;;  %p1388_p0 = scmp.ge.s32.totalorder %s1725_s12, 1  ;;  %s1725_s12 = sphi %s1748_s12, %s13_s12  }
   0x2   : > { %p137_p1 = scmp.lt.s32.totalorder %s1725_s12, 3 }
   0x4   : > { %p138_p2 = pnand %p1388_p0, %p137_p1 }
   0x5   : > { %p161_p3 = scmp.lt.s32.totalorder (!%p138_p2), %s1754_s13, 1 }
   0x6   : > { %141 = sbr.rel (%p138_p2) target bundleno = 363 (0x16b), region = 32 }
   0xb   : > { %v1647_v0 = vld [vmem:[%s2122_s1 + $0x38] sm:$0xff]   ;;  %v1727_v1 = vmov 0   ;;  %v1648_v2 = vld [vmem:[%s2122_s1 + $0x88] sm:$0xff]   ;;  %v1649_v3 = vld [vmem:[%s2122_s1 + $0x30] sm:$0xff]   ;;  %s162_s26 = scalar_select %p161_p3, %s1754_s13, 1  ;;  %vm297_vm0 = vcmask 261120  }
   0xc   : > { %310 = vmatprep.subr.bf16.mxu0 %v1727_v1  ;;  %530 = vmatprep.subr.bf16.mxu1 %v1727_v1  ;;  %v1650_v4 = vld [vmem:[%s2122_s1 + $0x80] sm:$0xff]   ;;  %v1651_v5 = vld [vmem:[%s2122_s1 + $0x28] sm:$0xff]   ;;  %v1652_v6 = vld [vmem:[%s2122_s1 + $0x78] sm:$0xff]   ;;  %vm375_vm1 = vcmask 523264  }
   0xd   : > { %311 = vmatpush1.bf16.msra.mxu0 %v1647_v0  ;;  %531 = vmatpush1.bf16.msra.mxu1 %v1648_v2  ;;  %v1653_v7 = vld [vmem:[%s2122_s1 + $0x20] sm:$0xff]   ;;  %v1654_v8 = vld [vmem:[%s2122_s1 + $0x70] sm:$0xff]   ;;  %s1637_s4 = smul.u32 96, %s162_s26  ;;  %v1655_v9 = vld [vmem:[%s2122_s1 + $0x18] sm:$0xff]  }
   0xe   : > { %312 = vmatprep.subr.bf16.mxu0 %v1727_v1  ;;  %532 = vmatprep.subr.bf16.mxu1 %v1727_v1  ;;  %v1656_v10 = vld [vmem:[%s2122_s1 + $0x68] sm:$0xff]   ;;  %v1657_v11 = vld [vmem:[%s2122_s1 + $0x10] sm:$0xff]   ;;  %v1658_v12 = vld [vmem:[%s2122_s1 + $0x60] sm:$0xff]  }
   0xf   : > { %s1803_s11 = scalar_lea.vmem %s2121_s0, %s1637_s4  ;;  %v1659_v18 = vld [vmem:[%s2122_s1 + $0x8] sm:$0xff]   ;;  %v1660_v19 = vld [vmem:[%s2122_s1 + $0x58] sm:$0xff]   ;;  %v1661_v20 = vld [vmem:[%s2122_s1] sm:$0xff]  }
  0x10   : > { %v173_v13 = vld [vmem:[%s1803_s11] sm:$0xff]  ;;  %v174_v14 = vld [vmem:[%s1803_s11 + $0x8] sm:$0xff]  ;;  %v1415_v15 = vld [vmem:[%s1803_s11 + $0x10] sm:$0xff] }
  0x11   : > { %313 = vmatpush1.bf16.msra.mxu0 %v1649_v3  ;;  %533 = vmatpush1.bf16.msra.mxu1 %v1650_v4  ;;  %v1393_v16 = vcombine.high %v173_v13, %v174_v14  ;;  %v1443_v17 = vcombine.high %v174_v14, %v1415_v15  ;;  %v1662_v21 = vld [vmem:[%s2122_s1 + $0x50] sm:$0xff]   ;;  %v1663_v22 = vld [vmem:[%s2122_s1 + $0x48] sm:$0xff]   ;;  %v1664_v23 = vld [vmem:[%s2122_s1 + $0x98] sm:$0xff]   ;;  %v1392_v27 = vcombine.low %v173_v13, %v174_v14 }
  0x12   : > { %314 = vmatprep.subr.bf16.mxu0 %v1727_v1  ;;  %534 = vmatprep.subr.bf16.mxu1 %v1727_v1  ;;  %v1665_v24 = vld [vmem:[%s2122_s1 + $0x40] sm:$0xff]   ;;  %v1666_v25 = vld [vmem:[%s2122_s1 + $0x90] sm:$0xff]   ;;  %v1671_v26 = vld [vmem:[%s2122_s1 + $0xd8] sm:$0xff]   ;;  %v1442_v29 = vcombine.low %v174_v14, %v1415_v15 }
  0x13   : > { %1410 = vmatprep.mubr.msk.bf16.mxu0 %vm297_vm0, %v1393_v16  ;;  %1460 = vmatprep.mubr.msk.bf16.mxu1 %vm297_vm0, %v1443_v17  ;;  %v176_v28 = vld [vmem:[%s1803_s11 + $0x18] sm:$0xff]  ;;  %v1417_v30 = vld [vmem:[%s1803_s11 + $0x20] sm:$0xff]  ;;  %v1672_v31 = vld [vmem:[%s2122_s1 + $0x128] sm:$0xff]  }
  0x14   : > { %v1860_v32 = vcombine.high %v1415_v15, %v176_v28  ;;  %v1862_v33 = vcombine.high %v176_v28, %v1417_v30  ;;  %v1673_v34 = vld [vmem:[%s2122_s1 + $0xd0] sm:$0xff]   ;;  %v1674_v35 = vld [vmem:[%s2122_s1 + $0x120] sm:$0xff]   ;;  %v1677_v36 = vld [vmem:[%s2122_s1 + $0xc8] sm:$0xff]   ;;  %v1877_v37 = vcombine.low %v1415_v15, %v176_v28  ;;  %v1882_v39 = vcombine.low %v176_v28, %v1417_v30 }
  0x15   : > { %315 = vmatpush1.bf16.msra.mxu0 %v1651_v5  ;;  %535 = vmatpush1.bf16.msra.mxu1 %v1652_v6  ;;  %v178_v38 = vld [vmem:[%s1803_s11 + $0x28] sm:$0xff]  ;;  %v1419_v40 = vld [vmem:[%s1803_s11 + $0x30] sm:$0xff]  ;;  %v1678_v41 = vld [vmem:[%s2122_s1 + $0x118] sm:$0xff]  }
  0x16   : > { %316 = vmatprep.subr.bf16.mxu0 %v1727_v1  ;;  %536 = vmatprep.subr.bf16.mxu1 %v1727_v1  ;;  %v1890_v42 = vcombine.high %v1417_v30, %v178_v38  ;;  %v1893_v43 = vcombine.high %v178_v38, %v1419_v40  ;;  %v1681_v44 = vld [vmem:[%s2122_s1 + $0xc0] sm:$0xff]   ;;  %v1682_v45 = vld [vmem:[%s2122_s1 + $0x110] sm:$0xff]   ;;  %v1906_v46 = vcombine.low %v1417_v30, %v178_v38  ;;  %v180_v47 = vld [vmem:[%s1803_s11 + $0x38] sm:$0xff] }
  0x17   : > { %v1685_v48 = vld [vmem:[%s2122_s1 + $0xb8] sm:$0xff]   ;;  %v1914_v49 = vcombine.low %v178_v38, %v1419_v40  ;;  %v1917_v50 = vld [vmem:[%s1803_s11 + $0x40] sm:$0xff]  ;;  %v1686_v51 = vld [vmem:[%s2122_s1 + $0x108] sm:$0xff]   ;;  %v1924_v52 = vcombine.high %v1419_v40, %v180_v47  ;;  %v1941_v56 = vcombine.low %v1419_v40, %v180_v47 }
  0x18   : > { %v1928_v53 = vcombine.high %v180_v47, %v1917_v50  ;;  %v1689_v54 = vld [vmem:[%s2122_s1 + $0xb0] sm:$0xff]   ;;  %v1690_v55 = vld [vmem:[%s2122_s1 + $0x100] sm:$0xff]   ;;  %v1693_v57 = vld [vmem:[%s2122_s1 + $0xa8] sm:$0xff]   ;;  %v1949_v58 = vcombine.low %v180_v47, %v1917_v50 }
  0x19   : > { %317 = vmatpush1.bf16.msra.mxu0 %v1653_v7  ;;  %537 = vmatpush1.bf16.msra.mxu1 %v1654_v8  ;;  %v1694_v59 = vld [vmem:[%s2122_s1 + $0xf8] sm:$0xff]   ;;  %v1697_v60 = vld [vmem:[%s2122_s1 + $0xa0] sm:$0xff]   ;;  %v1698_v61 = vld [vmem:[%s2122_s1 + $0xf0] sm:$0xff]  }
  0x1a   : > { %318 = vmatprep.subr.bf16.mxu0 %v1727_v1  ;;  %538 = vmatprep.subr.bf16.mxu1 %v1727_v1  ;;  %v1699_v62 = vld [vmem:[%s2122_s1 + $0xe8] sm:$0xff]   ;;  %v1700_v63 = vld [vmem:[%s2122_s1 + $0x138] sm:$0xff]   ;;  %v1701_v0 = vld [vmem:[%s2122_s1 + $0xe0] sm:$0xff]  }
  0x1b   : > { %v1702_v2 = vld [vmem:[%s2122_s1 + $0x130] sm:$0xff]   ;;  %v1703_v3 = vld [vmem:[%s2122_s1 + $0x178] sm:$0xff]   ;;  %v1705_v5 = vld [vmem:[%s2122_s1 + $0x168] sm:$0xff]  }
  0x1c   : > { %v1704_v4 = vld [vmem:[%s2122_s1 + $0x170] sm:$0xff]   ;;  %v1706_v6 = vld [vmem:[%s2122_s1 + $0x160] sm:$0xff]   ;;  %v1471_v7 = vld [vmem:[%s1803_s11 + $0x48] sm:$0xff] }
  0x1d   : > { %319 = vmatpush1.bf16.msra.mxu0 %v1655_v9  ;;  %539 = vmatpush1.bf16.msra.mxu1 %v1656_v10  ;;  %v1707_v8 = vld [vmem:[%s2122_s1 + $0x158] sm:$0xff]   ;;  %v1521_v9 = vld [vmem:[%s1803_s11 + $0x50] sm:$0xff]  ;;  %v1499_v10 = vcombine.high %v1917_v50, %v1471_v7  ;;  %v1498_v13 = vcombine.low %v1917_v50, %v1471_v7  ;;  %v1711_v14 = vld [vmem:[%s2122_s1 + $0x148] sm:$0xff]  }
  0x1e   : > { %320 = vmatprep.subr.bf16.mxu0 %v1727_v1  ;;  %540 = vmatprep.subr.bf16.mxu1 %v1727_v1  ;;  %v1548_v15 = vcombine.low %v1471_v7, %v1521_v9  ;;  %v1714_v16 = vld [vmem:[%s2122_s1 + $0x140] sm:$0xff]   ;;  %v1715_v17 = vld [vmem:[%s2122_s1 + $0x188] sm:$0xff]  }
  0x21   : > { %321 = vmatpush1.bf16.msra.mxu0 %v1657_v11  ;;  %541 = vmatpush1.bf16.msra.mxu1 %v1658_v12  ;;  %v1549_v11 = vcombine.high %v1471_v7, %v1521_v9  ;;  %v1708_v12 = vld [vmem:[%s2122_s1 + $0x150] sm:$0xff]  }
  0x22   : > { %322 = vmatprep.subr.bf16.mxu0 %v1727_v1  ;;  %542 = vmatprep.subr.bf16.mxu1 %v1727_v1 }
  0x25   : > { %323 = vmatpush1.bf16.msra.mxu0 %v1659_v18  ;;  %543 = vmatpush1.bf16.msra.mxu1 %v1660_v19  ;;  %v1716_v18 = vld [vmem:[%s2122_s1 + $0x180] sm:$0xff]   ;;  %v1571_v19 = vld [vmem:[%s1803_s11 + $0x58] sm:$0xff]  ;;  %s1390_s11 = sshll.u32 %s1754_s13, 1 }
  0x26   : > { %324 = vmatprep.subr.bf16.mxu0 %v1727_v1  ;;  %544 = vmatprep.subr.bf16.mxu1 %v1727_v1  ;;  %p167_p4 = scmp.lt.s32.totalorder %s1390_s11, 3 }
  0x28   : > { %s2126_s11 = smov (!%p167_p4, %s1390_s11), 3 }
  0x29   : > { %325 = vmatpush1.bf16.msra.mxu0 %v1661_v20  ;;  %545 = vmatpush1.bf16.msra.mxu1 %v1662_v21  ;;  %v1599_v20 = vcombine.high %v1521_v9, %v1571_v19  ;;  %v1598_v21 = vcombine.low %v1521_v9, %v1571_v19  ;;  %s1391_s22 = sshll.u32 %s2126_s11, 3 }
  0x2a   : > { %338 = vmatprep.subr.bf16.mxu0 %v1727_v1  ;;  %558 = vmatprep.subr.bf16.mxu1 %v1727_v1  ;;  %s170_s26 = scalar_lea.vmem %s2124_s3, %s1391_s22 }
  0x2d   : > { %339 = vmatpush2.bf16.msra.mxu0 %v1663_v22  ;;  %559 = vmatpush2.bf16.msra.mxu1 %v1664_v23 }
  0x2e   : > { %340 = vmatprep.subr.bf16.mxu0 %v1727_v1  ;;  %560 = vmatprep.subr.bf16.mxu1 %v1727_v1 }
  0x31   : > { %341 = vmatpush2.bf16.msra.mxu0 %v1665_v24  ;;  %561 = vmatpush2.bf16.msra.mxu1 %v1666_v25 }
  0x32   : > { %757 = vmatprep.subr.bf16.mxu0 %v1727_v1  ;;  %984 = vmatprep.subr.bf16.mxu1 %v1727_v1 }
  0x34   : > { %343 = vmatmul.mubr.bf16.vlgmr.msra.gmra.mxu0 %v1392_v27  ;;  %563 = vmatmul.mubr.bf16.vlgmr.msra.gmra.mxu1 %v1442_v29 }
  0x35   : > { %758 = vmatpush1.bf16.msra.mxu0 %v1671_v26  ;;  %985 = vmatpush1.bf16.msra.mxu1 %v1672_v31 }
  0x36   : > { %759 = vmatprep.subr.bf16.mxu0 %v1727_v1  ;;  %986 = vmatprep.subr.bf16.mxu1 %v1727_v1 }
  0x37   : > { %1411 = vmatprep.mubr.msk.bf16.mxu0 %vm297_vm0, %v1860_v32  ;;  %1461 = vmatprep.mubr.msk.bf16.mxu1 %vm297_vm0, %v1862_v33 }
  0x39   : > { %760 = vmatpush1.bf16.msra.mxu0 %v1673_v34  ;;  %987 = vmatpush1.bf16.msra.mxu1 %v1674_v35 }
  0x3a   : > { %761 = vmatprep.subr.bf16.mxu0 %v1727_v1  ;;  %988 = vmatprep.subr.bf16.mxu1 %v1727_v1 }
  0x3c   : > { %351 = vmatmul.mubr.bf16.gmra.mxu0 %v1877_v37  ;;  %571 = vmatmul.mubr.bf16.gmra.mxu1 %v1882_v39 }
  0x3d   : > { %762 = vmatpush1.bf16.msra.mxu0 %v1677_v36  ;;  %989 = vmatpush1.bf16.msra.mxu1 %v1678_v41 }
  0x3e   : > { %763 = vmatprep.subr.bf16.mxu0 %v1727_v1  ;;  %990 = vmatprep.subr.bf16.mxu1 %v1727_v1 }
  0x3f   : > { %1412 = vmatprep.mubr.msk.bf16.mxu0 %vm297_vm0, %v1890_v42  ;;  %1462 = vmatprep.mubr.msk.bf16.mxu1 %vm297_vm0, %v1893_v43 }
  0x41   : > { %764 = vmatpush1.bf16.msra.mxu0 %v1681_v44  ;;  %991 = vmatpush1.bf16.msra.mxu1 %v1682_v45 }
  0x42   : > { %765 = vmatprep.subr.bf16.mxu0 %v1727_v1  ;;  %992 = vmatprep.subr.bf16.mxu1 %v1727_v1 }
  0x44   : > { %359 = vmatmul.mubr.bf16.gmra.mxu0 %v1906_v46  ;;  %579 = vmatmul.mubr.bf16.gmra.mxu1 %v1914_v49 }
  0x45   : > { %766 = vmatpush1.bf16.msra.mxu0 %v1685_v48  ;;  %993 = vmatpush1.bf16.msra.mxu1 %v1686_v51 }
  0x46   : > { %767 = vmatprep.subr.bf16.mxu0 %v1727_v1  ;;  %994 = vmatprep.subr.bf16.mxu1 %v1727_v1 }
  0x47   : > { %1413 = vmatprep.mubr.msk.bf16.mxu0 %vm297_vm0, %v1924_v52  ;;  %1463 = vmatprep.mubr.msk.bf16.mxu1 %vm297_vm0, %v1928_v53 }
  0x49   : > { %768 = vmatpush1.bf16.msra.mxu0 %v1689_v54  ;;  %995 = vmatpush1.bf16.msra.mxu1 %v1690_v55 }
  0x4a   : > { %769 = vmatprep.subr.bf16.mxu0 %v1727_v1  ;;  %996 = vmatprep.subr.bf16.mxu1 %v1727_v1 }
  0x4c   : > { %367 = vmatmul.mubr.bf16.gmra.mxu0 %v1941_v56  ;;  %587 = vmatmul.mubr.bf16.gmra.mxu1 %v1949_v58 }
  0x4d   : > { %770 = vmatpush1.bf16.msra.mxu0 %v1693_v57  ;;  %997 = vmatpush1.bf16.msra.mxu1 %v1694_v59 }
  0x4e   : > { %771 = vmatprep.subr.bf16.mxu0 %v1727_v1  ;;  %998 = vmatprep.subr.bf16.mxu1 %v1727_v1 }
  0x4f   : > { %1510 = vmatprep.mubr.msk.bf16.mxu0 %vm297_vm0, %v1860_v32  ;;  %1560 = vmatprep.mubr.msk.bf16.mxu1 %vm297_vm0, %v1862_v33 }
  0x51   : > { %772 = vmatpush1.bf16.msra.mxu0 %v1697_v60  ;;  %999 = vmatpush1.bf16.msra.mxu1 %v1698_v61 }
  0x52   : > { %785 = vmatprep.subr.bf16.mxu0 %v1727_v1  ;;  %1012 = vmatprep.subr.bf16.mxu1 %v1727_v1 }
  0x55   : > { %786 = vmatpush2.bf16.msra.mxu0 %v1699_v62  ;;  %1013 = vmatpush2.bf16.msra.mxu1 %v1700_v63 }
  0x56   : > { %787 = vmatprep.subr.bf16.mxu0 %v1727_v1  ;;  %1014 = vmatprep.subr.bf16.mxu1 %v1727_v1 }
  0x59   : > { %788 = vmatpush2.bf16.msra.mxu0 %v1701_v0  ;;  %1015 = vmatpush2.bf16.msra.mxu1 %v1702_v2 }
  0x5a   : > { %1211 = vmatprep.subr.bf16.mxu0 %v1727_v1  ;;  %1617 = vmatprep.subr.bf16.mxu1 %v1727_v1 }
  0x5c   : > { %790 = vmatmul.mubr.bf16.vlgmr.msra.gmra.mxu0 %v1877_v37  ;;  %1017 = vmatmul.mubr.bf16.vlgmr.msra.gmra.mxu1 %v1882_v39 }
  0x5d   : > { %1212 = vmatpush1.bf16.msra.mxu0 %v1703_v3  ;;  %1627 = vmatpush1.bf16.msra.mxu1 %v1703_v3 }
  0x5e   : > { %1213 = vmatprep.subr.bf16.mxu0 %v1727_v1  ;;  %1618 = vmatprep.subr.bf16.mxu1 %v1727_v1 }
  0x5f   : > { %1511 = vmatprep.mubr.msk.bf16.mxu0 %vm297_vm0, %v1890_v42  ;;  %1561 = vmatprep.mubr.msk.bf16.mxu1 %vm297_vm0, %v1893_v43 }
  0x61   : > { %1214 = vmatpush1.bf16.msra.mxu0 %v1704_v4  ;;  %1628 = vmatpush1.bf16.msra.mxu1 %v1704_v4 }
  0x62   : > { %1215 = vmatprep.subr.bf16.mxu0 %v1727_v1  ;;  %1619 = vmatprep.subr.bf16.mxu1 %v1727_v1 }
  0x64   : > { %798 = vmatmul.mubr.bf16.gmra.mxu0 %v1906_v46  ;;  %1025 = vmatmul.mubr.bf16.gmra.mxu1 %v1914_v49 }
  0x65   : > { %1216 = vmatpush1.bf16.msra.mxu0 %v1705_v5  ;;  %1629 = vmatpush1.bf16.msra.mxu1 %v1705_v5 }
  0x66   : > { %1217 = vmatprep.subr.bf16.mxu0 %v1727_v1  ;;  %1620 = vmatprep.subr.bf16.mxu1 %v1727_v1 }
  0x67   : > { %1512 = vmatprep.mubr.msk.bf16.mxu0 %vm297_vm0, %v1924_v52  ;;  %1562 = vmatprep.mubr.msk.bf16.mxu1 %vm297_vm0, %v1928_v53 }
  0x69   : > { %1218 = vmatpush1.bf16.msra.mxu0 %v1706_v6  ;;  %1630 = vmatpush1.bf16.msra.mxu1 %v1706_v6 }
  0x6a   : > { %1219 = vmatprep.subr.bf16.mxu0 %v1727_v1  ;;  %1621 = vmatprep.subr.bf16.mxu1 %v1727_v1 }
  0x6c   : > { %806 = vmatmul.mubr.bf16.gmra.mxu0 %v1941_v56  ;;  %1033 = vmatmul.mubr.bf16.gmra.mxu1 %v1949_v58 }
  0x6d   : > { %1220 = vmatpush1.bf16.msra.mxu0 %v1707_v8  ;;  %1631 = vmatpush1.bf16.msra.mxu1 %v1707_v8 }
  0x6e   : > { %1221 = vmatprep.subr.bf16.mxu0 %v1727_v1  ;;  %1622 = vmatprep.subr.bf16.mxu1 %v1727_v1 }
  0x6f   : > { %1513 = vmatprep.mubr.msk.bf16.mxu0 %vm297_vm0, %v1499_v10  ;;  %1563 = vmatprep.mubr.msk.bf16.mxu1 %vm297_vm0, %v1549_v11 }
  0x71   : > { %1222 = vmatpush1.bf16.msra.mxu0 %v1708_v12  ;;  %1632 = vmatpush1.bf16.msra.mxu1 %v1708_v12 }
  0x72   : > { %1223 = vmatprep.subr.bf16.mxu0 %v1727_v1  ;;  %1623 = vmatprep.subr.bf16.mxu1 %v1727_v1 }
  0x74   : > { %814 = vmatmul.mubr.bf16.gmra.mxu0 %v1498_v13  ;;  %1041 = vmatmul.mubr.bf16.gmra.mxu1 %v1548_v15 }
  0x75   : > { %1224 = vmatpush1.bf16.msra.mxu0 %v1711_v14  ;;  %1633 = vmatpush1.bf16.msra.mxu1 %v1711_v14 }
  0x76   : > { %1225 = vmatprep.subr.bf16.mxu0 %v1727_v1  ;;  %1624 = vmatprep.subr.bf16.mxu1 %v1727_v1 }
  0x77   : > { %1610 = vmatprep.mubr.msk.bf16.mxu0 %vm297_vm0, %v1890_v42  ;;  %1612 = vmatprep.mubr.msk.bf16.mxu1 %vm297_vm0, %v1499_v10 }
  0x79   : > { %1226 = vmatpush1.bf16.msra.mxu0 %v1714_v16  ;;  %1634 = vmatpush1.bf16.msra.mxu1 %v1714_v16 }
  0x7a   : > { %1239 = vmatprep.subr.bf16.mxu0 %v1727_v1  ;;  %1625 = vmatprep.subr.bf16.mxu1 %v1727_v1 }
  0x7d   : > { %1240 = vmatpush2.bf16.msra.mxu0 %v1715_v17  ;;  %1635 = vmatpush2.bf16.msra.mxu1 %v1715_v17 }
  0x7e   : > { %1241 = vmatprep.subr.bf16.mxu0 %v1727_v1  ;;  %1626 = vmatprep.subr.bf16.mxu1 %v1727_v1 }
  0x81   : > { %1242 = vmatpush2.bf16.msra.mxu0 %v1716_v18  ;;  %1636 = vmatpush2.bf16.msra.mxu1 %v1716_v18 }
  0x84   : > { %1244 = vmatmul.mubr.bf16.vlgmr.msra.gmra.mxu0 %v1906_v46  ;;  %1260 = vmatmul.mubr.bf16.vlgmr.msra.gmra.mxu1 %v1498_v13 }
  0x85   : > { %1611 = vmatprep.mubr.msk.bf16.mxu0 %vm297_vm0, %v1924_v52  ;;  %1613 = vmatprep.mubr.msk.bf16.mxu1 %vm297_vm0, %v1599_v20 }
  0x8c   : > { %1252 = vmatmul.mubr.bf16.gmra.mxu0 %v1941_v56  ;;  %1268 = vmatmul.mubr.bf16.gmra.mxu1 %v1598_v21 }
  0xf4   : > { %v344_v22 = vpop.f32.mrf.mxu0  ;;  %v564_v1 = vpop.f32.mrf.mxu1 }
  0xf5   : > { %376 = vst.msk [vmem:[#allocation2] sm:$0xff] %vm375_vm1, %v344_v22 }
  0xf6   : > { %v346_v23 = vpop.f32.mrf.mxu0  ;;  %v566_v24 = vpop.f32.mrf.mxu1 }
  0xf8   : > { %v347_v25 = vpop.f32.mrf.mxu0  ;;  %v567_v26 = vpop.f32.mrf.mxu1 }
  0xf9   : > { %377 = vst.msk [vmem:[#allocation2 + $0x8] sm:$0xff] %vm375_vm1, %v347_v25 }
  0xfa   : > { %v349_v27 = vpop.f32.mrf.mxu0  ;;  %v569_v28 = vpop.f32.mrf.mxu1 }
  0xfc   : > { %v384_v29 = vld [vmem:[#allocation2] sm:$0xff]  ;;  %v352_v30 = vpop.f32.mrf.mxu0  ;;  %v572_v32 = vpop.f32.mrf.mxu1 }
  0xfd   : > { %v595_v31 = vadd.f32 %v564_v1, %v384_v29  ;;  %378 = vst.msk [vmem:[#allocation2 + $0x10] sm:$0xff] %vm375_vm1, %v352_v30 }
  0xfe   : > { %v354_v33 = vpop.f32.mrf.mxu0  ;;  %v574_v34 = vpop.f32.mrf.mxu1 }
  0xff   : > { %603 = vst.msk [vmem:[#allocation2] sm:$0xff] %vm375_vm1, %v595_v31 }
 0x100   : > { %v385_v35 = vld [vmem:[#allocation2 + $0x8] sm:$0xff]  ;;  %v355_v36 = vpop.f32.mrf.mxu0  ;;  %v575_v38 = vpop.f32.mrf.mxu1 }
 0x101   : > { %v596_v37 = vadd.f32 %v567_v26, %v385_v35  ;;  %379 = vst.msk [vmem:[#allocation2 + $0x18] sm:$0xff] %vm375_vm1, %v355_v36 }
 0x102   : > { %v357_v39 = vpop.f32.mrf.mxu0  ;;  %v577_v40 = vpop.f32.mrf.mxu1 }
 0x103   : > { %604 = vst.msk [vmem:[#allocation2 + $0x8] sm:$0xff] %vm375_vm1, %v596_v37 }
 0x104   : > { %v386_v41 = vld [vmem:[#allocation2 + $0x10] sm:$0xff]  ;;  %v360_v42 = vpop.f32.mrf.mxu0  ;;  %v580_v44 = vpop.f32.mrf.mxu1 }
 0x105   : > { %v597_v43 = vadd.f32 %v572_v32, %v386_v41  ;;  %380 = vst.msk [vmem:[#allocation2 + $0x20] sm:$0xff] %vm375_vm1, %v360_v42 }
 0x106   : > { %v362_v45 = vpop.f32.mrf.mxu0  ;;  %v582_v46 = vpop.f32.mrf.mxu1  ;;  %v611_v6 = vld [vmem:[#allocation2] sm:$0xff] }
 0x107   : > { %605 = vst.msk [vmem:[#allocation2 + $0x10] sm:$0xff] %vm375_vm1, %v597_v43 }
 0x108   : > { %v387_v47 = vld [vmem:[#allocation2 + $0x18] sm:$0xff]  ;;  %v363_v48 = vpop.f32.mrf.mxu0  ;;  %v583_v50 = vpop.f32.mrf.mxu1 }
 0x109   : > { %v598_v49 = vadd.f32 %v575_v38, %v387_v47  ;;  %381 = vst.msk [vmem:[#allocation2 + $0x28] sm:$0xff] %vm375_vm1, %v363_v48 }
 0x10a   : > { %v365_v51 = vpop.f32.mrf.mxu0  ;;  %v585_v52 = vpop.f32.mrf.mxu1  ;;  %v612_v12 = vld [vmem:[#allocation2 + $0x8] sm:$0xff] }
 0x10b   : > { %606 = vst.msk [vmem:[#allocation2 + $0x18] sm:$0xff] %vm375_vm1, %v598_v49 }
 0x10c   : > { %v388_v53 = vld [vmem:[#allocation2 + $0x20] sm:$0xff]  ;;  %v368_v54 = vpop.f32.mrf.mxu0  ;;  %v588_v56 = vpop.f32.mrf.mxu1 }
 0x10d   : > { %v599_v55 = vadd.f32 %v580_v44, %v388_v53  ;;  %382 = vst.msk [vmem:[#allocation2 + $0x30] sm:$0xff] %vm375_vm1, %v368_v54 }
 0x10e   : > { %v370_v57 = vpop.f32.mrf.mxu0  ;;  %v590_v58 = vpop.f32.mrf.mxu1  ;;  %v613_v18 = vld [vmem:[#allocation2 + $0x10] sm:$0xff] }
 0x10f   : > { %607 = vst.msk [vmem:[#allocation2 + $0x20] sm:$0xff] %vm375_vm1, %v599_v55 }
 0x110   : > { %v389_v59 = vld [vmem:[#allocation2 + $0x28] sm:$0xff]  ;;  %v371_v60 = vpop.f32.mrf.mxu0  ;;  %v591_v62 = vpop.f32.mrf.mxu1 }
 0x111   : > { %v600_v61 = vadd.f32 %v583_v50, %v389_v59  ;;  %383 = vst.msk [vmem:[#allocation2 + $0x38] sm:$0xff] %vm375_vm1, %v371_v60 }
 0x112   : > { %v373_v63 = vpop.f32.mrf.mxu0  ;;  %v593_v0 = vpop.f32.mrf.mxu1  ;;  %v614_v25 = vld [vmem:[#allocation2 + $0x18] sm:$0xff] }
 0x113   : > { %608 = vst.msk [vmem:[#allocation2 + $0x28] sm:$0xff] %vm375_vm1, %v600_v61 }
 0x114   : > { %v390_v2 = vld [vmem:[#allocation2 + $0x30] sm:$0xff] }
 0x115   : > { %v601_v3 = vadd.f32 %v588_v56, %v390_v2 }
 0x116   : > { %v615_v33 = vld [vmem:[#allocation2 + $0x20] sm:$0xff] }
 0x117   : > { %609 = vst.msk [vmem:[#allocation2 + $0x30] sm:$0xff] %vm375_vm1, %v601_v3 }
 0x118   : > { %v391_v4 = vld [vmem:[#allocation2 + $0x38] sm:$0xff] }
 0x119   : > { %v602_v5 = vadd.f32 %v591_v62, %v391_v4 }
 0x11a   : > { %v616_v41 = vld [vmem:[#allocation2 + $0x28] sm:$0xff] }
 0x11b   : > { %610 = vst.msk [vmem:[#allocation2 + $0x38] sm:$0xff] %vm375_vm1, %v602_v5 }
 0x11c   : > { %v791_v7 = vpop.f32.mrf.mxu0  ;;  %v1018_v9 = vpop.f32.mrf.mxu1 }
 0x11d   : > { %v822_v8 = vadd.f32 %v791_v7, %v611_v6 }
 0x11e   : > { %v793_v10 = vpop.f32.mrf.mxu0  ;;  %v1020_v11 = vpop.f32.mrf.mxu1  ;;  %v617_v49 = vld [vmem:[#allocation2 + $0x30] sm:$0xff] }
 0x11f   : > { %830 = vst.msk [vmem:[#allocation2] sm:$0xff] %vm375_vm1, %v822_v8 }
 0x120   : > { %v794_v13 = vpop.f32.mrf.mxu0  ;;  %v1021_v15 = vpop.f32.mrf.mxu1 }
 0x121   : > { %v823_v14 = vadd.f32 %v794_v13, %v612_v12 }
 0x122   : > { %v796_v16 = vpop.f32.mrf.mxu0  ;;  %v1023_v17 = vpop.f32.mrf.mxu1  ;;  %v618_v57 = vld [vmem:[#allocation2 + $0x38] sm:$0xff] }
 0x123   : > { %831 = vst.msk [vmem:[#allocation2 + $0x8] sm:$0xff] %vm375_vm1, %v823_v14 }
 0x124   : > { %v799_v19 = vpop.f32.mrf.mxu0  ;;  %v1026_v21 = vpop.f32.mrf.mxu1 }
 0x125   : > { %v824_v20 = vadd.f32 %v799_v19, %v613_v18 }
 0x126   : > { %v838_v22 = vld [vmem:[#allocation2] sm:$0xff]  ;;  %v801_v1 = vpop.f32.mrf.mxu0  ;;  %v1028_v24 = vpop.f32.mrf.mxu1 }
 0x127   : > { %v1049_v23 = vadd.f32 %v1018_v9, %v838_v22  ;;  %832 = vst.msk [vmem:[#allocation2 + $0x10] sm:$0xff] %vm375_vm1, %v824_v20 }
 0x128   : > { %v802_v26 = vpop.f32.mrf.mxu0  ;;  %v1029_v28 = vpop.f32.mrf.mxu1 }
 0x129   : > { %1057 = vst.msk [vmem:[#allocation2] sm:$0xff] %vm375_vm1, %v1049_v23  ;;  %v825_v27 = vadd.f32 %v802_v26, %v614_v25 }
 0x12a   : > { %v839_v29 = vld [vmem:[#allocation2 + $0x8] sm:$0xff]  ;;  %v804_v30 = vpop.f32.mrf.mxu0  ;;  %v1031_v32 = vpop.f32.mrf.mxu1 }
 0x12b   : > { %v1050_v31 = vadd.f32 %v1021_v15, %v839_v29  ;;  %833 = vst.msk [vmem:[#allocation2 + $0x18] sm:$0xff] %vm375_vm1, %v825_v27 }
 0x12c   : > { %v807_v34 = vpop.f32.mrf.mxu0  ;;  %v1034_v36 = vpop.f32.mrf.mxu1 }
 0x12d   : > { %1058 = vst.msk [vmem:[#allocation2 + $0x8] sm:$0xff] %vm375_vm1, %v1050_v31  ;;  %v826_v35 = vadd.f32 %v807_v34, %v615_v33 }
 0x12e   : > { %v840_v37 = vld [vmem:[#allocation2 + $0x10] sm:$0xff]  ;;  %v809_v38 = vpop.f32.mrf.mxu0  ;;  %v1036_v40 = vpop.f32.mrf.mxu1 }
 0x12f   : > { %v1051_v39 = vadd.f32 %v1026_v21, %v840_v37  ;;  %834 = vst.msk [vmem:[#allocation2 + $0x20] sm:$0xff] %vm375_vm1, %v826_v35 }
 0x130   : > { %v810_v42 = vpop.f32.mrf.mxu0  ;;  %v1037_v44 = vpop.f32.mrf.mxu1  ;;  %v1065_v6 = vld [vmem:[#allocation2] sm:$0xff] }
 0x131   : > { %1059 = vst.msk [vmem:[#allocation2 + $0x10] sm:$0xff] %vm375_vm1, %v1051_v39  ;;  %v827_v43 = vadd.f32 %v810_v42, %v616_v41 }
 0x132   : > { %v841_v45 = vld [vmem:[#allocation2 + $0x18] sm:$0xff]  ;;  %v812_v46 = vpop.f32.mrf.mxu0  ;;  %v1039_v48 = vpop.f32.mrf.mxu1 }
 0x133   : > { %v1052_v47 = vadd.f32 %v1029_v28, %v841_v45  ;;  %835 = vst.msk [vmem:[#allocation2 + $0x28] sm:$0xff] %vm375_vm1, %v827_v43 }
 0x134   : > { %v815_v50 = vpop.f32.mrf.mxu0  ;;  %v1042_v52 = vpop.f32.mrf.mxu1  ;;  %v1066_v14 = vld [vmem:[#allocation2 + $0x8] sm:$0xff] }
 0x135   : > { %1060 = vst.msk [vmem:[#allocation2 + $0x18] sm:$0xff] %vm375_vm1, %v1052_v47  ;;  %v828_v51 = vadd.f32 %v815_v50, %v617_v49 }
 0x136   : > { %v842_v53 = vld [vmem:[#allocation2 + $0x20] sm:$0xff]  ;;  %v817_v54 = vpop.f32.mrf.mxu0  ;;  %v1044_v56 = vpop.f32.mrf.mxu1 }
 0x137   : > { %v1053_v55 = vadd.f32 %v1034_v36, %v842_v53  ;;  %836 = vst.msk [vmem:[#allocation2 + $0x30] sm:$0xff] %vm375_vm1, %v828_v51  ;;  %v1614_v51 = vld [vmem:[%s2123_s2] ss:$0 sm:$0xff] }
 0x138   : > { %v818_v58 = vpop.f32.mrf.mxu0  ;;  %v1045_v60 = vpop.f32.mrf.mxu1  ;;  %v1067_v22 = vld [vmem:[#allocation2 + $0x10] sm:$0xff] }
 0x139   : > { %1061 = vst.msk [vmem:[#allocation2 + $0x20] sm:$0xff] %vm375_vm1, %v1053_v55  ;;  %v829_v59 = vadd.f32 %v818_v58, %v618_v57 }
 0x13a   : > { %v843_v61 = vld [vmem:[#allocation2 + $0x28] sm:$0xff]  ;;  %v820_v62 = vpop.f32.mrf.mxu0  ;;  %v1047_v0 = vpop.f32.mrf.mxu1 }
 0x13b   : > { %v1054_v63 = vadd.f32 %v1037_v44, %v843_v61  ;;  %837 = vst.msk [vmem:[#allocation2 + $0x38] sm:$0xff] %vm375_vm1, %v829_v59 }
 0x13c   : > { %v1068_v29 = vld [vmem:[#allocation2 + $0x18] sm:$0xff] }
 0x13d   : > { %1062 = vst.msk [vmem:[#allocation2 + $0x28] sm:$0xff] %vm375_vm1, %v1054_v63 }
 0x13e   : > { %v844_v2 = vld [vmem:[#allocation2 + $0x30] sm:$0xff] }
 0x13f   : > { %v1055_v3 = vadd.f32 %v1042_v52, %v844_v2 }
 0x140   : > { %v1069_v9 = vld [vmem:[#allocation2 + $0x20] sm:$0xff] }
 0x141   : > { %1063 = vst.msk [vmem:[#allocation2 + $0x30] sm:$0xff] %vm375_vm1, %v1055_v3 }
 0x142   : > { %v845_v4 = vld [vmem:[#allocation2 + $0x38] sm:$0xff] }
 0x143   : > { %v1056_v5 = vadd.f32 %v1045_v60, %v845_v4 }
 0x144   : > { %v1245_v7 = vpop.f32.mrf.mxu0  ;;  %v1261_v10 = vpop.f32.mrf.mxu1  ;;  %v1070_v17 = vld [vmem:[#allocation2 + $0x28] sm:$0xff] }
 0x145   : > { %1064 = vst.msk [vmem:[#allocation2 + $0x38] sm:$0xff] %vm375_vm1, %v1056_v5  ;;  %v1276_v8 = vadd.f32 %v1245_v7, %v1065_v6  ;;  %v1280_v11 = vadd.f32 %v1261_v10, %v1069_v9 }
 0x146   : > { %v1247_v12 = vpop.f32.mrf.mxu0  ;;  %v1263_v13 = vpop.f32.mrf.mxu1 }
 0x147   : > { %1284 = vst.msk [vmem:[#allocation2] sm:$0xff] %vm375_vm1, %v1276_v8  ;;  %1288 = vst.msk [vmem:[#allocation2 + $0x20] sm:$0xff] %vm375_vm1, %v1280_v11 }
 0x148   : > { %v1248_v15 = vpop.f32.mrf.mxu0  ;;  %v1264_v18 = vpop.f32.mrf.mxu1  ;;  %v1071_v24 = vld [vmem:[#allocation2 + $0x30] sm:$0xff] }
 0x149   : > { %v1277_v16 = vadd.f32 %v1248_v15, %v1066_v14  ;;  %v1281_v19 = vadd.f32 %v1264_v18, %v1070_v17 }
 0x14a   : > { %v1250_v20 = vpop.f32.mrf.mxu0  ;;  %v1266_v21 = vpop.f32.mrf.mxu1 }
 0x14b   : > { %1285 = vst.msk [vmem:[#allocation2 + $0x8] sm:$0xff] %vm375_vm1, %v1277_v16  ;;  %1289 = vst.msk [vmem:[#allocation2 + $0x28] sm:$0xff] %vm375_vm1, %v1281_v19 }
 0x14c   : > { %v1253_v1 = vpop.f32.mrf.mxu0  ;;  %v1269_v25 = vpop.f32.mrf.mxu1  ;;  %v1072_v32 = vld [vmem:[#allocation2 + $0x38] sm:$0xff] }
 0x14d   : > { %v1278_v23 = vadd.f32 %v1253_v1, %v1067_v22  ;;  %v1282_v26 = vadd.f32 %v1269_v25, %v1071_v24 }
 0x14e   : > { %v1255_v27 = vpop.f32.mrf.mxu0  ;;  %v1271_v28 = vpop.f32.mrf.mxu1  ;;  %v1292_v34 = vld [vmem:[#allocation2] sm:$0xff] }
 0x14f   : > { %1286 = vst.msk [vmem:[#allocation2 + $0x10] sm:$0xff] %vm375_vm1, %v1278_v23  ;;  %1290 = vst.msk [vmem:[#allocation2 + $0x30] sm:$0xff] %vm375_vm1, %v1282_v26  ;;  %v1296_v41 = vld [vmem:[#allocation2 + $0x20] sm:$0xff] }
 0x150   : > { %v1256_v30 = vpop.f32.mrf.mxu0  ;;  %v1272_v33 = vpop.f32.mrf.mxu1 }
 0x151   : > { %v1279_v31 = vadd.f32 %v1256_v30, %v1068_v29  ;;  %v1283_v36 = vadd.f32 %v1272_v33, %v1072_v32 }
 0x152   : > { %v1293_v35 = vld [vmem:[#allocation2 + $0x8] sm:$0xff]  ;;  %v1258_v37 = vpop.f32.mrf.mxu0  ;;  %v1274_v40 = vpop.f32.mrf.mxu1 }
 0x153   : > { %v1300_v38 = vmax.f32 %v1292_v34, %v1293_v35  ;;  %v1297_v39 = vld [vmem:[#allocation2 + $0x28] sm:$0xff]  ;;  %1287 = vst.msk [vmem:[#allocation2 + $0x18] sm:$0xff] %vm375_vm1, %v1279_v31  ;;  %1291 = vst.msk [vmem:[#allocation2 + $0x38] sm:$0xff] %vm375_vm1, %v1283_v36 }
 0x154   : > { %v1302_v42 = vmax.f32 %v1296_v41, %v1297_v39 }
 0x155   : > { %1304 = vst.msk [vmem:[#allocation2] sm:$0xff] %vm375_vm1, %v1300_v38 }
 0x156   : > { %v1294_v43 = vld [vmem:[#allocation2 + $0x10] sm:$0xff] }
 0x157   : > { %1306 = vst.msk [vmem:[#allocation2 + $0x10] sm:$0xff] %vm375_vm1, %v1302_v42  ;;  %v1298_v45 = vld [vmem:[#allocation2 + $0x30] sm:$0xff] }
 0x15a   : > { %v1295_v44 = vld [vmem:[#allocation2 + $0x18] sm:$0xff] }
 0x15b   : > { %v1301_v46 = vmax.f32 %v1294_v43, %v1295_v44  ;;  %v1299_v47 = vld [vmem:[#allocation2 + $0x38] sm:$0xff] }
 0x15c   : > { %v1303_v48 = vmax.f32 %v1298_v45, %v1299_v47 }
 0x15d   : > { %1305 = vst.msk [vmem:[#allocation2 + $0x8] sm:$0xff] %vm375_vm1, %v1301_v46 }
 0x15e   : > { %1307 = vst.msk [vmem:[#allocation2 + $0x18] sm:$0xff] %vm375_vm1, %v1303_v48 }
 0x164   : > { %v1308_v49 = vld [vmem:[#allocation2] ss:$2 sm:$0xff]  ;;  %v1312_v50 = vld [vmem:[#allocation2 + $0x1] ss:$2 sm:$0xff] }
 0x165   : > { %v1315_v52 = vmax.f32 %v1308_v49, %v1312_v50  ;;  %v1310_v53 = vld [vmem:[#allocation2 + $0x10] ss:$2 sm:$0xff]  ;;  %v1314_v54 = vld [vmem:[#allocation2 + $0x11] ss:$2 sm:$0xff] }
 0x166   : > { %v1316_v55 = vmax.f32 %v1310_v53, %v1314_v54 }
 0x167   : > { %v1324_v56 = vadd.f32 %v1614_v51, %v1315_v52 }
 0x168   : > { %v1325_v57 = vadd.f32 %v1614_v51, %v1316_v55 }
 0x169   : > { %1326 = vst.msk [vmem:[%s170_s26] sm:$0xff] %vm375_vm1, %v1324_v56 }
 0x16a   : > { %1327 = vst.msk [vmem:[%s170_s26 + $0x8] sm:$0xff] %vm375_vm1, %v1325_v57 }
 0x16b PF: > { %s13_s12 = sadd.s32 1, %s1725_s12  }
 0x16c   : > { %p10_p5 = scmp.ge.s32.totalorder %s13_s12, 4  }
 0x16e   :  { %12 = sbr.rel (!%p10_p5) target bundleno = 1 (0x1), region = 73 }

// kernel: forward.4
= control target key start
LH: loop header
LB: loop body
LE: loop exit
PB: predicated region body
PF: predicated region fallthrough
CT: control target
= control target key end

     0   :  { %s10887_s12 = smov 0   ;;  %s12420_s0 = inlined_call_operand.vmem [shape: bf16[2,36,32,15], index: 0, kind: input, shape index: {}]   ;;  %s12421_s1 = inlined_call_operand.vmem [shape: bf16[5,15,32], index: 1, kind: input, shape index: {}]   ;;  %s12422_s2 = inlined_call_operand.vmem [shape: f32[1,32], index: 2, kind: input, shape index: {}]   ;;  %s12423_s3 = inlined_call_operand.vmem [shape: f32[512,32], index: 3, kind: output, shape index: {}]  }
   0x1 LB: > { %s10893_s13 = sadd.s32 4294967295, %s10864_s12   ;;  %p8372_p0 = scmp.ge.s32.totalorder %s10864_s12, 1  ;;  %s10864_s12 = sphi %s10887_s12, %s13_s12  }
   0x2   : > { %p137_p1 = scmp.lt.s32.totalorder %s10864_s12, 3 }
   0x4   : > { %p138_p2 = pnand %p8372_p0, %p137_p1 }
   0x5   : > { %p161_p3 = scmp.lt.s32.totalorder (!%p138_p2), %s10893_s13, 1  ;;  %s8374_s29 = sshll.u32 (!%p138_p2), %s10893_s13, 5 }
   0x6   : > { %141 = sbr.rel (%p138_p2) target bundleno = 887 (0x377), region = 32  ;;  %p11965_p4 = scmp.lt.s32.totalorder (!%p138_p2), %s8374_s29, 63 }
   0xb   : > { %v10531_v0 = vld [vmem:[%s12421_s1] sm:$0xff]   ;;  %vm821_vm0 = vcmask 1046528   ;;  %vm822_vm1 = vcmask 1047552   ;;  %v10866_v1 = vmov 65535   ;;  %v10533_v3 = vld [vmem:[%s12421_s1 + $0x8] sm:$0xff]   ;;  %s162_s18 = scalar_select %p161_p3, %s10893_s13, 1 }
   0xc   : > { %v823_v2 = vsel %vm821_vm0, 4294967295, %v10866_v1  ;;  %v10539_v5 = vld [vmem:[%s12421_s1 + $0x10] sm:$0xff]   ;;  %v10599_v9 = vld [vmem:[%s12421_s1 + $0x18] sm:$0xff]   ;;  %vm628_vm2 = vcmask 121856   ;;  %v10605_v49 = vld [vmem:[%s12421_s1 + $0x20] sm:$0xff]   ;;  %vm1373_vm3 = vcmask 261120  }
   0xd   : > { %v10904_v4 = vsel %vm822_vm1, %v823_v2, 0  ;;  %s10521_s21 = smul.u32 576, %s162_s18  ;;  %s12426_s29 = smov (!%p11965_p4, %s8374_s29), 63 }
   0xe   : > { %v826_v6 = vand.u32 %v10531_v0, %v10904_v4  ;;  %v2280_v7 = vand.u32 %v10533_v3, %v10904_v4  ;;  %v3861_v8 = vand.u32 %v10539_v5, %v10904_v4  ;;  %v10924_v12 = vand.u32 %v10599_v9, %v10904_v4  ;;  %s8375_s4 = sshll.u32 %s12426_s29, 3 }
   0xf   : > { %s10919_s26 = scalar_lea.vmem %s12420_s0, %s10521_s21  ;;  %v11007_v52 = vand.u32 %v10605_v49, %v10904_v4  ;;  %s12016_s9 = scalar_lea.vmem %s12423_s3, %s8375_s4 }
  0x10   : > { %10519 = vmatprep.subr.bf16.mxu1 %v826_v6  ;;  %9869 = vmatprep.subr.bf16.mxu0 %v826_v6  ;;  %v10532_v10 = vld [vmem:[%s10919_s26 + $0x100] sm:$0xff]   ;;  %v10534_v11 = vld [vmem:[%s10919_s26 + $0x108] sm:$0xff]   ;;  %v10537_v15 = vld [vmem:[%s10919_s26 + $0x110] sm:$0xff]  }
  0x11   : > { %10520 = vmatpush3.bf16.msra.mxu1 %v826_v6  ;;  %9870 = vmatpush3.bf16.msra.mxu0 %v826_v6  ;;  %v10535_v13 = vld [vmem:[%s10919_s26] sm:$0xff]   ;;  %v10536_v14 = vld [vmem:[%s10919_s26 + $0x8] sm:$0xff]   ;;  %v10540_v16 = vld [vmem:[%s10919_s26 + $0x10] sm:$0xff]  }
  0x12   : > { %9999 = vmatprep.subr.bf16.mxu1 %v2280_v7  ;;  %10129 = vmatprep.subr.bf16.mxu0 %v3861_v8  ;;  %v10538_v17 = vld [vmem:[%s10919_s26 + $0x118] sm:$0xff]   ;;  %v10542_v18 = vld [vmem:[%s10919_s26 + $0x120] sm:$0xff]   ;;  %v10543_v21 = vld [vmem:[%s10919_s26 + $0x128] sm:$0xff]  }
  0x13   : > { %9935 = vmatprep.mubr.msk.bf16.mxu1 %vm628_vm2, %v10532_v10  ;;  %9871 = vmatprep.mubr.msk.bf16.mxu0 %vm628_vm2, %v10535_v13  ;;  %v10541_v19 = vld [vmem:[%s10919_s26 + $0x18] sm:$0xff]   ;;  %v10544_v20 = vld [vmem:[%s10919_s26 + $0x20] sm:$0xff]   ;;  %v10546_v22 = vld [vmem:[%s10919_s26 + $0x130] sm:$0xff]  }
  0x14   : > { %9936 = vmatmul.mubr.msk.bf16.vlgmr.msra.gmra.mxu1 %vm628_vm2, %v10534_v11  ;;  %9872 = vmatmul.mubr.msk.bf16.vlgmr.msra.gmra.mxu0 %vm628_vm2, %v10536_v14  ;;  %v10545_v23 = vld [vmem:[%s10919_s26 + $0x28] sm:$0xff]   ;;  %v10548_v24 = vld [vmem:[%s10919_s26 + $0x30] sm:$0xff]   ;;  %v10547_v25 = vld [vmem:[%s10919_s26 + $0x138] sm:$0xff]  }
  0x15   : > { %10000 = vmatpush3.bf16.msra.mxu1 %v2280_v7  ;;  %9939 = vmatprep.mubr.msk.bf16.mxu1 %vm628_vm2, %v10537_v15  ;;  %v10550_v26 = vld [vmem:[%s10919_s26 + $0x140] sm:$0xff]   ;;  %v10549_v27 = vld [vmem:[%s10919_s26 + $0x38] sm:$0xff]   ;;  %v10551_v29 = vld [vmem:[%s10919_s26 + $0x148] sm:$0xff]  }
  0x16   : > { %10259 = vmatprep.subr.bf16.mxu1 %v10924_v12  ;;  %10130 = vmatpush3.bf16.msra.mxu0 %v3861_v8  ;;  %v10552_v28 = vld [vmem:[%s10919_s26 + $0x40] sm:$0xff]   ;;  %v10554_v30 = vld [vmem:[%s10919_s26 + $0x150] sm:$0xff]   ;;  %v10553_v31 = vld [vmem:[%s10919_s26 + $0x48] sm:$0xff]  }
  0x17   : > { %9875 = vmatprep.mubr.msk.bf16.mxu0 %vm628_vm2, %v10540_v16  ;;  %v10556_v32 = vld [vmem:[%s10919_s26 + $0x50] sm:$0xff]   ;;  %v10555_v33 = vld [vmem:[%s10919_s26 + $0x158] sm:$0xff]   ;;  %v10558_v34 = vld [vmem:[%s10919_s26 + $0x160] sm:$0xff]   ;;  %10389 = vmatprep.subr.bf16.mxu0 %v11007_v52 }
  0x18   : > { %v10557_v35 = vld [vmem:[%s10919_s26 + $0x58] sm:$0xff]   ;;  %v10560_v36 = vld [vmem:[%s10919_s26 + $0x60] sm:$0xff]   ;;  %v10559_v37 = vld [vmem:[%s10919_s26 + $0x168] sm:$0xff]  }
  0x19   : > { %v10562_v38 = vld [vmem:[%s10919_s26 + $0x170] sm:$0xff]   ;;  %v10561_v39 = vld [vmem:[%s10919_s26 + $0x68] sm:$0xff]   ;;  %v10563_v41 = vld [vmem:[%s10919_s26 + $0x178] sm:$0xff]  }
  0x1a   : > { %v10564_v40 = vld [vmem:[%s10919_s26 + $0x70] sm:$0xff]   ;;  %v10566_v42 = vld [vmem:[%s10919_s26 + $0x180] sm:$0xff]   ;;  %v10565_v43 = vld [vmem:[%s10919_s26 + $0x78] sm:$0xff]  }
  0x1b   : > { %v10568_v44 = vld [vmem:[%s10919_s26 + $0x80] sm:$0xff]   ;;  %v10567_v45 = vld [vmem:[%s10919_s26 + $0x188] sm:$0xff]   ;;  %v10570_v46 = vld [vmem:[%s10919_s26 + $0x190] sm:$0xff]  }
  0x1c   : > { %9940 = vmatmul.mubr.msk.bf16.gmra.mxu1 %vm628_vm2, %v10538_v17  ;;  %9876 = vmatmul.mubr.msk.bf16.gmra.mxu0 %vm628_vm2, %v10541_v19  ;;  %v10569_v47 = vld [vmem:[%s10919_s26 + $0x88] sm:$0xff]   ;;  %v10572_v48 = vld [vmem:[%s10919_s26 + $0x90] sm:$0xff]   ;;  %v10571_v50 = vld [vmem:[%s10919_s26 + $0x198] sm:$0xff]  }
  0x1d   : > { %9943 = vmatprep.mubr.msk.bf16.mxu1 %vm628_vm2, %v10542_v18  ;;  %9879 = vmatprep.mubr.msk.bf16.mxu0 %vm628_vm2, %v10544_v20  ;;  %v10574_v51 = vld [vmem:[%s10919_s26 + $0x1a0] sm:$0xff]   ;;  %v10573_v53 = vld [vmem:[%s10919_s26 + $0x98] sm:$0xff]   ;;  %v10575_v55 = vld [vmem:[%s10919_s26 + $0x1a8] sm:$0xff]  }
  0x1e   : > { %v10576_v54 = vld [vmem:[%s10919_s26 + $0xa0] sm:$0xff]   ;;  %v10578_v56 = vld [vmem:[%s10919_s26 + $0x1b0] sm:$0xff]   ;;  %v10577_v57 = vld [vmem:[%s10919_s26 + $0xa8] sm:$0xff]  }
  0x1f   : > { %v10580_v58 = vld [vmem:[%s10919_s26 + $0xb0] sm:$0xff]   ;;  %v10579_v59 = vld [vmem:[%s10919_s26 + $0x1b8] sm:$0xff]   ;;  %v10582_v60 = vld [vmem:[%s10919_s26 + $0x1c0] sm:$0xff]  }
  0x20   : > { %v10581_v61 = vld [vmem:[%s10919_s26 + $0xb8] sm:$0xff]   ;;  %v10584_v62 = vld [vmem:[%s10919_s26 + $0xc0] sm:$0xff]   ;;  %v10583_v63 = vld [vmem:[%s10919_s26 + $0x1c8] sm:$0xff]  }
  0x21   : > { %v10586_v0 = vld [vmem:[%s10919_s26 + $0x1d0] sm:$0xff]   ;;  %v10585_v1 = vld [vmem:[%s10919_s26 + $0xc8] sm:$0xff]   ;;  %v10587_v3 = vld [vmem:[%s10919_s26 + $0x1d8] sm:$0xff]  }
  0x22   : > { %v10588_v2 = vld [vmem:[%s10919_s26 + $0xd0] sm:$0xff]   ;;  %v10590_v4 = vld [vmem:[%s10919_s26 + $0x1e0] sm:$0xff]   ;;  %v10589_v5 = vld [vmem:[%s10919_s26 + $0xd8] sm:$0xff]  }
  0x23   : > { %v10592_v6 = vld [vmem:[%s10919_s26 + $0xe0] sm:$0xff]   ;;  %v10591_v7 = vld [vmem:[%s10919_s26 + $0x1e8] sm:$0xff]   ;;  %v10594_v8 = vld [vmem:[%s10919_s26 + $0x1f0] sm:$0xff]  }
  0x24   : > { %9944 = vmatmul.mubr.msk.bf16.gmra.mxu1 %vm628_vm2, %v10543_v21  ;;  %9880 = vmatmul.mubr.msk.bf16.gmra.mxu0 %vm628_vm2, %v10545_v23  ;;  %v10593_v9 = vld [vmem:[%s10919_s26 + $0xe8] sm:$0xff]   ;;  %v10596_v10 = vld [vmem:[%s10919_s26 + $0xf0] sm:$0xff]   ;;  %v10595_v11 = vld [vmem:[%s10919_s26 + $0x1f8] sm:$0xff]  }
  0x25   : > { %9947 = vmatprep.mubr.msk.bf16.mxu1 %vm628_vm2, %v10546_v22  ;;  %9883 = vmatprep.mubr.msk.bf16.mxu0 %vm628_vm2, %v10548_v24  ;;  %v10598_v13 = vld [vmem:[%s10919_s26 + $0x10] sm:$0xff]   ;;  %v10597_v14 = vld [vmem:[%s10919_s26 + $0xf8] sm:$0xff]   ;;  %v10601_v15 = vld [vmem:[%s10919_s26 + $0x20] sm:$0xff]  }
  0x26   : > { %v10600_v16 = vld [vmem:[%s10919_s26 + $0x18] sm:$0xff]   ;;  %v10603_v17 = vld [vmem:[%s10919_s26 + $0x20] sm:$0xff]   ;;  %v10602_v18 = vld [vmem:[%s10919_s26 + $0x28] sm:$0xff]  }
  0x27   : > { %v10606_v19 = vld [vmem:[%s10919_s26 + $0x30] sm:$0xff]   ;;  %v10604_v20 = vld [vmem:[%s10919_s26 + $0x28] sm:$0xff]   ;;  %v10607_v21 = vld [vmem:[%s10919_s26 + $0x38] sm:$0xff]  }
  0x28   : > { %v10608_v22 = vld [vmem:[%s10919_s26 + $0x30] sm:$0xff]   ;;  %v10610_v23 = vld [vmem:[%s10919_s26 + $0x40] sm:$0xff]   ;;  %v10611_v24 = vld [vmem:[%s10919_s26 + $0x48] sm:$0xff]  }
  0x29   : > { %v10636_v49 = vld [vmem:[%s10919_s26 + $0xa0] sm:$0xff]  }
  0x2c   : > { %9948 = vmatmul.mubr.msk.bf16.gmra.mxu1 %vm628_vm2, %v10547_v25  ;;  %9884 = vmatmul.mubr.msk.bf16.gmra.mxu0 %vm628_vm2, %v10549_v27  ;;  %v10612_v25 = vld [vmem:[%s10919_s26 + $0x40] sm:$0xff]   ;;  %v10613_v27 = vld [vmem:[%s10919_s26 + $0x48] sm:$0xff]  }
  0x2d   : > { %9951 = vmatprep.mubr.msk.bf16.mxu1 %vm628_vm2, %v10550_v26  ;;  %9887 = vmatprep.mubr.msk.bf16.mxu0 %vm628_vm2, %v10552_v28  ;;  %v10614_v26 = vld [vmem:[%s10919_s26 + $0x50] sm:$0xff]   ;;  %v10615_v28 = vld [vmem:[%s10919_s26 + $0x58] sm:$0xff]  }
  0x34   : > { %9952 = vmatmul.mubr.msk.bf16.gmra.mxu1 %vm628_vm2, %v10551_v29  ;;  %9888 = vmatmul.mubr.msk.bf16.gmra.mxu0 %vm628_vm2, %v10553_v31  ;;  %v10616_v29 = vld [vmem:[%s10919_s26 + $0x50] sm:$0xff]   ;;  %v10617_v31 = vld [vmem:[%s10919_s26 + $0x58] sm:$0xff]  }
  0x35   : > { %9955 = vmatprep.mubr.msk.bf16.mxu1 %vm628_vm2, %v10554_v30  ;;  %9891 = vmatprep.mubr.msk.bf16.mxu0 %vm628_vm2, %v10556_v32  ;;  %v10618_v30 = vld [vmem:[%s10919_s26 + $0x60] sm:$0xff]   ;;  %v10619_v32 = vld [vmem:[%s10919_s26 + $0x68] sm:$0xff]  }
  0x3c   : > { %9956 = vmatmul.mubr.msk.bf16.gmra.mxu1 %vm628_vm2, %v10555_v33  ;;  %9892 = vmatmul.mubr.msk.bf16.gmra.mxu0 %vm628_vm2, %v10557_v35  ;;  %v10620_v33 = vld [vmem:[%s10919_s26 + $0x60] sm:$0xff]   ;;  %v10621_v35 = vld [vmem:[%s10919_s26 + $0x68] sm:$0xff]  }
  0x3d   : > { %9959 = vmatprep.mubr.msk.bf16.mxu1 %vm628_vm2, %v10558_v34  ;;  %9895 = vmatprep.mubr.msk.bf16.mxu0 %vm628_vm2, %v10560_v36  ;;  %v10622_v34 = vld [vmem:[%s10919_s26 + $0x70] sm:$0xff]   ;;  %v10623_v36 = vld [vmem:[%s10919_s26 + $0x78] sm:$0xff]  }
  0x44   : > { %9960 = vmatmul.mubr.msk.bf16.gmra.mxu1 %vm628_vm2, %v10559_v37  ;;  %9896 = vmatmul.mubr.msk.bf16.gmra.mxu0 %vm628_vm2, %v10561_v39  ;;  %v10624_v37 = vld [vmem:[%s10919_s26 + $0x70] sm:$0xff]   ;;  %v10625_v39 = vld [vmem:[%s10919_s26 + $0x78] sm:$0xff]  }
  0x45   : > { %9963 = vmatprep.mubr.msk.bf16.mxu1 %vm628_vm2, %v10562_v38  ;;  %9899 = vmatprep.mubr.msk.bf16.mxu0 %vm628_vm2, %v10564_v40  ;;  %v10626_v38 = vld [vmem:[%s10919_s26 + $0x80] sm:$0xff]   ;;  %v10627_v40 = vld [vmem:[%s10919_s26 + $0x88] sm:$0xff]  }
  0x4c   : > { %9964 = vmatmul.mubr.msk.bf16.gmra.mxu1 %vm628_vm2, %v10563_v41  ;;  %9900 = vmatmul.mubr.msk.bf16.gmra.mxu0 %vm628_vm2, %v10565_v43  ;;  %v10628_v41 = vld [vmem:[%s10919_s26 + $0x80] sm:$0xff]   ;;  %v10629_v43 = vld [vmem:[%s10919_s26 + $0x88] sm:$0xff]  }
  0x4d   : > { %9967 = vmatprep.mubr.msk.bf16.mxu1 %vm628_vm2, %v10566_v42  ;;  %9903 = vmatprep.mubr.msk.bf16.mxu0 %vm628_vm2, %v10568_v44  ;;  %v10630_v42 = vld [vmem:[%s10919_s26 + $0x90] sm:$0xff]   ;;  %v10631_v44 = vld [vmem:[%s10919_s26 + $0x98] sm:$0xff]  }
  0x54   : > { %9968 = vmatmul.mubr.msk.bf16.gmra.mxu1 %vm628_vm2, %v10567_v45  ;;  %9904 = vmatmul.mubr.msk.bf16.gmra.mxu0 %vm628_vm2, %v10569_v47  ;;  %v10632_v45 = vld [vmem:[%s10919_s26 + $0x90] sm:$0xff]   ;;  %v10633_v47 = vld [vmem:[%s10919_s26 + $0x98] sm:$0xff]  }
  0x55   : > { %9971 = vmatprep.mubr.msk.bf16.mxu1 %vm628_vm2, %v10570_v46  ;;  %9907 = vmatprep.mubr.msk.bf16.mxu0 %vm628_vm2, %v10572_v48  ;;  %v10634_v46 = vld [vmem:[%s10919_s26 + $0xa0] sm:$0xff]   ;;  %v10635_v48 = vld [vmem:[%s10919_s26 + $0xa8] sm:$0xff]  }
  0x5c   : > { %9972 = vmatmul.mubr.msk.bf16.gmra.mxu1 %vm628_vm2, %v10571_v50  ;;  %9908 = vmatmul.mubr.msk.bf16.gmra.mxu0 %vm628_vm2, %v10573_v53  ;;  %v10638_v50 = vld [vmem:[%s10919_s26 + $0xb0] sm:$0xff]  }
  0x5d   : > { %9975 = vmatprep.mubr.msk.bf16.mxu1 %vm628_vm2, %v10574_v51  ;;  %9911 = vmatprep.mubr.msk.bf16.mxu0 %vm628_vm2, %v10576_v54  ;;  %v10637_v54 = vld [vmem:[%s10919_s26 + $0xa8] sm:$0xff]  }
  0x64   : > { %9976 = vmatmul.mubr.msk.bf16.gmra.mxu1 %vm628_vm2, %v10575_v55  ;;  %9912 = vmatmul.mubr.msk.bf16.gmra.mxu0 %vm628_vm2, %v10577_v57  ;;  %v10639_v57 = vld [vmem:[%s10919_s26 + $0xb8] sm:$0xff]  }
  0x65   : > { %9979 = vmatprep.mubr.msk.bf16.mxu1 %vm628_vm2, %v10578_v56  ;;  %9915 = vmatprep.mubr.msk.bf16.mxu0 %vm628_vm2, %v10580_v58  ;;  %v10640_v58 = vld [vmem:[%s10919_s26 + $0xb0] sm:$0xff]  }
  0x6c   : > { %9980 = vmatmul.mubr.msk.bf16.gmra.mxu1 %vm628_vm2, %v10579_v59  ;;  %9916 = vmatmul.mubr.msk.bf16.gmra.mxu0 %vm628_vm2, %v10581_v61  ;;  %v10642_v61 = vld [vmem:[%s10919_s26 + $0xc0] sm:$0xff]  }
  0x6d   : > { %9983 = vmatprep.mubr.msk.bf16.mxu1 %vm628_vm2, %v10582_v60  ;;  %9919 = vmatprep.mubr.msk.bf16.mxu0 %vm628_vm2, %v10584_v62 }
  0x74   : > { %9984 = vmatmul.mubr.msk.bf16.gmra.mxu1 %vm628_vm2, %v10583_v63  ;;  %9920 = vmatmul.mubr.msk.bf16.gmra.mxu0 %vm628_vm2, %v10585_v1 }
  0x75   : > { %9987 = vmatprep.mubr.msk.bf16.mxu1 %vm628_vm2, %v10586_v0  ;;  %9923 = vmatprep.mubr.msk.bf16.mxu0 %vm628_vm2, %v10588_v2 }
  0x7c   : > { %9988 = vmatmul.mubr.msk.bf16.gmra.mxu1 %vm628_vm2, %v10587_v3  ;;  %9924 = vmatmul.mubr.msk.bf16.gmra.mxu0 %vm628_vm2, %v10589_v5  ;;  %v10644_v5 = vld [vmem:[%s10919_s26 + $0xc0] sm:$0xff]  }
  0x7d   : > { %9991 = vmatprep.mubr.msk.bf16.mxu1 %vm628_vm2, %v10590_v4  ;;  %9927 = vmatprep.mubr.msk.bf16.mxu0 %vm628_vm2, %v10592_v6  ;;  %v10641_v4 = vld [vmem:[%s10919_s26 + $0xb8] sm:$0xff]  }
  0x84   : > { %9992 = vmatmul.mubr.msk.bf16.gmra.mxu1 %vm628_vm2, %v10591_v7  ;;  %9928 = vmatmul.mubr.msk.bf16.gmra.mxu0 %vm628_vm2, %v10593_v9  ;;  %v10646_v9 = vld [vmem:[%s10919_s26 + $0xd0] sm:$0xff]  }
  0x85   : > { %9995 = vmatprep.mubr.msk.bf16.mxu1 %vm628_vm2, %v10594_v8  ;;  %9931 = vmatprep.mubr.msk.bf16.mxu0 %vm628_vm2, %v10596_v10  ;;  %v10643_v8 = vld [vmem:[%s10919_s26 + $0xc8] sm:$0xff]  }
  0x8c   : > { %9996 = vmatmul.mubr.msk.bf16.gmra.mxu1 %vm628_vm2, %v10595_v11  ;;  %9932 = vmatmul.mubr.msk.bf16.gmra.mxu0 %vm628_vm2, %v10597_v14 }
  0x8d   : > { %10001 = vmatprep.mubr.msk.bf16.mxu1 %vm628_vm2, %v10598_v13  ;;  %10131 = vmatprep.mubr.msk.bf16.mxu0 %vm628_vm2, %v10601_v15 }
  0x94   : > { %10002 = vmatmul.mubr.msk.bf16.vlgmr.msra.gmra.mxu1 %vm628_vm2, %v10600_v16  ;;  %10132 = vmatmul.mubr.msk.bf16.vlgmr.msra.gmra.mxu0 %vm628_vm2, %v10602_v18  ;;  %v10648_v18 = vld [vmem:[%s10919_s26 + $0xd0] sm:$0xff]  }
  0x95   : > { %10260 = vmatpush3.bf16.msra.mxu1 %v10924_v12  ;;  %10005 = vmatprep.mubr.msk.bf16.mxu1 %vm628_vm2, %v10603_v17  ;;  %v10609_v12 = vld [vmem:[%s10919_s26 + $0x38] sm:$0xff]   ;;  %v10645_v17 = vld [vmem:[%s10919_s26 + $0xc8] sm:$0xff]  }
  0x96   : > { %10390 = vmatpush3.bf16.msra.mxu0 %v11007_v52  ;;  %10135 = vmatprep.mubr.msk.bf16.mxu0 %vm628_vm2, %v10606_v19 }
  0x9c   : > { %10006 = vmatmul.mubr.msk.bf16.gmra.mxu1 %vm628_vm2, %v10604_v20  ;;  %10136 = vmatmul.mubr.msk.bf16.gmra.mxu0 %vm628_vm2, %v10607_v21  ;;  %v10647_v21 = vld [vmem:[%s10919_s26 + $0xd8] sm:$0xff]  }
  0x9d   : > { %10009 = vmatprep.mubr.msk.bf16.mxu1 %vm628_vm2, %v10608_v22  ;;  %10139 = vmatprep.mubr.msk.bf16.mxu0 %vm628_vm2, %v10610_v23  ;;  %v10650_v22 = vld [vmem:[%s10919_s26 + $0xe0] sm:$0xff]  }
  0xa4   : > { %10010 = vmatmul.mubr.msk.bf16.gmra.mxu1 %vm628_vm2, %v10609_v12  ;;  %10140 = vmatmul.mubr.msk.bf16.gmra.mxu0 %vm628_vm2, %v10611_v24 }
  0xa5   : > { %10013 = vmatprep.mubr.msk.bf16.mxu1 %vm628_vm2, %v10612_v25  ;;  %10143 = vmatprep.mubr.msk.bf16.mxu0 %vm628_vm2, %v10614_v26 }
  0xac   : > { %10014 = vmatmul.mubr.msk.bf16.gmra.mxu1 %vm628_vm2, %v10613_v27  ;;  %10144 = vmatmul.mubr.msk.bf16.gmra.mxu0 %vm628_vm2, %v10615_v28  ;;  %v10649_v28 = vld [vmem:[%s10919_s26 + $0xd8] sm:$0xff]  }
  0xad   : > { %10017 = vmatprep.mubr.msk.bf16.mxu1 %vm628_vm2, %v10616_v29  ;;  %10147 = vmatprep.mubr.msk.bf16.mxu0 %vm628_vm2, %v10618_v30  ;;  %v10652_v29 = vld [vmem:[%s10919_s26 + $0xe0] sm:$0xff]  }
  0xb4   : > { %10018 = vmatmul.mubr.msk.bf16.gmra.mxu1 %vm628_vm2, %v10617_v31  ;;  %10148 = vmatmul.mubr.msk.bf16.gmra.mxu0 %vm628_vm2, %v10619_v32  ;;  %v10651_v32 = vld [vmem:[%s10919_s26 + $0xe8] sm:$0xff]  }
  0xb5   : > { %10021 = vmatprep.mubr.msk.bf16.mxu1 %vm628_vm2, %v10620_v33  ;;  %10151 = vmatprep.mubr.msk.bf16.mxu0 %vm628_vm2, %v10622_v34  ;;  %v10654_v33 = vld [vmem:[%s10919_s26 + $0xf0] sm:$0xff]  }
  0xbc   : > { %10022 = vmatmul.mubr.msk.bf16.gmra.mxu1 %vm628_vm2, %v10621_v35  ;;  %10152 = vmatmul.mubr.msk.bf16.gmra.mxu0 %vm628_vm2, %v10623_v36 }
  0xbd   : > { %10025 = vmatprep.mubr.msk.bf16.mxu1 %vm628_vm2, %v10624_v37  ;;  %10155 = vmatprep.mubr.msk.bf16.mxu0 %vm628_vm2, %v10626_v38 }
  0xc4   : > { %10026 = vmatmul.mubr.msk.bf16.gmra.mxu1 %vm628_vm2, %v10625_v39  ;;  %10156 = vmatmul.mubr.msk.bf16.gmra.mxu0 %vm628_vm2, %v10627_v40  ;;  %v10653_v40 = vld [vmem:[%s10919_s26 + $0xe8] sm:$0xff]  }
  0xc5   : > { %10029 = vmatprep.mubr.msk.bf16.mxu1 %vm628_vm2, %v10628_v41  ;;  %10159 = vmatprep.mubr.msk.bf16.mxu0 %vm628_vm2, %v10630_v42  ;;  %v10656_v41 = vld [vmem:[%s10919_s26 + $0xf0] sm:$0xff]  }
  0xcc   : > { %10030 = vmatmul.mubr.msk.bf16.gmra.mxu1 %vm628_vm2, %v10629_v43  ;;  %10160 = vmatmul.mubr.msk.bf16.gmra.mxu0 %vm628_vm2, %v10631_v44  ;;  %v10655_v44 = vld [vmem:[%s10919_s26 + $0xf8] sm:$0xff]  }
  0xcd   : > { %10033 = vmatprep.mubr.msk.bf16.mxu1 %vm628_vm2, %v10632_v45  ;;  %10163 = vmatprep.mubr.msk.bf16.mxu0 %vm628_vm2, %v10634_v46  ;;  %v10658_v45 = vld [vmem:[%s10919_s26 + $0x100] sm:$0xff]  }
  0xd4   : > { %v9937_v51 = vpop.f32.mrf.mxu1  ;;  %10034 = vmatmul.mubr.msk.bf16.gmra.mxu1 %vm628_vm2, %v10633_v47  ;;  %v9873_v53 = vpop.f32.mrf.mxu0  ;;  %10164 = vmatmul.mubr.msk.bf16.gmra.mxu0 %vm628_vm2, %v10635_v48 }
  0xd5   : > { %1440 = vst.msk [vmem:[#allocation2 + $0x210] sm:$0xff] %vm1373_vm3, %v9937_v51  ;;  %10037 = vmatprep.mubr.msk.bf16.mxu1 %vm628_vm2, %v10636_v49  ;;  %1376 = vst.msk [vmem:[#allocation2 + $0x10] sm:$0xff] %vm1373_vm3, %v9873_v53  ;;  %10167 = vmatprep.mubr.msk.bf16.mxu0 %vm628_vm2, %v10638_v50  ;;  %v10660_v53 = vld [vmem:[%s10919_s26 + $0x100] sm:$0xff]  }
  0xd6   : > { %v1118_v52 = vpop.f32.mrf.mxu1  ;;  %v862_v56 = vpop.f32.mrf.mxu0 }
  0xd7   : > { %1438 = vst.msk [vmem:[#allocation2 + $0x200] sm:$0xff] %vm1373_vm3, %v1118_v52  ;;  %1374 = vst.msk [vmem:[#allocation2] sm:$0xff] %vm1373_vm3, %v862_v56  ;;  %v10657_v52 = vld [vmem:[%s10919_s26 + $0xf8] sm:$0xff]   ;;  %v10659_v56 = vld [vmem:[%s10919_s26 + $0x108] sm:$0xff]  }
  0xd8   : > { %v9938_v55 = vpop.f32.mrf.mxu1  ;;  %v9874_v60 = vpop.f32.mrf.mxu0 }
  0xd9   : > { %1441 = vst.msk [vmem:[#allocation2 + $0x218] sm:$0xff] %vm1373_vm3, %v9938_v55  ;;  %1377 = vst.msk [vmem:[#allocation2 + $0x18] sm:$0xff] %vm1373_vm3, %v9874_v60 }
  0xda   : > { %v1121_v59 = vpop.f32.mrf.mxu1  ;;  %v865_v63 = vpop.f32.mrf.mxu0 }
  0xdb   : > { %1439 = vst.msk [vmem:[#allocation2 + $0x208] sm:$0xff] %vm1373_vm3, %v1121_v59  ;;  %1375 = vst.msk [vmem:[#allocation2 + $0x8] sm:$0xff] %vm1373_vm3, %v865_v63 }
  0xdc   : > { %v9941_v62 = vpop.f32.mrf.mxu1  ;;  %10038 = vmatmul.mubr.msk.bf16.gmra.mxu1 %vm628_vm2, %v10637_v54  ;;  %v9877_v1 = vpop.f32.mrf.mxu0  ;;  %10168 = vmatmul.mubr.msk.bf16.gmra.mxu0 %vm628_vm2, %v10639_v57  ;;  %v10662_v57 = vld [vmem:[%s10919_s26 + $0x110] sm:$0xff]  }
  0xdd   : > { %1444 = vst.msk [vmem:[#allocation2 + $0x230] sm:$0xff] %vm1373_vm3, %v9941_v62  ;;  %10041 = vmatprep.mubr.msk.bf16.mxu1 %vm628_vm2, %v10640_v58  ;;  %1380 = vst.msk [vmem:[#allocation2 + $0x30] sm:$0xff] %vm1373_vm3, %v9877_v1  ;;  %10171 = vmatprep.mubr.msk.bf16.mxu0 %vm628_vm2, %v10642_v61  ;;  %v10664_v1 = vld [vmem:[%s10919_s26 + $0x110] sm:$0xff]  }
  0xde   : > { %v1134_v0 = vpop.f32.mrf.mxu1  ;;  %v878_v3 = vpop.f32.mrf.mxu0 }
  0xdf   : > { %1442 = vst.msk [vmem:[#allocation2 + $0x220] sm:$0xff] %vm1373_vm3, %v1134_v0  ;;  %1378 = vst.msk [vmem:[#allocation2 + $0x20] sm:$0xff] %vm1373_vm3, %v878_v3  ;;  %v10661_v0 = vld [vmem:[%s10919_s26 + $0x108] sm:$0xff]  }
  0xe0   : > { %v9942_v2 = vpop.f32.mrf.mxu1  ;;  %v9878_v7 = vpop.f32.mrf.mxu0 }
  0xe1   : > { %1445 = vst.msk [vmem:[#allocation2 + $0x238] sm:$0xff] %vm1373_vm3, %v9942_v2  ;;  %1381 = vst.msk [vmem:[#allocation2 + $0x38] sm:$0xff] %vm1373_vm3, %v9878_v7 }
  0xe2   : > { %v1137_v6 = vpop.f32.mrf.mxu1  ;;  %v881_v11 = vpop.f32.mrf.mxu0 }
  0xe3   : > { %1443 = vst.msk [vmem:[#allocation2 + $0x228] sm:$0xff] %vm1373_vm3, %v1137_v6  ;;  %1379 = vst.msk [vmem:[#allocation2 + $0x28] sm:$0xff] %vm1373_vm3, %v881_v11 }
  0xe4   : > { %v9945_v10 = vpop.f32.mrf.mxu1  ;;  %10042 = vmatmul.mubr.msk.bf16.gmra.mxu1 %vm628_vm2, %v10641_v4  ;;  %v9881_v14 = vpop.f32.mrf.mxu0  ;;  %10172 = vmatmul.mubr.msk.bf16.gmra.mxu0 %vm628_vm2, %v10643_v8  ;;  %v10663_v4 = vld [vmem:[%s10919_s26 + $0x118] sm:$0xff]  }
  0xe5   : > { %1448 = vst.msk [vmem:[#allocation2 + $0x250] sm:$0xff] %vm1373_vm3, %v9945_v10  ;;  %10045 = vmatprep.mubr.msk.bf16.mxu1 %vm628_vm2, %v10644_v5  ;;  %1384 = vst.msk [vmem:[#allocation2 + $0x50] sm:$0xff] %vm1373_vm3, %v9881_v14  ;;  %10175 = vmatprep.mubr.msk.bf16.mxu0 %vm628_vm2, %v10646_v9  ;;  %v10666_v5 = vld [vmem:[%s10919_s26 + $0x120] sm:$0xff]  }
  0xe6   : > { %v1150_v13 = vpop.f32.mrf.mxu1  ;;  %v894_v16 = vpop.f32.mrf.mxu0  ;;  %v10668_v14 = vld [vmem:[%s10919_s26 + $0x120] sm:$0xff]  }
  0xe7   : > { %1446 = vst.msk [vmem:[#allocation2 + $0x240] sm:$0xff] %vm1373_vm3, %v1150_v13  ;;  %1382 = vst.msk [vmem:[#allocation2 + $0x40] sm:$0xff] %vm1373_vm3, %v894_v16  ;;  %v10665_v13 = vld [vmem:[%s10919_s26 + $0x118] sm:$0xff]  }
  0xe8   : > { %v9946_v15 = vpop.f32.mrf.mxu1  ;;  %v9882_v20 = vpop.f32.mrf.mxu0 }
  0xe9   : > { %1449 = vst.msk [vmem:[#allocation2 + $0x258] sm:$0xff] %vm1373_vm3, %v9946_v15  ;;  %1385 = vst.msk [vmem:[#allocation2 + $0x58] sm:$0xff] %vm1373_vm3, %v9882_v20 }
  0xea   : > { %v1153_v19 = vpop.f32.mrf.mxu1  ;;  %v897_v12 = vpop.f32.mrf.mxu0 }
  0xeb   : > { %1447 = vst.msk [vmem:[#allocation2 + $0x248] sm:$0xff] %vm1373_vm3, %v1153_v19  ;;  %1383 = vst.msk [vmem:[#allocation2 + $0x48] sm:$0xff] %vm1373_vm3, %v897_v12 }
  0xec   : > { %v9949_v23 = vpop.f32.mrf.mxu1  ;;  %10046 = vmatmul.mubr.msk.bf16.gmra.mxu1 %vm628_vm2, %v10645_v17  ;;  %v9885_v25 = vpop.f32.mrf.mxu0  ;;  %10176 = vmatmul.mubr.msk.bf16.gmra.mxu0 %vm628_vm2, %v10647_v21  ;;  %v10667_v17 = vld [vmem:[%s10919_s26 + $0x128] sm:$0xff]  }
  0xed   : > { %1452 = vst.msk [vmem:[#allocation2 + $0x270] sm:$0xff] %vm1373_vm3, %v9949_v23  ;;  %10049 = vmatprep.mubr.msk.bf16.mxu1 %vm628_vm2, %v10648_v18  ;;  %1388 = vst.msk [vmem:[#allocation2 + $0x70] sm:$0xff] %vm1373_vm3, %v9885_v25  ;;  %10179 = vmatprep.mubr.msk.bf16.mxu0 %vm628_vm2, %v10650_v22  ;;  %v10670_v18 = vld [vmem:[%s10919_s26 + $0x130] sm:$0xff]  }
  0xee   : > { %v1166_v24 = vpop.f32.mrf.mxu1  ;;  %v910_v27 = vpop.f32.mrf.mxu0  ;;  %v10672_v25 = vld [vmem:[%s10919_s26 + $0x130] sm:$0xff]  }
  0xef   : > { %1450 = vst.msk [vmem:[#allocation2 + $0x260] sm:$0xff] %vm1373_vm3, %v1166_v24  ;;  %1386 = vst.msk [vmem:[#allocation2 + $0x60] sm:$0xff] %vm1373_vm3, %v910_v27  ;;  %v10669_v24 = vld [vmem:[%s10919_s26 + $0x128] sm:$0xff]  }
  0xf0   : > { %v9950_v26 = vpop.f32.mrf.mxu1  ;;  %v9886_v31 = vpop.f32.mrf.mxu0 }
  0xf1   : > { %1453 = vst.msk [vmem:[#allocation2 + $0x278] sm:$0xff] %vm1373_vm3, %v9950_v26  ;;  %1389 = vst.msk [vmem:[#allocation2 + $0x78] sm:$0xff] %vm1373_vm3, %v9886_v31 }
  0xf2   : > { %v1169_v30 = vpop.f32.mrf.mxu1  ;;  %v913_v35 = vpop.f32.mrf.mxu0 }
  0xf3   : > { %1451 = vst.msk [vmem:[#allocation2 + $0x268] sm:$0xff] %vm1373_vm3, %v1169_v30  ;;  %1387 = vst.msk [vmem:[#allocation2 + $0x68] sm:$0xff] %vm1373_vm3, %v913_v35 }
  0xf4   : > { %v9953_v34 = vpop.f32.mrf.mxu1  ;;  %10050 = vmatmul.mubr.msk.bf16.gmra.mxu1 %vm628_vm2, %v10649_v28  ;;  %v9889_v37 = vpop.f32.mrf.mxu0  ;;  %10180 = vmatmul.mubr.msk.bf16.gmra.mxu0 %vm628_vm2, %v10651_v32  ;;  %v10671_v28 = vld [vmem:[%s10919_s26 + $0x138] sm:$0xff]  }
  0xf5   : > { %1456 = vst.msk [vmem:[#allocation2 + $0x290] sm:$0xff] %vm1373_vm3, %v9953_v34  ;;  %10053 = vmatprep.mubr.msk.bf16.mxu1 %vm628_vm2, %v10652_v29  ;;  %1392 = vst.msk [vmem:[#allocation2 + $0x90] sm:$0xff] %vm1373_vm3, %v9889_v37  ;;  %10183 = vmatprep.mubr.msk.bf16.mxu0 %vm628_vm2, %v10654_v33  ;;  %v10674_v29 = vld [vmem:[%s10919_s26 + $0x140] sm:$0xff]  }
  0xf6   : > { %v1182_v36 = vpop.f32.mrf.mxu1  ;;  %v926_v39 = vpop.f32.mrf.mxu0  ;;  %v10676_v37 = vld [vmem:[%s10919_s26 + $0x140] sm:$0xff]  }
  0xf7   : > { %1454 = vst.msk [vmem:[#allocation2 + $0x280] sm:$0xff] %vm1373_vm3, %v1182_v36  ;;  %1390 = vst.msk [vmem:[#allocation2 + $0x80] sm:$0xff] %vm1373_vm3, %v926_v39  ;;  %v10673_v36 = vld [vmem:[%s10919_s26 + $0x138] sm:$0xff]  }
  0xf8   : > { %v9954_v38 = vpop.f32.mrf.mxu1  ;;  %v9890_v43 = vpop.f32.mrf.mxu0 }
  0xf9   : > { %1457 = vst.msk [vmem:[#allocation2 + $0x298] sm:$0xff] %vm1373_vm3, %v9954_v38  ;;  %1393 = vst.msk [vmem:[#allocation2 + $0x98] sm:$0xff] %vm1373_vm3, %v9890_v43 }
  0xfa   : > { %v1185_v42 = vpop.f32.mrf.mxu1  ;;  %v929_v47 = vpop.f32.mrf.mxu0 }
  0xfb   : > { %1455 = vst.msk [vmem:[#allocation2 + $0x288] sm:$0xff] %vm1373_vm3, %v1185_v42  ;;  %1391 = vst.msk [vmem:[#allocation2 + $0x88] sm:$0xff] %vm1373_vm3, %v929_v47 }
  0xfc   : > { %v9957_v46 = vpop.f32.mrf.mxu1  ;;  %10054 = vmatmul.mubr.msk.bf16.gmra.mxu1 %vm628_vm2, %v10653_v40  ;;  %v9893_v49 = vpop.f32.mrf.mxu0  ;;  %10184 = vmatmul.mubr.msk.bf16.gmra.mxu0 %vm628_vm2, %v10655_v44  ;;  %v10675_v40 = vld [vmem:[%s10919_s26 + $0x148] sm:$0xff]  }
  0xfd   : > { %1460 = vst.msk [vmem:[#allocation2 + $0x2b0] sm:$0xff] %vm1373_vm3, %v9957_v46  ;;  %10057 = vmatprep.mubr.msk.bf16.mxu1 %vm628_vm2, %v10656_v41  ;;  %1396 = vst.msk [vmem:[#allocation2 + $0xb0] sm:$0xff] %vm1373_vm3, %v9893_v49  ;;  %10187 = vmatprep.mubr.msk.bf16.mxu0 %vm628_vm2, %v10658_v45  ;;  %v10678_v41 = vld [vmem:[%s10919_s26 + $0x150] sm:$0xff]  }
  0xfe   : > { %v1198_v48 = vpop.f32.mrf.mxu1  ;;  %v942_v51 = vpop.f32.mrf.mxu0  ;;  %v10680_v49 = vld [vmem:[%s10919_s26 + $0x150] sm:$0xff]  }
  0xff   : > { %1458 = vst.msk [vmem:[#allocation2 + $0x2a0] sm:$0xff] %vm1373_vm3, %v1198_v48  ;;  %1394 = vst.msk [vmem:[#allocation2 + $0xa0] sm:$0xff] %vm1373_vm3, %v942_v51  ;;  %v10677_v48 = vld [vmem:[%s10919_s26 + $0x148] sm:$0xff]  }
 0x100   : > { %v9958_v50 = vpop.f32.mrf.mxu1  ;;  %v9894_v55 = vpop.f32.mrf.mxu0 }
 0x101   : > { %1461 = vst.msk [vmem:[#allocation2 + $0x2b8] sm:$0xff] %vm1373_vm3, %v9958_v50  ;;  %1397 = vst.msk [vmem:[#allocation2 + $0xb8] sm:$0xff] %vm1373_vm3, %v9894_v55 }
 0x102   : > { %v1201_v54 = vpop.f32.mrf.mxu1  ;;  %v945_v59 = vpop.f32.mrf.mxu0 }
 0x103   : > { %1459 = vst.msk [vmem:[#allocation2 + $0x2a8] sm:$0xff] %vm1373_vm3, %v1201_v54  ;;  %1395 = vst.msk [vmem:[#allocation2 + $0xa8] sm:$0xff] %vm1373_vm3, %v945_v59 }
 0x104   : > { %v9961_v58 = vpop.f32.mrf.mxu1  ;;  %10058 = vmatmul.mubr.msk.bf16.gmra.mxu1 %vm628_vm2, %v10657_v52  ;;  %v9897_v61 = vpop.f32.mrf.mxu0  ;;  %10188 = vmatmul.mubr.msk.bf16.gmra.mxu0 %vm628_vm2, %v10659_v56  ;;  %v10679_v52 = vld [vmem:[%s10919_s26 + $0x158] sm:$0xff]  }
 0x105   : > { %1464 = vst.msk [vmem:[#allocation2 + $0x2d0] sm:$0xff] %vm1373_vm3, %v9961_v58  ;;  %10061 = vmatprep.mubr.msk.bf16.mxu1 %vm628_vm2, %v10660_v53  ;;  %1400 = vst.msk [vmem:[#allocation2 + $0xd0] sm:$0xff] %vm1373_vm3, %v9897_v61  ;;  %10191 = vmatprep.mubr.msk.bf16.mxu0 %vm628_vm2, %v10662_v57  ;;  %v10682_v53 = vld [vmem:[%s10919_s26 + $0x160] sm:$0xff]  }
 0x106   : > { %v1214_v60 = vpop.f32.mrf.mxu1  ;;  %v958_v63 = vpop.f32.mrf.mxu0  ;;  %v10684_v61 = vld [vmem:[%s10919_s26 + $0x160] sm:$0xff]  }
 0x107   : > { %1462 = vst.msk [vmem:[#allocation2 + $0x2c0] sm:$0xff] %vm1373_vm3, %v1214_v60  ;;  %1398 = vst.msk [vmem:[#allocation2 + $0xc0] sm:$0xff] %vm1373_vm3, %v958_v63  ;;  %v10681_v60 = vld [vmem:[%s10919_s26 + $0x158] sm:$0xff]  }
 0x108   : > { %v9962_v62 = vpop.f32.mrf.mxu1  ;;  %v9898_v3 = vpop.f32.mrf.mxu0 }
 0x109   : > { %1465 = vst.msk [vmem:[#allocation2 + $0x2d8] sm:$0xff] %vm1373_vm3, %v9962_v62  ;;  %1401 = vst.msk [vmem:[#allocation2 + $0xd8] sm:$0xff] %vm1373_vm3, %v9898_v3 }
 0x10a   : > { %v1217_v2 = vpop.f32.mrf.mxu1  ;;  %v961_v7 = vpop.f32.mrf.mxu0 }
 0x10b   : > { %1463 = vst.msk [vmem:[#allocation2 + $0x2c8] sm:$0xff] %vm1373_vm3, %v1217_v2  ;;  %1399 = vst.msk [vmem:[#allocation2 + $0xc8] sm:$0xff] %vm1373_vm3, %v961_v7 }
 0x10c   : > { %v9965_v6 = vpop.f32.mrf.mxu1  ;;  %10062 = vmatmul.mubr.msk.bf16.gmra.mxu1 %vm628_vm2, %v10661_v0  ;;  %v9901_v9 = vpop.f32.mrf.mxu0  ;;  %10192 = vmatmul.mubr.msk.bf16.gmra.mxu0 %vm628_vm2, %v10663_v4  ;;  %v10683_v0 = vld [vmem:[%s10919_s26 + $0x168] sm:$0xff]  }
 0x10d   : > { %1468 = vst.msk [vmem:[#allocation2 + $0x2f0] sm:$0xff] %vm1373_vm3, %v9965_v6  ;;  %10065 = vmatprep.mubr.msk.bf16.mxu1 %vm628_vm2, %v10664_v1  ;;  %1404 = vst.msk [vmem:[#allocation2 + $0xf0] sm:$0xff] %vm1373_vm3, %v9901_v9  ;;  %10195 = vmatprep.mubr.msk.bf16.mxu0 %vm628_vm2, %v10666_v5  ;;  %v10686_v1 = vld [vmem:[%s10919_s26 + $0x170] sm:$0xff]  }
 0x10e   : > { %v1230_v8 = vpop.f32.mrf.mxu1  ;;  %v974_v11 = vpop.f32.mrf.mxu0  ;;  %v10688_v9 = vld [vmem:[%s10919_s26 + $0x170] sm:$0xff]  }
 0x10f   : > { %1466 = vst.msk [vmem:[#allocation2 + $0x2e0] sm:$0xff] %vm1373_vm3, %v1230_v8  ;;  %1402 = vst.msk [vmem:[#allocation2 + $0xe0] sm:$0xff] %vm1373_vm3, %v974_v11  ;;  %v10685_v8 = vld [vmem:[%s10919_s26 + $0x168] sm:$0xff]  }
 0x110   : > { %v9966_v10 = vpop.f32.mrf.mxu1  ;;  %v9902_v16 = vpop.f32.mrf.mxu0 }
 0x111   : > { %1469 = vst.msk [vmem:[#allocation2 + $0x2f8] sm:$0xff] %vm1373_vm3, %v9966_v10  ;;  %1405 = vst.msk [vmem:[#allocation2 + $0xf8] sm:$0xff] %vm1373_vm3, %v9902_v16 }
 0x112   : > { %v1233_v15 = vpop.f32.mrf.mxu1  ;;  %v977_v20 = vpop.f32.mrf.mxu0 }
 0x113   : > { %1467 = vst.msk [vmem:[#allocation2 + $0x2e8] sm:$0xff] %vm1373_vm3, %v1233_v15  ;;  %1403 = vst.msk [vmem:[#allocation2 + $0xe8] sm:$0xff] %vm1373_vm3, %v977_v20 }
 0x114   : > { %v9969_v19 = vpop.f32.mrf.mxu1  ;;  %10066 = vmatmul.mubr.msk.bf16.gmra.mxu1 %vm628_vm2, %v10665_v13  ;;  %v9905_v22 = vpop.f32.mrf.mxu0  ;;  %10196 = vmatmul.mubr.msk.bf16.gmra.mxu0 %vm628_vm2, %v10667_v17  ;;  %v10687_v13 = vld [vmem:[%s10919_s26 + $0x178] sm:$0xff]  }
 0x115   : > { %1472 = vst.msk [vmem:[#allocation2 + $0x310] sm:$0xff] %vm1373_vm3, %v9969_v19  ;;  %10069 = vmatprep.mubr.msk.bf16.mxu1 %vm628_vm2, %v10668_v14  ;;  %1408 = vst.msk [vmem:[#allocation2 + $0x110] sm:$0xff] %vm1373_vm3, %v9905_v22  ;;  %10199 = vmatprep.mubr.msk.bf16.mxu0 %vm628_vm2, %v10670_v18  ;;  %v10690_v14 = vld [vmem:[%s10919_s26 + $0x180] sm:$0xff]  }
 0x116   : > { %v1246_v21 = vpop.f32.mrf.mxu1  ;;  %v990_v12 = vpop.f32.mrf.mxu0  ;;  %v10692_v22 = vld [vmem:[%s10919_s26 + $0x180] sm:$0xff]  }
 0x117   : > { %1470 = vst.msk [vmem:[#allocation2 + $0x300] sm:$0xff] %vm1373_vm3, %v1246_v21  ;;  %1406 = vst.msk [vmem:[#allocation2 + $0x100] sm:$0xff] %vm1373_vm3, %v990_v12  ;;  %v10689_v21 = vld [vmem:[%s10919_s26 + $0x178] sm:$0xff]  }
 0x118   : > { %v9970_v23 = vpop.f32.mrf.mxu1  ;;  %v9906_v27 = vpop.f32.mrf.mxu0 }
 0x119   : > { %1473 = vst.msk [vmem:[#allocation2 + $0x318] sm:$0xff] %vm1373_vm3, %v9970_v23  ;;  %1409 = vst.msk [vmem:[#allocation2 + $0x118] sm:$0xff] %vm1373_vm3, %v9906_v27 }
 0x11a   : > { %v1249_v26 = vpop.f32.mrf.mxu1  ;;  %v993_v31 = vpop.f32.mrf.mxu0 }
 0x11b   : > { %1471 = vst.msk [vmem:[#allocation2 + $0x308] sm:$0xff] %vm1373_vm3, %v1249_v26  ;;  %1407 = vst.msk [vmem:[#allocation2 + $0x108] sm:$0xff] %vm1373_vm3, %v993_v31 }
 0x11c   : > { %v9973_v30 = vpop.f32.mrf.mxu1  ;;  %10070 = vmatmul.mubr.msk.bf16.gmra.mxu1 %vm628_vm2, %v10669_v24  ;;  %v9909_v33 = vpop.f32.mrf.mxu0  ;;  %10200 = vmatmul.mubr.msk.bf16.gmra.mxu0 %vm628_vm2, %v10671_v28  ;;  %v10691_v24 = vld [vmem:[%s10919_s26 + $0x188] sm:$0xff]  }
 0x11d   : > { %1476 = vst.msk [vmem:[#allocation2 + $0x330] sm:$0xff] %vm1373_vm3, %v9973_v30  ;;  %10073 = vmatprep.mubr.msk.bf16.mxu1 %vm628_vm2, %v10672_v25  ;;  %1412 = vst.msk [vmem:[#allocation2 + $0x130] sm:$0xff] %vm1373_vm3, %v9909_v33  ;;  %10203 = vmatprep.mubr.msk.bf16.mxu0 %vm628_vm2, %v10674_v29  ;;  %v10694_v25 = vld [vmem:[%s10919_s26 + $0x190] sm:$0xff]  }
 0x11e   : > { %v1262_v32 = vpop.f32.mrf.mxu1  ;;  %v1006_v35 = vpop.f32.mrf.mxu0  ;;  %v10696_v33 = vld [vmem:[%s10919_s26 + $0x190] sm:$0xff]  }
 0x11f   : > { %1474 = vst.msk [vmem:[#allocation2 + $0x320] sm:$0xff] %vm1373_vm3, %v1262_v32  ;;  %1410 = vst.msk [vmem:[#allocation2 + $0x120] sm:$0xff] %vm1373_vm3, %v1006_v35  ;;  %v10693_v32 = vld [vmem:[%s10919_s26 + $0x188] sm:$0xff]  }
 0x120   : > { %v9974_v34 = vpop.f32.mrf.mxu1  ;;  %v9910_v39 = vpop.f32.mrf.mxu0 }
 0x121   : > { %1477 = vst.msk [vmem:[#allocation2 + $0x338] sm:$0xff] %vm1373_vm3, %v9974_v34  ;;  %1413 = vst.msk [vmem:[#allocation2 + $0x138] sm:$0xff] %vm1373_vm3, %v9910_v39 }
 0x122   : > { %v1265_v38 = vpop.f32.mrf.mxu1  ;;  %v1009_v43 = vpop.f32.mrf.mxu0 }
 0x123   : > { %1475 = vst.msk [vmem:[#allocation2 + $0x328] sm:$0xff] %vm1373_vm3, %v1265_v38  ;;  %1411 = vst.msk [vmem:[#allocation2 + $0x128] sm:$0xff] %vm1373_vm3, %v1009_v43 }
 0x124   : > { %v9977_v42 = vpop.f32.mrf.mxu1  ;;  %10074 = vmatmul.mubr.msk.bf16.gmra.mxu1 %vm628_vm2, %v10673_v36  ;;  %v9913_v45 = vpop.f32.mrf.mxu0  ;;  %10204 = vmatmul.mubr.msk.bf16.gmra.mxu0 %vm628_vm2, %v10675_v40  ;;  %v10695_v36 = vld [vmem:[%s10919_s26 + $0x198] sm:$0xff]  }
 0x125   : > { %1480 = vst.msk [vmem:[#allocation2 + $0x350] sm:$0xff] %vm1373_vm3, %v9977_v42  ;;  %10077 = vmatprep.mubr.msk.bf16.mxu1 %vm628_vm2, %v10676_v37  ;;  %1416 = vst.msk [vmem:[#allocation2 + $0x150] sm:$0xff] %vm1373_vm3, %v9913_v45  ;;  %10207 = vmatprep.mubr.msk.bf16.mxu0 %vm628_vm2, %v10678_v41  ;;  %v10698_v37 = vld [vmem:[%s10919_s26 + $0x1a0] sm:$0xff]  }
 0x126   : > { %v1278_v44 = vpop.f32.mrf.mxu1  ;;  %v1022_v47 = vpop.f32.mrf.mxu0  ;;  %v10700_v45 = vld [vmem:[%s10919_s26 + $0x1a0] sm:$0xff]  }
 0x127   : > { %1478 = vst.msk [vmem:[#allocation2 + $0x340] sm:$0xff] %vm1373_vm3, %v1278_v44  ;;  %1414 = vst.msk [vmem:[#allocation2 + $0x140] sm:$0xff] %vm1373_vm3, %v1022_v47  ;;  %v10697_v44 = vld [vmem:[%s10919_s26 + $0x198] sm:$0xff]  }
 0x128   : > { %v9978_v46 = vpop.f32.mrf.mxu1  ;;  %v9914_v51 = vpop.f32.mrf.mxu0 }
 0x129   : > { %1481 = vst.msk [vmem:[#allocation2 + $0x358] sm:$0xff] %vm1373_vm3, %v9978_v46  ;;  %1417 = vst.msk [vmem:[#allocation2 + $0x158] sm:$0xff] %vm1373_vm3, %v9914_v51 }
 0x12a   : > { %v1281_v50 = vpop.f32.mrf.mxu1  ;;  %v1025_v55 = vpop.f32.mrf.mxu0 }
 0x12b   : > { %1479 = vst.msk [vmem:[#allocation2 + $0x348] sm:$0xff] %vm1373_vm3, %v1281_v50  ;;  %1415 = vst.msk [vmem:[#allocation2 + $0x148] sm:$0xff] %vm1373_vm3, %v1025_v55  ;;  %v1504_v50 = vld [vmem:[#allocation2 + $0x10] sm:$0xff] }
 0x12c   : > { %v9981_v54 = vpop.f32.mrf.mxu1  ;;  %10078 = vmatmul.mubr.msk.bf16.gmra.mxu1 %vm628_vm2, %v10677_v48  ;;  %v9917_v57 = vpop.f32.mrf.mxu0  ;;  %10208 = vmatmul.mubr.msk.bf16.gmra.mxu0 %vm628_vm2, %v10679_v52  ;;  %v10699_v48 = vld [vmem:[%s10919_s26 + $0x1a8] sm:$0xff]  }
 0x12d   : > { %1484 = vst.msk [vmem:[#allocation2 + $0x370] sm:$0xff] %vm1373_vm3, %v9981_v54  ;;  %10081 = vmatprep.mubr.msk.bf16.mxu1 %vm628_vm2, %v10680_v49  ;;  %1420 = vst.msk [vmem:[#allocation2 + $0x170] sm:$0xff] %vm1373_vm3, %v9917_v57  ;;  %10211 = vmatprep.mubr.msk.bf16.mxu0 %vm628_vm2, %v10682_v53  ;;  %v10702_v49 = vld [vmem:[%s10919_s26 + $0x1b0] sm:$0xff]   ;;  %v1502_v54 = vld [vmem:[#allocation2] sm:$0xff] }
 0x12e   : > { %v1294_v56 = vpop.f32.mrf.mxu1  ;;  %v1038_v59 = vpop.f32.mrf.mxu0 }
 0x12f   : > { %1482 = vst.msk [vmem:[#allocation2 + $0x360] sm:$0xff] %vm1373_vm3, %v1294_v56  ;;  %1418 = vst.msk [vmem:[#allocation2 + $0x160] sm:$0xff] %vm1373_vm3, %v1038_v59 }
 0x130   : > { %v9982_v58 = vpop.f32.mrf.mxu1  ;;  %v9918_v63 = vpop.f32.mrf.mxu0 }
 0x131   : > { %1485 = vst.msk [vmem:[#allocation2 + $0x378] sm:$0xff] %vm1373_vm3, %v9982_v58  ;;  %1421 = vst.msk [vmem:[#allocation2 + $0x178] sm:$0xff] %vm1373_vm3, %v9918_v63  ;;  %v1505_v58 = vld [vmem:[#allocation2 + $0x18] sm:$0xff] }
 0x132   : > { %v1297_v62 = vpop.f32.mrf.mxu1  ;;  %v1041_v3 = vpop.f32.mrf.mxu0 }
 0x133   : > { %1483 = vst.msk [vmem:[#allocation2 + $0x368] sm:$0xff] %vm1373_vm3, %v1297_v62  ;;  %1419 = vst.msk [vmem:[#allocation2 + $0x168] sm:$0xff] %vm1373_vm3, %v1041_v3  ;;  %v10703_v62 = vld [vmem:[%s10919_s26 + $0x1b8] sm:$0xff]  }
 0x134   : > { %v9985_v2 = vpop.f32.mrf.mxu1  ;;  %10082 = vmatmul.mubr.msk.bf16.gmra.mxu1 %vm628_vm2, %v10681_v60  ;;  %v9921_v5 = vpop.f32.mrf.mxu0  ;;  %10212 = vmatmul.mubr.msk.bf16.gmra.mxu0 %vm628_vm2, %v10683_v0  ;;  %v10704_v0 = vld [vmem:[%s10919_s26 + $0x1b0] sm:$0xff]  }
 0x135   : > { %1488 = vst.msk [vmem:[#allocation2 + $0x390] sm:$0xff] %vm1373_vm3, %v9985_v2  ;;  %10085 = vmatprep.mubr.msk.bf16.mxu1 %vm628_vm2, %v10684_v61  ;;  %1424 = vst.msk [vmem:[#allocation2 + $0x190] sm:$0xff] %vm1373_vm3, %v9921_v5  ;;  %10215 = vmatprep.mubr.msk.bf16.mxu0 %vm628_vm2, %v10686_v1  ;;  %v10701_v61 = vld [vmem:[%s10919_s26 + $0x1a8] sm:$0xff]  }
 0x136   : > { %v1310_v4 = vpop.f32.mrf.mxu1  ;;  %v1054_v7 = vpop.f32.mrf.mxu0  ;;  %v1503_v1 = vld [vmem:[#allocation2 + $0x8] sm:$0xff] }
 0x137   : > { %1486 = vst.msk [vmem:[#allocation2 + $0x380] sm:$0xff] %vm1373_vm3, %v1310_v4  ;;  %1422 = vst.msk [vmem:[#allocation2 + $0x180] sm:$0xff] %vm1373_vm3, %v1054_v7  ;;  %v10706_v4 = vld [vmem:[%s10919_s26 + $0x1c0] sm:$0xff]  }
 0x138   : > { %v9986_v6 = vpop.f32.mrf.mxu1  ;;  %v9922_v11 = vpop.f32.mrf.mxu0 }
 0x139   : > { %1489 = vst.msk [vmem:[#allocation2 + $0x398] sm:$0xff] %vm1373_vm3, %v9986_v6  ;;  %1425 = vst.msk [vmem:[#allocation2 + $0x198] sm:$0xff] %vm1373_vm3, %v9922_v11  ;;  %v1508_v6 = vld [vmem:[#allocation2 + $0x30] sm:$0xff]  ;;  %v1506_v11 = vld [vmem:[#allocation2 + $0x20] sm:$0xff] }
 0x13a   : > { %v1313_v10 = vpop.f32.mrf.mxu1  ;;  %v1057_v16 = vpop.f32.mrf.mxu0 }
 0x13b   : > { %1487 = vst.msk [vmem:[#allocation2 + $0x388] sm:$0xff] %vm1373_vm3, %v1313_v10  ;;  %1423 = vst.msk [vmem:[#allocation2 + $0x188] sm:$0xff] %vm1373_vm3, %v1057_v16 }
 0x13c   : > { %v9989_v15 = vpop.f32.mrf.mxu1  ;;  %10086 = vmatmul.mubr.msk.bf16.gmra.mxu1 %vm628_vm2, %v10685_v8  ;;  %v9925_v18 = vpop.f32.mrf.mxu0  ;;  %10216 = vmatmul.mubr.msk.bf16.gmra.mxu0 %vm628_vm2, %v10687_v13 }
 0x13d   : > { %1492 = vst.msk [vmem:[#allocation2 + $0x3b0] sm:$0xff] %vm1373_vm3, %v9989_v15  ;;  %10089 = vmatprep.mubr.msk.bf16.mxu1 %vm628_vm2, %v10688_v9  ;;  %1428 = vst.msk [vmem:[#allocation2 + $0x1b0] sm:$0xff] %vm1373_vm3, %v9925_v18  ;;  %10219 = vmatprep.mubr.msk.bf16.mxu0 %vm628_vm2, %v10690_v14  ;;  %v1509_v18 = vld [vmem:[#allocation2 + $0x38] sm:$0xff] }
 0x13e   : > { %v1326_v17 = vpop.f32.mrf.mxu1  ;;  %v1070_v20 = vpop.f32.mrf.mxu0 }
 0x13f   : > { %1490 = vst.msk [vmem:[#allocation2 + $0x3a0] sm:$0xff] %vm1373_vm3, %v1326_v17  ;;  %1426 = vst.msk [vmem:[#allocation2 + $0x1a0] sm:$0xff] %vm1373_vm3, %v1070_v20 }
 0x140   : > { %v9990_v19 = vpop.f32.mrf.mxu1  ;;  %v9926_v12 = vpop.f32.mrf.mxu0 }
 0x141   : > { %1493 = vst.msk [vmem:[#allocation2 + $0x3b8] sm:$0xff] %vm1373_vm3, %v9990_v19  ;;  %1429 = vst.msk [vmem:[#allocation2 + $0x1b8] sm:$0xff] %vm1373_vm3, %v9926_v12  ;;  %v10708_v12 = vld [vmem:[%s10919_s26 + $0x1c0] sm:$0xff]  }
 0x142   : > { %v1329_v23 = vpop.f32.mrf.mxu1  ;;  %v1073_v27 = vpop.f32.mrf.mxu0 }
 0x143   : > { %1491 = vst.msk [vmem:[#allocation2 + $0x3a8] sm:$0xff] %vm1373_vm3, %v1329_v23  ;;  %1427 = vst.msk [vmem:[#allocation2 + $0x1a8] sm:$0xff] %vm1373_vm3, %v1073_v27 }
 0x144   : > { %v9993_v26 = vpop.f32.mrf.mxu1  ;;  %10090 = vmatmul.mubr.msk.bf16.gmra.mxu1 %vm628_vm2, %v10689_v21  ;;  %v9929_v29 = vpop.f32.mrf.mxu0  ;;  %10220 = vmatmul.mubr.msk.bf16.gmra.mxu0 %vm628_vm2, %v10691_v24  ;;  %v10705_v21 = vld [vmem:[%s10919_s26 + $0x1b8] sm:$0xff]  }
 0x145   : > { %1496 = vst.msk [vmem:[#allocation2 + $0x3d0] sm:$0xff] %vm1373_vm3, %v9993_v26  ;;  %10093 = vmatprep.mubr.msk.bf16.mxu1 %vm628_vm2, %v10692_v22  ;;  %1432 = vst.msk [vmem:[#allocation2 + $0x1d0] sm:$0xff] %vm1373_vm3, %v9929_v29  ;;  %10223 = vmatprep.mubr.msk.bf16.mxu0 %vm628_vm2, %v10694_v25  ;;  %v1507_v25 = vld [vmem:[#allocation2 + $0x28] sm:$0xff] }
 0x146   : > { %v1342_v28 = vpop.f32.mrf.mxu1  ;;  %v1086_v31 = vpop.f32.mrf.mxu0 }
 0x147   : > { %1494 = vst.msk [vmem:[#allocation2 + $0x3c0] sm:$0xff] %vm1373_vm3, %v1342_v28  ;;  %1430 = vst.msk [vmem:[#allocation2 + $0x1c0] sm:$0xff] %vm1373_vm3, %v1086_v31  ;;  %v10707_v28 = vld [vmem:[%s10919_s26 + $0x1c8] sm:$0xff]   ;;  %v10710_v31 = vld [vmem:[%s10919_s26 + $0x1d0] sm:$0xff]  }
 0x148   : > { %v9994_v30 = vpop.f32.mrf.mxu1  ;;  %v9930_v35 = vpop.f32.mrf.mxu0 }
 0x149   : > { %1497 = vst.msk [vmem:[#allocation2 + $0x3d8] sm:$0xff] %vm1373_vm3, %v9994_v30  ;;  %1433 = vst.msk [vmem:[#allocation2 + $0x1d8] sm:$0xff] %vm1373_vm3, %v9930_v35 }
 0x14a   : > { %v1345_v34 = vpop.f32.mrf.mxu1  ;;  %v1089_v39 = vpop.f32.mrf.mxu0 }
 0x14b   : > { %1495 = vst.msk [vmem:[#allocation2 + $0x3c8] sm:$0xff] %vm1373_vm3, %v1345_v34  ;;  %1431 = vst.msk [vmem:[#allocation2 + $0x1c8] sm:$0xff] %vm1373_vm3, %v1089_v39  ;;  %v1510_v39 = vld [vmem:[#allocation2 + $0x40] sm:$0xff] }
 0x14c   : > { %v9997_v38 = vpop.f32.mrf.mxu1  ;;  %10094 = vmatmul.mubr.msk.bf16.gmra.mxu1 %vm628_vm2, %v10693_v32  ;;  %v9933_v41 = vpop.f32.mrf.mxu0  ;;  %10224 = vmatmul.mubr.msk.bf16.gmra.mxu0 %vm628_vm2, %v10695_v36 }
 0x14d   : > { %1500 = vst.msk [vmem:[#allocation2 + $0x3f0] sm:$0xff] %vm1373_vm3, %v9997_v38  ;;  %10097 = vmatprep.mubr.msk.bf16.mxu1 %vm628_vm2, %v10696_v33  ;;  %1436 = vst.msk [vmem:[#allocation2 + $0x1f0] sm:$0xff] %vm1373_vm3, %v9933_v41  ;;  %10227 = vmatprep.mubr.msk.bf16.mxu0 %vm628_vm2, %v10698_v37  ;;  %v1512_v33 = vld [vmem:[#allocation2 + $0x50] sm:$0xff] }
 0x14e   : > { %v1358_v40 = vpop.f32.mrf.mxu1  ;;  %v1102_v43 = vpop.f32.mrf.mxu0 }
 0x14f   : > { %1498 = vst.msk [vmem:[#allocation2 + $0x3e0] sm:$0xff] %vm1373_vm3, %v1358_v40  ;;  %1434 = vst.msk [vmem:[#allocation2 + $0x1e0] sm:$0xff] %vm1373_vm3, %v1102_v43 }
 0x150   : > { %v9998_v42 = vpop.f32.mrf.mxu1  ;;  %v9934_v47 = vpop.f32.mrf.mxu0 }
 0x151   : > { %1501 = vst.msk [vmem:[#allocation2 + $0x3f8] sm:$0xff] %vm1373_vm3, %v9998_v42  ;;  %1437 = vst.msk [vmem:[#allocation2 + $0x1f8] sm:$0xff] %vm1373_vm3, %v9934_v47 }
 0x152   : > { %v1361_v46 = vpop.f32.mrf.mxu1  ;;  %v1105_v52 = vpop.f32.mrf.mxu0 }
 0x153   : > { %1499 = vst.msk [vmem:[#allocation2 + $0x3e8] sm:$0xff] %vm1373_vm3, %v1361_v46  ;;  %1435 = vst.msk [vmem:[#allocation2 + $0x1e8] sm:$0xff] %vm1373_vm3, %v1105_v52 }
 0x154   : > { %v10003_v51 = vpop.f32.mrf.mxu1  ;;  %10098 = vmatmul.mubr.msk.bf16.gmra.mxu1 %vm628_vm2, %v10697_v44  ;;  %v10133_v56 = vpop.f32.mrf.mxu0  ;;  %10228 = vmatmul.mubr.msk.bf16.gmra.mxu0 %vm628_vm2, %v10699_v48  ;;  %v10709_v48 = vld [vmem:[%s10919_s26 + $0x1c8] sm:$0xff]  }
 0x155   : > { %v2829_v53 = vadd.f32 %v10003_v51, %v1504_v50  ;;  %10101 = vmatprep.mubr.msk.bf16.mxu1 %vm628_vm2, %v10700_v45  ;;  %10231 = vmatprep.mubr.msk.bf16.mxu0 %vm628_vm2, %v10702_v49  ;;  %v1513_v45 = vld [vmem:[#allocation2 + $0x58] sm:$0xff]  ;;  %v10712_v51 = vld [vmem:[%s10919_s26 + $0x1d0] sm:$0xff]  }
 0x156   : > { %v2316_v55 = vpop.f32.mrf.mxu1  ;;  %v3897_v60 = vpop.f32.mrf.mxu0 }
 0x157   : > { %2957 = vst.msk [vmem:[#allocation2 + $0x10] sm:$0xff] %vm1373_vm3, %v2829_v53  ;;  %v2827_v57 = vadd.f32 %v2316_v55, %v1502_v54  ;;  %v1511_v53 = vld [vmem:[#allocation2 + $0x48] sm:$0xff] }
 0x158   : > { %v10004_v59 = vpop.f32.mrf.mxu1  ;;  %v10134_v3 = vpop.f32.mrf.mxu0 }
 0x159   : > { %2955 = vst.msk [vmem:[#allocation2] sm:$0xff] %vm1373_vm3, %v2827_v57  ;;  %v2830_v63 = vadd.f32 %v10004_v59, %v1505_v58  ;;  %v10714_v59 = vld [vmem:[%s10919_s26 + $0x1e0] sm:$0xff]  }
 0x15a   : > { %v2319_v2 = vpop.f32.mrf.mxu1  ;;  %v3900_v8 = vpop.f32.mrf.mxu0 }
 0x15b   : > { %2958 = vst.msk [vmem:[#allocation2 + $0x18] sm:$0xff] %vm1373_vm3, %v2830_v63  ;;  %v2828_v5 = vadd.f32 %v2319_v2, %v1503_v1 }
 0x15c   : > { %v10007_v7 = vpop.f32.mrf.mxu1  ;;  %10102 = vmatmul.mubr.msk.bf16.gmra.mxu1 %vm628_vm2, %v10701_v61  ;;  %v10137_v14 = vpop.f32.mrf.mxu0  ;;  %10232 = vmatmul.mubr.msk.bf16.gmra.mxu0 %vm628_vm2, %v10703_v62  ;;  %v1516_v61 = vld [vmem:[#allocation2 + $0x70] sm:$0xff] }
 0x15d   : > { %2956 = vst.msk [vmem:[#allocation2 + $0x8] sm:$0xff] %vm1373_vm3, %v2828_v5  ;;  %v2833_v9 = vadd.f32 %v10007_v7, %v1508_v6  ;;  %10105 = vmatprep.mubr.msk.bf16.mxu1 %vm628_vm2, %v10704_v0  ;;  %10235 = vmatprep.mubr.msk.bf16.mxu0 %vm628_vm2, %v10706_v4 }
 0x15e   : > { %v3085_v10 = vld [vmem:[#allocation2 + $0x10] sm:$0xff]  ;;  %v2332_v13 = vpop.f32.mrf.mxu1  ;;  %v3913_v20 = vpop.f32.mrf.mxu0 }
 0x15f   : > { %v4410_v15 = vadd.f32 %v10133_v56, %v3085_v10  ;;  %2961 = vst.msk [vmem:[#allocation2 + $0x30] sm:$0xff] %vm1373_vm3, %v2833_v9  ;;  %v2831_v16 = vadd.f32 %v2332_v13, %v1506_v11  ;;  %v10711_v56 = vld [vmem:[%s10919_s26 + $0x1d8] sm:$0xff]  }
 0x160   : > { %v3083_v17 = vld [vmem:[#allocation2] sm:$0xff]  ;;  %v10008_v19 = vpop.f32.mrf.mxu1  ;;  %v10138_v27 = vpop.f32.mrf.mxu0  ;;  %v1517_v9 = vld [vmem:[#allocation2 + $0x78] sm:$0xff] }
 0x161   : > { %4538 = vst.msk [vmem:[#allocation2 + $0x10] sm:$0xff] %vm1373_vm3, %v4410_v15  ;;  %v4408_v22 = vadd.f32 %v3897_v60, %v3083_v17  ;;  %2959 = vst.msk [vmem:[#allocation2 + $0x20] sm:$0xff] %vm1373_vm3, %v2831_v16  ;;  %v2834_v23 = vadd.f32 %v10008_v19, %v1509_v18  ;;  %v10713_v13 = vld [vmem:[%s10919_s26 + $0x1d8] sm:$0xff]   ;;  %v10716_v16 = vld [vmem:[%s10919_s26 + $0x1e0] sm:$0xff]  }
 0x162   : > { %v3086_v24 = vld [vmem:[#allocation2 + $0x18] sm:$0xff]  ;;  %v2335_v26 = vpop.f32.mrf.mxu1  ;;  %v3916_v35 = vpop.f32.mrf.mxu0  ;;  %v1515_v18 = vld [vmem:[#allocation2 + $0x68] sm:$0xff] }
 0x163   : > { %4536 = vst.msk [vmem:[#allocation2] sm:$0xff] %vm1373_vm3, %v4408_v22  ;;  %v4411_v29 = vadd.f32 %v10134_v3, %v3086_v24  ;;  %2962 = vst.msk [vmem:[#allocation2 + $0x38] sm:$0xff] %vm1373_vm3, %v2834_v23  ;;  %v2832_v30 = vadd.f32 %v2335_v26, %v1507_v25  ;;  %v1514_v3 = vld [vmem:[#allocation2 + $0x60] sm:$0xff]  ;;  %v1520_v25 = vld [vmem:[#allocation2 + $0x90] sm:$0xff] }
 0x164   : > { %v3084_v32 = vld [vmem:[#allocation2 + $0x8] sm:$0xff]  ;;  %v10011_v34 = vpop.f32.mrf.mxu1  ;;  %10106 = vmatmul.mubr.msk.bf16.gmra.mxu1 %vm628_vm2, %v10705_v21  ;;  %v10141_v41 = vpop.f32.mrf.mxu0  ;;  %10236 = vmatmul.mubr.msk.bf16.gmra.mxu0 %vm628_vm2, %v10707_v28 }
 0x165   : > { %4539 = vst.msk [vmem:[#allocation2 + $0x18] sm:$0xff] %vm1373_vm3, %v4411_v29  ;;  %v4409_v36 = vadd.f32 %v3900_v8, %v3084_v32  ;;  %2960 = vst.msk [vmem:[#allocation2 + $0x28] sm:$0xff] %vm1373_vm3, %v2832_v30  ;;  %v2837_v37 = vadd.f32 %v10011_v34, %v1512_v33  ;;  %10109 = vmatprep.mubr.msk.bf16.mxu1 %vm628_vm2, %v10708_v12  ;;  %10239 = vmatprep.mubr.msk.bf16.mxu0 %vm628_vm2, %v10710_v31  ;;  %v10715_v21 = vld [vmem:[%s10919_s26 + $0x1e8] sm:$0xff]   ;;  %v10718_v12 = vld [vmem:[%s10919_s26 + $0x1f0] sm:$0xff]  }
 0x166   : > { %v3089_v38 = vld [vmem:[#allocation2 + $0x30] sm:$0xff]  ;;  %v2348_v40 = vpop.f32.mrf.mxu1  ;;  %v3929_v47 = vpop.f32.mrf.mxu0  ;;  %v1518_v31 = vld [vmem:[#allocation2 + $0x80] sm:$0xff] }
 0x167   : > { %4537 = vst.msk [vmem:[#allocation2 + $0x8] sm:$0xff] %vm1373_vm3, %v4409_v36  ;;  %v4414_v42 = vadd.f32 %v10137_v14, %v3089_v38  ;;  %2965 = vst.msk [vmem:[#allocation2 + $0x50] sm:$0xff] %vm1373_vm3, %v2837_v37  ;;  %v2835_v43 = vadd.f32 %v2348_v40, %v1510_v39  ;;  %v1521_v37 = vld [vmem:[#allocation2 + $0x98] sm:$0xff]  ;;  %v10717_v40 = vld [vmem:[%s10919_s26 + $0x1e8] sm:$0xff]  }
 0x168   : > { %v3087_v44 = vld [vmem:[#allocation2 + $0x20] sm:$0xff]  ;;  %v10012_v46 = vpop.f32.mrf.mxu1  ;;  %v10142_v55 = vpop.f32.mrf.mxu0 }
 0x169   : > { %4542 = vst.msk [vmem:[#allocation2 + $0x30] sm:$0xff] %vm1373_vm3, %v4414_v42  ;;  %v4412_v49 = vadd.f32 %v3913_v20, %v3087_v44  ;;  %2963 = vst.msk [vmem:[#allocation2 + $0x40] sm:$0xff] %vm1373_vm3, %v2835_v43  ;;  %v2838_v50 = vadd.f32 %v10012_v46, %v1513_v45  ;;  %v10720_v43 = vld [vmem:[%s10919_s26 + $0x1f0] sm:$0xff]   ;;  %v1519_v45 = vld [vmem:[#allocation2 + $0x88] sm:$0xff] }
 0x16a   : > { %v3090_v52 = vld [vmem:[#allocation2 + $0x38] sm:$0xff]  ;;  %v2351_v54 = vpop.f32.mrf.mxu1  ;;  %v3932_v63 = vpop.f32.mrf.mxu0 }
 0x16b   : > { %4540 = vst.msk [vmem:[#allocation2 + $0x20] sm:$0xff] %vm1373_vm3, %v4412_v49  ;;  %v4415_v57 = vadd.f32 %v10138_v27, %v3090_v52  ;;  %2966 = vst.msk [vmem:[#allocation2 + $0x58] sm:$0xff] %vm1373_vm3, %v2838_v50  ;;  %v2836_v58 = vadd.f32 %v2351_v54, %v1511_v53  ;;  %v1524_v53 = vld [vmem:[#allocation2 + $0xb0] sm:$0xff] }
 0x16c   : > { %v3088_v60 = vld [vmem:[#allocation2 + $0x28] sm:$0xff]  ;;  %v10015_v62 = vpop.f32.mrf.mxu1  ;;  %10110 = vmatmul.mubr.msk.bf16.gmra.mxu1 %vm628_vm2, %v10709_v48  ;;  %v10145_v5 = vpop.f32.mrf.mxu0  ;;  %10240 = vmatmul.mubr.msk.bf16.gmra.mxu0 %vm628_vm2, %v10711_v56  ;;  %v10719_v48 = vld [vmem:[%s10919_s26 + $0x1f8] sm:$0xff]  }
 0x16d   : > { %4543 = vst.msk [vmem:[#allocation2 + $0x38] sm:$0xff] %vm1373_vm3, %v4415_v57  ;;  %v4413_v0 = vadd.f32 %v3916_v35, %v3088_v60  ;;  %2964 = vst.msk [vmem:[#allocation2 + $0x48] sm:$0xff] %vm1373_vm3, %v2836_v58  ;;  %v2841_v1 = vadd.f32 %v10015_v62, %v1516_v61  ;;  %10113 = vmatprep.mubr.msk.bf16.mxu1 %vm628_vm2, %v10712_v51  ;;  %10243 = vmatprep.mubr.msk.bf16.mxu0 %vm628_vm2, %v10714_v59  ;;  %v10722_v51 = vld [vmem:[%s10919_s26 + $0x200] sm:$0xff]  }
 0x16e   : > { %v3093_v2 = vld [vmem:[#allocation2 + $0x50] sm:$0xff]  ;;  %v2364_v4 = vpop.f32.mrf.mxu1  ;;  %v3945_v11 = vpop.f32.mrf.mxu0  ;;  %v1522_v59 = vld [vmem:[#allocation2 + $0xa0] sm:$0xff] }
 0x16f   : > { %4541 = vst.msk [vmem:[#allocation2 + $0x28] sm:$0xff] %vm1373_vm3, %v4413_v0  ;;  %v4418_v6 = vadd.f32 %v10141_v41, %v3093_v2  ;;  %2969 = vst.msk [vmem:[#allocation2 + $0x70] sm:$0xff] %vm1373_vm3, %v2841_v1  ;;  %v2839_v7 = vadd.f32 %v2364_v4, %v1514_v3  ;;  %v1525_v1 = vld [vmem:[#allocation2 + $0xb8] sm:$0xff] }
 0x170   : > { %v3091_v8 = vld [vmem:[#allocation2 + $0x40] sm:$0xff]  ;;  %v10016_v10 = vpop.f32.mrf.mxu1  ;;  %v10146_v20 = vpop.f32.mrf.mxu0  ;;  %v10721_v4 = vld [vmem:[%s10919_s26 + $0x1f8] sm:$0xff]  }
 0x171   : > { %4546 = vst.msk [vmem:[#allocation2 + $0x50] sm:$0xff] %vm1373_vm3, %v4418_v6  ;;  %v4416_v14 = vadd.f32 %v3929_v47, %v3091_v8  ;;  %2967 = vst.msk [vmem:[#allocation2 + $0x60] sm:$0xff] %vm1373_vm3, %v2839_v7  ;;  %v2842_v15 = vadd.f32 %v10016_v10, %v1517_v9  ;;  %v10724_v7 = vld [vmem:[%s10919_s26 + $0x200] sm:$0xff]   ;;  %v1523_v9 = vld [vmem:[#allocation2 + $0xa8] sm:$0xff] }
 0x172   : > { %v3094_v17 = vld [vmem:[#allocation2 + $0x58] sm:$0xff]  ;;  %v2367_v19 = vpop.f32.mrf.mxu1  ;;  %v3948_v27 = vpop.f32.mrf.mxu0 }
 0x173   : > { %4544 = vst.msk [vmem:[#allocation2 + $0x40] sm:$0xff] %vm1373_vm3, %v4416_v14  ;;  %v4419_v22 = vadd.f32 %v10142_v55, %v3094_v17  ;;  %2970 = vst.msk [vmem:[#allocation2 + $0x78] sm:$0xff] %vm1373_vm3, %v2842_v15  ;;  %v2840_v23 = vadd.f32 %v2367_v19, %v1515_v18  ;;  %v1528_v18 = vld [vmem:[#allocation2 + $0xd0] sm:$0xff] }
 0x174   : > { %v3092_v24 = vld [vmem:[#allocation2 + $0x48] sm:$0xff]  ;;  %v10019_v26 = vpop.f32.mrf.mxu1  ;;  %10114 = vmatmul.mubr.msk.bf16.gmra.mxu1 %vm628_vm2, %v10713_v13  ;;  %v10149_v33 = vpop.f32.mrf.mxu0  ;;  %10244 = vmatmul.mubr.msk.bf16.gmra.mxu0 %vm628_vm2, %v10715_v21 }
 0x175   : > { %4547 = vst.msk [vmem:[#allocation2 + $0x58] sm:$0xff] %vm1373_vm3, %v4419_v22  ;;  %v4417_v28 = vadd.f32 %v3932_v63, %v3092_v24  ;;  %2968 = vst.msk [vmem:[#allocation2 + $0x68] sm:$0xff] %vm1373_vm3, %v2840_v23  ;;  %v2845_v29 = vadd.f32 %v10019_v26, %v1520_v25  ;;  %10117 = vmatprep.mubr.msk.bf16.mxu1 %vm628_vm2, %v10716_v16  ;;  %10247 = vmatprep.mubr.msk.bf16.mxu0 %vm628_vm2, %v10718_v12  ;;  %v10723_v13 = vld [vmem:[%s10919_s26 + $0x208] sm:$0xff]   ;;  %v10726_v16 = vld [vmem:[%s10919_s26 + $0x210] sm:$0xff]  }
 0x176   : > { %v3097_v30 = vld [vmem:[#allocation2 + $0x70] sm:$0xff]  ;;  %v2380_v32 = vpop.f32.mrf.mxu1  ;;  %v3961_v39 = vpop.f32.mrf.mxu0  ;;  %v1526_v12 = vld [vmem:[#allocation2 + $0xc0] sm:$0xff] }
 0x177   : > { %4545 = vst.msk [vmem:[#allocation2 + $0x48] sm:$0xff] %vm1373_vm3, %v4417_v28  ;;  %v4422_v34 = vadd.f32 %v10145_v5, %v3097_v30  ;;  %2973 = vst.msk [vmem:[#allocation2 + $0x90] sm:$0xff] %vm1373_vm3, %v2845_v29  ;;  %v2843_v35 = vadd.f32 %v2380_v32, %v1518_v31  ;;  %v1529_v29 = vld [vmem:[#allocation2 + $0xd8] sm:$0xff]  ;;  %v10725_v32 = vld [vmem:[%s10919_s26 + $0x208] sm:$0xff]  }
 0x178   : > { %v3095_v36 = vld [vmem:[#allocation2 + $0x60] sm:$0xff]  ;;  %v10020_v38 = vpop.f32.mrf.mxu1  ;;  %v10150_v47 = vpop.f32.mrf.mxu0 }
 0x179   : > { %4550 = vst.msk [vmem:[#allocation2 + $0x70] sm:$0xff] %vm1373_vm3, %v4422_v34  ;;  %v4420_v41 = vadd.f32 %v3945_v11, %v3095_v36  ;;  %2971 = vst.msk [vmem:[#allocation2 + $0x80] sm:$0xff] %vm1373_vm3, %v2843_v35  ;;  %v2846_v42 = vadd.f32 %v10020_v38, %v1521_v37  ;;  %v10728_v35 = vld [vmem:[%s10919_s26 + $0x30] sm:$0xff]   ;;  %v1527_v37 = vld [vmem:[#allocation2 + $0xc8] sm:$0xff] }
 0x17a   : > { %v3098_v44 = vld [vmem:[#allocation2 + $0x78] sm:$0xff]  ;;  %v2383_v46 = vpop.f32.mrf.mxu1  ;;  %v3964_v55 = vpop.f32.mrf.mxu0 }
 0x17b   : > { %4548 = vst.msk [vmem:[#allocation2 + $0x60] sm:$0xff] %vm1373_vm3, %v4420_v41  ;;  %v4423_v49 = vadd.f32 %v10146_v20, %v3098_v44  ;;  %2974 = vst.msk [vmem:[#allocation2 + $0x98] sm:$0xff] %vm1373_vm3, %v2846_v42  ;;  %v2844_v50 = vadd.f32 %v2383_v46, %v1519_v45  ;;  %v1532_v45 = vld [vmem:[#allocation2 + $0xf0] sm:$0xff] }
 0x17c   : > { %v3096_v52 = vld [vmem:[#allocation2 + $0x68] sm:$0xff]  ;;  %v10023_v54 = vpop.f32.mrf.mxu1  ;;  %10118 = vmatmul.mubr.msk.bf16.gmra.mxu1 %vm628_vm2, %v10717_v40  ;;  %v10153_v61 = vpop.f32.mrf.mxu0  ;;  %10248 = vmatmul.mubr.msk.bf16.gmra.mxu0 %vm628_vm2, %v10719_v48  ;;  %v10727_v40 = vld [vmem:[%s10919_s26 + $0x218] sm:$0xff]  }
 0x17d   : > { %4551 = vst.msk [vmem:[#allocation2 + $0x78] sm:$0xff] %vm1373_vm3, %v4423_v49  ;;  %v4421_v56 = vadd.f32 %v3948_v27, %v3096_v52  ;;  %2972 = vst.msk [vmem:[#allocation2 + $0x88] sm:$0xff] %vm1373_vm3, %v2844_v50  ;;  %v2849_v57 = vadd.f32 %v10023_v54, %v1524_v53  ;;  %10121 = vmatprep.mubr.msk.bf16.mxu1 %vm628_vm2, %v10720_v43  ;;  %10251 = vmatprep.mubr.msk.bf16.mxu0 %vm628_vm2, %v10722_v51  ;;  %v10730_v43 = vld [vmem:[%s10919_s26 + $0x40] sm:$0xff]  }
 0x17e   : > { %v3101_v58 = vld [vmem:[#allocation2 + $0x90] sm:$0xff]  ;;  %v2396_v60 = vpop.f32.mrf.mxu1  ;;  %v3977_v3 = vpop.f32.mrf.mxu0  ;;  %v1530_v51 = vld [vmem:[#allocation2 + $0xe0] sm:$0xff] }
 0x17f   : > { %4549 = vst.msk [vmem:[#allocation2 + $0x68] sm:$0xff] %vm1373_vm3, %v4421_v56  ;;  %v4426_v62 = vadd.f32 %v10149_v33, %v3101_v58  ;;  %2977 = vst.msk [vmem:[#allocation2 + $0xb0] sm:$0xff] %vm1373_vm3, %v2849_v57  ;;  %v2847_v63 = vadd.f32 %v2396_v60, %v1522_v59  ;;  %v1533_v57 = vld [vmem:[#allocation2 + $0xf8] sm:$0xff] }
 0x180   : > { %v3099_v0 = vld [vmem:[#allocation2 + $0x80] sm:$0xff]  ;;  %v10024_v2 = vpop.f32.mrf.mxu1  ;;  %v10154_v11 = vpop.f32.mrf.mxu0  ;;  %v10729_v60 = vld [vmem:[%s10919_s26 + $0x38] sm:$0xff]  }
 0x181   : > { %4554 = vst.msk [vmem:[#allocation2 + $0x90] sm:$0xff] %vm1373_vm3, %v4426_v62  ;;  %v4424_v5 = vadd.f32 %v3961_v39, %v3099_v0  ;;  %2975 = vst.msk [vmem:[#allocation2 + $0xa0] sm:$0xff] %vm1373_vm3, %v2847_v63  ;;  %v2850_v6 = vadd.f32 %v10024_v2, %v1525_v1  ;;  %v10732_v63 = vld [vmem:[%s10919_s26 + $0x40] sm:$0xff]   ;;  %v1531_v1 = vld [vmem:[#allocation2 + $0xe8] sm:$0xff] }
 0x182   : > { %v3102_v8 = vld [vmem:[#allocation2 + $0x98] sm:$0xff]  ;;  %v2399_v10 = vpop.f32.mrf.mxu1  ;;  %v3980_v20 = vpop.f32.mrf.mxu0 }
 0x183   : > { %4552 = vst.msk [vmem:[#allocation2 + $0x80] sm:$0xff] %vm1373_vm3, %v4424_v5  ;;  %v4427_v14 = vadd.f32 %v10150_v47, %v3102_v8  ;;  %2978 = vst.msk [vmem:[#allocation2 + $0xb8] sm:$0xff] %vm1373_vm3, %v2850_v6  ;;  %v2848_v15 = vadd.f32 %v2399_v10, %v1523_v9  ;;  %v1536_v9 = vld [vmem:[#allocation2 + $0x110] sm:$0xff] }
 0x184   : > { %v3100_v17 = vld [vmem:[#allocation2 + $0x88] sm:$0xff]  ;;  %v10027_v19 = vpop.f32.mrf.mxu1  ;;  %10122 = vmatmul.mubr.msk.bf16.gmra.mxu1 %vm628_vm2, %v10721_v4  ;;  %v10157_v25 = vpop.f32.mrf.mxu0  ;;  %10252 = vmatmul.mubr.msk.bf16.gmra.mxu0 %vm628_vm2, %v10723_v13 }
 0x185   : > { %4555 = vst.msk [vmem:[#allocation2 + $0x98] sm:$0xff] %vm1373_vm3, %v4427_v14  ;;  %v4425_v21 = vadd.f32 %v3964_v55, %v3100_v17  ;;  %2976 = vst.msk [vmem:[#allocation2 + $0xa8] sm:$0xff] %vm1373_vm3, %v2848_v15  ;;  %v2853_v22 = vadd.f32 %v10027_v19, %v1528_v18  ;;  %10125 = vmatprep.mubr.msk.bf16.mxu1 %vm628_vm2, %v10724_v7  ;;  %10255 = vmatprep.mubr.msk.bf16.mxu0 %vm628_vm2, %v10726_v16  ;;  %v10731_v4 = vld [vmem:[%s10919_s26 + $0x48] sm:$0xff]   ;;  %v10734_v7 = vld [vmem:[%s10919_s26 + $0x50] sm:$0xff]  }
 0x186   : > { %v3105_v23 = vld [vmem:[#allocation2 + $0xb0] sm:$0xff]  ;;  %v2412_v24 = vpop.f32.mrf.mxu1  ;;  %v3993_v31 = vpop.f32.mrf.mxu0  ;;  %v1534_v16 = vld [vmem:[#allocation2 + $0x100] sm:$0xff] }
 0x187   : > { %4553 = vst.msk [vmem:[#allocation2 + $0x88] sm:$0xff] %vm1373_vm3, %v4425_v21  ;;  %v4430_v26 = vadd.f32 %v10153_v61, %v3105_v23  ;;  %2981 = vst.msk [vmem:[#allocation2 + $0xd0] sm:$0xff] %vm1373_vm3, %v2853_v22  ;;  %v2851_v27 = vadd.f32 %v2412_v24, %v1526_v12  ;;  %v1537_v22 = vld [vmem:[#allocation2 + $0x118] sm:$0xff]  ;;  %v10733_v24 = vld [vmem:[%s10919_s26 + $0x48] sm:$0xff]  }
 0x188   : > { %v3103_v28 = vld [vmem:[#allocation2 + $0xa0] sm:$0xff]  ;;  %v10028_v30 = vpop.f32.mrf.mxu1  ;;  %v10158_v39 = vpop.f32.mrf.mxu0 }
 0x189   : > { %4558 = vst.msk [vmem:[#allocation2 + $0xb0] sm:$0xff] %vm1373_vm3, %v4430_v26  ;;  %v4428_v33 = vadd.f32 %v3977_v3, %v3103_v28  ;;  %2979 = vst.msk [vmem:[#allocation2 + $0xc0] sm:$0xff] %vm1373_vm3, %v2851_v27  ;;  %v2854_v34 = vadd.f32 %v10028_v30, %v1529_v29  ;;  %v10736_v27 = vld [vmem:[%s10919_s26 + $0x50] sm:$0xff]   ;;  %v1535_v29 = vld [vmem:[#allocation2 + $0x108] sm:$0xff] }
 0x18a   : > { %v3106_v36 = vld [vmem:[#allocation2 + $0xb8] sm:$0xff]  ;;  %v2415_v38 = vpop.f32.mrf.mxu1  ;;  %v3996_v47 = vpop.f32.mrf.mxu0 }
 0x18b   : > { %4556 = vst.msk [vmem:[#allocation2 + $0xa0] sm:$0xff] %vm1373_vm3, %v4428_v33  ;;  %v4431_v41 = vadd.f32 %v10154_v11, %v3106_v36  ;;  %2982 = vst.msk [vmem:[#allocation2 + $0xd8] sm:$0xff] %vm1373_vm3, %v2854_v34  ;;  %v2852_v42 = vadd.f32 %v2415_v38, %v1527_v37  ;;  %v1540_v37 = vld [vmem:[#allocation2 + $0x130] sm:$0xff] }
 0x18c   : > { %v3104_v44 = vld [vmem:[#allocation2 + $0xa8] sm:$0xff]  ;;  %v10031_v46 = vpop.f32.mrf.mxu1  ;;  %10126 = vmatmul.mubr.msk.bf16.gmra.mxu1 %vm628_vm2, %v10725_v32  ;;  %v10161_v53 = vpop.f32.mrf.mxu0  ;;  %10256 = vmatmul.mubr.msk.bf16.gmra.mxu0 %vm628_vm2, %v10727_v40  ;;  %v10735_v32 = vld [vmem:[%s10919_s26 + $0x58] sm:$0xff]  }
 0x18d   : > { %4559 = vst.msk [vmem:[#allocation2 + $0xb8] sm:$0xff] %vm1373_vm3, %v4431_v41  ;;  %v4429_v48 = vadd.f32 %v3980_v20, %v3104_v44  ;;  %2980 = vst.msk [vmem:[#allocation2 + $0xc8] sm:$0xff] %vm1373_vm3, %v2852_v42  ;;  %v2857_v49 = vadd.f32 %v10031_v46, %v1532_v45  ;;  %10261 = vmatprep.mubr.msk.bf16.mxu1 %vm628_vm2, %v10728_v35  ;;  %10391 = vmatprep.mubr.msk.bf16.mxu0 %vm628_vm2, %v10730_v43  ;;  %v10738_v35 = vld [vmem:[%s10919_s26 + $0x60] sm:$0xff]  }
 0x18e   : > { %v3109_v50 = vld [vmem:[#allocation2 + $0xd0] sm:$0xff]  ;;  %v2428_v52 = vpop.f32.mrf.mxu1  ;;  %v4009_v59 = vpop.f32.mrf.mxu0  ;;  %v1538_v43 = vld [vmem:[#allocation2 + $0x120] sm:$0xff] }
 0x18f   : > { %4557 = vst.msk [vmem:[#allocation2 + $0xa8] sm:$0xff] %vm1373_vm3, %v4429_v48  ;;  %v4434_v54 = vadd.f32 %v10157_v25, %v3109_v50  ;;  %2985 = vst.msk [vmem:[#allocation2 + $0xf0] sm:$0xff] %vm1373_vm3, %v2857_v49  ;;  %v2855_v55 = vadd.f32 %v2428_v52, %v1530_v51  ;;  %v1541_v49 = vld [vmem:[#allocation2 + $0x138] sm:$0xff] }
 0x190   : > { %v3107_v56 = vld [vmem:[#allocation2 + $0xc0] sm:$0xff]  ;;  %v10032_v58 = vpop.f32.mrf.mxu1  ;;  %v10162_v3 = vpop.f32.mrf.mxu0  ;;  %v10737_v52 = vld [vmem:[%s10919_s26 + $0x58] sm:$0xff]  }
 0x191   : > { %4562 = vst.msk [vmem:[#allocation2 + $0xd0] sm:$0xff] %vm1373_vm3, %v4434_v54  ;;  %v4432_v61 = vadd.f32 %v3993_v31, %v3107_v56  ;;  %2983 = vst.msk [vmem:[#allocation2 + $0xe0] sm:$0xff] %vm1373_vm3, %v2855_v55  ;;  %v2858_v62 = vadd.f32 %v10032_v58, %v1533_v57  ;;  %v10740_v55 = vld [vmem:[%s10919_s26 + $0x60] sm:$0xff]   ;;  %v1539_v57 = vld [vmem:[#allocation2 + $0x128] sm:$0xff] }
 0x192   : > { %v3110_v0 = vld [vmem:[#allocation2 + $0xd8] sm:$0xff]  ;;  %v2431_v2 = vpop.f32.mrf.mxu1  ;;  %v4012_v11 = vpop.f32.mrf.mxu0 }
 0x193   : > { %4560 = vst.msk [vmem:[#allocation2 + $0xc0] sm:$0xff] %vm1373_vm3, %v4432_v61  ;;  %v4435_v5 = vadd.f32 %v10158_v39, %v3110_v0  ;;  %2986 = vst.msk [vmem:[#allocation2 + $0xf8] sm:$0xff] %vm1373_vm3, %v2858_v62  ;;  %v2856_v6 = vadd.f32 %v2431_v2, %v1531_v1  ;;  %v1544_v1 = vld [vmem:[#allocation2 + $0x150] sm:$0xff] }
 0x194   : > { %v3108_v8 = vld [vmem:[#allocation2 + $0xc8] sm:$0xff]  ;;  %v10035_v10 = vpop.f32.mrf.mxu1  ;;  %10262 = vmatmul.mubr.msk.bf16.vlgmr.msra.gmra.mxu1 %vm628_vm2, %v10729_v60  ;;  %v10165_v18 = vpop.f32.mrf.mxu0  ;;  %10392 = vmatmul.mubr.msk.bf16.vlgmr.msra.gmra.mxu0 %vm628_vm2, %v10731_v4 }
 0x195   : > { %4563 = vst.msk [vmem:[#allocation2 + $0xd8] sm:$0xff] %vm1373_vm3, %v4435_v5  ;;  %v4433_v13 = vadd.f32 %v3996_v47, %v3108_v8  ;;  %2984 = vst.msk [vmem:[#allocation2 + $0xe8] sm:$0xff] %vm1373_vm3, %v2856_v6  ;;  %v2861_v14 = vadd.f32 %v10035_v10, %v1536_v9  ;;  %10265 = vmatprep.mubr.msk.bf16.mxu1 %vm628_vm2, %v10732_v63  ;;  %10395 = vmatprep.mubr.msk.bf16.mxu0 %vm628_vm2, %v10734_v7  ;;  %v10739_v60 = vld [vmem:[%s10919_s26 + $0x68] sm:$0xff]   ;;  %v10742_v63 = vld [vmem:[%s10919_s26 + $0x70] sm:$0xff]  }
 0x196   : > { %v3113_v15 = vld [vmem:[#allocation2 + $0xf0] sm:$0xff]  ;;  %v2444_v17 = vpop.f32.mrf.mxu1  ;;  %v4025_v12 = vpop.f32.mrf.mxu0  ;;  %v1542_v7 = vld [vmem:[#allocation2 + $0x140] sm:$0xff] }
 0x197   : > { %4561 = vst.msk [vmem:[#allocation2 + $0xc8] sm:$0xff] %vm1373_vm3, %v4433_v13  ;;  %v4438_v19 = vadd.f32 %v10161_v53, %v3113_v15  ;;  %2989 = vst.msk [vmem:[#allocation2 + $0x110] sm:$0xff] %vm1373_vm3, %v2861_v14  ;;  %v2859_v20 = vadd.f32 %v2444_v17, %v1534_v16  ;;  %v1545_v14 = vld [vmem:[#allocation2 + $0x158] sm:$0xff]  ;;  %v10741_v17 = vld [vmem:[%s10919_s26 + $0x68] sm:$0xff]  }
 0x198   : > { %v3111_v21 = vld [vmem:[#allocation2 + $0xe0] sm:$0xff]  ;;  %v10036_v23 = vpop.f32.mrf.mxu1  ;;  %v10166_v31 = vpop.f32.mrf.mxu0 }
 0x199   : > { %4566 = vst.msk [vmem:[#allocation2 + $0xf0] sm:$0xff] %vm1373_vm3, %v4438_v19  ;;  %v4436_v25 = vadd.f32 %v4009_v59, %v3111_v21  ;;  %2987 = vst.msk [vmem:[#allocation2 + $0x100] sm:$0xff] %vm1373_vm3, %v2859_v20  ;;  %v2862_v26 = vadd.f32 %v10036_v23, %v1537_v22  ;;  %v10744_v20 = vld [vmem:[%s10919_s26 + $0x70] sm:$0xff]   ;;  %v1543_v22 = vld [vmem:[#allocation2 + $0x148] sm:$0xff] }
 0x19a   : > { %v3114_v28 = vld [vmem:[#allocation2 + $0xf8] sm:$0xff]  ;;  %v2447_v30 = vpop.f32.mrf.mxu1  ;;  %v4028_v39 = vpop.f32.mrf.mxu0 }
 0x19b   : > { %4564 = vst.msk [vmem:[#allocation2 + $0xe0] sm:$0xff] %vm1373_vm3, %v4436_v25  ;;  %v4439_v33 = vadd.f32 %v10162_v3, %v3114_v28  ;;  %2990 = vst.msk [vmem:[#allocation2 + $0x118] sm:$0xff] %vm1373_vm3, %v2862_v26  ;;  %v2860_v34 = vadd.f32 %v2447_v30, %v1535_v29  ;;  %v1548_v29 = vld [vmem:[#allocation2 + $0x170] sm:$0xff] }
 0x19c   : > { %v3112_v36 = vld [vmem:[#allocation2 + $0xe8] sm:$0xff]  ;;  %v10039_v38 = vpop.f32.mrf.mxu1  ;;  %10266 = vmatmul.mubr.msk.bf16.gmra.mxu1 %vm628_vm2, %v10733_v24  ;;  %v10169_v45 = vpop.f32.mrf.mxu0  ;;  %10396 = vmatmul.mubr.msk.bf16.gmra.mxu0 %vm628_vm2, %v10735_v32  ;;  %v10743_v24 = vld [vmem:[%s10919_s26 + $0x78] sm:$0xff]  }
 0x19d   : > { %4567 = vst.msk [vmem:[#allocation2 + $0xf8] sm:$0xff] %vm1373_vm3, %v4439_v33  ;;  %v4437_v40 = vadd.f32 %v4012_v11, %v3112_v36  ;;  %2988 = vst.msk [vmem:[#allocation2 + $0x108] sm:$0xff] %vm1373_vm3, %v2860_v34  ;;  %v2865_v41 = vadd.f32 %v10039_v38, %v1540_v37  ;;  %10269 = vmatprep.mubr.msk.bf16.mxu1 %vm628_vm2, %v10736_v27  ;;  %10399 = vmatprep.mubr.msk.bf16.mxu0 %vm628_vm2, %v10738_v35  ;;  %v10746_v27 = vld [vmem:[%s10919_s26 + $0x80] sm:$0xff]  }
 0x19e   : > { %v3117_v42 = vld [vmem:[#allocation2 + $0x110] sm:$0xff]  ;;  %v2460_v44 = vpop.f32.mrf.mxu1  ;;  %v4041_v51 = vpop.f32.mrf.mxu0  ;;  %v1546_v35 = vld [vmem:[#allocation2 + $0x160] sm:$0xff] }
 0x19f   : > { %4565 = vst.msk [vmem:[#allocation2 + $0xe8] sm:$0xff] %vm1373_vm3, %v4437_v40  ;;  %v4442_v46 = vadd.f32 %v10165_v18, %v3117_v42  ;;  %2993 = vst.msk [vmem:[#allocation2 + $0x130] sm:$0xff] %vm1373_vm3, %v2865_v41  ;;  %v2863_v47 = vadd.f32 %v2460_v44, %v1538_v43  ;;  %v1549_v41 = vld [vmem:[#allocation2 + $0x178] sm:$0xff] }
 0x1a0   : > { %v3115_v48 = vld [vmem:[#allocation2 + $0x100] sm:$0xff]  ;;  %v10040_v50 = vpop.f32.mrf.mxu1  ;;  %v10170_v59 = vpop.f32.mrf.mxu0  ;;  %v10745_v44 = vld [vmem:[%s10919_s26 + $0x78] sm:$0xff]  }
 0x1a1   : > { %4570 = vst.msk [vmem:[#allocation2 + $0x110] sm:$0xff] %vm1373_vm3, %v4442_v46  ;;  %v4440_v53 = vadd.f32 %v4025_v12, %v3115_v48  ;;  %2991 = vst.msk [vmem:[#allocation2 + $0x120] sm:$0xff] %vm1373_vm3, %v2863_v47  ;;  %v2866_v54 = vadd.f32 %v10040_v50, %v1541_v49  ;;  %v10748_v47 = vld [vmem:[%s10919_s26 + $0x80] sm:$0xff]   ;;  %v1547_v49 = vld [vmem:[#allocation2 + $0x168] sm:$0xff] }
 0x1a2   : > { %v3118_v56 = vld [vmem:[#allocation2 + $0x118] sm:$0xff]  ;;  %v2463_v58 = vpop.f32.mrf.mxu1  ;;  %v4044_v3 = vpop.f32.mrf.mxu0 }
 0x1a3   : > { %4568 = vst.msk [vmem:[#allocation2 + $0x100] sm:$0xff] %vm1373_vm3, %v4440_v53  ;;  %v4443_v61 = vadd.f32 %v10166_v31, %v3118_v56  ;;  %2994 = vst.msk [vmem:[#allocation2 + $0x138] sm:$0xff] %vm1373_vm3, %v2866_v54  ;;  %v2864_v62 = vadd.f32 %v2463_v58, %v1539_v57  ;;  %v1552_v57 = vld [vmem:[#allocation2 + $0x190] sm:$0xff] }
 0x1a4   : > { %v3116_v0 = vld [vmem:[#allocation2 + $0x108] sm:$0xff]  ;;  %v10043_v2 = vpop.f32.mrf.mxu1  ;;  %10270 = vmatmul.mubr.msk.bf16.gmra.mxu1 %vm628_vm2, %v10737_v52  ;;  %v10173_v9 = vpop.f32.mrf.mxu0  ;;  %10400 = vmatmul.mubr.msk.bf16.gmra.mxu0 %vm628_vm2, %v10739_v60 }
 0x1a5   : > { %4571 = vst.msk [vmem:[#allocation2 + $0x118] sm:$0xff] %vm1373_vm3, %v4443_v61  ;;  %v4441_v4 = vadd.f32 %v4028_v39, %v3116_v0  ;;  %2992 = vst.msk [vmem:[#allocation2 + $0x128] sm:$0xff] %vm1373_vm3, %v2864_v62  ;;  %v2869_v5 = vadd.f32 %v10043_v2, %v1544_v1  ;;  %10273 = vmatprep.mubr.msk.bf16.mxu1 %vm628_vm2, %v10740_v55  ;;  %10403 = vmatprep.mubr.msk.bf16.mxu0 %vm628_vm2, %v10742_v63  ;;  %v10747_v52 = vld [vmem:[%s10919_s26 + $0x88] sm:$0xff]   ;;  %v10750_v55 = vld [vmem:[%s10919_s26 + $0x90] sm:$0xff]  }
 0x1a6   : > { %v3121_v6 = vld [vmem:[#allocation2 + $0x130] sm:$0xff]  ;;  %v2476_v8 = vpop.f32.mrf.mxu1  ;;  %v4057_v16 = vpop.f32.mrf.mxu0  ;;  %v1550_v63 = vld [vmem:[#allocation2 + $0x180] sm:$0xff] }
 0x1a7   : > { %4569 = vst.msk [vmem:[#allocation2 + $0x108] sm:$0xff] %vm1373_vm3, %v4441_v4  ;;  %v4446_v10 = vadd.f32 %v10169_v45, %v3121_v6  ;;  %2997 = vst.msk [vmem:[#allocation2 + $0x150] sm:$0xff] %vm1373_vm3, %v2869_v5  ;;  %v2867_v11 = vadd.f32 %v2476_v8, %v1542_v7  ;;  %v1553_v5 = vld [vmem:[#allocation2 + $0x198] sm:$0xff]  ;;  %v10749_v8 = vld [vmem:[%s10919_s26 + $0x88] sm:$0xff]  }
 0x1a8   : > { %v3119_v13 = vld [vmem:[#allocation2 + $0x120] sm:$0xff]  ;;  %v10044_v15 = vpop.f32.mrf.mxu1  ;;  %v10174_v12 = vpop.f32.mrf.mxu0 }
 0x1a9   : > { %4574 = vst.msk [vmem:[#allocation2 + $0x130] sm:$0xff] %vm1373_vm3, %v4446_v10  ;;  %v4444_v18 = vadd.f32 %v4041_v51, %v3119_v13  ;;  %2995 = vst.msk [vmem:[#allocation2 + $0x140] sm:$0xff] %vm1373_vm3, %v2867_v11  ;;  %v2870_v19 = vadd.f32 %v10044_v15, %v1545_v14  ;;  %v10752_v11 = vld [vmem:[%s10919_s26 + $0x90] sm:$0xff]   ;;  %v1551_v14 = vld [vmem:[#allocation2 + $0x188] sm:$0xff] }
 0x1aa   : > { %v3122_v21 = vld [vmem:[#allocation2 + $0x138] sm:$0xff]  ;;  %v2479_v23 = vpop.f32.mrf.mxu1  ;;  %v4060_v31 = vpop.f32.mrf.mxu0 }
 0x1ab   : > { %4572 = vst.msk [vmem:[#allocation2 + $0x120] sm:$0xff] %vm1373_vm3, %v4444_v18  ;;  %v4447_v25 = vadd.f32 %v10170_v59, %v3122_v21  ;;  %2998 = vst.msk [vmem:[#allocation2 + $0x158] sm:$0xff] %vm1373_vm3, %v2870_v19  ;;  %v2868_v26 = vadd.f32 %v2479_v23, %v1543_v22  ;;  %v1556_v22 = vld [vmem:[#allocation2 + $0x1b0] sm:$0xff] }
 0x1ac   : > { %v3120_v28 = vld [vmem:[#allocation2 + $0x128] sm:$0xff]  ;;  %v10047_v30 = vpop.f32.mrf.mxu1  ;;  %10274 = vmatmul.mubr.msk.bf16.gmra.mxu1 %vm628_vm2, %v10741_v17  ;;  %v10177_v37 = vpop.f32.mrf.mxu0  ;;  %10404 = vmatmul.mubr.msk.bf16.gmra.mxu0 %vm628_vm2, %v10743_v24  ;;  %v10751_v17 = vld [vmem:[%s10919_s26 + $0x98] sm:$0xff]  }
 0x1ad   : > { %4575 = vst.msk [vmem:[#allocation2 + $0x138] sm:$0xff] %vm1373_vm3, %v4447_v25  ;;  %v4445_v32 = vadd.f32 %v4044_v3, %v3120_v28  ;;  %2996 = vst.msk [vmem:[#allocation2 + $0x148] sm:$0xff] %vm1373_vm3, %v2868_v26  ;;  %v2873_v33 = vadd.f32 %v10047_v30, %v1548_v29  ;;  %10277 = vmatprep.mubr.msk.bf16.mxu1 %vm628_vm2, %v10744_v20  ;;  %10407 = vmatprep.mubr.msk.bf16.mxu0 %vm628_vm2, %v10746_v27  ;;  %v10754_v20 = vld [vmem:[%s10919_s26 + $0xa0] sm:$0xff]  }
 0x1ae   : > { %v3125_v34 = vld [vmem:[#allocation2 + $0x150] sm:$0xff]  ;;  %v2492_v36 = vpop.f32.mrf.mxu1  ;;  %v4073_v43 = vpop.f32.mrf.mxu0  ;;  %v1554_v27 = vld [vmem:[#allocation2 + $0x1a0] sm:$0xff] }
 0x1af   : > { %4573 = vst.msk [vmem:[#allocation2 + $0x128] sm:$0xff] %vm1373_vm3, %v4445_v32  ;;  %v4450_v38 = vadd.f32 %v10173_v9, %v3125_v34  ;;  %3001 = vst.msk [vmem:[#allocation2 + $0x170] sm:$0xff] %vm1373_vm3, %v2873_v33  ;;  %v2871_v39 = vadd.f32 %v2492_v36, %v1546_v35  ;;  %v1557_v33 = vld [vmem:[#allocation2 + $0x1b8] sm:$0xff] }
 0x1b0   : > { %v3123_v40 = vld [vmem:[#allocation2 + $0x140] sm:$0xff]  ;;  %v10048_v42 = vpop.f32.mrf.mxu1  ;;  %v10178_v51 = vpop.f32.mrf.mxu0  ;;  %v10753_v36 = vld [vmem:[%s10919_s26 + $0x98] sm:$0xff]  }
 0x1b1   : > { %4578 = vst.msk [vmem:[#allocation2 + $0x150] sm:$0xff] %vm1373_vm3, %v4450_v38  ;;  %v4448_v45 = vadd.f32 %v4057_v16, %v3123_v40  ;;  %2999 = vst.msk [vmem:[#allocation2 + $0x160] sm:$0xff] %vm1373_vm3, %v2871_v39  ;;  %v2874_v46 = vadd.f32 %v10048_v42, %v1549_v41  ;;  %v10756_v39 = vld [vmem:[%s10919_s26 + $0xa0] sm:$0xff]   ;;  %v1555_v41 = vld [vmem:[#allocation2 + $0x1a8] sm:$0xff] }
 0x1b2   : > { %v3126_v48 = vld [vmem:[#allocation2 + $0x158] sm:$0xff]  ;;  %v2495_v50 = vpop.f32.mrf.mxu1  ;;  %v4076_v59 = vpop.f32.mrf.mxu0 }
 0x1b3   : > { %4576 = vst.msk [vmem:[#allocation2 + $0x140] sm:$0xff] %vm1373_vm3, %v4448_v45  ;;  %v4451_v53 = vadd.f32 %v10174_v12, %v3126_v48  ;;  %3002 = vst.msk [vmem:[#allocation2 + $0x178] sm:$0xff] %vm1373_vm3, %v2874_v46  ;;  %v2872_v54 = vadd.f32 %v2495_v50, %v1547_v49  ;;  %v1560_v49 = vld [vmem:[#allocation2 + $0x1d0] sm:$0xff] }
 0x1b4   : > { %v3124_v56 = vld [vmem:[#allocation2 + $0x148] sm:$0xff]  ;;  %v10051_v58 = vpop.f32.mrf.mxu1  ;;  %10278 = vmatmul.mubr.msk.bf16.gmra.mxu1 %vm628_vm2, %v10745_v44  ;;  %v10181_v1 = vpop.f32.mrf.mxu0  ;;  %10408 = vmatmul.mubr.msk.bf16.gmra.mxu0 %vm628_vm2, %v10747_v52 }
 0x1b5   : > { %4579 = vst.msk [vmem:[#allocation2 + $0x158] sm:$0xff] %vm1373_vm3, %v4451_v53  ;;  %v4449_v60 = vadd.f32 %v4060_v31, %v3124_v56  ;;  %3000 = vst.msk [vmem:[#allocation2 + $0x168] sm:$0xff] %vm1373_vm3, %v2872_v54  ;;  %v2877_v61 = vadd.f32 %v10051_v58, %v1552_v57  ;;  %10281 = vmatprep.mubr.msk.bf16.mxu1 %vm628_vm2, %v10748_v47  ;;  %10411 = vmatprep.mubr.msk.bf16.mxu0 %vm628_vm2, %v10750_v55  ;;  %v10755_v44 = vld [vmem:[%s10919_s26 + $0xa8] sm:$0xff]   ;;  %v10758_v47 = vld [vmem:[%s10919_s26 + $0xb0] sm:$0xff]  }
 0x1b6   : > { %v3129_v62 = vld [vmem:[#allocation2 + $0x170] sm:$0xff]  ;;  %v2508_v0 = vpop.f32.mrf.mxu1  ;;  %v4089_v7 = vpop.f32.mrf.mxu0  ;;  %v1558_v55 = vld [vmem:[#allocation2 + $0x1c0] sm:$0xff] }
 0x1b7   : > { %4577 = vst.msk [vmem:[#allocation2 + $0x148] sm:$0xff] %vm1373_vm3, %v4449_v60  ;;  %v4454_v2 = vadd.f32 %v10177_v37, %v3129_v62  ;;  %3005 = vst.msk [vmem:[#allocation2 + $0x190] sm:$0xff] %vm1373_vm3, %v2877_v61  ;;  %v2875_v3 = vadd.f32 %v2508_v0, %v1550_v63  ;;  %v1561_v61 = vld [vmem:[#allocation2 + $0x1d8] sm:$0xff]  ;;  %v10757_v0 = vld [vmem:[%s10919_s26 + $0xa8] sm:$0xff]  }
 0x1b8   : > { %v3127_v4 = vld [vmem:[#allocation2 + $0x160] sm:$0xff]  ;;  %v10052_v6 = vpop.f32.mrf.mxu1  ;;  %v10182_v16 = vpop.f32.mrf.mxu0 }
 0x1b9   : > { %4582 = vst.msk [vmem:[#allocation2 + $0x170] sm:$0xff] %vm1373_vm3, %v4454_v2  ;;  %v4452_v9 = vadd.f32 %v4073_v43, %v3127_v4  ;;  %3003 = vst.msk [vmem:[#allocation2 + $0x180] sm:$0xff] %vm1373_vm3, %v2875_v3  ;;  %v2878_v10 = vadd.f32 %v10052_v6, %v1553_v5  ;;  %v10760_v3 = vld [vmem:[%s10919_s26 + $0xb0] sm:$0xff]   ;;  %v1559_v5 = vld [vmem:[#allocation2 + $0x1c8] sm:$0xff] }
 0x1ba   : > { %v3130_v13 = vld [vmem:[#allocation2 + $0x178] sm:$0xff]  ;;  %v2511_v15 = vpop.f32.mrf.mxu1  ;;  %v4092_v12 = vpop.f32.mrf.mxu0 }
 0x1bb   : > { %4580 = vst.msk [vmem:[#allocation2 + $0x160] sm:$0xff] %vm1373_vm3, %v4452_v9  ;;  %v4455_v18 = vadd.f32 %v10178_v51, %v3130_v13  ;;  %3006 = vst.msk [vmem:[#allocation2 + $0x198] sm:$0xff] %vm1373_vm3, %v2878_v10  ;;  %v2876_v19 = vadd.f32 %v2511_v15, %v1551_v14  ;;  %v1564_v14 = vld [vmem:[#allocation2 + $0x1f0] sm:$0xff] }
 0x1bc   : > { %v3128_v21 = vld [vmem:[#allocation2 + $0x168] sm:$0xff]  ;;  %v10055_v23 = vpop.f32.mrf.mxu1  ;;  %10282 = vmatmul.mubr.msk.bf16.gmra.mxu1 %vm628_vm2, %v10749_v8  ;;  %v10185_v29 = vpop.f32.mrf.mxu0  ;;  %10412 = vmatmul.mubr.msk.bf16.gmra.mxu0 %vm628_vm2, %v10751_v17  ;;  %v10759_v8 = vld [vmem:[%s10919_s26 + $0xb8] sm:$0xff]  }
 0x1bd   : > { %4583 = vst.msk [vmem:[#allocation2 + $0x178] sm:$0xff] %vm1373_vm3, %v4455_v18  ;;  %v4453_v24 = vadd.f32 %v4076_v59, %v3128_v21  ;;  %3004 = vst.msk [vmem:[#allocation2 + $0x188] sm:$0xff] %vm1373_vm3, %v2876_v19  ;;  %v2881_v25 = vadd.f32 %v10055_v23, %v1556_v22  ;;  %10285 = vmatprep.mubr.msk.bf16.mxu1 %vm628_vm2, %v10752_v11  ;;  %10415 = vmatprep.mubr.msk.bf16.mxu0 %vm628_vm2, %v10754_v20  ;;  %v10762_v11 = vld [vmem:[%s10919_s26 + $0xc0] sm:$0xff]  }
 0x1be   : > { %v3133_v26 = vld [vmem:[#allocation2 + $0x190] sm:$0xff]  ;;  %v2524_v28 = vpop.f32.mrf.mxu1  ;;  %v4105_v35 = vpop.f32.mrf.mxu0  ;;  %v1562_v20 = vld [vmem:[#allocation2 + $0x1e0] sm:$0xff] }
 0x1bf   : > { %4581 = vst.msk [vmem:[#allocation2 + $0x168] sm:$0xff] %vm1373_vm3, %v4453_v24  ;;  %v4458_v30 = vadd.f32 %v10181_v1, %v3133_v26  ;;  %3009 = vst.msk [vmem:[#allocation2 + $0x1b0] sm:$0xff] %vm1373_vm3, %v2881_v25  ;;  %v2879_v31 = vadd.f32 %v2524_v28, %v1554_v27  ;;  %v1565_v25 = vld [vmem:[#allocation2 + $0x1f8] sm:$0xff] }
 0x1c0   : > { %v3131_v32 = vld [vmem:[#allocation2 + $0x180] sm:$0xff]  ;;  %v10056_v34 = vpop.f32.mrf.mxu1  ;;  %v10186_v43 = vpop.f32.mrf.mxu0  ;;  %v10761_v28 = vld [vmem:[%s10919_s26 + $0xb8] sm:$0xff]  }
 0x1c1   : > { %4586 = vst.msk [vmem:[#allocation2 + $0x190] sm:$0xff] %vm1373_vm3, %v4458_v30  ;;  %v4456_v37 = vadd.f32 %v4089_v7, %v3131_v32  ;;  %3007 = vst.msk [vmem:[#allocation2 + $0x1a0] sm:$0xff] %vm1373_vm3, %v2879_v31  ;;  %v2882_v38 = vadd.f32 %v10056_v34, %v1557_v33  ;;  %v10764_v31 = vld [vmem:[%s10919_s26 + $0xc0] sm:$0xff]   ;;  %v1563_v33 = vld [vmem:[#allocation2 + $0x1e8] sm:$0xff] }
 0x1c2   : > { %v3134_v40 = vld [vmem:[#allocation2 + $0x198] sm:$0xff]  ;;  %v2527_v42 = vpop.f32.mrf.mxu1  ;;  %v4108_v51 = vpop.f32.mrf.mxu0 }
 0x1c3   : > { %4584 = vst.msk [vmem:[#allocation2 + $0x180] sm:$0xff] %vm1373_vm3, %v4456_v37  ;;  %v4459_v45 = vadd.f32 %v10182_v16, %v3134_v40  ;;  %3010 = vst.msk [vmem:[#allocation2 + $0x1b8] sm:$0xff] %vm1373_vm3, %v2882_v38  ;;  %v2880_v46 = vadd.f32 %v2527_v42, %v1555_v41  ;;  %v1568_v41 = vld [vmem:[#allocation2 + $0x210] sm:$0xff] }
 0x1c4   : > { %v3132_v48 = vld [vmem:[#allocation2 + $0x188] sm:$0xff]  ;;  %v10059_v50 = vpop.f32.mrf.mxu1  ;;  %10286 = vmatmul.mubr.msk.bf16.gmra.mxu1 %vm628_vm2, %v10753_v36  ;;  %v10189_v57 = vpop.f32.mrf.mxu0  ;;  %10416 = vmatmul.mubr.msk.bf16.gmra.mxu0 %vm628_vm2, %v10755_v44 }
 0x1c5   : > { %4587 = vst.msk [vmem:[#allocation2 + $0x198] sm:$0xff] %vm1373_vm3, %v4459_v45  ;;  %v4457_v52 = vadd.f32 %v4092_v12, %v3132_v48  ;;  %3008 = vst.msk [vmem:[#allocation2 + $0x1a8] sm:$0xff] %vm1373_vm3, %v2880_v46  ;;  %v2885_v53 = vadd.f32 %v10059_v50, %v1560_v49  ;;  %10289 = vmatprep.mubr.msk.bf16.mxu1 %vm628_vm2, %v10756_v39  ;;  %10419 = vmatprep.mubr.msk.bf16.mxu0 %vm628_vm2, %v10758_v47  ;;  %v10763_v36 = vld [vmem:[%s10919_s26 + $0xc8] sm:$0xff]   ;;  %v10766_v39 = vld [vmem:[%s10919_s26 + $0xd0] sm:$0xff]  }
 0x1c6   : > { %v3137_v54 = vld [vmem:[#allocation2 + $0x1b0] sm:$0xff]  ;;  %v2540_v56 = vpop.f32.mrf.mxu1  ;;  %v4121_v63 = vpop.f32.mrf.mxu0  ;;  %v1566_v47 = vld [vmem:[#allocation2 + $0x200] sm:$0xff] }
 0x1c7   : > { %4585 = vst.msk [vmem:[#allocation2 + $0x188] sm:$0xff] %vm1373_vm3, %v4457_v52  ;;  %v4462_v58 = vadd.f32 %v10185_v29, %v3137_v54  ;;  %3013 = vst.msk [vmem:[#allocation2 + $0x1d0] sm:$0xff] %vm1373_vm3, %v2885_v53  ;;  %v2883_v59 = vadd.f32 %v2540_v56, %v1558_v55  ;;  %v1569_v53 = vld [vmem:[#allocation2 + $0x218] sm:$0xff]  ;;  %v10765_v56 = vld [vmem:[%s10919_s26 + $0xc8] sm:$0xff]  }
 0x1c8   : > { %v3135_v60 = vld [vmem:[#allocation2 + $0x1a0] sm:$0xff]  ;;  %v10060_v62 = vpop.f32.mrf.mxu1  ;;  %v10190_v7 = vpop.f32.mrf.mxu0 }
 0x1c9   : > { %4590 = vst.msk [vmem:[#allocation2 + $0x1b0] sm:$0xff] %vm1373_vm3, %v4462_v58  ;;  %v4460_v1 = vadd.f32 %v4105_v35, %v3135_v60  ;;  %3011 = vst.msk [vmem:[#allocation2 + $0x1c0] sm:$0xff] %vm1373_vm3, %v2883_v59  ;;  %v2886_v2 = vadd.f32 %v10060_v62, %v1561_v61  ;;  %v10768_v59 = vld [vmem:[%s10919_s26 + $0xd0] sm:$0xff]   ;;  %v1567_v61 = vld [vmem:[#allocation2 + $0x208] sm:$0xff] }
 0x1ca   : > { %v3138_v4 = vld [vmem:[#allocation2 + $0x1b8] sm:$0xff]  ;;  %v2543_v6 = vpop.f32.mrf.mxu1  ;;  %v4124_v16 = vpop.f32.mrf.mxu0 }
 0x1cb   : > { %4588 = vst.msk [vmem:[#allocation2 + $0x1a0] sm:$0xff] %vm1373_vm3, %v4460_v1  ;;  %v4463_v9 = vadd.f32 %v10186_v43, %v3138_v4  ;;  %3014 = vst.msk [vmem:[#allocation2 + $0x1d8] sm:$0xff] %vm1373_vm3, %v2886_v2  ;;  %v2884_v10 = vadd.f32 %v2543_v6, %v1559_v5  ;;  %v1572_v5 = vld [vmem:[#allocation2 + $0x230] sm:$0xff] }
 0x1cc   : > { %v3136_v13 = vld [vmem:[#allocation2 + $0x1a8] sm:$0xff]  ;;  %v10063_v15 = vpop.f32.mrf.mxu1  ;;  %10290 = vmatmul.mubr.msk.bf16.gmra.mxu1 %vm628_vm2, %v10757_v0  ;;  %v10193_v22 = vpop.f32.mrf.mxu0  ;;  %10420 = vmatmul.mubr.msk.bf16.gmra.mxu0 %vm628_vm2, %v10759_v8  ;;  %v10767_v0 = vld [vmem:[%s10919_s26 + $0xd8] sm:$0xff]  }
 0x1cd   : > { %4591 = vst.msk [vmem:[#allocation2 + $0x1b8] sm:$0xff] %vm1373_vm3, %v4463_v9  ;;  %v4461_v17 = vadd.f32 %v4108_v51, %v3136_v13  ;;  %3012 = vst.msk [vmem:[#allocation2 + $0x1c8] sm:$0xff] %vm1373_vm3, %v2884_v10  ;;  %v2889_v18 = vadd.f32 %v10063_v15, %v1564_v14  ;;  %10293 = vmatprep.mubr.msk.bf16.mxu1 %vm628_vm2, %v10760_v3  ;;  %10423 = vmatprep.mubr.msk.bf16.mxu0 %vm628_vm2, %v10762_v11  ;;  %v10770_v3 = vld [vmem:[%s10919_s26 + $0xe0] sm:$0xff]  }
 0x1ce   : > { %v3141_v19 = vld [vmem:[#allocation2 + $0x1d0] sm:$0xff]  ;;  %v2556_v21 = vpop.f32.mrf.mxu1  ;;  %v4137_v27 = vpop.f32.mrf.mxu0  ;;  %v1570_v11 = vld [vmem:[#allocation2 + $0x220] sm:$0xff] }
 0x1cf   : > { %4589 = vst.msk [vmem:[#allocation2 + $0x1a8] sm:$0xff] %vm1373_vm3, %v4461_v17  ;;  %v4466_v23 = vadd.f32 %v10189_v57, %v3141_v19  ;;  %3017 = vst.msk [vmem:[#allocation2 + $0x1f0] sm:$0xff] %vm1373_vm3, %v2889_v18  ;;  %v2887_v12 = vadd.f32 %v2556_v21, %v1562_v20  ;;  %v1573_v18 = vld [vmem:[#allocation2 + $0x238] sm:$0xff] }
 0x1d0   : > { %v3139_v24 = vld [vmem:[#allocation2 + $0x1c0] sm:$0xff]  ;;  %v10064_v26 = vpop.f32.mrf.mxu1  ;;  %v10194_v35 = vpop.f32.mrf.mxu0  ;;  %v10769_v21 = vld [vmem:[%s10919_s26 + $0xd8] sm:$0xff]  }
 0x1d1   : > { %4594 = vst.msk [vmem:[#allocation2 + $0x1d0] sm:$0xff] %vm1373_vm3, %v4466_v23  ;;  %v4464_v29 = vadd.f32 %v4121_v63, %v3139_v24  ;;  %3015 = vst.msk [vmem:[#allocation2 + $0x1e0] sm:$0xff] %vm1373_vm3, %v2887_v12  ;;  %v2890_v30 = vadd.f32 %v10064_v26, %v1565_v25  ;;  %v10772_v12 = vld [vmem:[%s10919_s26 + $0xe0] sm:$0xff]   ;;  %v1571_v25 = vld [vmem:[#allocation2 + $0x228] sm:$0xff] }
 0x1d2   : > { %v3142_v32 = vld [vmem:[#allocation2 + $0x1d8] sm:$0xff]  ;;  %v2559_v34 = vpop.f32.mrf.mxu1  ;;  %v4140_v43 = vpop.f32.mrf.mxu0 }
 0x1d3   : > { %4592 = vst.msk [vmem:[#allocation2 + $0x1c0] sm:$0xff] %vm1373_vm3, %v4464_v29  ;;  %v4467_v37 = vadd.f32 %v10190_v7, %v3142_v32  ;;  %3018 = vst.msk [vmem:[#allocation2 + $0x1f8] sm:$0xff] %vm1373_vm3, %v2890_v30  ;;  %v2888_v38 = vadd.f32 %v2559_v34, %v1563_v33  ;;  %v1576_v33 = vld [vmem:[#allocation2 + $0x250] sm:$0xff] }
 0x1d4   : > { %v3140_v40 = vld [vmem:[#allocation2 + $0x1c8] sm:$0xff]  ;;  %v10067_v42 = vpop.f32.mrf.mxu1  ;;  %10294 = vmatmul.mubr.msk.bf16.gmra.mxu1 %vm628_vm2, %v10761_v28  ;;  %v10197_v49 = vpop.f32.mrf.mxu0  ;;  %10424 = vmatmul.mubr.msk.bf16.gmra.mxu0 %vm628_vm2, %v10763_v36 }
 0x1d5   : > { %4595 = vst.msk [vmem:[#allocation2 + $0x1d8] sm:$0xff] %vm1373_vm3, %v4467_v37  ;;  %v4465_v44 = vadd.f32 %v4124_v16, %v3140_v40  ;;  %3016 = vst.msk [vmem:[#allocation2 + $0x1e8] sm:$0xff] %vm1373_vm3, %v2888_v38  ;;  %v2893_v45 = vadd.f32 %v10067_v42, %v1568_v41  ;;  %10297 = vmatprep.mubr.msk.bf16.mxu1 %vm628_vm2, %v10764_v31  ;;  %10427 = vmatprep.mubr.msk.bf16.mxu0 %vm628_vm2, %v10766_v39  ;;  %v10771_v28 = vld [vmem:[%s10919_s26 + $0xe8] sm:$0xff]   ;;  %v10774_v31 = vld [vmem:[%s10919_s26 + $0xf0] sm:$0xff]  }
 0x1d6   : > { %v3145_v46 = vld [vmem:[#allocation2 + $0x1f0] sm:$0xff]  ;;  %v2572_v48 = vpop.f32.mrf.mxu1  ;;  %v4153_v55 = vpop.f32.mrf.mxu0  ;;  %v1574_v39 = vld [vmem:[#allocation2 + $0x240] sm:$0xff] }
 0x1d7   : > { %4593 = vst.msk [vmem:[#allocation2 + $0x1c8] sm:$0xff] %vm1373_vm3, %v4465_v44  ;;  %v4470_v50 = vadd.f32 %v10193_v22, %v3145_v46  ;;  %3021 = vst.msk [vmem:[#allocation2 + $0x210] sm:$0xff] %vm1373_vm3, %v2893_v45  ;;  %v2891_v51 = vadd.f32 %v2572_v48, %v1566_v47  ;;  %v1577_v45 = vld [vmem:[#allocation2 + $0x258] sm:$0xff]  ;;  %v10773_v48 = vld [vmem:[%s10919_s26 + $0xe8] sm:$0xff]  }
 0x1d8   : > { %v3143_v52 = vld [vmem:[#allocation2 + $0x1e0] sm:$0xff]  ;;  %v10068_v54 = vpop.f32.mrf.mxu1  ;;  %v10198_v63 = vpop.f32.mrf.mxu0 }
 0x1d9   : > { %4598 = vst.msk [vmem:[#allocation2 + $0x1f0] sm:$0xff] %vm1373_vm3, %v4470_v50  ;;  %v4468_v57 = vadd.f32 %v4137_v27, %v3143_v52  ;;  %3019 = vst.msk [vmem:[#allocation2 + $0x200] sm:$0xff] %vm1373_vm3, %v2891_v51  ;;  %v2894_v58 = vadd.f32 %v10068_v54, %v1569_v53  ;;  %v10776_v51 = vld [vmem:[%s10919_s26 + $0xf0] sm:$0xff]   ;;  %v1575_v53 = vld [vmem:[#allocation2 + $0x248] sm:$0xff] }
 0x1da   : > { %v3146_v60 = vld [vmem:[#allocation2 + $0x1f8] sm:$0xff]  ;;  %v2575_v62 = vpop.f32.mrf.mxu1  ;;  %v4156_v7 = vpop.f32.mrf.mxu0 }
 0x1db   : > { %4596 = vst.msk [vmem:[#allocation2 + $0x1e0] sm:$0xff] %vm1373_vm3, %v4468_v57  ;;  %v4471_v1 = vadd.f32 %v10194_v35, %v3146_v60  ;;  %3022 = vst.msk [vmem:[#allocation2 + $0x218] sm:$0xff] %vm1373_vm3, %v2894_v58  ;;  %v2892_v2 = vadd.f32 %v2575_v62, %v1567_v61  ;;  %v1580_v61 = vld [vmem:[#allocation2 + $0x270] sm:$0xff] }
 0x1dc   : > { %v3144_v4 = vld [vmem:[#allocation2 + $0x1e8] sm:$0xff]  ;;  %v10071_v6 = vpop.f32.mrf.mxu1  ;;  %10298 = vmatmul.mubr.msk.bf16.gmra.mxu1 %vm628_vm2, %v10765_v56  ;;  %v10201_v14 = vpop.f32.mrf.mxu0  ;;  %10428 = vmatmul.mubr.msk.bf16.gmra.mxu0 %vm628_vm2, %v10767_v0  ;;  %v10775_v56 = vld [vmem:[%s10919_s26 + $0xf8] sm:$0xff]  }
 0x1dd   : > { %4599 = vst.msk [vmem:[#allocation2 + $0x1f8] sm:$0xff] %vm1373_vm3, %v4471_v1  ;;  %v4469_v8 = vadd.f32 %v4140_v43, %v3144_v4  ;;  %3020 = vst.msk [vmem:[#allocation2 + $0x208] sm:$0xff] %vm1373_vm3, %v2892_v2  ;;  %v2897_v9 = vadd.f32 %v10071_v6, %v1572_v5  ;;  %10301 = vmatprep.mubr.msk.bf16.mxu1 %vm628_vm2, %v10768_v59  ;;  %10431 = vmatprep.mubr.msk.bf16.mxu0 %vm628_vm2, %v10770_v3  ;;  %v10778_v59 = vld [vmem:[%s10919_s26 + $0x100] sm:$0xff]  }
 0x1de   : > { %v3149_v10 = vld [vmem:[#allocation2 + $0x210] sm:$0xff]  ;;  %v2588_v13 = vpop.f32.mrf.mxu1  ;;  %v4169_v20 = vpop.f32.mrf.mxu0  ;;  %v1578_v3 = vld [vmem:[#allocation2 + $0x260] sm:$0xff] }
 0x1df   : > { %4597 = vst.msk [vmem:[#allocation2 + $0x1e8] sm:$0xff] %vm1373_vm3, %v4469_v8  ;;  %v4474_v15 = vadd.f32 %v10197_v49, %v3149_v10  ;;  %3025 = vst.msk [vmem:[#allocation2 + $0x230] sm:$0xff] %vm1373_vm3, %v2897_v9  ;;  %v2895_v16 = vadd.f32 %v2588_v13, %v1570_v11  ;;  %v1581_v9 = vld [vmem:[#allocation2 + $0x278] sm:$0xff] }
 0x1e0   : > { %v3147_v17 = vld [vmem:[#allocation2 + $0x200] sm:$0xff]  ;;  %v10072_v19 = vpop.f32.mrf.mxu1  ;;  %v10202_v27 = vpop.f32.mrf.mxu0  ;;  %v10777_v13 = vld [vmem:[%s10919_s26 + $0xf8] sm:$0xff]  }
 0x1e1   : > { %4602 = vst.msk [vmem:[#allocation2 + $0x210] sm:$0xff] %vm1373_vm3, %v4474_v15  ;;  %v4472_v22 = vadd.f32 %v4153_v55, %v3147_v17  ;;  %3023 = vst.msk [vmem:[#allocation2 + $0x220] sm:$0xff] %vm1373_vm3, %v2895_v16  ;;  %v2898_v23 = vadd.f32 %v10072_v19, %v1573_v18  ;;  %v10780_v16 = vld [vmem:[%s10919_s26 + $0x100] sm:$0xff]   ;;  %v1579_v18 = vld [vmem:[#allocation2 + $0x268] sm:$0xff] }
 0x1e2   : > { %v3150_v24 = vld [vmem:[#allocation2 + $0x218] sm:$0xff]  ;;  %v2591_v26 = vpop.f32.mrf.mxu1  ;;  %v4172_v35 = vpop.f32.mrf.mxu0 }
 0x1e3   : > { %4600 = vst.msk [vmem:[#allocation2 + $0x200] sm:$0xff] %vm1373_vm3, %v4472_v22  ;;  %v4475_v29 = vadd.f32 %v10198_v63, %v3150_v24  ;;  %3026 = vst.msk [vmem:[#allocation2 + $0x238] sm:$0xff] %vm1373_vm3, %v2898_v23  ;;  %v2896_v30 = vadd.f32 %v2591_v26, %v1571_v25  ;;  %v1584_v25 = vld [vmem:[#allocation2 + $0x290] sm:$0xff] }
 0x1e4   : > { %v3148_v32 = vld [vmem:[#allocation2 + $0x208] sm:$0xff]  ;;  %v10075_v34 = vpop.f32.mrf.mxu1  ;;  %10302 = vmatmul.mubr.msk.bf16.gmra.mxu1 %vm628_vm2, %v10769_v21  ;;  %v10205_v41 = vpop.f32.mrf.mxu0  ;;  %10432 = vmatmul.mubr.msk.bf16.gmra.mxu0 %vm628_vm2, %v10771_v28 }
 0x1e5   : > { %4603 = vst.msk [vmem:[#allocation2 + $0x218] sm:$0xff] %vm1373_vm3, %v4475_v29  ;;  %v4473_v36 = vadd.f32 %v4156_v7, %v3148_v32  ;;  %3024 = vst.msk [vmem:[#allocation2 + $0x228] sm:$0xff] %vm1373_vm3, %v2896_v30  ;;  %v2901_v37 = vadd.f32 %v10075_v34, %v1576_v33  ;;  %10305 = vmatprep.mubr.msk.bf16.mxu1 %vm628_vm2, %v10772_v12  ;;  %10435 = vmatprep.mubr.msk.bf16.mxu0 %vm628_vm2, %v10774_v31  ;;  %v10779_v21 = vld [vmem:[%s10919_s26 + $0x108] sm:$0xff]   ;;  %v10782_v12 = vld [vmem:[%s10919_s26 + $0x110] sm:$0xff]  }
 0x1e6   : > { %v3153_v38 = vld [vmem:[#allocation2 + $0x230] sm:$0xff]  ;;  %v2604_v40 = vpop.f32.mrf.mxu1  ;;  %v4185_v47 = vpop.f32.mrf.mxu0  ;;  %v1582_v31 = vld [vmem:[#allocation2 + $0x280] sm:$0xff] }
 0x1e7   : > { %4601 = vst.msk [vmem:[#allocation2 + $0x208] sm:$0xff] %vm1373_vm3, %v4473_v36  ;;  %v4478_v42 = vadd.f32 %v10201_v14, %v3153_v38  ;;  %3029 = vst.msk [vmem:[#allocation2 + $0x250] sm:$0xff] %vm1373_vm3, %v2901_v37  ;;  %v2899_v43 = vadd.f32 %v2604_v40, %v1574_v39  ;;  %v1585_v37 = vld [vmem:[#allocation2 + $0x298] sm:$0xff]  ;;  %v10781_v40 = vld [vmem:[%s10919_s26 + $0x108] sm:$0xff]  }
 0x1e8   : > { %v3151_v44 = vld [vmem:[#allocation2 + $0x220] sm:$0xff]  ;;  %v10076_v46 = vpop.f32.mrf.mxu1  ;;  %v10206_v55 = vpop.f32.mrf.mxu0 }
 0x1e9   : > { %4606 = vst.msk [vmem:[#allocation2 + $0x230] sm:$0xff] %vm1373_vm3, %v4478_v42  ;;  %v4476_v49 = vadd.f32 %v4169_v20, %v3151_v44  ;;  %3027 = vst.msk [vmem:[#allocation2 + $0x240] sm:$0xff] %vm1373_vm3, %v2899_v43  ;;  %v2902_v50 = vadd.f32 %v10076_v46, %v1577_v45  ;;  %v10784_v43 = vld [vmem:[%s10919_s26 + $0x110] sm:$0xff]   ;;  %v1583_v45 = vld [vmem:[#allocation2 + $0x288] sm:$0xff] }
 0x1ea   : > { %v3154_v52 = vld [vmem:[#allocation2 + $0x238] sm:$0xff]  ;;  %v2607_v54 = vpop.f32.mrf.mxu1  ;;  %v4188_v63 = vpop.f32.mrf.mxu0 }
 0x1eb   : > { %4604 = vst.msk [vmem:[#allocation2 + $0x220] sm:$0xff] %vm1373_vm3, %v4476_v49  ;;  %v4479_v57 = vadd.f32 %v10202_v27, %v3154_v52  ;;  %3030 = vst.msk [vmem:[#allocation2 + $0x258] sm:$0xff] %vm1373_vm3, %v2902_v50  ;;  %v2900_v58 = vadd.f32 %v2607_v54, %v1575_v53  ;;  %v1588_v53 = vld [vmem:[#allocation2 + $0x2b0] sm:$0xff] }
 0x1ec   : > { %v3152_v60 = vld [vmem:[#allocation2 + $0x228] sm:$0xff]  ;;  %v10079_v62 = vpop.f32.mrf.mxu1  ;;  %10306 = vmatmul.mubr.msk.bf16.gmra.mxu1 %vm628_vm2, %v10773_v48  ;;  %v10209_v5 = vpop.f32.mrf.mxu0  ;;  %10436 = vmatmul.mubr.msk.bf16.gmra.mxu0 %vm628_vm2, %v10775_v56  ;;  %v10783_v48 = vld [vmem:[%s10919_s26 + $0x118] sm:$0xff]  }
 0x1ed   : > { %4607 = vst.msk [vmem:[#allocation2 + $0x238] sm:$0xff] %vm1373_vm3, %v4479_v57  ;;  %v4477_v0 = vadd.f32 %v4172_v35, %v3152_v60  ;;  %3028 = vst.msk [vmem:[#allocation2 + $0x248] sm:$0xff] %vm1373_vm3, %v2900_v58  ;;  %v2905_v1 = vadd.f32 %v10079_v62, %v1580_v61  ;;  %10309 = vmatprep.mubr.msk.bf16.mxu1 %vm628_vm2, %v10776_v51  ;;  %10439 = vmatprep.mubr.msk.bf16.mxu0 %vm628_vm2, %v10778_v59  ;;  %v10786_v51 = vld [vmem:[%s10919_s26 + $0x120] sm:$0xff]  }
 0x1ee   : > { %v3157_v2 = vld [vmem:[#allocation2 + $0x250] sm:$0xff]  ;;  %v2620_v4 = vpop.f32.mrf.mxu1  ;;  %v4201_v11 = vpop.f32.mrf.mxu0  ;;  %v1586_v59 = vld [vmem:[#allocation2 + $0x2a0] sm:$0xff] }
 0x1ef   : > { %4605 = vst.msk [vmem:[#allocation2 + $0x228] sm:$0xff] %vm1373_vm3, %v4477_v0  ;;  %v4482_v6 = vadd.f32 %v10205_v41, %v3157_v2  ;;  %3033 = vst.msk [vmem:[#allocation2 + $0x270] sm:$0xff] %vm1373_vm3, %v2905_v1  ;;  %v2903_v7 = vadd.f32 %v2620_v4, %v1578_v3  ;;  %v1589_v1 = vld [vmem:[#allocation2 + $0x2b8] sm:$0xff] }
 0x1f0   : > { %v3155_v8 = vld [vmem:[#allocation2 + $0x240] sm:$0xff]  ;;  %v10080_v10 = vpop.f32.mrf.mxu1  ;;  %v10210_v20 = vpop.f32.mrf.mxu0  ;;  %v10785_v4 = vld [vmem:[%s10919_s26 + $0x118] sm:$0xff]  }
 0x1f1   : > { %4610 = vst.msk [vmem:[#allocation2 + $0x250] sm:$0xff] %vm1373_vm3, %v4482_v6  ;;  %v4480_v14 = vadd.f32 %v4185_v47, %v3155_v8  ;;  %3031 = vst.msk [vmem:[#allocation2 + $0x260] sm:$0xff] %vm1373_vm3, %v2903_v7  ;;  %v2906_v15 = vadd.f32 %v10080_v10, %v1581_v9  ;;  %v10788_v7 = vld [vmem:[%s10919_s26 + $0x120] sm:$0xff]   ;;  %v1587_v9 = vld [vmem:[#allocation2 + $0x2a8] sm:$0xff] }
 0x1f2   : > { %v3158_v17 = vld [vmem:[#allocation2 + $0x258] sm:$0xff]  ;;  %v2623_v19 = vpop.f32.mrf.mxu1  ;;  %v4204_v27 = vpop.f32.mrf.mxu0 }
 0x1f3   : > { %4608 = vst.msk [vmem:[#allocation2 + $0x240] sm:$0xff] %vm1373_vm3, %v4480_v14  ;;  %v4483_v22 = vadd.f32 %v10206_v55, %v3158_v17  ;;  %3034 = vst.msk [vmem:[#allocation2 + $0x278] sm:$0xff] %vm1373_vm3, %v2906_v15  ;;  %v2904_v23 = vadd.f32 %v2623_v19, %v1579_v18  ;;  %v1592_v18 = vld [vmem:[#allocation2 + $0x2d0] sm:$0xff] }
 0x1f4   : > { %v3156_v24 = vld [vmem:[#allocation2 + $0x248] sm:$0xff]  ;;  %v10083_v26 = vpop.f32.mrf.mxu1  ;;  %10310 = vmatmul.mubr.msk.bf16.gmra.mxu1 %vm628_vm2, %v10777_v13  ;;  %v10213_v33 = vpop.f32.mrf.mxu0  ;;  %10440 = vmatmul.mubr.msk.bf16.gmra.mxu0 %vm628_vm2, %v10779_v21 }
 0x1f5   : > { %4611 = vst.msk [vmem:[#allocation2 + $0x258] sm:$0xff] %vm1373_vm3, %v4483_v22  ;;  %v4481_v28 = vadd.f32 %v4188_v63, %v3156_v24  ;;  %3032 = vst.msk [vmem:[#allocation2 + $0x268] sm:$0xff] %vm1373_vm3, %v2904_v23  ;;  %v2909_v29 = vadd.f32 %v10083_v26, %v1584_v25  ;;  %10313 = vmatprep.mubr.msk.bf16.mxu1 %vm628_vm2, %v10780_v16  ;;  %10443 = vmatprep.mubr.msk.bf16.mxu0 %vm628_vm2, %v10782_v12  ;;  %v10787_v13 = vld [vmem:[%s10919_s26 + $0x128] sm:$0xff]   ;;  %v10790_v16 = vld [vmem:[%s10919_s26 + $0x130] sm:$0xff]  }
 0x1f6   : > { %v3161_v30 = vld [vmem:[#allocation2 + $0x270] sm:$0xff]  ;;  %v2636_v32 = vpop.f32.mrf.mxu1  ;;  %v4217_v39 = vpop.f32.mrf.mxu0  ;;  %v1590_v12 = vld [vmem:[#allocation2 + $0x2c0] sm:$0xff] }
 0x1f7   : > { %4609 = vst.msk [vmem:[#allocation2 + $0x248] sm:$0xff] %vm1373_vm3, %v4481_v28  ;;  %v4486_v34 = vadd.f32 %v10209_v5, %v3161_v30  ;;  %3037 = vst.msk [vmem:[#allocation2 + $0x290] sm:$0xff] %vm1373_vm3, %v2909_v29  ;;  %v2907_v35 = vadd.f32 %v2636_v32, %v1582_v31  ;;  %v1593_v29 = vld [vmem:[#allocation2 + $0x2d8] sm:$0xff]  ;;  %v10789_v32 = vld [vmem:[%s10919_s26 + $0x128] sm:$0xff]  }
 0x1f8   : > { %v3159_v36 = vld [vmem:[#allocation2 + $0x260] sm:$0xff]  ;;  %v10084_v38 = vpop.f32.mrf.mxu1  ;;  %v10214_v47 = vpop.f32.mrf.mxu0 }
 0x1f9   : > { %4614 = vst.msk [vmem:[#allocation2 + $0x270] sm:$0xff] %vm1373_vm3, %v4486_v34  ;;  %v4484_v41 = vadd.f32 %v4201_v11, %v3159_v36  ;;  %3035 = vst.msk [vmem:[#allocation2 + $0x280] sm:$0xff] %vm1373_vm3, %v2907_v35  ;;  %v2910_v42 = vadd.f32 %v10084_v38, %v1585_v37  ;;  %v10792_v35 = vld [vmem:[%s10919_s26 + $0x130] sm:$0xff]   ;;  %v1591_v37 = vld [vmem:[#allocation2 + $0x2c8] sm:$0xff] }
 0x1fa   : > { %v3162_v44 = vld [vmem:[#allocation2 + $0x278] sm:$0xff]  ;;  %v2639_v46 = vpop.f32.mrf.mxu1  ;;  %v4220_v55 = vpop.f32.mrf.mxu0 }
 0x1fb   : > { %4612 = vst.msk [vmem:[#allocation2 + $0x260] sm:$0xff] %vm1373_vm3, %v4484_v41  ;;  %v4487_v49 = vadd.f32 %v10210_v20, %v3162_v44  ;;  %3038 = vst.msk [vmem:[#allocation2 + $0x298] sm:$0xff] %vm1373_vm3, %v2910_v42  ;;  %v2908_v50 = vadd.f32 %v2639_v46, %v1583_v45  ;;  %v1596_v45 = vld [vmem:[#allocation2 + $0x2f0] sm:$0xff] }
 0x1fc   : > { %v3160_v52 = vld [vmem:[#allocation2 + $0x268] sm:$0xff]  ;;  %v10087_v54 = vpop.f32.mrf.mxu1  ;;  %10314 = vmatmul.mubr.msk.bf16.gmra.mxu1 %vm628_vm2, %v10781_v40  ;;  %v10217_v61 = vpop.f32.mrf.mxu0  ;;  %10444 = vmatmul.mubr.msk.bf16.gmra.mxu0 %vm628_vm2, %v10783_v48  ;;  %v10791_v40 = vld [vmem:[%s10919_s26 + $0x138] sm:$0xff]  }
 0x1fd   : > { %4615 = vst.msk [vmem:[#allocation2 + $0x278] sm:$0xff] %vm1373_vm3, %v4487_v49  ;;  %v4485_v56 = vadd.f32 %v4204_v27, %v3160_v52  ;;  %3036 = vst.msk [vmem:[#allocation2 + $0x288] sm:$0xff] %vm1373_vm3, %v2908_v50  ;;  %v2913_v57 = vadd.f32 %v10087_v54, %v1588_v53  ;;  %10317 = vmatprep.mubr.msk.bf16.mxu1 %vm628_vm2, %v10784_v43  ;;  %10447 = vmatprep.mubr.msk.bf16.mxu0 %vm628_vm2, %v10786_v51  ;;  %v10794_v43 = vld [vmem:[%s10919_s26 + $0x140] sm:$0xff]  }
 0x1fe   : > { %v3165_v58 = vld [vmem:[#allocation2 + $0x290] sm:$0xff]  ;;  %v2652_v60 = vpop.f32.mrf.mxu1  ;;  %v4233_v3 = vpop.f32.mrf.mxu0  ;;  %v1594_v51 = vld [vmem:[#allocation2 + $0x2e0] sm:$0xff] }
 0x1ff   : > { %4613 = vst.msk [vmem:[#allocation2 + $0x268] sm:$0xff] %vm1373_vm3, %v4485_v56  ;;  %v4490_v62 = vadd.f32 %v10213_v33, %v3165_v58  ;;  %3041 = vst.msk [vmem:[#allocation2 + $0x2b0] sm:$0xff] %vm1373_vm3, %v2913_v57  ;;  %v2911_v63 = vadd.f32 %v2652_v60, %v1586_v59  ;;  %v1597_v57 = vld [vmem:[#allocation2 + $0x2f8] sm:$0xff] }
 0x200   : > { %v3163_v0 = vld [vmem:[#allocation2 + $0x280] sm:$0xff]  ;;  %v10088_v2 = vpop.f32.mrf.mxu1  ;;  %v10218_v11 = vpop.f32.mrf.mxu0  ;;  %v10793_v60 = vld [vmem:[%s10919_s26 + $0x138] sm:$0xff]  }
 0x201   : > { %4618 = vst.msk [vmem:[#allocation2 + $0x290] sm:$0xff] %vm1373_vm3, %v4490_v62  ;;  %v4488_v5 = vadd.f32 %v4217_v39, %v3163_v0  ;;  %3039 = vst.msk [vmem:[#allocation2 + $0x2a0] sm:$0xff] %vm1373_vm3, %v2911_v63  ;;  %v2914_v6 = vadd.f32 %v10088_v2, %v1589_v1  ;;  %v10796_v63 = vld [vmem:[%s10919_s26 + $0x140] sm:$0xff]   ;;  %v1595_v1 = vld [vmem:[#allocation2 + $0x2e8] sm:$0xff] }
 0x202   : > { %v3166_v8 = vld [vmem:[#allocation2 + $0x298] sm:$0xff]  ;;  %v2655_v10 = vpop.f32.mrf.mxu1  ;;  %v4236_v20 = vpop.f32.mrf.mxu0 }
 0x203   : > { %4616 = vst.msk [vmem:[#allocation2 + $0x280] sm:$0xff] %vm1373_vm3, %v4488_v5  ;;  %v4491_v14 = vadd.f32 %v10214_v47, %v3166_v8  ;;  %3042 = vst.msk [vmem:[#allocation2 + $0x2b8] sm:$0xff] %vm1373_vm3, %v2914_v6  ;;  %v2912_v15 = vadd.f32 %v2655_v10, %v1587_v9  ;;  %v1600_v9 = vld [vmem:[#allocation2 + $0x310] sm:$0xff] }
 0x204   : > { %v3164_v17 = vld [vmem:[#allocation2 + $0x288] sm:$0xff]  ;;  %v10091_v19 = vpop.f32.mrf.mxu1  ;;  %10318 = vmatmul.mubr.msk.bf16.gmra.mxu1 %vm628_vm2, %v10785_v4  ;;  %v10221_v25 = vpop.f32.mrf.mxu0  ;;  %10448 = vmatmul.mubr.msk.bf16.gmra.mxu0 %vm628_vm2, %v10787_v13 }
 0x205   : > { %4619 = vst.msk [vmem:[#allocation2 + $0x298] sm:$0xff] %vm1373_vm3, %v4491_v14  ;;  %v4489_v21 = vadd.f32 %v4220_v55, %v3164_v17  ;;  %3040 = vst.msk [vmem:[#allocation2 + $0x2a8] sm:$0xff] %vm1373_vm3, %v2912_v15  ;;  %v2917_v22 = vadd.f32 %v10091_v19, %v1592_v18  ;;  %10321 = vmatprep.mubr.msk.bf16.mxu1 %vm628_vm2, %v10788_v7  ;;  %10451 = vmatprep.mubr.msk.bf16.mxu0 %vm628_vm2, %v10790_v16  ;;  %v10795_v4 = vld [vmem:[%s10919_s26 + $0x148] sm:$0xff]   ;;  %v10798_v7 = vld [vmem:[%s10919_s26 + $0x150] sm:$0xff]  }
 0x206   : > { %v3169_v23 = vld [vmem:[#allocation2 + $0x2b0] sm:$0xff]  ;;  %v2668_v24 = vpop.f32.mrf.mxu1  ;;  %v4249_v31 = vpop.f32.mrf.mxu0  ;;  %v1598_v16 = vld [vmem:[#allocation2 + $0x300] sm:$0xff] }
 0x207   : > { %4617 = vst.msk [vmem:[#allocation2 + $0x288] sm:$0xff] %vm1373_vm3, %v4489_v21  ;;  %v4494_v26 = vadd.f32 %v10217_v61, %v3169_v23  ;;  %3045 = vst.msk [vmem:[#allocation2 + $0x2d0] sm:$0xff] %vm1373_vm3, %v2917_v22  ;;  %v2915_v27 = vadd.f32 %v2668_v24, %v1590_v12  ;;  %v1601_v22 = vld [vmem:[#allocation2 + $0x318] sm:$0xff]  ;;  %v10797_v24 = vld [vmem:[%s10919_s26 + $0x148] sm:$0xff]  }
 0x208   : > { %v3167_v28 = vld [vmem:[#allocation2 + $0x2a0] sm:$0xff]  ;;  %v10092_v30 = vpop.f32.mrf.mxu1  ;;  %v10222_v39 = vpop.f32.mrf.mxu0 }
 0x209   : > { %4622 = vst.msk [vmem:[#allocation2 + $0x2b0] sm:$0xff] %vm1373_vm3, %v4494_v26  ;;  %v4492_v33 = vadd.f32 %v4233_v3, %v3167_v28  ;;  %3043 = vst.msk [vmem:[#allocation2 + $0x2c0] sm:$0xff] %vm1373_vm3, %v2915_v27  ;;  %v2918_v34 = vadd.f32 %v10092_v30, %v1593_v29  ;;  %v10800_v27 = vld [vmem:[%s10919_s26 + $0x150] sm:$0xff]   ;;  %v1599_v29 = vld [vmem:[#allocation2 + $0x308] sm:$0xff] }
 0x20a   : > { %v3170_v36 = vld [vmem:[#allocation2 + $0x2b8] sm:$0xff]  ;;  %v2671_v38 = vpop.f32.mrf.mxu1  ;;  %v4252_v47 = vpop.f32.mrf.mxu0 }
 0x20b   : > { %4620 = vst.msk [vmem:[#allocation2 + $0x2a0] sm:$0xff] %vm1373_vm3, %v4492_v33  ;;  %v4495_v41 = vadd.f32 %v10218_v11, %v3170_v36  ;;  %3046 = vst.msk [vmem:[#allocation2 + $0x2d8] sm:$0xff] %vm1373_vm3, %v2918_v34  ;;  %v2916_v42 = vadd.f32 %v2671_v38, %v1591_v37  ;;  %v1604_v37 = vld [vmem:[#allocation2 + $0x330] sm:$0xff] }
 0x20c   : > { %v3168_v44 = vld [vmem:[#allocation2 + $0x2a8] sm:$0xff]  ;;  %v10095_v46 = vpop.f32.mrf.mxu1  ;;  %10322 = vmatmul.mubr.msk.bf16.gmra.mxu1 %vm628_vm2, %v10789_v32  ;;  %v10225_v53 = vpop.f32.mrf.mxu0  ;;  %10452 = vmatmul.mubr.msk.bf16.gmra.mxu0 %vm628_vm2, %v10791_v40  ;;  %v10799_v32 = vld [vmem:[%s10919_s26 + $0x158] sm:$0xff]  }
 0x20d   : > { %4623 = vst.msk [vmem:[#allocation2 + $0x2b8] sm:$0xff] %vm1373_vm3, %v4495_v41  ;;  %v4493_v48 = vadd.f32 %v4236_v20, %v3168_v44  ;;  %3044 = vst.msk [vmem:[#allocation2 + $0x2c8] sm:$0xff] %vm1373_vm3, %v2916_v42  ;;  %v2921_v49 = vadd.f32 %v10095_v46, %v1596_v45  ;;  %10325 = vmatprep.mubr.msk.bf16.mxu1 %vm628_vm2, %v10792_v35  ;;  %10455 = vmatprep.mubr.msk.bf16.mxu0 %vm628_vm2, %v10794_v43  ;;  %v10802_v35 = vld [vmem:[%s10919_s26 + $0x160] sm:$0xff]  }
 0x20e   : > { %v3173_v50 = vld [vmem:[#allocation2 + $0x2d0] sm:$0xff]  ;;  %v2684_v52 = vpop.f32.mrf.mxu1  ;;  %v4265_v59 = vpop.f32.mrf.mxu0  ;;  %v1602_v43 = vld [vmem:[#allocation2 + $0x320] sm:$0xff] }
 0x20f   : > { %4621 = vst.msk [vmem:[#allocation2 + $0x2a8] sm:$0xff] %vm1373_vm3, %v4493_v48  ;;  %v4498_v54 = vadd.f32 %v10221_v25, %v3173_v50  ;;  %3049 = vst.msk [vmem:[#allocation2 + $0x2f0] sm:$0xff] %vm1373_vm3, %v2921_v49  ;;  %v2919_v55 = vadd.f32 %v2684_v52, %v1594_v51  ;;  %v1605_v49 = vld [vmem:[#allocation2 + $0x338] sm:$0xff] }
 0x210   : > { %v3171_v56 = vld [vmem:[#allocation2 + $0x2c0] sm:$0xff]  ;;  %v10096_v58 = vpop.f32.mrf.mxu1  ;;  %v10226_v3 = vpop.f32.mrf.mxu0  ;;  %v10801_v52 = vld [vmem:[%s10919_s26 + $0x158] sm:$0xff]  }
 0x211   : > { %4626 = vst.msk [vmem:[#allocation2 + $0x2d0] sm:$0xff] %vm1373_vm3, %v4498_v54  ;;  %v4496_v61 = vadd.f32 %v4249_v31, %v3171_v56  ;;  %3047 = vst.msk [vmem:[#allocation2 + $0x2e0] sm:$0xff] %vm1373_vm3, %v2919_v55  ;;  %v2922_v62 = vadd.f32 %v10096_v58, %v1597_v57  ;;  %v10804_v55 = vld [vmem:[%s10919_s26 + $0x160] sm:$0xff]   ;;  %v1603_v57 = vld [vmem:[#allocation2 + $0x328] sm:$0xff] }
 0x212   : > { %v3174_v0 = vld [vmem:[#allocation2 + $0x2d8] sm:$0xff]  ;;  %v2687_v2 = vpop.f32.mrf.mxu1  ;;  %v4268_v11 = vpop.f32.mrf.mxu0 }
 0x213   : > { %4624 = vst.msk [vmem:[#allocation2 + $0x2c0] sm:$0xff] %vm1373_vm3, %v4496_v61  ;;  %v4499_v5 = vadd.f32 %v10222_v39, %v3174_v0  ;;  %3050 = vst.msk [vmem:[#allocation2 + $0x2f8] sm:$0xff] %vm1373_vm3, %v2922_v62  ;;  %v2920_v6 = vadd.f32 %v2687_v2, %v1595_v1  ;;  %v1608_v1 = vld [vmem:[#allocation2 + $0x350] sm:$0xff] }
 0x214   : > { %v3172_v8 = vld [vmem:[#allocation2 + $0x2c8] sm:$0xff]  ;;  %v10099_v10 = vpop.f32.mrf.mxu1  ;;  %10326 = vmatmul.mubr.msk.bf16.gmra.mxu1 %vm628_vm2, %v10793_v60  ;;  %v10229_v18 = vpop.f32.mrf.mxu0  ;;  %10456 = vmatmul.mubr.msk.bf16.gmra.mxu0 %vm628_vm2, %v10795_v4 }
 0x215   : > { %4627 = vst.msk [vmem:[#allocation2 + $0x2d8] sm:$0xff] %vm1373_vm3, %v4499_v5  ;;  %v4497_v13 = vadd.f32 %v4252_v47, %v3172_v8  ;;  %3048 = vst.msk [vmem:[#allocation2 + $0x2e8] sm:$0xff] %vm1373_vm3, %v2920_v6  ;;  %v2925_v14 = vadd.f32 %v10099_v10, %v1600_v9  ;;  %10329 = vmatprep.mubr.msk.bf16.mxu1 %vm628_vm2, %v10796_v63  ;;  %10459 = vmatprep.mubr.msk.bf16.mxu0 %vm628_vm2, %v10798_v7  ;;  %v10803_v60 = vld [vmem:[%s10919_s26 + $0x168] sm:$0xff]   ;;  %v10806_v63 = vld [vmem:[%s10919_s26 + $0x170] sm:$0xff]  }
 0x216   : > { %v3177_v15 = vld [vmem:[#allocation2 + $0x2f0] sm:$0xff]  ;;  %v2700_v17 = vpop.f32.mrf.mxu1  ;;  %v4281_v12 = vpop.f32.mrf.mxu0  ;;  %v1606_v7 = vld [vmem:[#allocation2 + $0x340] sm:$0xff] }
 0x217   : > { %4625 = vst.msk [vmem:[#allocation2 + $0x2c8] sm:$0xff] %vm1373_vm3, %v4497_v13  ;;  %v4502_v19 = vadd.f32 %v10225_v53, %v3177_v15  ;;  %3053 = vst.msk [vmem:[#allocation2 + $0x310] sm:$0xff] %vm1373_vm3, %v2925_v14  ;;  %v2923_v20 = vadd.f32 %v2700_v17, %v1598_v16  ;;  %v1609_v14 = vld [vmem:[#allocation2 + $0x358] sm:$0xff]  ;;  %v10805_v17 = vld [vmem:[%s10919_s26 + $0x168] sm:$0xff]  }
 0x218   : > { %v3175_v21 = vld [vmem:[#allocation2 + $0x2e0] sm:$0xff]  ;;  %v10100_v23 = vpop.f32.mrf.mxu1  ;;  %v10230_v31 = vpop.f32.mrf.mxu0 }
 0x219   : > { %4630 = vst.msk [vmem:[#allocation2 + $0x2f0] sm:$0xff] %vm1373_vm3, %v4502_v19  ;;  %v4500_v25 = vadd.f32 %v4265_v59, %v3175_v21  ;;  %3051 = vst.msk [vmem:[#allocation2 + $0x300] sm:$0xff] %vm1373_vm3, %v2923_v20  ;;  %v2926_v26 = vadd.f32 %v10100_v23, %v1601_v22  ;;  %v10808_v20 = vld [vmem:[%s10919_s26 + $0x170] sm:$0xff]   ;;  %v1607_v22 = vld [vmem:[#allocation2 + $0x348] sm:$0xff] }
 0x21a   : > { %v3178_v28 = vld [vmem:[#allocation2 + $0x2f8] sm:$0xff]  ;;  %v2703_v30 = vpop.f32.mrf.mxu1  ;;  %v4284_v39 = vpop.f32.mrf.mxu0 }
 0x21b   : > { %4628 = vst.msk [vmem:[#allocation2 + $0x2e0] sm:$0xff] %vm1373_vm3, %v4500_v25  ;;  %v4503_v33 = vadd.f32 %v10226_v3, %v3178_v28  ;;  %3054 = vst.msk [vmem:[#allocation2 + $0x318] sm:$0xff] %vm1373_vm3, %v2926_v26  ;;  %v2924_v34 = vadd.f32 %v2703_v30, %v1599_v29  ;;  %v1612_v29 = vld [vmem:[#allocation2 + $0x370] sm:$0xff] }
 0x21c   : > { %v3176_v36 = vld [vmem:[#allocation2 + $0x2e8] sm:$0xff]  ;;  %v10103_v38 = vpop.f32.mrf.mxu1  ;;  %10330 = vmatmul.mubr.msk.bf16.gmra.mxu1 %vm628_vm2, %v10797_v24  ;;  %v10233_v45 = vpop.f32.mrf.mxu0  ;;  %10460 = vmatmul.mubr.msk.bf16.gmra.mxu0 %vm628_vm2, %v10799_v32  ;;  %v10807_v24 = vld [vmem:[%s10919_s26 + $0x178] sm:$0xff]  }
 0x21d   : > { %4631 = vst.msk [vmem:[#allocation2 + $0x2f8] sm:$0xff] %vm1373_vm3, %v4503_v33  ;;  %v4501_v40 = vadd.f32 %v4268_v11, %v3176_v36  ;;  %3052 = vst.msk [vmem:[#allocation2 + $0x308] sm:$0xff] %vm1373_vm3, %v2924_v34  ;;  %v2929_v41 = vadd.f32 %v10103_v38, %v1604_v37  ;;  %10333 = vmatprep.mubr.msk.bf16.mxu1 %vm628_vm2, %v10800_v27  ;;  %10463 = vmatprep.mubr.msk.bf16.mxu0 %vm628_vm2, %v10802_v35  ;;  %v10810_v27 = vld [vmem:[%s10919_s26 + $0x180] sm:$0xff]  }
 0x21e   : > { %v3181_v42 = vld [vmem:[#allocation2 + $0x310] sm:$0xff]  ;;  %v2716_v44 = vpop.f32.mrf.mxu1  ;;  %v4297_v51 = vpop.f32.mrf.mxu0  ;;  %v1610_v35 = vld [vmem:[#allocation2 + $0x360] sm:$0xff] }
 0x21f   : > { %4629 = vst.msk [vmem:[#allocation2 + $0x2e8] sm:$0xff] %vm1373_vm3, %v4501_v40  ;;  %v4506_v46 = vadd.f32 %v10229_v18, %v3181_v42  ;;  %3057 = vst.msk [vmem:[#allocation2 + $0x330] sm:$0xff] %vm1373_vm3, %v2929_v41  ;;  %v2927_v47 = vadd.f32 %v2716_v44, %v1602_v43  ;;  %v1613_v41 = vld [vmem:[#allocation2 + $0x378] sm:$0xff] }
 0x220   : > { %v3179_v48 = vld [vmem:[#allocation2 + $0x300] sm:$0xff]  ;;  %v10104_v50 = vpop.f32.mrf.mxu1  ;;  %v10234_v59 = vpop.f32.mrf.mxu0  ;;  %v10809_v44 = vld [vmem:[%s10919_s26 + $0x178] sm:$0xff]  }
 0x221   : > { %4634 = vst.msk [vmem:[#allocation2 + $0x310] sm:$0xff] %vm1373_vm3, %v4506_v46  ;;  %v4504_v53 = vadd.f32 %v4281_v12, %v3179_v48  ;;  %3055 = vst.msk [vmem:[#allocation2 + $0x320] sm:$0xff] %vm1373_vm3, %v2927_v47  ;;  %v2930_v54 = vadd.f32 %v10104_v50, %v1605_v49  ;;  %v10812_v47 = vld [vmem:[%s10919_s26 + $0x180] sm:$0xff]   ;;  %v1611_v49 = vld [vmem:[#allocation2 + $0x368] sm:$0xff] }
 0x222   : > { %v3182_v56 = vld [vmem:[#allocation2 + $0x318] sm:$0xff]  ;;  %v2719_v58 = vpop.f32.mrf.mxu1  ;;  %v4300_v3 = vpop.f32.mrf.mxu0 }
 0x223   : > { %4632 = vst.msk [vmem:[#allocation2 + $0x300] sm:$0xff] %vm1373_vm3, %v4504_v53  ;;  %v4507_v61 = vadd.f32 %v10230_v31, %v3182_v56  ;;  %3058 = vst.msk [vmem:[#allocation2 + $0x338] sm:$0xff] %vm1373_vm3, %v2930_v54  ;;  %v2928_v62 = vadd.f32 %v2719_v58, %v1603_v57  ;;  %v1616_v57 = vld [vmem:[#allocation2 + $0x390] sm:$0xff] }
 0x224   : > { %v3180_v0 = vld [vmem:[#allocation2 + $0x308] sm:$0xff]  ;;  %v10107_v2 = vpop.f32.mrf.mxu1  ;;  %10334 = vmatmul.mubr.msk.bf16.gmra.mxu1 %vm628_vm2, %v10801_v52  ;;  %v10237_v9 = vpop.f32.mrf.mxu0  ;;  %10464 = vmatmul.mubr.msk.bf16.gmra.mxu0 %vm628_vm2, %v10803_v60 }
 0x225   : > { %4635 = vst.msk [vmem:[#allocation2 + $0x318] sm:$0xff] %vm1373_vm3, %v4507_v61  ;;  %v4505_v4 = vadd.f32 %v4284_v39, %v3180_v0  ;;  %3056 = vst.msk [vmem:[#allocation2 + $0x328] sm:$0xff] %vm1373_vm3, %v2928_v62  ;;  %v2933_v5 = vadd.f32 %v10107_v2, %v1608_v1  ;;  %10337 = vmatprep.mubr.msk.bf16.mxu1 %vm628_vm2, %v10804_v55  ;;  %10467 = vmatprep.mubr.msk.bf16.mxu0 %vm628_vm2, %v10806_v63  ;;  %v10811_v52 = vld [vmem:[%s10919_s26 + $0x188] sm:$0xff]   ;;  %v10814_v55 = vld [vmem:[%s10919_s26 + $0x190] sm:$0xff]  }
 0x226   : > { %v3185_v6 = vld [vmem:[#allocation2 + $0x330] sm:$0xff]  ;;  %v2732_v8 = vpop.f32.mrf.mxu1  ;;  %v4313_v16 = vpop.f32.mrf.mxu0  ;;  %v1614_v63 = vld [vmem:[#allocation2 + $0x380] sm:$0xff] }
 0x227   : > { %4633 = vst.msk [vmem:[#allocation2 + $0x308] sm:$0xff] %vm1373_vm3, %v4505_v4  ;;  %v4510_v10 = vadd.f32 %v10233_v45, %v3185_v6  ;;  %3061 = vst.msk [vmem:[#allocation2 + $0x350] sm:$0xff] %vm1373_vm3, %v2933_v5  ;;  %v2931_v11 = vadd.f32 %v2732_v8, %v1606_v7  ;;  %v1617_v5 = vld [vmem:[#allocation2 + $0x398] sm:$0xff]  ;;  %v10813_v8 = vld [vmem:[%s10919_s26 + $0x188] sm:$0xff]  }
 0x228   : > { %v3183_v13 = vld [vmem:[#allocation2 + $0x320] sm:$0xff]  ;;  %v10108_v15 = vpop.f32.mrf.mxu1  ;;  %v10238_v12 = vpop.f32.mrf.mxu0 }
 0x229   : > { %4638 = vst.msk [vmem:[#allocation2 + $0x330] sm:$0xff] %vm1373_vm3, %v4510_v10  ;;  %v4508_v18 = vadd.f32 %v4297_v51, %v3183_v13  ;;  %3059 = vst.msk [vmem:[#allocation2 + $0x340] sm:$0xff] %vm1373_vm3, %v2931_v11  ;;  %v2934_v19 = vadd.f32 %v10108_v15, %v1609_v14  ;;  %v10816_v11 = vld [vmem:[%s10919_s26 + $0x190] sm:$0xff]   ;;  %v1615_v14 = vld [vmem:[#allocation2 + $0x388] sm:$0xff] }
 0x22a   : > { %v3186_v21 = vld [vmem:[#allocation2 + $0x338] sm:$0xff]  ;;  %v2735_v23 = vpop.f32.mrf.mxu1  ;;  %v4316_v31 = vpop.f32.mrf.mxu0 }
 0x22b   : > { %4636 = vst.msk [vmem:[#allocation2 + $0x320] sm:$0xff] %vm1373_vm3, %v4508_v18  ;;  %v4511_v25 = vadd.f32 %v10234_v59, %v3186_v21  ;;  %3062 = vst.msk [vmem:[#allocation2 + $0x358] sm:$0xff] %vm1373_vm3, %v2934_v19  ;;  %v2932_v26 = vadd.f32 %v2735_v23, %v1607_v22  ;;  %v1620_v22 = vld [vmem:[#allocation2 + $0x3b0] sm:$0xff] }
 0x22c   : > { %v3184_v28 = vld [vmem:[#allocation2 + $0x328] sm:$0xff]  ;;  %v10111_v30 = vpop.f32.mrf.mxu1  ;;  %10338 = vmatmul.mubr.msk.bf16.gmra.mxu1 %vm628_vm2, %v10805_v17  ;;  %v10241_v37 = vpop.f32.mrf.mxu0  ;;  %10468 = vmatmul.mubr.msk.bf16.gmra.mxu0 %vm628_vm2, %v10807_v24  ;;  %v10815_v17 = vld [vmem:[%s10919_s26 + $0x198] sm:$0xff]  }
 0x22d   : > { %4639 = vst.msk [vmem:[#allocation2 + $0x338] sm:$0xff] %vm1373_vm3, %v4511_v25  ;;  %v4509_v32 = vadd.f32 %v4300_v3, %v3184_v28  ;;  %3060 = vst.msk [vmem:[#allocation2 + $0x348] sm:$0xff] %vm1373_vm3, %v2932_v26  ;;  %v2937_v33 = vadd.f32 %v10111_v30, %v1612_v29  ;;  %10341 = vmatprep.mubr.msk.bf16.mxu1 %vm628_vm2, %v10808_v20  ;;  %10471 = vmatprep.mubr.msk.bf16.mxu0 %vm628_vm2, %v10810_v27  ;;  %v10818_v20 = vld [vmem:[%s10919_s26 + $0x1a0] sm:$0xff]  }
 0x22e   : > { %v3189_v34 = vld [vmem:[#allocation2 + $0x350] sm:$0xff]  ;;  %v2748_v36 = vpop.f32.mrf.mxu1  ;;  %v4329_v43 = vpop.f32.mrf.mxu0  ;;  %v1618_v27 = vld [vmem:[#allocation2 + $0x3a0] sm:$0xff] }
 0x22f   : > { %4637 = vst.msk [vmem:[#allocation2 + $0x328] sm:$0xff] %vm1373_vm3, %v4509_v32  ;;  %v4514_v38 = vadd.f32 %v10237_v9, %v3189_v34  ;;  %3065 = vst.msk [vmem:[#allocation2 + $0x370] sm:$0xff] %vm1373_vm3, %v2937_v33  ;;  %v2935_v39 = vadd.f32 %v2748_v36, %v1610_v35  ;;  %v1621_v33 = vld [vmem:[#allocation2 + $0x3b8] sm:$0xff] }
 0x230   : > { %v3187_v40 = vld [vmem:[#allocation2 + $0x340] sm:$0xff]  ;;  %v10112_v42 = vpop.f32.mrf.mxu1  ;;  %v10242_v51 = vpop.f32.mrf.mxu0  ;;  %v10817_v36 = vld [vmem:[%s10919_s26 + $0x198] sm:$0xff]  }
 0x231   : > { %4642 = vst.msk [vmem:[#allocation2 + $0x350] sm:$0xff] %vm1373_vm3, %v4514_v38  ;;  %v4512_v45 = vadd.f32 %v4313_v16, %v3187_v40  ;;  %3063 = vst.msk [vmem:[#allocation2 + $0x360] sm:$0xff] %vm1373_vm3, %v2935_v39  ;;  %v2938_v46 = vadd.f32 %v10112_v42, %v1613_v41  ;;  %v10820_v39 = vld [vmem:[%s10919_s26 + $0x1a0] sm:$0xff]   ;;  %v1619_v41 = vld [vmem:[#allocation2 + $0x3a8] sm:$0xff] }
 0x232   : > { %v3190_v48 = vld [vmem:[#allocation2 + $0x358] sm:$0xff]  ;;  %v2751_v50 = vpop.f32.mrf.mxu1  ;;  %v4332_v59 = vpop.f32.mrf.mxu0 }
 0x233   : > { %4640 = vst.msk [vmem:[#allocation2 + $0x340] sm:$0xff] %vm1373_vm3, %v4512_v45  ;;  %v4515_v53 = vadd.f32 %v10238_v12, %v3190_v48  ;;  %3066 = vst.msk [vmem:[#allocation2 + $0x378] sm:$0xff] %vm1373_vm3, %v2938_v46  ;;  %v2936_v54 = vadd.f32 %v2751_v50, %v1611_v49  ;;  %v1624_v49 = vld [vmem:[#allocation2 + $0x3d0] sm:$0xff] }
 0x234   : > { %v3188_v56 = vld [vmem:[#allocation2 + $0x348] sm:$0xff]  ;;  %v10115_v58 = vpop.f32.mrf.mxu1  ;;  %10342 = vmatmul.mubr.msk.bf16.gmra.mxu1 %vm628_vm2, %v10809_v44  ;;  %v10245_v1 = vpop.f32.mrf.mxu0  ;;  %10472 = vmatmul.mubr.msk.bf16.gmra.mxu0 %vm628_vm2, %v10811_v52 }
 0x235   : > { %4643 = vst.msk [vmem:[#allocation2 + $0x358] sm:$0xff] %vm1373_vm3, %v4515_v53  ;;  %v4513_v60 = vadd.f32 %v4316_v31, %v3188_v56  ;;  %3064 = vst.msk [vmem:[#allocation2 + $0x368] sm:$0xff] %vm1373_vm3, %v2936_v54  ;;  %v2941_v61 = vadd.f32 %v10115_v58, %v1616_v57  ;;  %10345 = vmatprep.mubr.msk.bf16.mxu1 %vm628_vm2, %v10812_v47  ;;  %10475 = vmatprep.mubr.msk.bf16.mxu0 %vm628_vm2, %v10814_v55  ;;  %v10819_v44 = vld [vmem:[%s10919_s26 + $0x1a8] sm:$0xff]   ;;  %v10822_v47 = vld [vmem:[%s10919_s26 + $0x1b0] sm:$0xff]  }
 0x236   : > { %v3193_v62 = vld [vmem:[#allocation2 + $0x370] sm:$0xff]  ;;  %v2764_v0 = vpop.f32.mrf.mxu1  ;;  %v4345_v7 = vpop.f32.mrf.mxu0  ;;  %v1622_v55 = vld [vmem:[#allocation2 + $0x3c0] sm:$0xff] }
 0x237   : > { %4641 = vst.msk [vmem:[#allocation2 + $0x348] sm:$0xff] %vm1373_vm3, %v4513_v60  ;;  %v4518_v2 = vadd.f32 %v10241_v37, %v3193_v62  ;;  %3069 = vst.msk [vmem:[#allocation2 + $0x390] sm:$0xff] %vm1373_vm3, %v2941_v61  ;;  %v2939_v3 = vadd.f32 %v2764_v0, %v1614_v63  ;;  %v1625_v61 = vld [vmem:[#allocation2 + $0x3d8] sm:$0xff]  ;;  %v10821_v0 = vld [vmem:[%s10919_s26 + $0x1a8] sm:$0xff]  }
 0x238   : > { %v3191_v4 = vld [vmem:[#allocation2 + $0x360] sm:$0xff]  ;;  %v10116_v6 = vpop.f32.mrf.mxu1  ;;  %v10246_v16 = vpop.f32.mrf.mxu0 }
 0x239   : > { %4646 = vst.msk [vmem:[#allocation2 + $0x370] sm:$0xff] %vm1373_vm3, %v4518_v2  ;;  %v4516_v9 = vadd.f32 %v4329_v43, %v3191_v4  ;;  %3067 = vst.msk [vmem:[#allocation2 + $0x380] sm:$0xff] %vm1373_vm3, %v2939_v3  ;;  %v2942_v10 = vadd.f32 %v10116_v6, %v1617_v5  ;;  %v10824_v3 = vld [vmem:[%s10919_s26 + $0x1b0] sm:$0xff]   ;;  %v1623_v5 = vld [vmem:[#allocation2 + $0x3c8] sm:$0xff] }
 0x23a   : > { %v3194_v13 = vld [vmem:[#allocation2 + $0x378] sm:$0xff]  ;;  %v2767_v15 = vpop.f32.mrf.mxu1  ;;  %v4348_v12 = vpop.f32.mrf.mxu0 }
 0x23b   : > { %4644 = vst.msk [vmem:[#allocation2 + $0x360] sm:$0xff] %vm1373_vm3, %v4516_v9  ;;  %v4519_v18 = vadd.f32 %v10242_v51, %v3194_v13  ;;  %3070 = vst.msk [vmem:[#allocation2 + $0x398] sm:$0xff] %vm1373_vm3, %v2942_v10  ;;  %v2940_v19 = vadd.f32 %v2767_v15, %v1615_v14  ;;  %v1628_v14 = vld [vmem:[#allocation2 + $0x3f0] sm:$0xff] }
 0x23c   : > { %v3192_v21 = vld [vmem:[#allocation2 + $0x368] sm:$0xff]  ;;  %v10119_v23 = vpop.f32.mrf.mxu1  ;;  %10346 = vmatmul.mubr.msk.bf16.gmra.mxu1 %vm628_vm2, %v10813_v8  ;;  %v10249_v29 = vpop.f32.mrf.mxu0  ;;  %10476 = vmatmul.mubr.msk.bf16.gmra.mxu0 %vm628_vm2, %v10815_v17  ;;  %v10823_v8 = vld [vmem:[%s10919_s26 + $0x1b8] sm:$0xff]  }
 0x23d   : > { %4647 = vst.msk [vmem:[#allocation2 + $0x378] sm:$0xff] %vm1373_vm3, %v4519_v18  ;;  %v4517_v24 = vadd.f32 %v4332_v59, %v3192_v21  ;;  %3068 = vst.msk [vmem:[#allocation2 + $0x388] sm:$0xff] %vm1373_vm3, %v2940_v19  ;;  %v2945_v25 = vadd.f32 %v10119_v23, %v1620_v22  ;;  %10349 = vmatprep.mubr.msk.bf16.mxu1 %vm628_vm2, %v10816_v11  ;;  %10479 = vmatprep.mubr.msk.bf16.mxu0 %vm628_vm2, %v10818_v20  ;;  %v10826_v11 = vld [vmem:[%s10919_s26 + $0x1c0] sm:$0xff]  }
 0x23e   : > { %v3197_v26 = vld [vmem:[#allocation2 + $0x390] sm:$0xff]  ;;  %v2780_v28 = vpop.f32.mrf.mxu1  ;;  %v4361_v35 = vpop.f32.mrf.mxu0  ;;  %v1626_v20 = vld [vmem:[#allocation2 + $0x3e0] sm:$0xff] }
 0x23f   : > { %4645 = vst.msk [vmem:[#allocation2 + $0x368] sm:$0xff] %vm1373_vm3, %v4517_v24  ;;  %v4522_v30 = vadd.f32 %v10245_v1, %v3197_v26  ;;  %3073 = vst.msk [vmem:[#allocation2 + $0x3b0] sm:$0xff] %vm1373_vm3, %v2945_v25  ;;  %v2943_v31 = vadd.f32 %v2780_v28, %v1618_v27  ;;  %v1629_v25 = vld [vmem:[#allocation2 + $0x3f8] sm:$0xff] }
 0x240   : > { %v3195_v32 = vld [vmem:[#allocation2 + $0x380] sm:$0xff]  ;;  %v10120_v34 = vpop.f32.mrf.mxu1  ;;  %v10250_v43 = vpop.f32.mrf.mxu0  ;;  %v10825_v28 = vld [vmem:[%s10919_s26 + $0x1b8] sm:$0xff]  }
 0x241   : > { %4650 = vst.msk [vmem:[#allocation2 + $0x390] sm:$0xff] %vm1373_vm3, %v4522_v30  ;;  %v4520_v37 = vadd.f32 %v4345_v7, %v3195_v32  ;;  %3071 = vst.msk [vmem:[#allocation2 + $0x3a0] sm:$0xff] %vm1373_vm3, %v2943_v31  ;;  %v2946_v38 = vadd.f32 %v10120_v34, %v1621_v33  ;;  %v10828_v31 = vld [vmem:[%s10919_s26 + $0x1c0] sm:$0xff]   ;;  %v1627_v33 = vld [vmem:[#allocation2 + $0x3e8] sm:$0xff] }
 0x242   : > { %v3198_v40 = vld [vmem:[#allocation2 + $0x398] sm:$0xff]  ;;  %v2783_v42 = vpop.f32.mrf.mxu1  ;;  %v4364_v51 = vpop.f32.mrf.mxu0 }
 0x243   : > { %4648 = vst.msk [vmem:[#allocation2 + $0x380] sm:$0xff] %vm1373_vm3, %v4520_v37  ;;  %v4523_v45 = vadd.f32 %v10246_v16, %v3198_v40  ;;  %3074 = vst.msk [vmem:[#allocation2 + $0x3b8] sm:$0xff] %vm1373_vm3, %v2946_v38  ;;  %v2944_v46 = vadd.f32 %v2783_v42, %v1619_v41  ;;  %v4666_v41 = vld [vmem:[#allocation2 + $0x10] sm:$0xff] }
 0x244   : > { %v3196_v48 = vld [vmem:[#allocation2 + $0x388] sm:$0xff]  ;;  %v10123_v50 = vpop.f32.mrf.mxu1  ;;  %10350 = vmatmul.mubr.msk.bf16.gmra.mxu1 %vm628_vm2, %v10817_v36  ;;  %v10253_v57 = vpop.f32.mrf.mxu0  ;;  %10480 = vmatmul.mubr.msk.bf16.gmra.mxu0 %vm628_vm2, %v10819_v44 }
 0x245   : > { %4651 = vst.msk [vmem:[#allocation2 + $0x398] sm:$0xff] %vm1373_vm3, %v4523_v45  ;;  %v4521_v52 = vadd.f32 %v4348_v12, %v3196_v48  ;;  %3072 = vst.msk [vmem:[#allocation2 + $0x3a8] sm:$0xff] %vm1373_vm3, %v2944_v46  ;;  %v2949_v53 = vadd.f32 %v10123_v50, %v1624_v49  ;;  %10353 = vmatprep.mubr.msk.bf16.mxu1 %vm628_vm2, %v10820_v39  ;;  %10483 = vmatprep.mubr.msk.bf16.mxu0 %vm628_vm2, %v10822_v47  ;;  %v10827_v36 = vld [vmem:[%s10919_s26 + $0x1c8] sm:$0xff]   ;;  %v10830_v39 = vld [vmem:[%s10919_s26 + $0x1d0] sm:$0xff]  }
 0x246   : > { %v3201_v54 = vld [vmem:[#allocation2 + $0x3b0] sm:$0xff]  ;;  %v2796_v56 = vpop.f32.mrf.mxu1  ;;  %v4377_v63 = vpop.f32.mrf.mxu0  ;;  %v4664_v47 = vld [vmem:[#allocation2] sm:$0xff] }
 0x247   : > { %4649 = vst.msk [vmem:[#allocation2 + $0x388] sm:$0xff] %vm1373_vm3, %v4521_v52  ;;  %v4526_v58 = vadd.f32 %v10249_v29, %v3201_v54  ;;  %3077 = vst.msk [vmem:[#allocation2 + $0x3d0] sm:$0xff] %vm1373_vm3, %v2949_v53  ;;  %v2947_v59 = vadd.f32 %v2796_v56, %v1622_v55  ;;  %v4667_v53 = vld [vmem:[#allocation2 + $0x18] sm:$0xff]  ;;  %v10829_v56 = vld [vmem:[%s10919_s26 + $0x1c8] sm:$0xff]  }
 0x248   : > { %v3199_v60 = vld [vmem:[#allocation2 + $0x3a0] sm:$0xff]  ;;  %v10124_v62 = vpop.f32.mrf.mxu1  ;;  %v10254_v7 = vpop.f32.mrf.mxu0 }
 0x249   : > { %4654 = vst.msk [vmem:[#allocation2 + $0x3b0] sm:$0xff] %vm1373_vm3, %v4526_v58  ;;  %v4524_v1 = vadd.f32 %v4361_v35, %v3199_v60  ;;  %3075 = vst.msk [vmem:[#allocation2 + $0x3c0] sm:$0xff] %vm1373_vm3, %v2947_v59  ;;  %v2950_v2 = vadd.f32 %v10124_v62, %v1625_v61  ;;  %v10832_v59 = vld [vmem:[%s10919_s26 + $0x1d0] sm:$0xff]   ;;  %v4665_v61 = vld [vmem:[#allocation2 + $0x8] sm:$0xff] }
 0x24a   : > { %v3202_v4 = vld [vmem:[#allocation2 + $0x3b8] sm:$0xff]  ;;  %v2799_v6 = vpop.f32.mrf.mxu1  ;;  %v4380_v16 = vpop.f32.mrf.mxu0 }
 0x24b   : > { %4652 = vst.msk [vmem:[#allocation2 + $0x3a0] sm:$0xff] %vm1373_vm3, %v4524_v1  ;;  %v4527_v9 = vadd.f32 %v10250_v43, %v3202_v4  ;;  %3078 = vst.msk [vmem:[#allocation2 + $0x3d8] sm:$0xff] %vm1373_vm3, %v2950_v2  ;;  %v2948_v10 = vadd.f32 %v2799_v6, %v1623_v5  ;;  %v4670_v5 = vld [vmem:[#allocation2 + $0x30] sm:$0xff] }
 0x24c   : > { %v3200_v13 = vld [vmem:[#allocation2 + $0x3a8] sm:$0xff]  ;;  %v10127_v15 = vpop.f32.mrf.mxu1  ;;  %10354 = vmatmul.mubr.msk.bf16.gmra.mxu1 %vm628_vm2, %v10821_v0  ;;  %v10257_v22 = vpop.f32.mrf.mxu0  ;;  %10484 = vmatmul.mubr.msk.bf16.gmra.mxu0 %vm628_vm2, %v10823_v8  ;;  %v10831_v0 = vld [vmem:[%s10919_s26 + $0x1d8] sm:$0xff]  }
 0x24d   : > { %4655 = vst.msk [vmem:[#allocation2 + $0x3b8] sm:$0xff] %vm1373_vm3, %v4527_v9  ;;  %v4525_v17 = vadd.f32 %v4364_v51, %v3200_v13  ;;  %3076 = vst.msk [vmem:[#allocation2 + $0x3c8] sm:$0xff] %vm1373_vm3, %v2948_v10  ;;  %v2953_v18 = vadd.f32 %v10127_v15, %v1628_v14  ;;  %10357 = vmatprep.mubr.msk.bf16.mxu1 %vm628_vm2, %v10824_v3  ;;  %10487 = vmatprep.mubr.msk.bf16.mxu0 %vm628_vm2, %v10826_v11  ;;  %v10834_v3 = vld [vmem:[%s10919_s26 + $0x1e0] sm:$0xff]  }
 0x24e   : > { %v3205_v19 = vld [vmem:[#allocation2 + $0x3d0] sm:$0xff]  ;;  %v2812_v21 = vpop.f32.mrf.mxu1  ;;  %v4393_v27 = vpop.f32.mrf.mxu0  ;;  %v4668_v11 = vld [vmem:[#allocation2 + $0x20] sm:$0xff] }
 0x24f   : > { %4653 = vst.msk [vmem:[#allocation2 + $0x3a8] sm:$0xff] %vm1373_vm3, %v4525_v17  ;;  %v4530_v23 = vadd.f32 %v10253_v57, %v3205_v19  ;;  %3081 = vst.msk [vmem:[#allocation2 + $0x3f0] sm:$0xff] %vm1373_vm3, %v2953_v18  ;;  %v2951_v12 = vadd.f32 %v2812_v21, %v1626_v20  ;;  %v4671_v18 = vld [vmem:[#allocation2 + $0x38] sm:$0xff] }
 0x250   : > { %v3203_v24 = vld [vmem:[#allocation2 + $0x3c0] sm:$0xff]  ;;  %v10128_v26 = vpop.f32.mrf.mxu1  ;;  %v10258_v35 = vpop.f32.mrf.mxu0  ;;  %v10833_v21 = vld [vmem:[%s10919_s26 + $0x1d8] sm:$0xff]  }
 0x251   : > { %4658 = vst.msk [vmem:[#allocation2 + $0x3d0] sm:$0xff] %vm1373_vm3, %v4530_v23  ;;  %v4528_v29 = vadd.f32 %v4377_v63, %v3203_v24  ;;  %3079 = vst.msk [vmem:[#allocation2 + $0x3e0] sm:$0xff] %vm1373_vm3, %v2951_v12  ;;  %v2954_v30 = vadd.f32 %v10128_v26, %v1629_v25  ;;  %v10836_v12 = vld [vmem:[%s10919_s26 + $0x1e0] sm:$0xff]   ;;  %v4669_v25 = vld [vmem:[#allocation2 + $0x28] sm:$0xff] }
 0x252   : > { %v3206_v32 = vld [vmem:[#allocation2 + $0x3d8] sm:$0xff]  ;;  %v2815_v34 = vpop.f32.mrf.mxu1  ;;  %v4396_v43 = vpop.f32.mrf.mxu0 }
 0x253   : > { %4656 = vst.msk [vmem:[#allocation2 + $0x3c0] sm:$0xff] %vm1373_vm3, %v4528_v29  ;;  %v4531_v37 = vadd.f32 %v10254_v7, %v3206_v32  ;;  %3082 = vst.msk [vmem:[#allocation2 + $0x3f8] sm:$0xff] %vm1373_vm3, %v2954_v30  ;;  %v2952_v38 = vadd.f32 %v2815_v34, %v1627_v33  ;;  %v4674_v33 = vld [vmem:[#allocation2 + $0x50] sm:$0xff] }
 0x254   : > { %v3204_v40 = vld [vmem:[#allocation2 + $0x3c8] sm:$0xff]  ;;  %v10263_v42 = vpop.f32.mrf.mxu1  ;;  %10358 = vmatmul.mubr.msk.bf16.gmra.mxu1 %vm628_vm2, %v10825_v28  ;;  %v10393_v49 = vpop.f32.mrf.mxu0  ;;  %10488 = vmatmul.mubr.msk.bf16.gmra.mxu0 %vm628_vm2, %v10827_v36 }
 0x255   : > { %4659 = vst.msk [vmem:[#allocation2 + $0x3d8] sm:$0xff] %vm1373_vm3, %v4531_v37  ;;  %v4529_v44 = vadd.f32 %v4380_v16, %v3204_v40  ;;  %3080 = vst.msk [vmem:[#allocation2 + $0x3e8] sm:$0xff] %vm1373_vm3, %v2952_v38  ;;  %v5991_v45 = vadd.f32 %v10263_v42, %v4666_v41  ;;  %10361 = vmatprep.mubr.msk.bf16.mxu1 %vm628_vm2, %v10828_v31  ;;  %10491 = vmatprep.mubr.msk.bf16.mxu0 %vm628_vm2, %v10830_v39  ;;  %v10835_v28 = vld [vmem:[%s10919_s26 + $0x1e8] sm:$0xff]   ;;  %v10838_v31 = vld [vmem:[%s10919_s26 + $0x1f0] sm:$0xff]  }
 0x256   : > { %v3209_v46 = vld [vmem:[#allocation2 + $0x3f0] sm:$0xff]  ;;  %v5478_v48 = vpop.f32.mrf.mxu1  ;;  %v7059_v55 = vpop.f32.mrf.mxu0  ;;  %v4672_v39 = vld [vmem:[#allocation2 + $0x40] sm:$0xff] }
 0x257   : > { %4657 = vst.msk [vmem:[#allocation2 + $0x3c8] sm:$0xff] %vm1373_vm3, %v4529_v44  ;;  %v4534_v50 = vadd.f32 %v10257_v22, %v3209_v46  ;;  %6119 = vst.msk [vmem:[#allocation2 + $0x10] sm:$0xff] %vm1373_vm3, %v5991_v45  ;;  %v5989_v51 = vadd.f32 %v5478_v48, %v4664_v47  ;;  %v4675_v45 = vld [vmem:[#allocation2 + $0x58] sm:$0xff]  ;;  %v10837_v48 = vld [vmem:[%s10919_s26 + $0x1e8] sm:$0xff]  }
 0x258   : > { %v3207_v52 = vld [vmem:[#allocation2 + $0x3e0] sm:$0xff]  ;;  %v10264_v54 = vpop.f32.mrf.mxu1  ;;  %v10394_v63 = vpop.f32.mrf.mxu0 }
 0x259   : > { %4662 = vst.msk [vmem:[#allocation2 + $0x3f0] sm:$0xff] %vm1373_vm3, %v4534_v50  ;;  %v4532_v57 = vadd.f32 %v4393_v27, %v3207_v52  ;;  %6117 = vst.msk [vmem:[#allocation2] sm:$0xff] %vm1373_vm3, %v5989_v51  ;;  %v5992_v58 = vadd.f32 %v10264_v54, %v4667_v53  ;;  %v10840_v51 = vld [vmem:[%s10919_s26 + $0x1f0] sm:$0xff]   ;;  %v4673_v53 = vld [vmem:[#allocation2 + $0x48] sm:$0xff] }
 0x25a   : > { %v3210_v60 = vld [vmem:[#allocation2 + $0x3f8] sm:$0xff]  ;;  %v5481_v62 = vpop.f32.mrf.mxu1  ;;  %v7062_v7 = vpop.f32.mrf.mxu0 }
 0x25b   : > { %4660 = vst.msk [vmem:[#allocation2 + $0x3e0] sm:$0xff] %vm1373_vm3, %v4532_v57  ;;  %v4535_v1 = vadd.f32 %v10258_v35, %v3210_v60  ;;  %6120 = vst.msk [vmem:[#allocation2 + $0x18] sm:$0xff] %vm1373_vm3, %v5992_v58  ;;  %v5990_v2 = vadd.f32 %v5481_v62, %v4665_v61  ;;  %v4678_v61 = vld [vmem:[#allocation2 + $0x70] sm:$0xff] }
 0x25c   : > { %v3208_v4 = vld [vmem:[#allocation2 + $0x3e8] sm:$0xff]  ;;  %v10267_v6 = vpop.f32.mrf.mxu1  ;;  %10362 = vmatmul.mubr.msk.bf16.gmra.mxu1 %vm628_vm2, %v10829_v56  ;;  %v10397_v14 = vpop.f32.mrf.mxu0  ;;  %10492 = vmatmul.mubr.msk.bf16.gmra.mxu0 %vm628_vm2, %v10831_v0  ;;  %v10839_v56 = vld [vmem:[%s10919_s26 + $0x1f8] sm:$0xff]  }
 0x25d   : > { %4663 = vst.msk [vmem:[#allocation2 + $0x3f8] sm:$0xff] %vm1373_vm3, %v4535_v1  ;;  %v4533_v8 = vadd.f32 %v4396_v43, %v3208_v4  ;;  %6118 = vst.msk [vmem:[#allocation2 + $0x8] sm:$0xff] %vm1373_vm3, %v5990_v2  ;;  %v5995_v9 = vadd.f32 %v10267_v6, %v4670_v5  ;;  %10365 = vmatprep.mubr.msk.bf16.mxu1 %vm628_vm2, %v10832_v59  ;;  %10495 = vmatprep.mubr.msk.bf16.mxu0 %vm628_vm2, %v10834_v3  ;;  %v10842_v59 = vld [vmem:[%s10919_s26 + $0x200] sm:$0xff]  }
 0x25e   : > { %v6247_v10 = vld [vmem:[#allocation2 + $0x10] sm:$0xff]  ;;  %v5494_v13 = vpop.f32.mrf.mxu1  ;;  %v7075_v20 = vpop.f32.mrf.mxu0  ;;  %v4676_v3 = vld [vmem:[#allocation2 + $0x60] sm:$0xff] }
 0x25f   : > { %4661 = vst.msk [vmem:[#allocation2 + $0x3e8] sm:$0xff] %vm1373_vm3, %v4533_v8  ;;  %v7572_v15 = vadd.f32 %v10393_v49, %v6247_v10  ;;  %6123 = vst.msk [vmem:[#allocation2 + $0x30] sm:$0xff] %vm1373_vm3, %v5995_v9  ;;  %v5993_v16 = vadd.f32 %v5494_v13, %v4668_v11  ;;  %v4679_v8 = vld [vmem:[#allocation2 + $0x78] sm:$0xff] }
 0x260   : > { %v6245_v17 = vld [vmem:[#allocation2] sm:$0xff]  ;;  %v10268_v19 = vpop.f32.mrf.mxu1  ;;  %v10398_v27 = vpop.f32.mrf.mxu0  ;;  %v10841_v9 = vld [vmem:[%s10919_s26 + $0x1f8] sm:$0xff]  }
 0x261   : > { %7700 = vst.msk [vmem:[#allocation2 + $0x10] sm:$0xff] %vm1373_vm3, %v7572_v15  ;;  %v7570_v22 = vadd.f32 %v7059_v55, %v6245_v17  ;;  %6121 = vst.msk [vmem:[#allocation2 + $0x20] sm:$0xff] %vm1373_vm3, %v5993_v16  ;;  %v5996_v23 = vadd.f32 %v10268_v19, %v4671_v18  ;;  %v4677_v19 = vld [vmem:[#allocation2 + $0x68] sm:$0xff] }
 0x262   : > { %v6248_v24 = vld [vmem:[#allocation2 + $0x18] sm:$0xff]  ;;  %v5497_v26 = vpop.f32.mrf.mxu1  ;;  %v7078_v35 = vpop.f32.mrf.mxu0 }
 0x263   : > { %7698 = vst.msk [vmem:[#allocation2] sm:$0xff] %vm1373_vm3, %v7570_v22  ;;  %v7573_v29 = vadd.f32 %v10394_v63, %v6248_v24  ;;  %6124 = vst.msk [vmem:[#allocation2 + $0x38] sm:$0xff] %vm1373_vm3, %v5996_v23  ;;  %v5994_v30 = vadd.f32 %v5497_v26, %v4669_v25 }
 0x264   : > { %v6246_v32 = vld [vmem:[#allocation2 + $0x8] sm:$0xff]  ;;  %v10271_v34 = vpop.f32.mrf.mxu1  ;;  %10366 = vmatmul.mubr.msk.bf16.gmra.mxu1 %vm628_vm2, %v10833_v21  ;;  %v10401_v41 = vpop.f32.mrf.mxu0  ;;  %10496 = vmatmul.mubr.msk.bf16.gmra.mxu0 %vm628_vm2, %v10835_v28  ;;  %v10844_v21 = vld [vmem:[%s10919_s26 + $0x200] sm:$0xff]  }
 0x265   : > { %7701 = vst.msk [vmem:[#allocation2 + $0x18] sm:$0xff] %vm1373_vm3, %v7573_v29  ;;  %v7571_v36 = vadd.f32 %v7062_v7, %v6246_v32  ;;  %6122 = vst.msk [vmem:[#allocation2 + $0x28] sm:$0xff] %vm1373_vm3, %v5994_v30  ;;  %v5999_v37 = vadd.f32 %v10271_v34, %v4674_v33  ;;  %10369 = vmatprep.mubr.msk.bf16.mxu1 %vm628_vm2, %v10836_v12  ;;  %10499 = vmatprep.mubr.msk.bf16.mxu0 %vm628_vm2, %v10838_v31  ;;  %v4682_v29 = vld [vmem:[#allocation2 + $0x90] sm:$0xff] }
 0x266   : > { %v6251_v38 = vld [vmem:[#allocation2 + $0x30] sm:$0xff]  ;;  %v5510_v40 = vpop.f32.mrf.mxu1  ;;  %v7091_v47 = vpop.f32.mrf.mxu0 }
 0x267   : > { %7699 = vst.msk [vmem:[#allocation2 + $0x8] sm:$0xff] %vm1373_vm3, %v7571_v36  ;;  %v7576_v42 = vadd.f32 %v10397_v14, %v6251_v38  ;;  %6127 = vst.msk [vmem:[#allocation2 + $0x50] sm:$0xff] %vm1373_vm3, %v5999_v37  ;;  %v5997_v43 = vadd.f32 %v5510_v40, %v4672_v39  ;;  %v10846_v30 = vld [vmem:[%s10919_s26 + $0x210] sm:$0xff]   ;;  %v4680_v39 = vld [vmem:[#allocation2 + $0x80] sm:$0xff] }
 0x268   : > { %v6249_v44 = vld [vmem:[#allocation2 + $0x20] sm:$0xff]  ;;  %v10272_v46 = vpop.f32.mrf.mxu1  ;;  %v10402_v55 = vpop.f32.mrf.mxu0  ;;  %v7828_v10 = vld [vmem:[#allocation2 + $0x10] sm:$0xff] }
 0x269   : > { %7704 = vst.msk [vmem:[#allocation2 + $0x30] sm:$0xff] %vm1373_vm3, %v7576_v42  ;;  %v7574_v49 = vadd.f32 %v7075_v20, %v6249_v44  ;;  %6125 = vst.msk [vmem:[#allocation2 + $0x40] sm:$0xff] %vm1373_vm3, %v5997_v43  ;;  %v6000_v50 = vadd.f32 %v10272_v46, %v4675_v45  ;;  %v10843_v20 = vld [vmem:[%s10919_s26 + $0x208] sm:$0xff]  }
 0x26a   : > { %v6252_v52 = vld [vmem:[#allocation2 + $0x38] sm:$0xff]  ;;  %v5513_v54 = vpop.f32.mrf.mxu1  ;;  %v7094_v63 = vpop.f32.mrf.mxu0  ;;  %v7826_v22 = vld [vmem:[#allocation2] sm:$0xff] }
 0x26b   : > { %7702 = vst.msk [vmem:[#allocation2 + $0x20] sm:$0xff] %vm1373_vm3, %v7574_v49  ;;  %v7577_v57 = vadd.f32 %v10398_v27, %v6252_v52  ;;  %6128 = vst.msk [vmem:[#allocation2 + $0x58] sm:$0xff] %vm1373_vm3, %v6000_v50  ;;  %v5998_v58 = vadd.f32 %v5513_v54, %v4673_v53  ;;  %v4683_v49 = vld [vmem:[#allocation2 + $0x98] sm:$0xff]  ;;  %v10845_v52 = vld [vmem:[%s10919_s26 + $0x208] sm:$0xff]  }
 0x26c   : > { %v6250_v60 = vld [vmem:[#allocation2 + $0x28] sm:$0xff]  ;;  %v10275_v62 = vpop.f32.mrf.mxu1  ;;  %10370 = vmatmul.mubr.msk.bf16.gmra.mxu1 %vm628_vm2, %v10837_v48  ;;  %v10405_v5 = vpop.f32.mrf.mxu0  ;;  %10500 = vmatmul.mubr.msk.bf16.gmra.mxu0 %vm628_vm2, %v10839_v56  ;;  %v7829_v31 = vld [vmem:[#allocation2 + $0x18] sm:$0xff] }
 0x26d   : > { %7705 = vst.msk [vmem:[#allocation2 + $0x38] sm:$0xff] %vm1373_vm3, %v7577_v57  ;;  %v7575_v0 = vadd.f32 %v7078_v35, %v6250_v60  ;;  %6126 = vst.msk [vmem:[#allocation2 + $0x48] sm:$0xff] %vm1373_vm3, %v5998_v58  ;;  %v6003_v1 = vadd.f32 %v10275_v62, %v4678_v61  ;;  %10373 = vmatprep.mubr.msk.bf16.mxu1 %vm628_vm2, %v10840_v51  ;;  %10503 = vmatprep.mubr.msk.bf16.mxu0 %vm628_vm2, %v10842_v59  ;;  %v4681_v57 = vld [vmem:[#allocation2 + $0x88] sm:$0xff]  ;;  %v10847_v60 = vld [vmem:[%s10919_s26 + $0x218] sm:$0xff]  }
 0x26e   : > { %v6255_v2 = vld [vmem:[#allocation2 + $0x50] sm:$0xff]  ;;  %v5526_v4 = vpop.f32.mrf.mxu1  ;;  %v7107_v15 = vpop.f32.mrf.mxu0  ;;  %v7827_v40 = vld [vmem:[#allocation2 + $0x8] sm:$0xff] }
 0x26f   : > { %7703 = vst.msk [vmem:[#allocation2 + $0x28] sm:$0xff] %vm1373_vm3, %v7575_v0  ;;  %v7580_v6 = vadd.f32 %v10401_v41, %v6255_v2  ;;  %6131 = vst.msk [vmem:[#allocation2 + $0x70] sm:$0xff] %vm1373_vm3, %v6003_v1  ;;  %v6001_v7 = vadd.f32 %v5526_v4, %v4676_v3  ;;  %v4686_v1 = vld [vmem:[#allocation2 + $0xb0] sm:$0xff] }
 0x270   : > { %v7832_v11 = vld [vmem:[#allocation2 + $0x30] sm:$0xff]  ;;  %v6253_v13 = vld [vmem:[#allocation2 + $0x40] sm:$0xff]  ;;  %v10276_v14 = vpop.f32.mrf.mxu1  ;;  %v10406_v25 = vpop.f32.mrf.mxu0 }
 0x271   : > { %v7956_v16 = vmax.f32 %v7828_v10, %v7832_v11  ;;  %7708 = vst.msk [vmem:[#allocation2 + $0x50] sm:$0xff] %vm1373_vm3, %v7580_v6  ;;  %v7578_v17 = vadd.f32 %v7091_v47, %v6253_v13  ;;  %6129 = vst.msk [vmem:[#allocation2 + $0x60] sm:$0xff] %vm1373_vm3, %v6001_v7  ;;  %v6004_v18 = vadd.f32 %v10276_v14, %v4679_v8  ;;  %v4684_v6 = vld [vmem:[#allocation2 + $0xa0] sm:$0xff]  ;;  %v4687_v11 = vld [vmem:[#allocation2 + $0xb8] sm:$0xff] }
 0x272   : > { %v7830_v23 = vld [vmem:[#allocation2 + $0x20] sm:$0xff]  ;;  %v6256_v12 = vld [vmem:[#allocation2 + $0x58] sm:$0xff]  ;;  %v5529_v24 = vpop.f32.mrf.mxu1  ;;  %v7110_v35 = vpop.f32.mrf.mxu0 }
 0x273   : > { %8020 = vst.msk [vmem:[#allocation2 + $0x10] sm:$0xff] %vm1373_vm3, %v7956_v16  ;;  %v7954_v26 = vmax.f32 %v7826_v22, %v7830_v23  ;;  %7706 = vst.msk [vmem:[#allocation2 + $0x40] sm:$0xff] %vm1373_vm3, %v7578_v17  ;;  %v7581_v27 = vadd.f32 %v10402_v55, %v6256_v12  ;;  %v6002_v28 = vadd.f32 %v5529_v24, %v4677_v19  ;;  %v10848_v55 = vld [vmem:[%s10919_s26 + $0x210] sm:$0xff]   ;;  %v4685_v12 = vld [vmem:[#allocation2 + $0xa8] sm:$0xff] }
 0x274   : > { %6132 = vst.msk [vmem:[#allocation2 + $0x78] sm:$0xff] %vm1373_vm3, %v6004_v18  ;;  %v7833_v32 = vld [vmem:[#allocation2 + $0x38] sm:$0xff]  ;;  %v6254_v33 = vld [vmem:[#allocation2 + $0x48] sm:$0xff]  ;;  %v10279_v34 = vpop.f32.mrf.mxu1  ;;  %10374 = vmatmul.mubr.msk.bf16.gmra.mxu1 %vm628_vm2, %v10841_v9  ;;  %v10409_v44 = vpop.f32.mrf.mxu0  ;;  %10504 = vmatmul.mubr.msk.bf16.gmra.mxu0 %vm628_vm2, %v10843_v20  ;;  %v12004_v9 = vld [vmem:[%s12422_s2] ss:$0 sm:$0xff] }
 0x275   : > { %8018 = vst.msk [vmem:[#allocation2] sm:$0xff] %vm1373_vm3, %v7954_v26  ;;  %v7957_v36 = vmax.f32 %v7829_v31, %v7833_v32  ;;  %7709 = vst.msk [vmem:[#allocation2 + $0x58] sm:$0xff] %vm1373_vm3, %v7581_v27  ;;  %v7579_v37 = vadd.f32 %v7094_v63, %v6254_v33  ;;  %v6007_v38 = vadd.f32 %v10279_v34, %v4682_v29  ;;  %10377 = vmatprep.mubr.msk.bf16.mxu1 %vm628_vm2, %v10844_v21  ;;  %v10850_v63 = vld [vmem:[%s10919_s26 + $0x220] sm:$0xff]   ;;  %v10849_v18 = vld [vmem:[%s10919_s26 + $0x218] sm:$0xff]  }
 0x276   : > { %6130 = vst.msk [vmem:[#allocation2 + $0x68] sm:$0xff] %vm1373_vm3, %v6002_v28  ;;  %v7831_v41 = vld [vmem:[#allocation2 + $0x28] sm:$0xff]  ;;  %v6259_v42 = vld [vmem:[#allocation2 + $0x70] sm:$0xff]  ;;  %v5542_v43 = vpop.f32.mrf.mxu1  ;;  %10507 = vmatprep.mubr.msk.bf16.mxu0 %vm628_vm2, %v10846_v30  ;;  %v11977_v51 = vpop.f32.mrf.mxu0  ;;  %v10852_v31 = vld [vmem:[%s10919_s26 + $0x220] sm:$0xff]  }
 0x277   : > { %8021 = vst.msk [vmem:[#allocation2 + $0x18] sm:$0xff] %vm1373_vm3, %v7957_v36  ;;  %v7955_v45 = vmax.f32 %v7827_v40, %v7831_v41  ;;  %7707 = vst.msk [vmem:[#allocation2 + $0x48] sm:$0xff] %vm1373_vm3, %v7579_v37  ;;  %v7584_v46 = vadd.f32 %v10405_v5, %v6259_v42  ;;  %v6005_v47 = vadd.f32 %v5542_v43, %v4680_v39  ;;  %v10851_v30 = vld [vmem:[%s10919_s26 + $0x228] sm:$0xff]   ;;  %v4690_v42 = vld [vmem:[#allocation2 + $0xd0] sm:$0xff] }
 0x278   : > { %6135 = vst.msk [vmem:[#allocation2 + $0x90] sm:$0xff] %vm1373_vm3, %v6007_v38  ;;  %v6257_v48 = vld [vmem:[#allocation2 + $0x60] sm:$0xff]  ;;  %v10280_v50 = vpop.f32.mrf.mxu1  ;;  %v10410_v59 = vpop.f32.mrf.mxu0  ;;  %v10854_v43 = vld [vmem:[%s10919_s26 + $0x230] sm:$0xff]  }
 0x279   : > { %8019 = vst.msk [vmem:[#allocation2 + $0x8] sm:$0xff] %vm1373_vm3, %v7955_v45  ;;  %7712 = vst.msk [vmem:[#allocation2 + $0x70] sm:$0xff] %vm1373_vm3, %v7584_v46  ;;  %v7582_v53 = vadd.f32 %v7107_v15, %v6257_v48  ;;  %v6008_v54 = vadd.f32 %v10280_v50, %v4683_v49  ;;  %v7836_v15 = vld [vmem:[#allocation2 + $0x50] sm:$0xff] }
 0x27a   : > { %6133 = vst.msk [vmem:[#allocation2 + $0x80] sm:$0xff] %vm1373_vm3, %v6005_v47  ;;  %v5545_v58 = vpop.f32.mrf.mxu1  ;;  %v11995_v3 = vpop.f32.mrf.mxu0  ;;  %v7834_v32 = vld [vmem:[#allocation2 + $0x40] sm:$0xff] }
 0x27b   : > { %v6260_v56 = vld [vmem:[#allocation2 + $0x78] sm:$0xff]  ;;  %7710 = vst.msk [vmem:[#allocation2 + $0x60] sm:$0xff] %vm1373_vm3, %v7582_v53  ;;  %6136 = vst.msk [vmem:[#allocation2 + $0x98] sm:$0xff] %vm1373_vm3, %v6008_v54  ;;  %v6006_v62 = vadd.f32 %v5545_v58, %v4681_v57 }
 0x27c   : > { %v7585_v61 = vadd.f32 %v10406_v25, %v6260_v56  ;;  %v10283_v2 = vpop.f32.mrf.mxu1  ;;  %10378 = vmatmul.mubr.msk.bf16.gmra.mxu1 %vm628_vm2, %v10845_v52  ;;  %v12006_v13 = vpop.f32.mrf.mxu0  ;;  %10508 = vmatmul.mubr.msk.bf16.gmra.mxu0 %vm628_vm2, %v10847_v60  ;;  %v4688_v52 = vld [vmem:[#allocation2 + $0xc0] sm:$0xff] }
 0x27d   : > { %v6258_v0 = vld [vmem:[#allocation2 + $0x68] sm:$0xff]  ;;  %6134 = vst.msk [vmem:[#allocation2 + $0x88] sm:$0xff] %vm1373_vm3, %v6006_v62  ;;  %v6011_v5 = vadd.f32 %v10283_v2, %v4686_v1  ;;  %10381 = vmatprep.mubr.msk.bf16.mxu1 %vm628_vm2, %v10848_v55  ;;  %10511 = vmatprep.mubr.msk.bf16.mxu0 %vm628_vm2, %v10850_v63  ;;  %v4691_v62 = vld [vmem:[#allocation2 + $0xd8] sm:$0xff] }
 0x27e   : > { %7713 = vst.msk [vmem:[#allocation2 + $0x78] sm:$0xff] %vm1373_vm3, %v7585_v61  ;;  %v7583_v4 = vadd.f32 %v7110_v35, %v6258_v0  ;;  %v8084_v7 = vld [vmem:[#allocation2 + $0x10] ss:$2 sm:$0xff]  ;;  %v8148_v8 = vld [vmem:[#allocation2 + $0x11] ss:$2 sm:$0xff]  ;;  %v5558_v10 = vpop.f32.mrf.mxu1  ;;  %v7139_v24 = vpop.f32.mrf.mxu0  ;;  %v7835_v53 = vld [vmem:[#allocation2 + $0x48] sm:$0xff] }
 0x27f   : > { %v8210_v14 = vmax.f32 %v8084_v7, %v8148_v8  ;;  %v6263_v16 = vld [vmem:[#allocation2 + $0x90] sm:$0xff]  ;;  %6139 = vst.msk [vmem:[#allocation2 + $0xb0] sm:$0xff] %vm1373_vm3, %v6011_v5  ;;  %v6009_v17 = vadd.f32 %v5558_v10, %v4684_v6  ;;  %v10853_v1 = vld [vmem:[%s10919_s26 + $0x228] sm:$0xff]   ;;  %v10855_v8 = vld [vmem:[%s10919_s26 + $0x238] sm:$0xff]  }
 0x280   : > { %7711 = vst.msk [vmem:[#allocation2 + $0x68] sm:$0xff] %vm1373_vm3, %v7583_v4  ;;  %v8082_v19 = vld [vmem:[#allocation2] ss:$2 sm:$0xff]  ;;  %v8146_v20 = vld [vmem:[#allocation2 + $0x1] ss:$2 sm:$0xff]  ;;  %v7840_v21 = vld [vmem:[#allocation2 + $0x70] sm:$0xff]  ;;  %v7588_v22 = vadd.f32 %v10409_v44, %v6263_v16  ;;  %v10284_v23 = vpop.f32.mrf.mxu1  ;;  %v10414_v37 = vpop.f32.mrf.mxu0 }
 0x281   : > { %v8249_v25 = vadd.f32 %v12004_v9, %v8210_v14  ;;  %v8209_v26 = vmax.f32 %v8082_v19, %v8146_v20  ;;  %v7960_v27 = vmax.f32 %v7836_v15, %v7840_v21  ;;  %v6261_v28 = vld [vmem:[#allocation2 + $0x80] sm:$0xff]  ;;  %6137 = vst.msk [vmem:[#allocation2 + $0xa0] sm:$0xff] %vm1373_vm3, %v6009_v17  ;;  %v6012_v29 = vadd.f32 %v10284_v23, %v4687_v11  ;;  %v7837_v44 = vld [vmem:[#allocation2 + $0x58] sm:$0xff]  ;;  %v4689_v5 = vld [vmem:[#allocation2 + $0xc8] sm:$0xff] }
 0x282   : > { %v7838_v33 = vld [vmem:[#allocation2 + $0x60] sm:$0xff]  ;;  %7716 = vst.msk [vmem:[#allocation2 + $0x90] sm:$0xff] %vm1373_vm3, %v7588_v22  ;;  %v7586_v34 = vadd.f32 %v11977_v51, %v6261_v28  ;;  %v6264_v35 = vld [vmem:[#allocation2 + $0x98] sm:$0xff]  ;;  %v5561_v36 = vpop.f32.mrf.mxu1  ;;  %v7142_v48 = vpop.f32.mrf.mxu0  ;;  %v4694_v14 = vld [vmem:[#allocation2 + $0xf0] sm:$0xff] }
 0x283   : > { %8281 = vst.msk [vmem:[%s12016_s9 + $0x8] sm:$0xff] %vm1373_vm3, %v8249_v25  ;;  %v8248_v38 = vadd.f32 %v12004_v9, %v8209_v26  ;;  %8024 = vst.msk [vmem:[#allocation2 + $0x30] sm:$0xff] %vm1373_vm3, %v7960_v27  ;;  %v7958_v39 = vmax.f32 %v7834_v32, %v7838_v33  ;;  %v7589_v40 = vadd.f32 %v10410_v59, %v6264_v35  ;;  %v4692_v21 = vld [vmem:[#allocation2 + $0xe0] sm:$0xff]  ;;  %v4695_v27 = vld [vmem:[#allocation2 + $0xf8] sm:$0xff] }
 0x284   : > { %6140 = vst.msk [vmem:[#allocation2 + $0xb8] sm:$0xff] %vm1373_vm3, %v6012_v29  ;;  %v6010_v41 = vadd.f32 %v5561_v36, %v4685_v12  ;;  %7714 = vst.msk [vmem:[#allocation2 + $0x80] sm:$0xff] %vm1373_vm3, %v7586_v34  ;;  %v6262_v46 = vld [vmem:[#allocation2 + $0x88] sm:$0xff]  ;;  %v10287_v47 = vpop.f32.mrf.mxu1  ;;  %10382 = vmatmul.mubr.msk.bf16.gmra.mxu1 %vm628_vm2, %v10849_v18  ;;  %v10417_v57 = vpop.f32.mrf.mxu0  ;;  %10512 = vmatmul.mubr.msk.bf16.gmra.mxu0 %vm628_vm2, %v10851_v30 }
 0x285   : > { %v7841_v45 = vld [vmem:[#allocation2 + $0x78] sm:$0xff]  ;;  %8280 = vst.msk [vmem:[%s12016_s9] sm:$0xff] %vm1373_vm3, %v8248_v38  ;;  %8022 = vst.msk [vmem:[#allocation2 + $0x20] sm:$0xff] %vm1373_vm3, %v7958_v39  ;;  %v7587_v50 = vadd.f32 %v11995_v3, %v6262_v46  ;;  %v6015_v51 = vadd.f32 %v10287_v47, %v4690_v42  ;;  %10385 = vmatprep.mubr.msk.bf16.mxu1 %vm628_vm2, %v10852_v31  ;;  %10515 = vmatprep.mubr.msk.bf16.mxu0 %vm628_vm2, %v10854_v43  ;;  %v4693_v39 = vld [vmem:[#allocation2 + $0xe8] sm:$0xff] }
 0x286   : > { %v7961_v49 = vmax.f32 %v7837_v44, %v7841_v45  ;;  %7717 = vst.msk [vmem:[#allocation2 + $0x98] sm:$0xff] %vm1373_vm3, %v7589_v40  ;;  %6138 = vst.msk [vmem:[#allocation2 + $0xa8] sm:$0xff] %vm1373_vm3, %v6010_v41  ;;  %v6267_v55 = vld [vmem:[#allocation2 + $0xb0] sm:$0xff]  ;;  %v5574_v56 = vpop.f32.mrf.mxu1  ;;  %v7155_v0 = vpop.f32.mrf.mxu0 }
 0x287   : > { %v7839_v54 = vld [vmem:[#allocation2 + $0x68] sm:$0xff]  ;;  %7715 = vst.msk [vmem:[#allocation2 + $0x88] sm:$0xff] %vm1373_vm3, %v7587_v50  ;;  %v7592_v59 = vadd.f32 %v12006_v13, %v6267_v55  ;;  %6143 = vst.msk [vmem:[#allocation2 + $0xd0] sm:$0xff] %vm1373_vm3, %v6015_v51  ;;  %v6013_v60 = vadd.f32 %v5574_v56, %v4688_v52  ;;  %v4698_v50 = vld [vmem:[#allocation2 + $0x110] sm:$0xff] }
 0x288   : > { %8025 = vst.msk [vmem:[#allocation2 + $0x38] sm:$0xff] %vm1373_vm3, %v7961_v49  ;;  %v7959_v58 = vmax.f32 %v7835_v53, %v7839_v54  ;;  %v6265_v61 = vld [vmem:[#allocation2 + $0xa0] sm:$0xff]  ;;  %v10288_v63 = vpop.f32.mrf.mxu1  ;;  %v10418_v7 = vpop.f32.mrf.mxu0 }
 0x289   : > { %7720 = vst.msk [vmem:[#allocation2 + $0xb0] sm:$0xff] %vm1373_vm3, %v7592_v59  ;;  %v7590_v2 = vadd.f32 %v7139_v24, %v6265_v61  ;;  %6141 = vst.msk [vmem:[#allocation2 + $0xc0] sm:$0xff] %vm1373_vm3, %v6013_v60  ;;  %v6016_v3 = vadd.f32 %v10288_v63, %v4691_v62  ;;  %v7844_v24 = vld [vmem:[#allocation2 + $0x90] sm:$0xff]  ;;  %v4696_v59 = vld [vmem:[#allocation2 + $0x100] sm:$0xff] }
 0x28a   : > { %8023 = vst.msk [vmem:[#allocation2 + $0x28] sm:$0xff] %vm1373_vm3, %v7959_v58  ;;  %v5577_v6 = vpop.f32.mrf.mxu1  ;;  %v7158_v16 = vpop.f32.mrf.mxu0 }
 0x28b   : > { %v6268_v4 = vld [vmem:[#allocation2 + $0xb8] sm:$0xff]  ;;  %7718 = vst.msk [vmem:[#allocation2 + $0xa0] sm:$0xff] %vm1373_vm3, %v7590_v2  ;;  %6144 = vst.msk [vmem:[#allocation2 + $0xd8] sm:$0xff] %vm1373_vm3, %v6016_v3  ;;  %v6014_v11 = vadd.f32 %v5577_v6, %v4689_v5  ;;  %v7842_v40 = vld [vmem:[#allocation2 + $0x80] sm:$0xff] }
 0x28c   : > { %v7593_v10 = vadd.f32 %v10414_v37, %v6268_v4  ;;  %v10291_v15 = vpop.f32.mrf.mxu1  ;;  %10386 = vmatmul.mubr.msk.bf16.gmra.mxu1 %vm628_vm2, %v10853_v1  ;;  %v10421_v23 = vpop.f32.mrf.mxu0  ;;  %10516 = vmatmul.mubr.msk.bf16.gmra.mxu0 %vm628_vm2, %v10855_v8  ;;  %v4699_v5 = vld [vmem:[#allocation2 + $0x118] sm:$0xff] }
 0x28d   : > { %v6266_v13 = vld [vmem:[#allocation2 + $0xa8] sm:$0xff]  ;;  %6142 = vst.msk [vmem:[#allocation2 + $0xc8] sm:$0xff] %vm1373_vm3, %v6014_v11  ;;  %v6019_v18 = vadd.f32 %v10291_v15, %v4694_v14  ;;  %v7845_v51 = vld [vmem:[#allocation2 + $0x98] sm:$0xff] }
 0x28e   : > { %7721 = vst.msk [vmem:[#allocation2 + $0xb8] sm:$0xff] %vm1373_vm3, %v7593_v10  ;;  %v7591_v17 = vadd.f32 %v7142_v48, %v6266_v13  ;;  %v5590_v22 = vpop.f32.mrf.mxu1  ;;  %v6271_v25 = vld [vmem:[#allocation2 + $0xd0] sm:$0xff]  ;;  %v7171_v33 = vpop.f32.mrf.mxu0  ;;  %v7843_v60 = vld [vmem:[#allocation2 + $0x88] sm:$0xff] }
 0x28f   : > { %v8088_v19 = vld [vmem:[#allocation2 + $0x30] ss:$2 sm:$0xff]  ;;  %v8152_v20 = vld [vmem:[#allocation2 + $0x31] ss:$2 sm:$0xff]  ;;  %6147 = vst.msk [vmem:[#allocation2 + $0xf0] sm:$0xff] %vm1373_vm3, %v6019_v18  ;;  %v6017_v26 = vadd.f32 %v5590_v22, %v4692_v21  ;;  %v7596_v31 = vadd.f32 %v10417_v57, %v6271_v25  ;;  %v4697_v13 = vld [vmem:[#allocation2 + $0x108] sm:$0xff] }
 0x290   : > { %v8212_v12 = vmax.f32 %v8088_v19, %v8152_v20  ;;  %7719 = vst.msk [vmem:[#allocation2 + $0xa8] sm:$0xff] %vm1373_vm3, %v7591_v17  ;;  %v7848_v30 = vld [vmem:[#allocation2 + $0xb0] sm:$0xff]  ;;  %v10292_v32 = vpop.f32.mrf.mxu1  ;;  %v6269_v37 = vld [vmem:[#allocation2 + $0xc0] sm:$0xff]  ;;  %v10422_v45 = vpop.f32.mrf.mxu0 }
 0x291   : > { %v8086_v28 = vld [vmem:[#allocation2 + $0x20] ss:$2 sm:$0xff]  ;;  %v8150_v29 = vld [vmem:[#allocation2 + $0x21] ss:$2 sm:$0xff]  ;;  %v7964_v36 = vmax.f32 %v7844_v24, %v7848_v30  ;;  %6145 = vst.msk [vmem:[#allocation2 + $0xe0] sm:$0xff] %vm1373_vm3, %v6017_v26  ;;  %v6020_v38 = vadd.f32 %v10292_v32, %v4695_v27  ;;  %7724 = vst.msk [vmem:[#allocation2 + $0xd0] sm:$0xff] %vm1373_vm3, %v7596_v31  ;;  %v7594_v42 = vadd.f32 %v7155_v0, %v6269_v37 }
 0x292   : > { %v8251_v34 = vadd.f32 %v12004_v9, %v8212_v12  ;;  %v8211_v35 = vmax.f32 %v8086_v28, %v8150_v29  ;;  %v7846_v41 = vld [vmem:[#allocation2 + $0xa0] sm:$0xff]  ;;  %v6272_v43 = vld [vmem:[#allocation2 + $0xd8] sm:$0xff]  ;;  %v5593_v44 = vpop.f32.mrf.mxu1  ;;  %v7174_v55 = vpop.f32.mrf.mxu0  ;;  %v4702_v19 = vld [vmem:[#allocation2 + $0x130] sm:$0xff] }
 0x293   : > { %8028 = vst.msk [vmem:[#allocation2 + $0x50] sm:$0xff] %vm1373_vm3, %v7964_v36  ;;  %v7962_v47 = vmax.f32 %v7842_v40, %v7846_v41  ;;  %v7597_v48 = vadd.f32 %v10418_v7, %v6272_v43  ;;  %6148 = vst.msk [vmem:[#allocation2 + $0xf8] sm:$0xff] %vm1373_vm3, %v6020_v38  ;;  %v6018_v49 = vadd.f32 %v5593_v44, %v4693_v39  ;;  %v4700_v25 = vld [vmem:[#allocation2 + $0x120] sm:$0xff]  ;;  %v4703_v32 = vld [vmem:[#allocation2 + $0x138] sm:$0xff] }
 0x294   : > { %8283 = vst.msk [vmem:[%s12016_s9 + $0x18] sm:$0xff] %vm1373_vm3, %v8251_v34  ;;  %v8250_v46 = vadd.f32 %v12004_v9, %v8211_v35  ;;  %7722 = vst.msk [vmem:[#allocation2 + $0xc0] sm:$0xff] %vm1373_vm3, %v7594_v42  ;;  %v6270_v53 = vld [vmem:[#allocation2 + $0xc8] sm:$0xff]  ;;  %v10295_v54 = vpop.f32.mrf.mxu1  ;;  %v10425_v0 = vpop.f32.mrf.mxu0 }
 0x295   : > { %v7849_v52 = vld [vmem:[#allocation2 + $0xb8] sm:$0xff]  ;;  %8026 = vst.msk [vmem:[#allocation2 + $0x40] sm:$0xff] %vm1373_vm3, %v7962_v47  ;;  %7725 = vst.msk [vmem:[#allocation2 + $0xd8] sm:$0xff] %vm1373_vm3, %v7597_v48  ;;  %v7595_v57 = vadd.f32 %v7158_v16, %v6270_v53  ;;  %v6023_v58 = vadd.f32 %v10295_v54, %v4698_v50  ;;  %v4701_v44 = vld [vmem:[#allocation2 + $0x128] sm:$0xff] }
 0x296   : > { %8282 = vst.msk [vmem:[%s12016_s9 + $0x10] sm:$0xff] %vm1373_vm3, %v8250_v46  ;;  %v7965_v56 = vmax.f32 %v7845_v51, %v7849_v52  ;;  %6146 = vst.msk [vmem:[#allocation2 + $0xe8] sm:$0xff] %vm1373_vm3, %v6018_v49  ;;  %v6275_v62 = vld [vmem:[#allocation2 + $0xf0] sm:$0xff]  ;;  %v5606_v63 = vpop.f32.mrf.mxu1  ;;  %v7187_v7 = vpop.f32.mrf.mxu0 }
 0x297   : > { %v7847_v61 = vld [vmem:[#allocation2 + $0xa8] sm:$0xff]  ;;  %7723 = vst.msk [vmem:[#allocation2 + $0xc8] sm:$0xff] %vm1373_vm3, %v7595_v57  ;;  %v7600_v2 = vadd.f32 %v10421_v23, %v6275_v62  ;;  %6151 = vst.msk [vmem:[#allocation2 + $0x110] sm:$0xff] %vm1373_vm3, %v6023_v58  ;;  %v6021_v3 = vadd.f32 %v5606_v63, %v4696_v59 }
 0x298   : > { %8029 = vst.msk [vmem:[#allocation2 + $0x58] sm:$0xff] %vm1373_vm3, %v7965_v56  ;;  %v7963_v1 = vmax.f32 %v7843_v60, %v7847_v61  ;;  %v6273_v4 = vld [vmem:[#allocation2 + $0xe0] sm:$0xff]  ;;  %v10296_v6 = vpop.f32.mrf.mxu1  ;;  %v10426_v15 = vpop.f32.mrf.mxu0  ;;  %v7852_v29 = vld [vmem:[#allocation2 + $0xd0] sm:$0xff] }
 0x299   : > { %7728 = vst.msk [vmem:[#allocation2 + $0xf0] sm:$0xff] %vm1373_vm3, %v7600_v2  ;;  %v7598_v8 = vadd.f32 %v7171_v33, %v6273_v4  ;;  %6149 = vst.msk [vmem:[#allocation2 + $0x100] sm:$0xff] %vm1373_vm3, %v6021_v3  ;;  %v6024_v10 = vadd.f32 %v10296_v6, %v4699_v5 }
 0x29a   : > { %8027 = vst.msk [vmem:[#allocation2 + $0x48] sm:$0xff] %vm1373_vm3, %v7963_v1  ;;  %v6276_v11 = vld [vmem:[#allocation2 + $0xf8] sm:$0xff]  ;;  %v5609_v14 = vpop.f32.mrf.mxu1  ;;  %v7190_v21 = vpop.f32.mrf.mxu0 }
 0x29b   : > { %7726 = vst.msk [vmem:[#allocation2 + $0xe0] sm:$0xff] %vm1373_vm3, %v7598_v8  ;;  %v7601_v16 = vadd.f32 %v10422_v45, %v6276_v11  ;;  %6152 = vst.msk [vmem:[#allocation2 + $0x118] sm:$0xff] %vm1373_vm3, %v6024_v10  ;;  %v6022_v17 = vadd.f32 %v5609_v14, %v4697_v13  ;;  %v7850_v45 = vld [vmem:[#allocation2 + $0xc0] sm:$0xff]  ;;  %v4707_v11 = vld [vmem:[#allocation2 + $0x158] sm:$0xff] }
 0x29c   : > { %v10299_v20 = vpop.f32.mrf.mxu1  ;;  %v10429_v27 = vpop.f32.mrf.mxu0  ;;  %v7853_v56 = vld [vmem:[#allocation2 + $0xd8] sm:$0xff] }
 0x29d   : > { %v6274_v18 = vld [vmem:[#allocation2 + $0xe8] sm:$0xff]  ;;  %7729 = vst.msk [vmem:[#allocation2 + $0xf8] sm:$0xff] %vm1373_vm3, %v7601_v16  ;;  %6150 = vst.msk [vmem:[#allocation2 + $0x108] sm:$0xff] %vm1373_vm3, %v6022_v17  ;;  %v6027_v23 = vadd.f32 %v10299_v20, %v4702_v19 }
 0x29e   : > { %v7599_v22 = vadd.f32 %v7174_v55, %v6274_v18  ;;  %v5622_v26 = vpop.f32.mrf.mxu1  ;;  %v6279_v30 = vld [vmem:[#allocation2 + $0x110] sm:$0xff]  ;;  %v7203_v38 = vpop.f32.mrf.mxu0  ;;  %v7851_v1 = vld [vmem:[#allocation2 + $0xc8] sm:$0xff] }
 0x29f   : > { %v8092_v12 = vld [vmem:[#allocation2 + $0x50] ss:$2 sm:$0xff]  ;;  %v8156_v24 = vld [vmem:[#allocation2 + $0x51] ss:$2 sm:$0xff]  ;;  %6155 = vst.msk [vmem:[#allocation2 + $0x130] sm:$0xff] %vm1373_vm3, %v6027_v23  ;;  %v6025_v31 = vadd.f32 %v5622_v26, %v4700_v25  ;;  %v7604_v36 = vadd.f32 %v10425_v0, %v6279_v30  ;;  %v4704_v0 = vld [vmem:[#allocation2 + $0x140] sm:$0xff] }
 0x2a0   : > { %v8214_v28 = vmax.f32 %v8092_v12, %v8156_v24  ;;  %7727 = vst.msk [vmem:[#allocation2 + $0xe8] sm:$0xff] %vm1373_vm3, %v7599_v22  ;;  %v7856_v35 = vld [vmem:[#allocation2 + $0xf0] sm:$0xff]  ;;  %v10300_v37 = vpop.f32.mrf.mxu1  ;;  %v6277_v42 = vld [vmem:[#allocation2 + $0x100] sm:$0xff]  ;;  %v10430_v50 = vpop.f32.mrf.mxu0  ;;  %v4705_v18 = vld [vmem:[#allocation2 + $0x148] sm:$0xff] }
 0x2a1   : > { %v8090_v33 = vld [vmem:[#allocation2 + $0x40] ss:$2 sm:$0xff]  ;;  %v8154_v34 = vld [vmem:[#allocation2 + $0x41] ss:$2 sm:$0xff]  ;;  %v7968_v41 = vmax.f32 %v7852_v29, %v7856_v35  ;;  %6153 = vst.msk [vmem:[#allocation2 + $0x120] sm:$0xff] %vm1373_vm3, %v6025_v31  ;;  %v6028_v43 = vadd.f32 %v10300_v37, %v4703_v32  ;;  %7732 = vst.msk [vmem:[#allocation2 + $0x110] sm:$0xff] %vm1373_vm3, %v7604_v36  ;;  %v7602_v47 = vadd.f32 %v7187_v7, %v6277_v42 }
 0x2a2   : > { %v8253_v39 = vadd.f32 %v12004_v9, %v8214_v28  ;;  %v8213_v40 = vmax.f32 %v8090_v33, %v8154_v34  ;;  %v7854_v46 = vld [vmem:[#allocation2 + $0xe0] sm:$0xff]  ;;  %v6280_v48 = vld [vmem:[#allocation2 + $0x118] sm:$0xff]  ;;  %v5625_v49 = vpop.f32.mrf.mxu1  ;;  %v4706_v55 = vld [vmem:[#allocation2 + $0x150] sm:$0xff]  ;;  %v7206_v60 = vpop.f32.mrf.mxu0 }
 0x2a3   : > { %8032 = vst.msk [vmem:[#allocation2 + $0x70] sm:$0xff] %vm1373_vm3, %v7968_v41  ;;  %v7966_v52 = vmax.f32 %v7850_v45, %v7854_v46  ;;  %v7605_v53 = vadd.f32 %v10426_v15, %v6280_v48  ;;  %6156 = vst.msk [vmem:[#allocation2 + $0x138] sm:$0xff] %vm1373_vm3, %v6028_v43  ;;  %v6026_v54 = vadd.f32 %v5625_v49, %v4701_v44  ;;  %v4710_v12 = vld [vmem:[#allocation2 + $0x170] sm:$0xff]  ;;  %v4708_v30 = vld [vmem:[#allocation2 + $0x160] sm:$0xff] }
 0x2a4   : > { %8285 = vst.msk [vmem:[%s12016_s9 + $0x28] sm:$0xff] %vm1373_vm3, %v8253_v39  ;;  %v8252_v51 = vadd.f32 %v12004_v9, %v8213_v40  ;;  %v7857_v57 = vld [vmem:[#allocation2 + $0xf8] sm:$0xff]  ;;  %7730 = vst.msk [vmem:[#allocation2 + $0x100] sm:$0xff] %vm1373_vm3, %v7602_v47  ;;  %v6278_v58 = vld [vmem:[#allocation2 + $0x108] sm:$0xff]  ;;  %v10303_v59 = vpop.f32.mrf.mxu1  ;;  %v10433_v5 = vpop.f32.mrf.mxu0 }
 0x2a5   : > { %8030 = vst.msk [vmem:[#allocation2 + $0x60] sm:$0xff] %vm1373_vm3, %v7966_v52  ;;  %v7969_v61 = vmax.f32 %v7853_v56, %v7857_v57  ;;  %7733 = vst.msk [vmem:[#allocation2 + $0x118] sm:$0xff] %vm1373_vm3, %v7605_v53  ;;  %v7603_v62 = vadd.f32 %v7190_v21, %v6278_v58  ;;  %v6031_v63 = vadd.f32 %v10303_v59, %v4706_v55  ;;  %v4711_v37 = vld [vmem:[#allocation2 + $0x178] sm:$0xff]  ;;  %v4709_v49 = vld [vmem:[#allocation2 + $0x168] sm:$0xff] }
 0x2a6   : > { %8284 = vst.msk [vmem:[%s12016_s9 + $0x20] sm:$0xff] %vm1373_vm3, %v8252_v51  ;;  %6154 = vst.msk [vmem:[#allocation2 + $0x128] sm:$0xff] %vm1373_vm3, %v6026_v54  ;;  %v6283_v3 = vld [vmem:[#allocation2 + $0x130] sm:$0xff]  ;;  %v5638_v4 = vpop.f32.mrf.mxu1  ;;  %v7219_v14 = vpop.f32.mrf.mxu0 }
 0x2a7   : > { %v7855_v2 = vld [vmem:[#allocation2 + $0xe8] sm:$0xff]  ;;  %8033 = vst.msk [vmem:[#allocation2 + $0x78] sm:$0xff] %vm1373_vm3, %v7969_v61  ;;  %7731 = vst.msk [vmem:[#allocation2 + $0x108] sm:$0xff] %vm1373_vm3, %v7603_v62  ;;  %v7608_v7 = vadd.f32 %v10429_v27, %v6283_v3  ;;  %v6029_v8 = vadd.f32 %v5638_v4, %v4704_v0 }
 0x2a8   : > { %v7967_v6 = vmax.f32 %v7851_v1, %v7855_v2  ;;  %6159 = vst.msk [vmem:[#allocation2 + $0x150] sm:$0xff] %vm1373_vm3, %v6031_v63  ;;  %v6281_v10 = vld [vmem:[#allocation2 + $0x120] sm:$0xff]  ;;  %v10304_v13 = vpop.f32.mrf.mxu1  ;;  %v10434_v20 = vpop.f32.mrf.mxu0  ;;  %v7860_v34 = vld [vmem:[#allocation2 + $0x110] sm:$0xff] }
 0x2a9   : > { %7736 = vst.msk [vmem:[#allocation2 + $0x130] sm:$0xff] %vm1373_vm3, %v7608_v7  ;;  %v7606_v15 = vadd.f32 %v7203_v38, %v6281_v10  ;;  %6157 = vst.msk [vmem:[#allocation2 + $0x140] sm:$0xff] %vm1373_vm3, %v6029_v8  ;;  %v6032_v16 = vadd.f32 %v10304_v13, %v4707_v11 }
 0x2aa   : > { %8031 = vst.msk [vmem:[#allocation2 + $0x68] sm:$0xff] %vm1373_vm3, %v7967_v6  ;;  %v6284_v17 = vld [vmem:[#allocation2 + $0x138] sm:$0xff]  ;;  %v5641_v19 = vpop.f32.mrf.mxu1  ;;  %v7222_v25 = vpop.f32.mrf.mxu0 }
 0x2ab   : > { %7734 = vst.msk [vmem:[#allocation2 + $0x120] sm:$0xff] %vm1373_vm3, %v7606_v15  ;;  %v7609_v21 = vadd.f32 %v10430_v50, %v6284_v17  ;;  %6160 = vst.msk [vmem:[#allocation2 + $0x158] sm:$0xff] %vm1373_vm3, %v6032_v16  ;;  %v6030_v22 = vadd.f32 %v5641_v19, %v4705_v18  ;;  %v7858_v50 = vld [vmem:[#allocation2 + $0x100] sm:$0xff]  ;;  %v4715_v17 = vld [vmem:[#allocation2 + $0x198] sm:$0xff] }
 0x2ac   : > { %v10307_v24 = vpop.f32.mrf.mxu1  ;;  %v10437_v32 = vpop.f32.mrf.mxu0  ;;  %v7861_v61 = vld [vmem:[#allocation2 + $0x118] sm:$0xff] }
 0x2ad   : > { %v6282_v23 = vld [vmem:[#allocation2 + $0x128] sm:$0xff]  ;;  %7737 = vst.msk [vmem:[#allocation2 + $0x138] sm:$0xff] %vm1373_vm3, %v7609_v21  ;;  %6158 = vst.msk [vmem:[#allocation2 + $0x148] sm:$0xff] %vm1373_vm3, %v6030_v22  ;;  %v6035_v27 = vadd.f32 %v10307_v24, %v4710_v12 }
 0x2ae   : > { %v7607_v26 = vadd.f32 %v7206_v60, %v6282_v23  ;;  %v8096_v28 = vld [vmem:[#allocation2 + $0x70] ss:$2 sm:$0xff]  ;;  %v8160_v29 = vld [vmem:[#allocation2 + $0x71] ss:$2 sm:$0xff]  ;;  %v5654_v31 = vpop.f32.mrf.mxu1  ;;  %v7235_v43 = vpop.f32.mrf.mxu0  ;;  %v7859_v6 = vld [vmem:[#allocation2 + $0x108] sm:$0xff] }
 0x2af   : > { %v8216_v33 = vmax.f32 %v8096_v28, %v8160_v29  ;;  %v6287_v35 = vld [vmem:[#allocation2 + $0x150] sm:$0xff]  ;;  %6163 = vst.msk [vmem:[#allocation2 + $0x170] sm:$0xff] %vm1373_vm3, %v6035_v27  ;;  %v6033_v36 = vadd.f32 %v5654_v31, %v4708_v30  ;;  %v4713_v23 = vld [vmem:[#allocation2 + $0x188] sm:$0xff] }
 0x2b0   : > { %7735 = vst.msk [vmem:[#allocation2 + $0x128] sm:$0xff] %vm1373_vm3, %v7607_v26  ;;  %v7864_v40 = vld [vmem:[#allocation2 + $0x130] sm:$0xff]  ;;  %v7612_v41 = vadd.f32 %v10433_v5, %v6287_v35  ;;  %v10308_v42 = vpop.f32.mrf.mxu1  ;;  %v6285_v47 = vld [vmem:[#allocation2 + $0x140] sm:$0xff]  ;;  %v10438_v55 = vpop.f32.mrf.mxu0 }
 0x2b1   : > { %v8094_v38 = vld [vmem:[#allocation2 + $0x60] ss:$2 sm:$0xff]  ;;  %v8158_v39 = vld [vmem:[#allocation2 + $0x61] ss:$2 sm:$0xff]  ;;  %v8255_v44 = vadd.f32 %v12004_v9, %v8216_v33  ;;  %v7972_v46 = vmax.f32 %v7860_v34, %v7864_v40  ;;  %6161 = vst.msk [vmem:[#allocation2 + $0x160] sm:$0xff] %vm1373_vm3, %v6033_v36  ;;  %v6036_v48 = vadd.f32 %v10308_v42, %v4711_v37  ;;  %v7610_v52 = vadd.f32 %v7219_v14, %v6285_v47  ;;  %v4714_v60 = vld [vmem:[#allocation2 + $0x190] sm:$0xff] }
 0x2b2   : > { %v8215_v45 = vmax.f32 %v8094_v38, %v8158_v39  ;;  %v7862_v51 = vld [vmem:[#allocation2 + $0x120] sm:$0xff]  ;;  %7740 = vst.msk [vmem:[#allocation2 + $0x150] sm:$0xff] %vm1373_vm3, %v7612_v41  ;;  %v6288_v53 = vld [vmem:[#allocation2 + $0x158] sm:$0xff]  ;;  %v5657_v54 = vpop.f32.mrf.mxu1  ;;  %v7238_v1 = vpop.f32.mrf.mxu0  ;;  %v4718_v28 = vld [vmem:[#allocation2 + $0x1b0] sm:$0xff] }
 0x2b3   : > { %8287 = vst.msk [vmem:[%s12016_s9 + $0x38] sm:$0xff] %vm1373_vm3, %v8255_v44  ;;  %8036 = vst.msk [vmem:[#allocation2 + $0x90] sm:$0xff] %vm1373_vm3, %v7972_v46  ;;  %v7970_v57 = vmax.f32 %v7858_v50, %v7862_v51  ;;  %v7613_v58 = vadd.f32 %v10434_v20, %v6288_v53  ;;  %v6034_v59 = vadd.f32 %v5657_v54, %v4709_v49  ;;  %v4712_v5 = vld [vmem:[#allocation2 + $0x180] sm:$0xff]  ;;  %v4719_v42 = vld [vmem:[#allocation2 + $0x1b8] sm:$0xff] }
 0x2b4   : > { %v8254_v56 = vadd.f32 %v12004_v9, %v8215_v45  ;;  %6164 = vst.msk [vmem:[#allocation2 + $0x178] sm:$0xff] %vm1373_vm3, %v6036_v48  ;;  %v7865_v62 = vld [vmem:[#allocation2 + $0x138] sm:$0xff]  ;;  %7738 = vst.msk [vmem:[#allocation2 + $0x140] sm:$0xff] %vm1373_vm3, %v7610_v52  ;;  %v6286_v63 = vld [vmem:[#allocation2 + $0x148] sm:$0xff]  ;;  %v10311_v0 = vpop.f32.mrf.mxu1  ;;  %v10441_v11 = vpop.f32.mrf.mxu0 }
 0x2b5   : > { %8034 = vst.msk [vmem:[#allocation2 + $0x80] sm:$0xff] %vm1373_vm3, %v7970_v57  ;;  %v7973_v2 = vmax.f32 %v7861_v61, %v7865_v62  ;;  %7741 = vst.msk [vmem:[#allocation2 + $0x158] sm:$0xff] %vm1373_vm3, %v7613_v58  ;;  %v7611_v3 = vadd.f32 %v7222_v25, %v6286_v63  ;;  %v6039_v4 = vadd.f32 %v10311_v0, %v4714_v60  ;;  %v4716_v35 = vld [vmem:[#allocation2 + $0x1a0] sm:$0xff]  ;;  %v4717_v54 = vld [vmem:[#allocation2 + $0x1a8] sm:$0xff] }
 0x2b6   : > { %8286 = vst.msk [vmem:[%s12016_s9 + $0x30] sm:$0xff] %vm1373_vm3, %v8254_v56  ;;  %6162 = vst.msk [vmem:[#allocation2 + $0x168] sm:$0xff] %vm1373_vm3, %v6034_v59  ;;  %v6291_v8 = vld [vmem:[#allocation2 + $0x170] sm:$0xff]  ;;  %v5670_v10 = vpop.f32.mrf.mxu1  ;;  %v7251_v19 = vpop.f32.mrf.mxu0 }
 0x2b7   : > { %v7863_v7 = vld [vmem:[#allocation2 + $0x128] sm:$0xff]  ;;  %8037 = vst.msk [vmem:[#allocation2 + $0x98] sm:$0xff] %vm1373_vm3, %v7973_v2  ;;  %7739 = vst.msk [vmem:[#allocation2 + $0x148] sm:$0xff] %vm1373_vm3, %v7611_v3  ;;  %v7616_v14 = vadd.f32 %v10437_v32, %v6291_v8  ;;  %v6037_v15 = vadd.f32 %v5670_v10, %v4712_v5 }
 0x2b8   : > { %v7971_v13 = vmax.f32 %v7859_v6, %v7863_v7  ;;  %6167 = vst.msk [vmem:[#allocation2 + $0x190] sm:$0xff] %vm1373_vm3, %v6039_v4  ;;  %v6289_v16 = vld [vmem:[#allocation2 + $0x160] sm:$0xff]  ;;  %v10312_v18 = vpop.f32.mrf.mxu1  ;;  %v10442_v24 = vpop.f32.mrf.mxu0 }
 0x2b9   : > { %7744 = vst.msk [vmem:[#allocation2 + $0x170] sm:$0xff] %vm1373_vm3, %v7616_v14  ;;  %v7614_v20 = vadd.f32 %v7235_v43, %v6289_v16  ;;  %6165 = vst.msk [vmem:[#allocation2 + $0x180] sm:$0xff] %vm1373_vm3, %v6037_v15  ;;  %v6040_v21 = vadd.f32 %v10312_v18, %v4715_v17  ;;  %v7868_v39 = vld [vmem:[#allocation2 + $0x150] sm:$0xff] }
 0x2ba   : > { %8035 = vst.msk [vmem:[#allocation2 + $0x88] sm:$0xff] %vm1373_vm3, %v7971_v13  ;;  %v5673_v12 = vpop.f32.mrf.mxu1  ;;  %v7254_v30 = vpop.f32.mrf.mxu0 }
 0x2bb   : > { %v6292_v22 = vld [vmem:[#allocation2 + $0x178] sm:$0xff]  ;;  %7742 = vst.msk [vmem:[#allocation2 + $0x160] sm:$0xff] %vm1373_vm3, %v7614_v20  ;;  %6168 = vst.msk [vmem:[#allocation2 + $0x198] sm:$0xff] %vm1373_vm3, %v6040_v21  ;;  %v6038_v26 = vadd.f32 %v5673_v12, %v4713_v23 }
 0x2bc   : > { %v7617_v25 = vadd.f32 %v10438_v55, %v6292_v22  ;;  %v10315_v29 = vpop.f32.mrf.mxu1  ;;  %v10445_v37 = vpop.f32.mrf.mxu0  ;;  %v7866_v55 = vld [vmem:[#allocation2 + $0x140] sm:$0xff]  ;;  %v7869_v2 = vld [vmem:[#allocation2 + $0x158] sm:$0xff] }
 0x2bd   : > { %v6290_v27 = vld [vmem:[#allocation2 + $0x168] sm:$0xff]  ;;  %6166 = vst.msk [vmem:[#allocation2 + $0x188] sm:$0xff] %vm1373_vm3, %v6038_v26  ;;  %v6043_v32 = vadd.f32 %v10315_v29, %v4718_v28  ;;  %v4723_v22 = vld [vmem:[#allocation2 + $0x1d8] sm:$0xff] }
 0x2be   : > { %7745 = vst.msk [vmem:[#allocation2 + $0x178] sm:$0xff] %vm1373_vm3, %v7617_v25  ;;  %v7615_v31 = vadd.f32 %v7238_v1, %v6290_v27  ;;  %v8100_v33 = vld [vmem:[#allocation2 + $0x90] ss:$2 sm:$0xff]  ;;  %v8164_v34 = vld [vmem:[#allocation2 + $0x91] ss:$2 sm:$0xff]  ;;  %v5686_v36 = vpop.f32.mrf.mxu1  ;;  %v7267_v48 = vpop.f32.mrf.mxu0  ;;  %v7867_v13 = vld [vmem:[#allocation2 + $0x148] sm:$0xff] }
 0x2bf   : > { %v8218_v38 = vmax.f32 %v8100_v33, %v8164_v34  ;;  %v6295_v40 = vld [vmem:[#allocation2 + $0x190] sm:$0xff]  ;;  %6171 = vst.msk [vmem:[#allocation2 + $0x1b0] sm:$0xff] %vm1373_vm3, %v6043_v32  ;;  %v6041_v41 = vadd.f32 %v5686_v36, %v4716_v35  ;;  %v4721_v27 = vld [vmem:[#allocation2 + $0x1c8] sm:$0xff] }
 0x2c0   : > { %7743 = vst.msk [vmem:[#allocation2 + $0x168] sm:$0xff] %vm1373_vm3, %v7615_v31  ;;  %v7872_v45 = vld [vmem:[#allocation2 + $0x170] sm:$0xff]  ;;  %v7620_v46 = vadd.f32 %v10441_v11, %v6295_v40  ;;  %v10316_v47 = vpop.f32.mrf.mxu1  ;;  %v6293_v52 = vld [vmem:[#allocation2 + $0x180] sm:$0xff]  ;;  %v10446_v60 = vpop.f32.mrf.mxu0 }
 0x2c1   : > { %v8098_v43 = vld [vmem:[#allocation2 + $0x80] ss:$2 sm:$0xff]  ;;  %v8162_v44 = vld [vmem:[#allocation2 + $0x81] ss:$2 sm:$0xff]  ;;  %v8257_v49 = vadd.f32 %v12004_v9, %v8218_v38  ;;  %v7976_v51 = vmax.f32 %v7868_v39, %v7872_v45  ;;  %6169 = vst.msk [vmem:[#allocation2 + $0x1a0] sm:$0xff] %vm1373_vm3, %v6041_v41  ;;  %v6044_v53 = vadd.f32 %v10316_v47, %v4719_v42  ;;  %v7618_v57 = vadd.f32 %v7251_v19, %v6293_v52  ;;  %v4722_v1 = vld [vmem:[#allocation2 + $0x1d0] sm:$0xff] }
 0x2c2   : > { %v8217_v50 = vmax.f32 %v8098_v43, %v8162_v44  ;;  %v7870_v56 = vld [vmem:[#allocation2 + $0x160] sm:$0xff]  ;;  %7748 = vst.msk [vmem:[#allocation2 + $0x190] sm:$0xff] %vm1373_vm3, %v7620_v46  ;;  %v6296_v58 = vld [vmem:[#allocation2 + $0x198] sm:$0xff]  ;;  %v5689_v59 = vpop.f32.mrf.mxu1  ;;  %v7270_v6 = vpop.f32.mrf.mxu0  ;;  %v4726_v33 = vld [vmem:[#allocation2 + $0x1f0] sm:$0xff] }
 0x2c3   : > { %8289 = vst.msk [vmem:[%s12016_s9 + $0x48] sm:$0xff] %vm1373_vm3, %v8257_v49  ;;  %8040 = vst.msk [vmem:[#allocation2 + $0xb0] sm:$0xff] %vm1373_vm3, %v7976_v51  ;;  %v7974_v62 = vmax.f32 %v7866_v55, %v7870_v56  ;;  %v7621_v63 = vadd.f32 %v10442_v24, %v6296_v58  ;;  %v6042_v0 = vadd.f32 %v5689_v59, %v4717_v54  ;;  %v4720_v11 = vld [vmem:[#allocation2 + $0x1c0] sm:$0xff]  ;;  %v4727_v47 = vld [vmem:[#allocation2 + $0x1f8] sm:$0xff] }
 0x2c4   : > { %v8256_v61 = vadd.f32 %v12004_v9, %v8217_v50  ;;  %6172 = vst.msk [vmem:[#allocation2 + $0x1b8] sm:$0xff] %vm1373_vm3, %v6044_v53  ;;  %7746 = vst.msk [vmem:[#allocation2 + $0x180] sm:$0xff] %vm1373_vm3, %v7618_v57  ;;  %v6294_v4 = vld [vmem:[#allocation2 + $0x188] sm:$0xff]  ;;  %v10319_v5 = vpop.f32.mrf.mxu1  ;;  %v10449_v17 = vpop.f32.mrf.mxu0  ;;  %v4724_v40 = vld [vmem:[#allocation2 + $0x1e0] sm:$0xff] }
 0x2c5   : > { %v7873_v3 = vld [vmem:[#allocation2 + $0x178] sm:$0xff]  ;;  %8038 = vst.msk [vmem:[#allocation2 + $0xa0] sm:$0xff] %vm1373_vm3, %v7974_v62  ;;  %7749 = vst.msk [vmem:[#allocation2 + $0x198] sm:$0xff] %vm1373_vm3, %v7621_v63  ;;  %v7619_v8 = vadd.f32 %v7254_v30, %v6294_v4  ;;  %v6047_v10 = vadd.f32 %v10319_v5, %v4722_v1  ;;  %v4725_v59 = vld [vmem:[#allocation2 + $0x1e8] sm:$0xff] }
 0x2c6   : > { %8288 = vst.msk [vmem:[%s12016_s9 + $0x40] sm:$0xff] %vm1373_vm3, %v8256_v61  ;;  %v7977_v7 = vmax.f32 %v7869_v2, %v7873_v3  ;;  %6170 = vst.msk [vmem:[#allocation2 + $0x1a8] sm:$0xff] %vm1373_vm3, %v6042_v0  ;;  %v6299_v15 = vld [vmem:[#allocation2 + $0x1b0] sm:$0xff]  ;;  %v5702_v16 = vpop.f32.mrf.mxu1  ;;  %v7283_v12 = vpop.f32.mrf.mxu0 }
 0x2c7   : > { %v7871_v14 = vld [vmem:[#allocation2 + $0x168] sm:$0xff]  ;;  %7747 = vst.msk [vmem:[#allocation2 + $0x188] sm:$0xff] %vm1373_vm3, %v7619_v8  ;;  %v7624_v19 = vadd.f32 %v10445_v37, %v6299_v15  ;;  %6175 = vst.msk [vmem:[#allocation2 + $0x1d0] sm:$0xff] %vm1373_vm3, %v6047_v10  ;;  %v6045_v20 = vadd.f32 %v5702_v16, %v4720_v11  ;;  %v4728_v16 = vld [vmem:[#allocation2 + $0x200] sm:$0xff] }
 0x2c8   : > { %8041 = vst.msk [vmem:[#allocation2 + $0xb8] sm:$0xff] %vm1373_vm3, %v7977_v7  ;;  %v7975_v18 = vmax.f32 %v7867_v13, %v7871_v14  ;;  %v6297_v21 = vld [vmem:[#allocation2 + $0x1a0] sm:$0xff]  ;;  %v10320_v23 = vpop.f32.mrf.mxu1  ;;  %v10450_v29 = vpop.f32.mrf.mxu0 }
 0x2c9   : > { %7752 = vst.msk [vmem:[#allocation2 + $0x1b0] sm:$0xff] %vm1373_vm3, %v7624_v19  ;;  %v7622_v24 = vadd.f32 %v7267_v48, %v6297_v21  ;;  %6173 = vst.msk [vmem:[#allocation2 + $0x1c0] sm:$0xff] %vm1373_vm3, %v6045_v20  ;;  %v6048_v25 = vadd.f32 %v10320_v23, %v4723_v22  ;;  %v7876_v44 = vld [vmem:[#allocation2 + $0x190] sm:$0xff] }
 0x2ca   : > { %8039 = vst.msk [vmem:[#allocation2 + $0xa8] sm:$0xff] %vm1373_vm3, %v7975_v18  ;;  %v5705_v28 = vpop.f32.mrf.mxu1  ;;  %v7286_v35 = vpop.f32.mrf.mxu0 }
 0x2cb   : > { %v6300_v26 = vld [vmem:[#allocation2 + $0x1b8] sm:$0xff]  ;;  %7750 = vst.msk [vmem:[#allocation2 + $0x1a0] sm:$0xff] %vm1373_vm3, %v7622_v24  ;;  %6176 = vst.msk [vmem:[#allocation2 + $0x1d8] sm:$0xff] %vm1373_vm3, %v6048_v25  ;;  %v6046_v31 = vadd.f32 %v5705_v28, %v4721_v27 }
 0x2cc   : > { %v7625_v30 = vadd.f32 %v10446_v60, %v6300_v26  ;;  %v10323_v34 = vpop.f32.mrf.mxu1  ;;  %v10453_v42 = vpop.f32.mrf.mxu0  ;;  %v7874_v60 = vld [vmem:[#allocation2 + $0x180] sm:$0xff]  ;;  %v7877_v7 = vld [vmem:[#allocation2 + $0x198] sm:$0xff] }
 0x2cd   : > { %v6298_v32 = vld [vmem:[#allocation2 + $0x1a8] sm:$0xff]  ;;  %6174 = vst.msk [vmem:[#allocation2 + $0x1c8] sm:$0xff] %vm1373_vm3, %v6046_v31  ;;  %v6051_v37 = vadd.f32 %v10323_v34, %v4726_v33  ;;  %v4731_v25 = vld [vmem:[#allocation2 + $0x218] sm:$0xff] }
 0x2ce   : > { %7753 = vst.msk [vmem:[#allocation2 + $0x1b8] sm:$0xff] %vm1373_vm3, %v7625_v30  ;;  %v7623_v36 = vadd.f32 %v7270_v6, %v6298_v32  ;;  %v5718_v41 = vpop.f32.mrf.mxu1  ;;  %v6303_v45 = vld [vmem:[#allocation2 + $0x1d0] sm:$0xff]  ;;  %v7299_v53 = vpop.f32.mrf.mxu0  ;;  %v4729_v31 = vld [vmem:[#allocation2 + $0x208] sm:$0xff] }
 0x2cf   : > { %v8104_v38 = vld [vmem:[#allocation2 + $0xb0] ss:$2 sm:$0xff]  ;;  %v8168_v39 = vld [vmem:[#allocation2 + $0xb1] ss:$2 sm:$0xff]  ;;  %6179 = vst.msk [vmem:[#allocation2 + $0x1f0] sm:$0xff] %vm1373_vm3, %v6051_v37  ;;  %v6049_v46 = vadd.f32 %v5718_v41, %v4724_v40  ;;  %v7628_v51 = vadd.f32 %v10449_v17, %v6303_v45  ;;  %v7875_v17 = vld [vmem:[#allocation2 + $0x188] sm:$0xff] }
 0x2d0   : > { %v8220_v43 = vmax.f32 %v8104_v38, %v8168_v39  ;;  %7751 = vst.msk [vmem:[#allocation2 + $0x1a8] sm:$0xff] %vm1373_vm3, %v7623_v36  ;;  %v7880_v50 = vld [vmem:[#allocation2 + $0x1b0] sm:$0xff]  ;;  %v10324_v52 = vpop.f32.mrf.mxu1  ;;  %v6301_v57 = vld [vmem:[#allocation2 + $0x1c0] sm:$0xff]  ;;  %v10454_v1 = vpop.f32.mrf.mxu0 }
 0x2d1   : > { %v8102_v48 = vld [vmem:[#allocation2 + $0xa0] ss:$2 sm:$0xff]  ;;  %v8166_v49 = vld [vmem:[#allocation2 + $0xa1] ss:$2 sm:$0xff]  ;;  %v7980_v56 = vmax.f32 %v7876_v44, %v7880_v50  ;;  %6177 = vst.msk [vmem:[#allocation2 + $0x1e0] sm:$0xff] %vm1373_vm3, %v6049_v46  ;;  %v6052_v58 = vadd.f32 %v10324_v52, %v4727_v47  ;;  %7756 = vst.msk [vmem:[#allocation2 + $0x1d0] sm:$0xff] %vm1373_vm3, %v7628_v51  ;;  %v7626_v62 = vadd.f32 %v7283_v12, %v6301_v57 }
 0x2d2   : > { %v8259_v54 = vadd.f32 %v12004_v9, %v8220_v43  ;;  %v8219_v55 = vmax.f32 %v8102_v48, %v8166_v49  ;;  %v7878_v61 = vld [vmem:[#allocation2 + $0x1a0] sm:$0xff]  ;;  %v6304_v63 = vld [vmem:[#allocation2 + $0x1d8] sm:$0xff]  ;;  %v5721_v0 = vpop.f32.mrf.mxu1  ;;  %v4730_v6 = vld [vmem:[#allocation2 + $0x210] sm:$0xff]  ;;  %v7302_v13 = vpop.f32.mrf.mxu0 }
 0x2d3   : > { %8044 = vst.msk [vmem:[#allocation2 + $0xd0] sm:$0xff] %vm1373_vm3, %v7980_v56  ;;  %v7978_v3 = vmax.f32 %v7874_v60, %v7878_v61  ;;  %v7629_v4 = vadd.f32 %v10450_v29, %v6304_v63  ;;  %6180 = vst.msk [vmem:[#allocation2 + $0x1f8] sm:$0xff] %vm1373_vm3, %v6052_v58  ;;  %v6050_v5 = vadd.f32 %v5721_v0, %v4725_v59  ;;  %v4734_v37 = vld [vmem:[#allocation2 + $0x230] sm:$0xff]  ;;  %v4732_v44 = vld [vmem:[#allocation2 + $0x220] sm:$0xff] }
 0x2d4   : > { %8291 = vst.msk [vmem:[%s12016_s9 + $0x58] sm:$0xff] %vm1373_vm3, %v8259_v54  ;;  %v8258_v2 = vadd.f32 %v12004_v9, %v8219_v55  ;;  %7754 = vst.msk [vmem:[#allocation2 + $0x1c0] sm:$0xff] %vm1373_vm3, %v7626_v62  ;;  %v6302_v10 = vld [vmem:[#allocation2 + $0x1c8] sm:$0xff]  ;;  %v10327_v11 = vpop.f32.mrf.mxu1  ;;  %v10457_v21 = vpop.f32.mrf.mxu0  ;;  %v4735_v51 = vld [vmem:[#allocation2 + $0x238] sm:$0xff] }
 0x2d5   : > { %v7881_v8 = vld [vmem:[#allocation2 + $0x1b8] sm:$0xff]  ;;  %8042 = vst.msk [vmem:[#allocation2 + $0xc0] sm:$0xff] %vm1373_vm3, %v7978_v3  ;;  %7757 = vst.msk [vmem:[#allocation2 + $0x1d8] sm:$0xff] %vm1373_vm3, %v7629_v4  ;;  %v7627_v14 = vadd.f32 %v7286_v35, %v6302_v10  ;;  %v6055_v15 = vadd.f32 %v10327_v11, %v4730_v6  ;;  %v12191_v58 = vld [vmem:[%s12422_s2] ss:$0 sm:$0xff] }
 0x2d6   : > { %8290 = vst.msk [vmem:[%s12016_s9 + $0x50] sm:$0xff] %vm1373_vm3, %v8258_v2  ;;  %v7981_v9 = vmax.f32 %v7877_v7, %v7881_v8  ;;  %6178 = vst.msk [vmem:[#allocation2 + $0x1e8] sm:$0xff] %vm1373_vm3, %v6050_v5  ;;  %v6307_v19 = vld [vmem:[#allocation2 + $0x1f0] sm:$0xff]  ;;  %v5734_v20 = vpop.f32.mrf.mxu1  ;;  %v7315_v27 = vpop.f32.mrf.mxu0  ;;  %v4733_v0 = vld [vmem:[#allocation2 + $0x228] sm:$0xff] }
 0x2d7   : > { %v7879_v18 = vld [vmem:[#allocation2 + $0x1a8] sm:$0xff]  ;;  %7755 = vst.msk [vmem:[#allocation2 + $0x1c8] sm:$0xff] %vm1373_vm3, %v7627_v14  ;;  %v7632_v23 = vadd.f32 %v10453_v42, %v6307_v19  ;;  %6183 = vst.msk [vmem:[#allocation2 + $0x210] sm:$0xff] %vm1373_vm3, %v6055_v15  ;;  %v6053_v12 = vadd.f32 %v5734_v20, %v4728_v16 }
 0x2d8   : > { %8045 = vst.msk [vmem:[#allocation2 + $0xd8] sm:$0xff] %vm1373_vm3, %v7981_v9  ;;  %v7979_v22 = vmax.f32 %v7875_v17, %v7879_v18  ;;  %v6305_v24 = vld [vmem:[#allocation2 + $0x1e0] sm:$0xff]  ;;  %v10328_v26 = vpop.f32.mrf.mxu1  ;;  %v10458_v33 = vpop.f32.mrf.mxu0  ;;  %v7884_v48 = vld [vmem:[#allocation2 + $0x1d0] sm:$0xff] }
 0x2d9   : > { %7760 = vst.msk [vmem:[#allocation2 + $0x1f0] sm:$0xff] %vm1373_vm3, %v7632_v23  ;;  %v7630_v28 = vadd.f32 %v7299_v53, %v6305_v24  ;;  %6181 = vst.msk [vmem:[#allocation2 + $0x200] sm:$0xff] %vm1373_vm3, %v6053_v12  ;;  %v6056_v29 = vadd.f32 %v10328_v26, %v4731_v25 }
 0x2da   : > { %8043 = vst.msk [vmem:[#allocation2 + $0xc8] sm:$0xff] %vm1373_vm3, %v7979_v22  ;;  %v6308_v30 = vld [vmem:[#allocation2 + $0x1f8] sm:$0xff]  ;;  %v5737_v32 = vpop.f32.mrf.mxu1  ;;  %v7318_v39 = vpop.f32.mrf.mxu0 }
 0x2db   : > { %7758 = vst.msk [vmem:[#allocation2 + $0x1e0] sm:$0xff] %vm1373_vm3, %v7630_v28  ;;  %v7633_v34 = vadd.f32 %v10454_v1, %v6308_v30  ;;  %6184 = vst.msk [vmem:[#allocation2 + $0x218] sm:$0xff] %vm1373_vm3, %v6056_v29  ;;  %v6054_v35 = vadd.f32 %v5737_v32, %v4729_v31  ;;  %v7882_v1 = vld [vmem:[#allocation2 + $0x1c0] sm:$0xff]  ;;  %v4739_v30 = vld [vmem:[#allocation2 + $0x258] sm:$0xff] }
 0x2dc   : > { %v10331_v38 = vpop.f32.mrf.mxu1  ;;  %v10461_v46 = vpop.f32.mrf.mxu0  ;;  %v7885_v9 = vld [vmem:[#allocation2 + $0x1d8] sm:$0xff] }
 0x2dd   : > { %v6306_v36 = vld [vmem:[#allocation2 + $0x1e8] sm:$0xff]  ;;  %7761 = vst.msk [vmem:[#allocation2 + $0x1f8] sm:$0xff] %vm1373_vm3, %v7633_v34  ;;  %6182 = vst.msk [vmem:[#allocation2 + $0x208] sm:$0xff] %vm1373_vm3, %v6054_v35  ;;  %v6059_v41 = vadd.f32 %v10331_v38, %v4734_v37 }
 0x2de   : > { %v7631_v40 = vadd.f32 %v7302_v13, %v6306_v36  ;;  %v5750_v45 = vpop.f32.mrf.mxu1  ;;  %v6311_v49 = vld [vmem:[#allocation2 + $0x210] sm:$0xff]  ;;  %v7331_v57 = vpop.f32.mrf.mxu0  ;;  %v7883_v22 = vld [vmem:[#allocation2 + $0x1c8] sm:$0xff] }
 0x2df   : > { %v8108_v42 = vld [vmem:[#allocation2 + $0xd0] ss:$2 sm:$0xff]  ;;  %v8172_v43 = vld [vmem:[#allocation2 + $0xd1] ss:$2 sm:$0xff]  ;;  %6187 = vst.msk [vmem:[#allocation2 + $0x230] sm:$0xff] %vm1373_vm3, %v6059_v41  ;;  %v6057_v50 = vadd.f32 %v5750_v45, %v4732_v44  ;;  %v7636_v55 = vadd.f32 %v10457_v21, %v6311_v49  ;;  %v4736_v21 = vld [vmem:[#allocation2 + $0x240] sm:$0xff] }
 0x2e0   : > { %v8222_v47 = vmax.f32 %v8108_v42, %v8172_v43  ;;  %7759 = vst.msk [vmem:[#allocation2 + $0x1e8] sm:$0xff] %vm1373_vm3, %v7631_v40  ;;  %v7888_v54 = vld [vmem:[#allocation2 + $0x1f0] sm:$0xff]  ;;  %v10332_v56 = vpop.f32.mrf.mxu1  ;;  %v6309_v62 = vld [vmem:[#allocation2 + $0x200] sm:$0xff]  ;;  %v10462_v6 = vpop.f32.mrf.mxu0  ;;  %v4737_v36 = vld [vmem:[#allocation2 + $0x248] sm:$0xff] }
 0x2e1   : > { %v8106_v52 = vld [vmem:[#allocation2 + $0xc0] ss:$2 sm:$0xff]  ;;  %v8170_v53 = vld [vmem:[#allocation2 + $0xc1] ss:$2 sm:$0xff]  ;;  %v7984_v61 = vmax.f32 %v7884_v48, %v7888_v54  ;;  %6185 = vst.msk [vmem:[#allocation2 + $0x220] sm:$0xff] %vm1373_vm3, %v6057_v50  ;;  %v6060_v63 = vadd.f32 %v10332_v56, %v4735_v51  ;;  %7764 = vst.msk [vmem:[#allocation2 + $0x210] sm:$0xff] %vm1373_vm3, %v7636_v55  ;;  %v7634_v3 = vadd.f32 %v7315_v27, %v6309_v62 }
 0x2e2   : > { %v8261_v59 = vadd.f32 %v12191_v58, %v8222_v47  ;;  %v8221_v60 = vmax.f32 %v8106_v52, %v8170_v53  ;;  %v7886_v2 = vld [vmem:[#allocation2 + $0x1e0] sm:$0xff]  ;;  %v6312_v4 = vld [vmem:[#allocation2 + $0x218] sm:$0xff]  ;;  %v5753_v5 = vpop.f32.mrf.mxu1  ;;  %v4738_v13 = vld [vmem:[#allocation2 + $0x250] sm:$0xff]  ;;  %v7334_v17 = vpop.f32.mrf.mxu0 }
 0x2e3   : > { %8048 = vst.msk [vmem:[#allocation2 + $0xf0] sm:$0xff] %vm1373_vm3, %v7984_v61  ;;  %v7982_v8 = vmax.f32 %v7882_v1, %v7886_v2  ;;  %v7637_v10 = vadd.f32 %v10458_v33, %v6312_v4  ;;  %6188 = vst.msk [vmem:[#allocation2 + $0x238] sm:$0xff] %vm1373_vm3, %v6060_v63  ;;  %v6058_v11 = vadd.f32 %v5753_v5, %v4733_v0  ;;  %v4742_v42 = vld [vmem:[#allocation2 + $0x270] sm:$0xff]  ;;  %v4740_v49 = vld [vmem:[#allocation2 + $0x260] sm:$0xff] }
 0x2e4   : > { %8293 = vst.msk [vmem:[%s12016_s9 + $0x68] sm:$0xff] %vm1373_vm3, %v8261_v59  ;;  %v8260_v7 = vadd.f32 %v12191_v58, %v8221_v60  ;;  %v7889_v14 = vld [vmem:[#allocation2 + $0x1f8] sm:$0xff]  ;;  %7762 = vst.msk [vmem:[#allocation2 + $0x200] sm:$0xff] %vm1373_vm3, %v7634_v3  ;;  %v6310_v15 = vld [vmem:[#allocation2 + $0x208] sm:$0xff]  ;;  %v10335_v16 = vpop.f32.mrf.mxu1  ;;  %v10465_v25 = vpop.f32.mrf.mxu0 }
 0x2e5   : > { %8046 = vst.msk [vmem:[#allocation2 + $0xe0] sm:$0xff] %vm1373_vm3, %v7982_v8  ;;  %v7985_v18 = vmax.f32 %v7885_v9, %v7889_v14  ;;  %7765 = vst.msk [vmem:[#allocation2 + $0x218] sm:$0xff] %vm1373_vm3, %v7637_v10  ;;  %v7635_v19 = vadd.f32 %v7318_v39, %v6310_v15  ;;  %v6063_v20 = vadd.f32 %v10335_v16, %v4738_v13  ;;  %v4743_v56 = vld [vmem:[#allocation2 + $0x278] sm:$0xff]  ;;  %v4741_v5 = vld [vmem:[#allocation2 + $0x268] sm:$0xff] }
 0x2e6   : > { %8292 = vst.msk [vmem:[%s12016_s9 + $0x60] sm:$0xff] %vm1373_vm3, %v8260_v7  ;;  %6186 = vst.msk [vmem:[#allocation2 + $0x228] sm:$0xff] %vm1373_vm3, %v6058_v11  ;;  %v6315_v12 = vld [vmem:[#allocation2 + $0x230] sm:$0xff]  ;;  %v5766_v24 = vpop.f32.mrf.mxu1  ;;  %v7347_v32 = vpop.f32.mrf.mxu0 }
 0x2e7   : > { %v7887_v23 = vld [vmem:[#allocation2 + $0x1e8] sm:$0xff]  ;;  %8049 = vst.msk [vmem:[#allocation2 + $0xf8] sm:$0xff] %vm1373_vm3, %v7985_v18  ;;  %7763 = vst.msk [vmem:[#allocation2 + $0x208] sm:$0xff] %vm1373_vm3, %v7635_v19  ;;  %v7640_v27 = vadd.f32 %v10461_v46, %v6315_v12  ;;  %v6061_v28 = vadd.f32 %v5766_v24, %v4736_v21 }
 0x2e8   : > { %v7983_v26 = vmax.f32 %v7883_v22, %v7887_v23  ;;  %6191 = vst.msk [vmem:[#allocation2 + $0x250] sm:$0xff] %vm1373_vm3, %v6063_v20  ;;  %v6313_v29 = vld [vmem:[#allocation2 + $0x220] sm:$0xff]  ;;  %v10336_v31 = vpop.f32.mrf.mxu1  ;;  %v10466_v38 = vpop.f32.mrf.mxu0  ;;  %v7892_v53 = vld [vmem:[#allocation2 + $0x210] sm:$0xff] }
 0x2e9   : > { %7768 = vst.msk [vmem:[#allocation2 + $0x230] sm:$0xff] %vm1373_vm3, %v7640_v27  ;;  %v7638_v33 = vadd.f32 %v7331_v57, %v6313_v29  ;;  %6189 = vst.msk [vmem:[#allocation2 + $0x240] sm:$0xff] %vm1373_vm3, %v6061_v28  ;;  %v6064_v34 = vadd.f32 %v10336_v31, %v4739_v30 }
 0x2ea   : > { %8047 = vst.msk [vmem:[#allocation2 + $0xe8] sm:$0xff] %vm1373_vm3, %v7983_v26  ;;  %v6316_v35 = vld [vmem:[#allocation2 + $0x238] sm:$0xff]  ;;  %v5769_v37 = vpop.f32.mrf.mxu1  ;;  %v7350_v44 = vpop.f32.mrf.mxu0 }
 0x2eb   : > { %7766 = vst.msk [vmem:[#allocation2 + $0x220] sm:$0xff] %vm1373_vm3, %v7638_v33  ;;  %v7641_v39 = vadd.f32 %v10462_v6, %v6316_v35  ;;  %6192 = vst.msk [vmem:[#allocation2 + $0x258] sm:$0xff] %vm1373_vm3, %v6064_v34  ;;  %v6062_v40 = vadd.f32 %v5769_v37, %v4737_v36  ;;  %v7890_v6 = vld [vmem:[#allocation2 + $0x200] sm:$0xff]  ;;  %v4747_v35 = vld [vmem:[#allocation2 + $0x298] sm:$0xff] }
 0x2ec   : > { %v10339_v43 = vpop.f32.mrf.mxu1  ;;  %v10469_v51 = vpop.f32.mrf.mxu0  ;;  %v7893_v18 = vld [vmem:[#allocation2 + $0x218] sm:$0xff] }
 0x2ed   : > { %v6314_v41 = vld [vmem:[#allocation2 + $0x228] sm:$0xff]  ;;  %7769 = vst.msk [vmem:[#allocation2 + $0x238] sm:$0xff] %vm1373_vm3, %v7641_v39  ;;  %6190 = vst.msk [vmem:[#allocation2 + $0x248] sm:$0xff] %vm1373_vm3, %v6062_v40  ;;  %v6067_v46 = vadd.f32 %v10339_v43, %v4742_v42 }
 0x2ee   : > { %v7639_v45 = vadd.f32 %v7334_v17, %v6314_v41  ;;  %v8112_v47 = vld [vmem:[#allocation2 + $0xf0] ss:$2 sm:$0xff]  ;;  %v8176_v48 = vld [vmem:[#allocation2 + $0xf1] ss:$2 sm:$0xff]  ;;  %v5782_v50 = vpop.f32.mrf.mxu1  ;;  %v7363_v63 = vpop.f32.mrf.mxu0  ;;  %v7891_v26 = vld [vmem:[#allocation2 + $0x208] sm:$0xff] }
 0x2ef   : > { %v8224_v52 = vmax.f32 %v8112_v47, %v8176_v48  ;;  %v6319_v54 = vld [vmem:[#allocation2 + $0x250] sm:$0xff]  ;;  %6195 = vst.msk [vmem:[#allocation2 + $0x270] sm:$0xff] %vm1373_vm3, %v6067_v46  ;;  %v6065_v55 = vadd.f32 %v5782_v50, %v4740_v49  ;;  %v4745_v41 = vld [vmem:[#allocation2 + $0x288] sm:$0xff] }
 0x2f0   : > { %7767 = vst.msk [vmem:[#allocation2 + $0x228] sm:$0xff] %vm1373_vm3, %v7639_v45  ;;  %v7896_v60 = vld [vmem:[#allocation2 + $0x230] sm:$0xff]  ;;  %v7644_v61 = vadd.f32 %v10465_v25, %v6319_v54  ;;  %v10340_v62 = vpop.f32.mrf.mxu1  ;;  %v6317_v3 = vld [vmem:[#allocation2 + $0x240] sm:$0xff]  ;;  %v10470_v13 = vpop.f32.mrf.mxu0 }
 0x2f1   : > { %v8110_v57 = vld [vmem:[#allocation2 + $0xe0] ss:$2 sm:$0xff]  ;;  %v8174_v59 = vld [vmem:[#allocation2 + $0xe1] ss:$2 sm:$0xff]  ;;  %v8263_v0 = vadd.f32 %v12191_v58, %v8224_v52  ;;  %v7988_v2 = vmax.f32 %v7892_v53, %v7896_v60  ;;  %6193 = vst.msk [vmem:[#allocation2 + $0x260] sm:$0xff] %vm1373_vm3, %v6065_v55  ;;  %v6068_v4 = vadd.f32 %v10340_v62, %v4743_v56  ;;  %v7642_v8 = vadd.f32 %v7347_v32, %v6317_v3  ;;  %v4746_v17 = vld [vmem:[#allocation2 + $0x290] sm:$0xff] }
 0x2f2   : > { %v8223_v1 = vmax.f32 %v8110_v57, %v8174_v59  ;;  %v7894_v7 = vld [vmem:[#allocation2 + $0x220] sm:$0xff]  ;;  %7772 = vst.msk [vmem:[#allocation2 + $0x250] sm:$0xff] %vm1373_vm3, %v7644_v61  ;;  %v6320_v10 = vld [vmem:[#allocation2 + $0x258] sm:$0xff]  ;;  %v5785_v11 = vpop.f32.mrf.mxu1  ;;  %v7366_v22 = vpop.f32.mrf.mxu0  ;;  %v4750_v47 = vld [vmem:[#allocation2 + $0x2b0] sm:$0xff] }
 0x2f3   : > { %8295 = vst.msk [vmem:[%s12016_s9 + $0x78] sm:$0xff] %vm1373_vm3, %v8263_v0  ;;  %8052 = vst.msk [vmem:[#allocation2 + $0x110] sm:$0xff] %vm1373_vm3, %v7988_v2  ;;  %v7986_v14 = vmax.f32 %v7890_v6, %v7894_v7  ;;  %v7645_v15 = vadd.f32 %v10466_v38, %v6320_v10  ;;  %v6066_v16 = vadd.f32 %v5785_v11, %v4741_v5  ;;  %v4744_v25 = vld [vmem:[#allocation2 + $0x280] sm:$0xff]  ;;  %v4751_v62 = vld [vmem:[#allocation2 + $0x2b8] sm:$0xff] }
 0x2f4   : > { %v8262_v9 = vadd.f32 %v12191_v58, %v8223_v1  ;;  %6196 = vst.msk [vmem:[#allocation2 + $0x278] sm:$0xff] %vm1373_vm3, %v6068_v4  ;;  %v7897_v19 = vld [vmem:[#allocation2 + $0x238] sm:$0xff]  ;;  %7770 = vst.msk [vmem:[#allocation2 + $0x240] sm:$0xff] %vm1373_vm3, %v7642_v8  ;;  %v6318_v20 = vld [vmem:[#allocation2 + $0x248] sm:$0xff]  ;;  %v10343_v21 = vpop.f32.mrf.mxu1  ;;  %v10473_v30 = vpop.f32.mrf.mxu0 }
 0x2f5   : > { %8050 = vst.msk [vmem:[#allocation2 + $0x100] sm:$0xff] %vm1373_vm3, %v7986_v14  ;;  %v7989_v23 = vmax.f32 %v7893_v18, %v7897_v19  ;;  %7773 = vst.msk [vmem:[#allocation2 + $0x258] sm:$0xff] %vm1373_vm3, %v7645_v15  ;;  %v7643_v12 = vadd.f32 %v7350_v44, %v6318_v20  ;;  %v6071_v24 = vadd.f32 %v10343_v21, %v4746_v17  ;;  %v4748_v54 = vld [vmem:[#allocation2 + $0x2a0] sm:$0xff]  ;;  %v4749_v11 = vld [vmem:[#allocation2 + $0x2a8] sm:$0xff] }
 0x2f6   : > { %8294 = vst.msk [vmem:[%s12016_s9 + $0x70] sm:$0xff] %vm1373_vm3, %v8262_v9  ;;  %6194 = vst.msk [vmem:[#allocation2 + $0x268] sm:$0xff] %vm1373_vm3, %v6066_v16  ;;  %v6323_v28 = vld [vmem:[#allocation2 + $0x270] sm:$0xff]  ;;  %v5798_v29 = vpop.f32.mrf.mxu1  ;;  %v7379_v37 = vpop.f32.mrf.mxu0 }
 0x2f7   : > { %v7895_v27 = vld [vmem:[#allocation2 + $0x228] sm:$0xff]  ;;  %8053 = vst.msk [vmem:[#allocation2 + $0x118] sm:$0xff] %vm1373_vm3, %v7989_v23  ;;  %7771 = vst.msk [vmem:[#allocation2 + $0x248] sm:$0xff] %vm1373_vm3, %v7643_v12  ;;  %v7648_v32 = vadd.f32 %v10469_v51, %v6323_v28  ;;  %v6069_v33 = vadd.f32 %v5798_v29, %v4744_v25 }
 0x2f8   : > { %v7987_v31 = vmax.f32 %v7891_v26, %v7895_v27  ;;  %6199 = vst.msk [vmem:[#allocation2 + $0x290] sm:$0xff] %vm1373_vm3, %v6071_v24  ;;  %v6321_v34 = vld [vmem:[#allocation2 + $0x260] sm:$0xff]  ;;  %v10344_v36 = vpop.f32.mrf.mxu1  ;;  %v10474_v43 = vpop.f32.mrf.mxu0 }
 0x2f9   : > { %7776 = vst.msk [vmem:[#allocation2 + $0x270] sm:$0xff] %vm1373_vm3, %v7648_v32  ;;  %v7646_v38 = vadd.f32 %v7363_v63, %v6321_v34  ;;  %6197 = vst.msk [vmem:[#allocation2 + $0x280] sm:$0xff] %vm1373_vm3, %v6069_v33  ;;  %v6072_v39 = vadd.f32 %v10344_v36, %v4747_v35  ;;  %v7900_v59 = vld [vmem:[#allocation2 + $0x250] sm:$0xff] }
 0x2fa   : > { %8051 = vst.msk [vmem:[#allocation2 + $0x108] sm:$0xff] %vm1373_vm3, %v7987_v31  ;;  %v5801_v42 = vpop.f32.mrf.mxu1  ;;  %v7382_v49 = vpop.f32.mrf.mxu0 }
 0x2fb   : > { %v6324_v40 = vld [vmem:[#allocation2 + $0x278] sm:$0xff]  ;;  %7774 = vst.msk [vmem:[#allocation2 + $0x260] sm:$0xff] %vm1373_vm3, %v7646_v38  ;;  %6200 = vst.msk [vmem:[#allocation2 + $0x298] sm:$0xff] %vm1373_vm3, %v6072_v39  ;;  %v6070_v45 = vadd.f32 %v5801_v42, %v4745_v41 }
 0x2fc   : > { %v7649_v44 = vadd.f32 %v10470_v13, %v6324_v40  ;;  %v10347_v48 = vpop.f32.mrf.mxu1  ;;  %v10477_v56 = vpop.f32.mrf.mxu0  ;;  %v7898_v13 = vld [vmem:[#allocation2 + $0x240] sm:$0xff]  ;;  %v7901_v23 = vld [vmem:[#allocation2 + $0x258] sm:$0xff] }
 0x2fd   : > { %v6322_v46 = vld [vmem:[#allocation2 + $0x268] sm:$0xff]  ;;  %6198 = vst.msk [vmem:[#allocation2 + $0x288] sm:$0xff] %vm1373_vm3, %v6070_v45  ;;  %v6075_v51 = vadd.f32 %v10347_v48, %v4750_v47  ;;  %v4755_v40 = vld [vmem:[#allocation2 + $0x2d8] sm:$0xff] }
 0x2fe   : > { %7777 = vst.msk [vmem:[#allocation2 + $0x278] sm:$0xff] %vm1373_vm3, %v7649_v44  ;;  %v7647_v50 = vadd.f32 %v7366_v22, %v6322_v46  ;;  %v8116_v52 = vld [vmem:[#allocation2 + $0x110] ss:$2 sm:$0xff]  ;;  %v8180_v53 = vld [vmem:[#allocation2 + $0x111] ss:$2 sm:$0xff]  ;;  %v5814_v55 = vpop.f32.mrf.mxu1  ;;  %v7395_v4 = vpop.f32.mrf.mxu0  ;;  %v7899_v31 = vld [vmem:[#allocation2 + $0x248] sm:$0xff] }
 0x2ff   : > { %v8226_v57 = vmax.f32 %v8116_v52, %v8180_v53  ;;  %v6327_v60 = vld [vmem:[#allocation2 + $0x290] sm:$0xff]  ;;  %6203 = vst.msk [vmem:[#allocation2 + $0x2b0] sm:$0xff] %vm1373_vm3, %v6075_v51  ;;  %v6073_v61 = vadd.f32 %v5814_v55, %v4748_v54  ;;  %v4753_v46 = vld [vmem:[#allocation2 + $0x2c8] sm:$0xff] }
 0x300   : > { %7775 = vst.msk [vmem:[#allocation2 + $0x268] sm:$0xff] %vm1373_vm3, %v7647_v50  ;;  %v7904_v1 = vld [vmem:[#allocation2 + $0x270] sm:$0xff]  ;;  %v7652_v2 = vadd.f32 %v10473_v30, %v6327_v60  ;;  %v10348_v3 = vpop.f32.mrf.mxu1  ;;  %v6325_v8 = vld [vmem:[#allocation2 + $0x280] sm:$0xff]  ;;  %v10478_v17 = vpop.f32.mrf.mxu0 }
 0x301   : > { %v8114_v63 = vld [vmem:[#allocation2 + $0x100] ss:$2 sm:$0xff]  ;;  %v8178_v0 = vld [vmem:[#allocation2 + $0x101] ss:$2 sm:$0xff]  ;;  %v8265_v5 = vadd.f32 %v12191_v58, %v8226_v57  ;;  %v7992_v7 = vmax.f32 %v7900_v59, %v7904_v1  ;;  %6201 = vst.msk [vmem:[#allocation2 + $0x2a0] sm:$0xff] %vm1373_vm3, %v6073_v61  ;;  %v6076_v10 = vadd.f32 %v10348_v3, %v4751_v62  ;;  %v7650_v14 = vadd.f32 %v7379_v37, %v6325_v8  ;;  %v4754_v22 = vld [vmem:[#allocation2 + $0x2d0] sm:$0xff] }
 0x302   : > { %v8225_v6 = vmax.f32 %v8114_v63, %v8178_v0  ;;  %v7902_v9 = vld [vmem:[#allocation2 + $0x260] sm:$0xff]  ;;  %7780 = vst.msk [vmem:[#allocation2 + $0x290] sm:$0xff] %vm1373_vm3, %v7652_v2  ;;  %v6328_v15 = vld [vmem:[#allocation2 + $0x298] sm:$0xff]  ;;  %v5817_v16 = vpop.f32.mrf.mxu1  ;;  %v7398_v26 = vpop.f32.mrf.mxu0  ;;  %v4758_v52 = vld [vmem:[#allocation2 + $0x2f0] sm:$0xff] }
 0x303   : > { %8297 = vst.msk [vmem:[%s12016_s9 + $0x88] sm:$0xff] %vm1373_vm3, %v8265_v5  ;;  %8056 = vst.msk [vmem:[#allocation2 + $0x130] sm:$0xff] %vm1373_vm3, %v7992_v7  ;;  %v7990_v19 = vmax.f32 %v7898_v13, %v7902_v9  ;;  %v7653_v20 = vadd.f32 %v10474_v43, %v6328_v15  ;;  %v6074_v21 = vadd.f32 %v5817_v16, %v4749_v11  ;;  %v4752_v30 = vld [vmem:[#allocation2 + $0x2c0] sm:$0xff]  ;;  %v4759_v3 = vld [vmem:[#allocation2 + $0x2f8] sm:$0xff] }
 0x304   : > { %v8264_v18 = vadd.f32 %v12191_v58, %v8225_v6  ;;  %6204 = vst.msk [vmem:[#allocation2 + $0x2b8] sm:$0xff] %vm1373_vm3, %v6076_v10  ;;  %7778 = vst.msk [vmem:[#allocation2 + $0x280] sm:$0xff] %vm1373_vm3, %v7650_v14  ;;  %v6326_v24 = vld [vmem:[#allocation2 + $0x288] sm:$0xff]  ;;  %v10351_v25 = vpop.f32.mrf.mxu1  ;;  %v10481_v35 = vpop.f32.mrf.mxu0  ;;  %v4756_v60 = vld [vmem:[#allocation2 + $0x2e0] sm:$0xff] }
 0x305   : > { %v7905_v12 = vld [vmem:[#allocation2 + $0x278] sm:$0xff]  ;;  %8054 = vst.msk [vmem:[#allocation2 + $0x120] sm:$0xff] %vm1373_vm3, %v7990_v19  ;;  %7781 = vst.msk [vmem:[#allocation2 + $0x298] sm:$0xff] %vm1373_vm3, %v7653_v20  ;;  %v7651_v28 = vadd.f32 %v7382_v49, %v6326_v24  ;;  %v6079_v29 = vadd.f32 %v10351_v25, %v4754_v22  ;;  %v4757_v16 = vld [vmem:[#allocation2 + $0x2e8] sm:$0xff] }
 0x306   : > { %8296 = vst.msk [vmem:[%s12016_s9 + $0x80] sm:$0xff] %vm1373_vm3, %v8264_v18  ;;  %v7993_v27 = vmax.f32 %v7901_v23, %v7905_v12  ;;  %6202 = vst.msk [vmem:[#allocation2 + $0x2a8] sm:$0xff] %vm1373_vm3, %v6074_v21  ;;  %v6331_v33 = vld [vmem:[#allocation2 + $0x2b0] sm:$0xff]  ;;  %v5830_v34 = vpop.f32.mrf.mxu1  ;;  %v7411_v42 = vpop.f32.mrf.mxu0 }
 0x307   : > { %v7903_v32 = vld [vmem:[#allocation2 + $0x268] sm:$0xff]  ;;  %7779 = vst.msk [vmem:[#allocation2 + $0x288] sm:$0xff] %vm1373_vm3, %v7651_v28  ;;  %v7656_v37 = vadd.f32 %v10477_v56, %v6331_v33  ;;  %6207 = vst.msk [vmem:[#allocation2 + $0x2d0] sm:$0xff] %vm1373_vm3, %v6079_v29  ;;  %v6077_v38 = vadd.f32 %v5830_v34, %v4752_v30 }
 0x308   : > { %8057 = vst.msk [vmem:[#allocation2 + $0x138] sm:$0xff] %vm1373_vm3, %v7993_v27  ;;  %v7991_v36 = vmax.f32 %v7899_v31, %v7903_v32  ;;  %v6329_v39 = vld [vmem:[#allocation2 + $0x2a0] sm:$0xff]  ;;  %v10352_v41 = vpop.f32.mrf.mxu1  ;;  %v10482_v48 = vpop.f32.mrf.mxu0 }
 0x309   : > { %7784 = vst.msk [vmem:[#allocation2 + $0x2b0] sm:$0xff] %vm1373_vm3, %v7656_v37  ;;  %v7654_v43 = vadd.f32 %v7395_v4, %v6329_v39  ;;  %6205 = vst.msk [vmem:[#allocation2 + $0x2c0] sm:$0xff] %vm1373_vm3, %v6077_v38  ;;  %v6080_v44 = vadd.f32 %v10352_v41, %v4755_v40  ;;  %v7908_v0 = vld [vmem:[#allocation2 + $0x290] sm:$0xff] }
 0x30a   : > { %8055 = vst.msk [vmem:[#allocation2 + $0x128] sm:$0xff] %vm1373_vm3, %v7991_v36  ;;  %v5833_v47 = vpop.f32.mrf.mxu1  ;;  %v7414_v54 = vpop.f32.mrf.mxu0 }
 0x30b   : > { %v6332_v45 = vld [vmem:[#allocation2 + $0x2b8] sm:$0xff]  ;;  %7782 = vst.msk [vmem:[#allocation2 + $0x2a0] sm:$0xff] %vm1373_vm3, %v7654_v43  ;;  %6208 = vst.msk [vmem:[#allocation2 + $0x2d8] sm:$0xff] %vm1373_vm3, %v6080_v44  ;;  %v6078_v50 = vadd.f32 %v5833_v47, %v4753_v46 }
 0x30c   : > { %v7657_v49 = vadd.f32 %v10478_v17, %v6332_v45  ;;  %v10355_v53 = vpop.f32.mrf.mxu1  ;;  %v10485_v62 = vpop.f32.mrf.mxu0  ;;  %v7906_v17 = vld [vmem:[#allocation2 + $0x280] sm:$0xff]  ;;  %v7909_v27 = vld [vmem:[#allocation2 + $0x298] sm:$0xff] }
 0x30d   : > { %v6330_v51 = vld [vmem:[#allocation2 + $0x2a8] sm:$0xff]  ;;  %6206 = vst.msk [vmem:[#allocation2 + $0x2c8] sm:$0xff] %vm1373_vm3, %v6078_v50  ;;  %v6083_v56 = vadd.f32 %v10355_v53, %v4758_v52  ;;  %v4763_v45 = vld [vmem:[#allocation2 + $0x318] sm:$0xff] }
 0x30e   : > { %7785 = vst.msk [vmem:[#allocation2 + $0x2b8] sm:$0xff] %vm1373_vm3, %v7657_v49  ;;  %v7655_v55 = vadd.f32 %v7398_v26, %v6330_v51  ;;  %v5846_v61 = vpop.f32.mrf.mxu1  ;;  %v6335_v1 = vld [vmem:[#allocation2 + $0x2d0] sm:$0xff]  ;;  %v7427_v10 = vpop.f32.mrf.mxu0  ;;  %v7907_v36 = vld [vmem:[#allocation2 + $0x288] sm:$0xff] }
 0x30f   : > { %v8120_v57 = vld [vmem:[#allocation2 + $0x130] ss:$2 sm:$0xff]  ;;  %v8184_v59 = vld [vmem:[#allocation2 + $0x131] ss:$2 sm:$0xff]  ;;  %6211 = vst.msk [vmem:[#allocation2 + $0x2f0] sm:$0xff] %vm1373_vm3, %v6083_v56  ;;  %v6081_v2 = vadd.f32 %v5846_v61, %v4756_v60  ;;  %v7660_v7 = vadd.f32 %v10481_v35, %v6335_v1  ;;  %v4760_v35 = vld [vmem:[#allocation2 + $0x300] sm:$0xff] }
 0x310   : > { %v8228_v63 = vmax.f32 %v8120_v57, %v8184_v59  ;;  %7783 = vst.msk [vmem:[#allocation2 + $0x2a8] sm:$0xff] %vm1373_vm3, %v7655_v55  ;;  %v7912_v6 = vld [vmem:[#allocation2 + $0x2b0] sm:$0xff]  ;;  %v10356_v8 = vpop.f32.mrf.mxu1  ;;  %v6333_v14 = vld [vmem:[#allocation2 + $0x2c0] sm:$0xff]  ;;  %v10486_v22 = vpop.f32.mrf.mxu0  ;;  %v4761_v51 = vld [vmem:[#allocation2 + $0x308] sm:$0xff] }
 0x311   : > { %v8118_v4 = vld [vmem:[#allocation2 + $0x120] ss:$2 sm:$0xff]  ;;  %v8182_v5 = vld [vmem:[#allocation2 + $0x121] ss:$2 sm:$0xff]  ;;  %v7996_v9 = vmax.f32 %v7908_v0, %v7912_v6  ;;  %6209 = vst.msk [vmem:[#allocation2 + $0x2e0] sm:$0xff] %vm1373_vm3, %v6081_v2  ;;  %v6084_v15 = vadd.f32 %v10356_v8, %v4759_v3  ;;  %7788 = vst.msk [vmem:[#allocation2 + $0x2d0] sm:$0xff] %vm1373_vm3, %v7660_v7  ;;  %v7658_v19 = vadd.f32 %v7411_v42, %v6333_v14 }
 0x312   : > { %v8267_v11 = vadd.f32 %v12191_v58, %v8228_v63  ;;  %v8227_v13 = vmax.f32 %v8118_v4, %v8182_v5  ;;  %v7910_v18 = vld [vmem:[#allocation2 + $0x2a0] sm:$0xff]  ;;  %v6336_v20 = vld [vmem:[#allocation2 + $0x2d8] sm:$0xff]  ;;  %v5849_v21 = vpop.f32.mrf.mxu1  ;;  %v4762_v26 = vld [vmem:[#allocation2 + $0x310] sm:$0xff]  ;;  %v7430_v31 = vpop.f32.mrf.mxu0 }
 0x313   : > { %8060 = vst.msk [vmem:[#allocation2 + $0x150] sm:$0xff] %vm1373_vm3, %v7996_v9  ;;  %v7994_v12 = vmax.f32 %v7906_v17, %v7910_v18  ;;  %v7661_v24 = vadd.f32 %v10482_v48, %v6336_v20  ;;  %6212 = vst.msk [vmem:[#allocation2 + $0x2f8] sm:$0xff] %vm1373_vm3, %v6084_v15  ;;  %v6082_v25 = vadd.f32 %v5849_v21, %v4757_v16  ;;  %v4766_v57 = vld [vmem:[#allocation2 + $0x330] sm:$0xff]  ;;  %v4764_v1 = vld [vmem:[#allocation2 + $0x320] sm:$0xff] }
 0x314   : > { %8299 = vst.msk [vmem:[%s12016_s9 + $0x98] sm:$0xff] %vm1373_vm3, %v8267_v11  ;;  %v8266_v23 = vadd.f32 %v12191_v58, %v8227_v13  ;;  %7786 = vst.msk [vmem:[#allocation2 + $0x2c0] sm:$0xff] %vm1373_vm3, %v7658_v19  ;;  %v6334_v29 = vld [vmem:[#allocation2 + $0x2c8] sm:$0xff]  ;;  %v10359_v30 = vpop.f32.mrf.mxu1  ;;  %v10489_v40 = vpop.f32.mrf.mxu0  ;;  %v4767_v8 = vld [vmem:[#allocation2 + $0x338] sm:$0xff] }
 0x315   : > { %v7913_v28 = vld [vmem:[#allocation2 + $0x2b8] sm:$0xff]  ;;  %8058 = vst.msk [vmem:[#allocation2 + $0x140] sm:$0xff] %vm1373_vm3, %v7994_v12  ;;  %7789 = vst.msk [vmem:[#allocation2 + $0x2d8] sm:$0xff] %vm1373_vm3, %v7661_v24  ;;  %v7659_v33 = vadd.f32 %v7414_v54, %v6334_v29  ;;  %v6087_v34 = vadd.f32 %v10359_v30, %v4762_v26  ;;  %v4765_v21 = vld [vmem:[#allocation2 + $0x328] sm:$0xff] }
 0x316   : > { %8298 = vst.msk [vmem:[%s12016_s9 + $0x90] sm:$0xff] %vm1373_vm3, %v8266_v23  ;;  %v7997_v32 = vmax.f32 %v7909_v27, %v7913_v28  ;;  %6210 = vst.msk [vmem:[#allocation2 + $0x2e8] sm:$0xff] %vm1373_vm3, %v6082_v25  ;;  %v6339_v38 = vld [vmem:[#allocation2 + $0x2f0] sm:$0xff]  ;;  %v5862_v39 = vpop.f32.mrf.mxu1  ;;  %v7443_v47 = vpop.f32.mrf.mxu0 }
 0x317   : > { %v7911_v37 = vld [vmem:[#allocation2 + $0x2a8] sm:$0xff]  ;;  %7787 = vst.msk [vmem:[#allocation2 + $0x2c8] sm:$0xff] %vm1373_vm3, %v7659_v33  ;;  %v7664_v42 = vadd.f32 %v10485_v62, %v6339_v38  ;;  %6215 = vst.msk [vmem:[#allocation2 + $0x310] sm:$0xff] %vm1373_vm3, %v6087_v34  ;;  %v6085_v43 = vadd.f32 %v5862_v39, %v4760_v35 }
 0x318   : > { %8061 = vst.msk [vmem:[#allocation2 + $0x158] sm:$0xff] %vm1373_vm3, %v7997_v32  ;;  %v7995_v41 = vmax.f32 %v7907_v36, %v7911_v37  ;;  %v6337_v44 = vld [vmem:[#allocation2 + $0x2e0] sm:$0xff]  ;;  %v10360_v46 = vpop.f32.mrf.mxu1  ;;  %v10490_v53 = vpop.f32.mrf.mxu0  ;;  %v7916_v5 = vld [vmem:[#allocation2 + $0x2d0] sm:$0xff] }
 0x319   : > { %7792 = vst.msk [vmem:[#allocation2 + $0x2f0] sm:$0xff] %vm1373_vm3, %v7664_v42  ;;  %v7662_v48 = vadd.f32 %v7427_v10, %v6337_v44  ;;  %6213 = vst.msk [vmem:[#allocation2 + $0x300] sm:$0xff] %vm1373_vm3, %v6085_v43  ;;  %v6088_v49 = vadd.f32 %v10360_v46, %v4763_v45 }
 0x31a   : > { %8059 = vst.msk [vmem:[#allocation2 + $0x148] sm:$0xff] %vm1373_vm3, %v7995_v41  ;;  %v6340_v50 = vld [vmem:[#allocation2 + $0x2f8] sm:$0xff]  ;;  %v5865_v52 = vpop.f32.mrf.mxu1  ;;  %v7446_v60 = vpop.f32.mrf.mxu0 }
 0x31b   : > { %7790 = vst.msk [vmem:[#allocation2 + $0x2e0] sm:$0xff] %vm1373_vm3, %v7662_v48  ;;  %v7665_v54 = vadd.f32 %v10486_v22, %v6340_v50  ;;  %6216 = vst.msk [vmem:[#allocation2 + $0x318] sm:$0xff] %vm1373_vm3, %v6088_v49  ;;  %v6086_v55 = vadd.f32 %v5865_v52, %v4761_v51  ;;  %v7914_v22 = vld [vmem:[#allocation2 + $0x2c0] sm:$0xff]  ;;  %v4771_v50 = vld [vmem:[#allocation2 + $0x358] sm:$0xff] }
 0x31c   : > { %v10363_v59 = vpop.f32.mrf.mxu1  ;;  %v10493_v3 = vpop.f32.mrf.mxu0  ;;  %v7917_v32 = vld [vmem:[#allocation2 + $0x2d8] sm:$0xff] }
 0x31d   : > { %v6338_v56 = vld [vmem:[#allocation2 + $0x2e8] sm:$0xff]  ;;  %7793 = vst.msk [vmem:[#allocation2 + $0x2f8] sm:$0xff] %vm1373_vm3, %v7665_v54  ;;  %6214 = vst.msk [vmem:[#allocation2 + $0x308] sm:$0xff] %vm1373_vm3, %v6086_v55  ;;  %v6091_v62 = vadd.f32 %v10363_v59, %v4766_v57 }
 0x31e   : > { %v7663_v61 = vadd.f32 %v7430_v31, %v6338_v56  ;;  %v5878_v2 = vpop.f32.mrf.mxu1  ;;  %v6343_v6 = vld [vmem:[#allocation2 + $0x310] sm:$0xff]  ;;  %v7459_v15 = vpop.f32.mrf.mxu0  ;;  %v7915_v41 = vld [vmem:[#allocation2 + $0x2c8] sm:$0xff] }
 0x31f   : > { %v8124_v63 = vld [vmem:[#allocation2 + $0x150] ss:$2 sm:$0xff]  ;;  %v8188_v0 = vld [vmem:[#allocation2 + $0x151] ss:$2 sm:$0xff]  ;;  %6219 = vst.msk [vmem:[#allocation2 + $0x330] sm:$0xff] %vm1373_vm3, %v6091_v62  ;;  %v6089_v7 = vadd.f32 %v5878_v2, %v4764_v1  ;;  %v7668_v9 = vadd.f32 %v10489_v40, %v6343_v6  ;;  %v4768_v40 = vld [vmem:[#allocation2 + $0x340] sm:$0xff] }
 0x320   : > { %v8230_v4 = vmax.f32 %v8124_v63, %v8188_v0  ;;  %7791 = vst.msk [vmem:[#allocation2 + $0x2e8] sm:$0xff] %vm1373_vm3, %v7663_v61  ;;  %v7920_v13 = vld [vmem:[#allocation2 + $0x2f0] sm:$0xff]  ;;  %v10364_v14 = vpop.f32.mrf.mxu1  ;;  %v6341_v19 = vld [vmem:[#allocation2 + $0x300] sm:$0xff]  ;;  %v10494_v26 = vpop.f32.mrf.mxu0  ;;  %v4769_v56 = vld [vmem:[#allocation2 + $0x348] sm:$0xff] }
 0x321   : > { %v8122_v10 = vld [vmem:[#allocation2 + $0x140] ss:$2 sm:$0xff]  ;;  %v8186_v11 = vld [vmem:[#allocation2 + $0x141] ss:$2 sm:$0xff]  ;;  %v8000_v18 = vmax.f32 %v7916_v5, %v7920_v13  ;;  %6217 = vst.msk [vmem:[#allocation2 + $0x320] sm:$0xff] %vm1373_vm3, %v6089_v7  ;;  %v6092_v20 = vadd.f32 %v10364_v14, %v4767_v8  ;;  %7796 = vst.msk [vmem:[#allocation2 + $0x310] sm:$0xff] %vm1373_vm3, %v7668_v9  ;;  %v7666_v12 = vadd.f32 %v7443_v47, %v6341_v19 }
 0x322   : > { %v8269_v16 = vadd.f32 %v12191_v58, %v8230_v4  ;;  %v8229_v17 = vmax.f32 %v8122_v10, %v8186_v11  ;;  %v7918_v23 = vld [vmem:[#allocation2 + $0x2e0] sm:$0xff]  ;;  %v6344_v24 = vld [vmem:[#allocation2 + $0x318] sm:$0xff]  ;;  %v5881_v25 = vpop.f32.mrf.mxu1  ;;  %v4770_v31 = vld [vmem:[#allocation2 + $0x350] sm:$0xff]  ;;  %v7462_v36 = vpop.f32.mrf.mxu0 }
 0x323   : > { %8064 = vst.msk [vmem:[#allocation2 + $0x170] sm:$0xff] %vm1373_vm3, %v8000_v18  ;;  %v7998_v28 = vmax.f32 %v7914_v22, %v7918_v23  ;;  %v7669_v29 = vadd.f32 %v10490_v53, %v6344_v24  ;;  %6220 = vst.msk [vmem:[#allocation2 + $0x338] sm:$0xff] %vm1373_vm3, %v6092_v20  ;;  %v6090_v30 = vadd.f32 %v5881_v25, %v4765_v21  ;;  %v4774_v63 = vld [vmem:[#allocation2 + $0x370] sm:$0xff]  ;;  %v4772_v6 = vld [vmem:[#allocation2 + $0x360] sm:$0xff] }
 0x324   : > { %8301 = vst.msk [vmem:[%s12016_s9 + $0xa8] sm:$0xff] %vm1373_vm3, %v8269_v16  ;;  %v8268_v27 = vadd.f32 %v12191_v58, %v8229_v17  ;;  %v7921_v33 = vld [vmem:[#allocation2 + $0x2f8] sm:$0xff]  ;;  %7794 = vst.msk [vmem:[#allocation2 + $0x300] sm:$0xff] %vm1373_vm3, %v7666_v12  ;;  %v6342_v34 = vld [vmem:[#allocation2 + $0x308] sm:$0xff]  ;;  %v10367_v35 = vpop.f32.mrf.mxu1  ;;  %v10497_v45 = vpop.f32.mrf.mxu0 }
 0x325   : > { %8062 = vst.msk [vmem:[#allocation2 + $0x160] sm:$0xff] %vm1373_vm3, %v7998_v28  ;;  %v8001_v37 = vmax.f32 %v7917_v32, %v7921_v33  ;;  %7797 = vst.msk [vmem:[#allocation2 + $0x318] sm:$0xff] %vm1373_vm3, %v7669_v29  ;;  %v7667_v38 = vadd.f32 %v7446_v60, %v6342_v34  ;;  %v6095_v39 = vadd.f32 %v10367_v35, %v4770_v31  ;;  %v4775_v14 = vld [vmem:[#allocation2 + $0x378] sm:$0xff]  ;;  %v4773_v25 = vld [vmem:[#allocation2 + $0x368] sm:$0xff] }
 0x326   : > { %8300 = vst.msk [vmem:[%s12016_s9 + $0xa0] sm:$0xff] %vm1373_vm3, %v8268_v27  ;;  %6218 = vst.msk [vmem:[#allocation2 + $0x328] sm:$0xff] %vm1373_vm3, %v6090_v30  ;;  %v6347_v43 = vld [vmem:[#allocation2 + $0x330] sm:$0xff]  ;;  %v5894_v44 = vpop.f32.mrf.mxu1  ;;  %v7475_v52 = vpop.f32.mrf.mxu0 }
 0x327   : > { %v7919_v42 = vld [vmem:[#allocation2 + $0x2e8] sm:$0xff]  ;;  %8065 = vst.msk [vmem:[#allocation2 + $0x178] sm:$0xff] %vm1373_vm3, %v8001_v37  ;;  %7795 = vst.msk [vmem:[#allocation2 + $0x308] sm:$0xff] %vm1373_vm3, %v7667_v38  ;;  %v7672_v47 = vadd.f32 %v10493_v3, %v6347_v43  ;;  %v6093_v48 = vadd.f32 %v5894_v44, %v4768_v40  ;;  %v4776_v44 = vld [vmem:[#allocation2 + $0x380] sm:$0xff] }
 0x328   : > { %v7999_v46 = vmax.f32 %v7915_v41, %v7919_v42  ;;  %6223 = vst.msk [vmem:[#allocation2 + $0x350] sm:$0xff] %vm1373_vm3, %v6095_v39  ;;  %v6345_v49 = vld [vmem:[#allocation2 + $0x320] sm:$0xff]  ;;  %v10368_v51 = vpop.f32.mrf.mxu1  ;;  %v10498_v59 = vpop.f32.mrf.mxu0  ;;  %v7924_v11 = vld [vmem:[#allocation2 + $0x310] sm:$0xff] }
 0x329   : > { %7800 = vst.msk [vmem:[#allocation2 + $0x330] sm:$0xff] %vm1373_vm3, %v7672_v47  ;;  %v7670_v53 = vadd.f32 %v7459_v15, %v6345_v49  ;;  %6221 = vst.msk [vmem:[#allocation2 + $0x340] sm:$0xff] %vm1373_vm3, %v6093_v48  ;;  %v6096_v54 = vadd.f32 %v10368_v51, %v4771_v50 }
 0x32a   : > { %8063 = vst.msk [vmem:[#allocation2 + $0x168] sm:$0xff] %vm1373_vm3, %v7999_v46  ;;  %v6348_v55 = vld [vmem:[#allocation2 + $0x338] sm:$0xff]  ;;  %v5897_v57 = vpop.f32.mrf.mxu1  ;;  %v7478_v1 = vpop.f32.mrf.mxu0 }
 0x32b   : > { %7798 = vst.msk [vmem:[#allocation2 + $0x320] sm:$0xff] %vm1373_vm3, %v7670_v53  ;;  %v7673_v60 = vadd.f32 %v10494_v26, %v6348_v55  ;;  %6224 = vst.msk [vmem:[#allocation2 + $0x358] sm:$0xff] %vm1373_vm3, %v6096_v54  ;;  %v6094_v61 = vadd.f32 %v5897_v57, %v4769_v56  ;;  %v7922_v26 = vld [vmem:[#allocation2 + $0x300] sm:$0xff]  ;;  %v4779_v54 = vld [vmem:[#allocation2 + $0x398] sm:$0xff] }
 0x32c   : > { %v10371_v0 = vpop.f32.mrf.mxu1  ;;  %v10501_v8 = vpop.f32.mrf.mxu0  ;;  %v7925_v37 = vld [vmem:[#allocation2 + $0x318] sm:$0xff] }
 0x32d   : > { %v6346_v62 = vld [vmem:[#allocation2 + $0x328] sm:$0xff]  ;;  %7801 = vst.msk [vmem:[#allocation2 + $0x338] sm:$0xff] %vm1373_vm3, %v7673_v60  ;;  %6222 = vst.msk [vmem:[#allocation2 + $0x348] sm:$0xff] %vm1373_vm3, %v6094_v61  ;;  %v6099_v3 = vadd.f32 %v10371_v0, %v4774_v63 }
 0x32e   : > { %v7671_v2 = vadd.f32 %v7462_v36, %v6346_v62  ;;  %v8128_v4 = vld [vmem:[#allocation2 + $0x170] ss:$2 sm:$0xff]  ;;  %v8192_v5 = vld [vmem:[#allocation2 + $0x171] ss:$2 sm:$0xff]  ;;  %v5910_v7 = vpop.f32.mrf.mxu1  ;;  %v7491_v20 = vpop.f32.mrf.mxu0  ;;  %v4777_v61 = vld [vmem:[#allocation2 + $0x388] sm:$0xff] }
 0x32f   : > { %v8232_v10 = vmax.f32 %v8128_v4, %v8192_v5  ;;  %v6351_v13 = vld [vmem:[#allocation2 + $0x350] sm:$0xff]  ;;  %6227 = vst.msk [vmem:[#allocation2 + $0x370] sm:$0xff] %vm1373_vm3, %v6099_v3  ;;  %v6097_v9 = vadd.f32 %v5910_v7, %v4772_v6 }
 0x330   : > { %7799 = vst.msk [vmem:[#allocation2 + $0x328] sm:$0xff] %vm1373_vm3, %v7671_v2  ;;  %v7928_v17 = vld [vmem:[#allocation2 + $0x330] sm:$0xff]  ;;  %v7676_v18 = vadd.f32 %v10497_v45, %v6351_v13  ;;  %v10372_v19 = vpop.f32.mrf.mxu1  ;;  %v6349_v12 = vld [vmem:[#allocation2 + $0x340] sm:$0xff]  ;;  %v10502_v31 = vpop.f32.mrf.mxu0  ;;  %v7923_v45 = vld [vmem:[#allocation2 + $0x308] sm:$0xff] }
 0x331   : > { %v8126_v15 = vld [vmem:[#allocation2 + $0x160] ss:$2 sm:$0xff]  ;;  %v8190_v16 = vld [vmem:[#allocation2 + $0x161] ss:$2 sm:$0xff]  ;;  %v8271_v21 = vadd.f32 %v12191_v58, %v8232_v10  ;;  %v8004_v23 = vmax.f32 %v7924_v11, %v7928_v17  ;;  %6225 = vst.msk [vmem:[#allocation2 + $0x360] sm:$0xff] %vm1373_vm3, %v6097_v9  ;;  %v6100_v24 = vadd.f32 %v10372_v19, %v4775_v14  ;;  %v7674_v28 = vadd.f32 %v7475_v52, %v6349_v12  ;;  %v4778_v36 = vld [vmem:[#allocation2 + $0x390] sm:$0xff] }
 0x332   : > { %v8231_v22 = vmax.f32 %v8126_v15, %v8190_v16  ;;  %v7926_v27 = vld [vmem:[#allocation2 + $0x320] sm:$0xff]  ;;  %7804 = vst.msk [vmem:[#allocation2 + $0x350] sm:$0xff] %vm1373_vm3, %v7676_v18  ;;  %v6352_v29 = vld [vmem:[#allocation2 + $0x358] sm:$0xff]  ;;  %v5913_v30 = vpop.f32.mrf.mxu1  ;;  %v7494_v41 = vpop.f32.mrf.mxu0  ;;  %v4782_v3 = vld [vmem:[#allocation2 + $0x3b0] sm:$0xff] }
 0x333   : > { %8303 = vst.msk [vmem:[%s12016_s9 + $0xb8] sm:$0xff] %vm1373_vm3, %v8271_v21  ;;  %8068 = vst.msk [vmem:[#allocation2 + $0x190] sm:$0xff] %vm1373_vm3, %v8004_v23  ;;  %v8002_v33 = vmax.f32 %v7922_v26, %v7926_v27  ;;  %v7677_v34 = vadd.f32 %v10498_v59, %v6352_v29  ;;  %v6098_v35 = vadd.f32 %v5913_v30, %v4773_v25  ;;  %v4780_v11 = vld [vmem:[#allocation2 + $0x3a0] sm:$0xff]  ;;  %v4783_v18 = vld [vmem:[#allocation2 + $0x3b8] sm:$0xff] }
 0x334   : > { %v8270_v32 = vadd.f32 %v12191_v58, %v8231_v22  ;;  %6228 = vst.msk [vmem:[#allocation2 + $0x378] sm:$0xff] %vm1373_vm3, %v6100_v24  ;;  %v7929_v38 = vld [vmem:[#allocation2 + $0x338] sm:$0xff]  ;;  %7802 = vst.msk [vmem:[#allocation2 + $0x340] sm:$0xff] %vm1373_vm3, %v7674_v28  ;;  %v6350_v39 = vld [vmem:[#allocation2 + $0x348] sm:$0xff]  ;;  %v10375_v40 = vpop.f32.mrf.mxu1  ;;  %v10505_v49 = vpop.f32.mrf.mxu0 }
 0x335   : > { %8066 = vst.msk [vmem:[#allocation2 + $0x180] sm:$0xff] %vm1373_vm3, %v8002_v33  ;;  %v8005_v58 = vmax.f32 %v7925_v37, %v7929_v38  ;;  %7805 = vst.msk [vmem:[#allocation2 + $0x358] sm:$0xff] %vm1373_vm3, %v7677_v34  ;;  %v7675_v42 = vadd.f32 %v7478_v1, %v6350_v39  ;;  %v6103_v43 = vadd.f32 %v10375_v40, %v4778_v36  ;;  %v12352_v24 = vld [vmem:[%s12422_s2] ss:$0 sm:$0xff]  ;;  %v4781_v30 = vld [vmem:[#allocation2 + $0x3a8] sm:$0xff] }
 0x336   : > { %8302 = vst.msk [vmem:[%s12016_s9 + $0xb0] sm:$0xff] %vm1373_vm3, %v8270_v32  ;;  %6226 = vst.msk [vmem:[#allocation2 + $0x368] sm:$0xff] %vm1373_vm3, %v6098_v35  ;;  %v6355_v47 = vld [vmem:[#allocation2 + $0x370] sm:$0xff]  ;;  %v5926_v48 = vpop.f32.mrf.mxu1  ;;  %v7507_v56 = vpop.f32.mrf.mxu0 }
 0x337   : > { %v7927_v46 = vld [vmem:[#allocation2 + $0x328] sm:$0xff]  ;;  %8069 = vst.msk [vmem:[#allocation2 + $0x198] sm:$0xff] %vm1373_vm3, %v8005_v58  ;;  %7803 = vst.msk [vmem:[#allocation2 + $0x348] sm:$0xff] %vm1373_vm3, %v7675_v42  ;;  %v7680_v51 = vadd.f32 %v10501_v8, %v6355_v47  ;;  %v6101_v52 = vadd.f32 %v5926_v48, %v4776_v44 }
 0x338   : > { %v8003_v50 = vmax.f32 %v7923_v45, %v7927_v46  ;;  %6231 = vst.msk [vmem:[#allocation2 + $0x390] sm:$0xff] %vm1373_vm3, %v6103_v43  ;;  %v6353_v53 = vld [vmem:[#allocation2 + $0x360] sm:$0xff]  ;;  %v10376_v55 = vpop.f32.mrf.mxu1  ;;  %v10506_v63 = vpop.f32.mrf.mxu0 }
 0x339   : > { %7808 = vst.msk [vmem:[#allocation2 + $0x370] sm:$0xff] %vm1373_vm3, %v7680_v51  ;;  %v7678_v57 = vadd.f32 %v7491_v20, %v6353_v53  ;;  %6229 = vst.msk [vmem:[#allocation2 + $0x380] sm:$0xff] %vm1373_vm3, %v6101_v52  ;;  %v6104_v59 = vadd.f32 %v10376_v55, %v4779_v54  ;;  %v7932_v15 = vld [vmem:[#allocation2 + $0x350] sm:$0xff] }
 0x33a   : > { %8067 = vst.msk [vmem:[#allocation2 + $0x188] sm:$0xff] %vm1373_vm3, %v8003_v50  ;;  %v5929_v62 = vpop.f32.mrf.mxu1  ;;  %v7510_v5 = vpop.f32.mrf.mxu0 }
 0x33b   : > { %v6356_v60 = vld [vmem:[#allocation2 + $0x378] sm:$0xff]  ;;  %7806 = vst.msk [vmem:[#allocation2 + $0x360] sm:$0xff] %vm1373_vm3, %v7678_v57  ;;  %6232 = vst.msk [vmem:[#allocation2 + $0x398] sm:$0xff] %vm1373_vm3, %v6104_v59  ;;  %v6102_v1 = vadd.f32 %v5929_v62, %v4777_v61 }
 0x33c   : > { %v7681_v0 = vadd.f32 %v10502_v31, %v6356_v60  ;;  %v10379_v4 = vpop.f32.mrf.mxu1  ;;  %v10509_v9 = vpop.f32.mrf.mxu0  ;;  %v7930_v31 = vld [vmem:[#allocation2 + $0x340] sm:$0xff]  ;;  %v7933_v58 = vld [vmem:[#allocation2 + $0x358] sm:$0xff] }
 0x33d   : > { %v6354_v2 = vld [vmem:[#allocation2 + $0x368] sm:$0xff]  ;;  %6230 = vst.msk [vmem:[#allocation2 + $0x388] sm:$0xff] %vm1373_vm3, %v6102_v1  ;;  %v6107_v7 = vadd.f32 %v10379_v4, %v4782_v3  ;;  %v4787_v60 = vld [vmem:[#allocation2 + $0x3d8] sm:$0xff] }
 0x33e   : > { %7809 = vst.msk [vmem:[#allocation2 + $0x378] sm:$0xff] %vm1373_vm3, %v7681_v0  ;;  %v7679_v6 = vadd.f32 %v7494_v41, %v6354_v2  ;;  %v8132_v8 = vld [vmem:[#allocation2 + $0x190] ss:$2 sm:$0xff]  ;;  %v8196_v10 = vld [vmem:[#allocation2 + $0x191] ss:$2 sm:$0xff]  ;;  %v5942_v13 = vpop.f32.mrf.mxu1  ;;  %v7523_v12 = vpop.f32.mrf.mxu0  ;;  %v7931_v50 = vld [vmem:[#allocation2 + $0x348] sm:$0xff] }
 0x33f   : > { %v8234_v14 = vmax.f32 %v8132_v8, %v8196_v10  ;;  %v6359_v16 = vld [vmem:[#allocation2 + $0x390] sm:$0xff]  ;;  %6235 = vst.msk [vmem:[#allocation2 + $0x3b0] sm:$0xff] %vm1373_vm3, %v6107_v7  ;;  %v6105_v17 = vadd.f32 %v5942_v13, %v4780_v11  ;;  %v4785_v2 = vld [vmem:[#allocation2 + $0x3c8] sm:$0xff] }
 0x340   : > { %7807 = vst.msk [vmem:[#allocation2 + $0x368] sm:$0xff] %vm1373_vm3, %v7679_v6  ;;  %v7936_v21 = vld [vmem:[#allocation2 + $0x370] sm:$0xff]  ;;  %v7684_v22 = vadd.f32 %v10505_v49, %v6359_v16  ;;  %v10380_v23 = vpop.f32.mrf.mxu1  ;;  %v6357_v28 = vld [vmem:[#allocation2 + $0x380] sm:$0xff]  ;;  %v10510_v36 = vpop.f32.mrf.mxu0 }
 0x341   : > { %v8130_v19 = vld [vmem:[#allocation2 + $0x180] ss:$2 sm:$0xff]  ;;  %v8194_v20 = vld [vmem:[#allocation2 + $0x181] ss:$2 sm:$0xff]  ;;  %v8273_v25 = vadd.f32 %v12352_v24, %v8234_v14  ;;  %v8008_v27 = vmax.f32 %v7932_v15, %v7936_v21  ;;  %6233 = vst.msk [vmem:[#allocation2 + $0x3a0] sm:$0xff] %vm1373_vm3, %v6105_v17  ;;  %v6108_v29 = vadd.f32 %v10380_v23, %v4783_v18  ;;  %v7682_v33 = vadd.f32 %v7507_v56, %v6357_v28  ;;  %v4786_v41 = vld [vmem:[#allocation2 + $0x3d0] sm:$0xff] }
 0x342   : > { %v8233_v26 = vmax.f32 %v8130_v19, %v8194_v20  ;;  %v7934_v32 = vld [vmem:[#allocation2 + $0x360] sm:$0xff]  ;;  %7812 = vst.msk [vmem:[#allocation2 + $0x390] sm:$0xff] %vm1373_vm3, %v7684_v22  ;;  %v6360_v34 = vld [vmem:[#allocation2 + $0x398] sm:$0xff]  ;;  %v5945_v35 = vpop.f32.mrf.mxu1  ;;  %v7526_v45 = vpop.f32.mrf.mxu0  ;;  %v4790_v8 = vld [vmem:[#allocation2 + $0x3f0] sm:$0xff] }
 0x343   : > { %8305 = vst.msk [vmem:[%s12016_s9 + $0xc8] sm:$0xff] %vm1373_vm3, %v8273_v25  ;;  %8072 = vst.msk [vmem:[#allocation2 + $0x1b0] sm:$0xff] %vm1373_vm3, %v8008_v27  ;;  %v8006_v38 = vmax.f32 %v7930_v31, %v7934_v32  ;;  %v7685_v39 = vadd.f32 %v10506_v63, %v6360_v34  ;;  %v6106_v40 = vadd.f32 %v5945_v35, %v4781_v30  ;;  %v4784_v49 = vld [vmem:[#allocation2 + $0x3c0] sm:$0xff]  ;;  %v4791_v22 = vld [vmem:[#allocation2 + $0x3f8] sm:$0xff] }
 0x344   : > { %v8272_v37 = vadd.f32 %v12352_v24, %v8233_v26  ;;  %6236 = vst.msk [vmem:[#allocation2 + $0x3b8] sm:$0xff] %vm1373_vm3, %v6108_v29  ;;  %7810 = vst.msk [vmem:[#allocation2 + $0x380] sm:$0xff] %vm1373_vm3, %v7682_v33  ;;  %v6358_v43 = vld [vmem:[#allocation2 + $0x388] sm:$0xff]  ;;  %v10383_v44 = vpop.f32.mrf.mxu1  ;;  %v10513_v54 = vpop.f32.mrf.mxu0  ;;  %v4788_v16 = vld [vmem:[#allocation2 + $0x3e0] sm:$0xff] }
 0x345   : > { %v7937_v42 = vld [vmem:[#allocation2 + $0x378] sm:$0xff]  ;;  %8070 = vst.msk [vmem:[#allocation2 + $0x1a0] sm:$0xff] %vm1373_vm3, %v8006_v38  ;;  %7813 = vst.msk [vmem:[#allocation2 + $0x398] sm:$0xff] %vm1373_vm3, %v7685_v39  ;;  %v7683_v47 = vadd.f32 %v7510_v5, %v6358_v43  ;;  %v6111_v48 = vadd.f32 %v10383_v44, %v4786_v41  ;;  %v4789_v34 = vld [vmem:[#allocation2 + $0x3e8] sm:$0xff] }
 0x346   : > { %8304 = vst.msk [vmem:[%s12016_s9 + $0xc0] sm:$0xff] %vm1373_vm3, %v8272_v37  ;;  %v8009_v46 = vmax.f32 %v7933_v58, %v7937_v42  ;;  %6234 = vst.msk [vmem:[#allocation2 + $0x3a8] sm:$0xff] %vm1373_vm3, %v6106_v40  ;;  %v6363_v52 = vld [vmem:[#allocation2 + $0x3b0] sm:$0xff]  ;;  %v5958_v53 = vpop.f32.mrf.mxu1  ;;  %v7539_v62 = vpop.f32.mrf.mxu0 }
 0x347   : > { %v7935_v51 = vld [vmem:[#allocation2 + $0x368] sm:$0xff]  ;;  %7811 = vst.msk [vmem:[#allocation2 + $0x388] sm:$0xff] %vm1373_vm3, %v7683_v47  ;;  %v7688_v56 = vadd.f32 %v10509_v9, %v6363_v52  ;;  %6239 = vst.msk [vmem:[#allocation2 + $0x3d0] sm:$0xff] %vm1373_vm3, %v6111_v48  ;;  %v6109_v57 = vadd.f32 %v5958_v53, %v4784_v49 }
 0x348   : > { %8073 = vst.msk [vmem:[#allocation2 + $0x1b8] sm:$0xff] %vm1373_vm3, %v8009_v46  ;;  %v8007_v55 = vmax.f32 %v7931_v50, %v7935_v51  ;;  %v6361_v59 = vld [vmem:[#allocation2 + $0x3a0] sm:$0xff]  ;;  %v10384_v61 = vpop.f32.mrf.mxu1  ;;  %v10514_v4 = vpop.f32.mrf.mxu0 }
 0x349   : > { %7816 = vst.msk [vmem:[#allocation2 + $0x3b0] sm:$0xff] %vm1373_vm3, %v7688_v56  ;;  %v7686_v63 = vadd.f32 %v7523_v12, %v6361_v59  ;;  %6237 = vst.msk [vmem:[#allocation2 + $0x3c0] sm:$0xff] %vm1373_vm3, %v6109_v57  ;;  %v6112_v0 = vadd.f32 %v10384_v61, %v4787_v60  ;;  %v7940_v19 = vld [vmem:[#allocation2 + $0x390] sm:$0xff] }
 0x34a   : > { %8071 = vst.msk [vmem:[#allocation2 + $0x1a8] sm:$0xff] %vm1373_vm3, %v8007_v55  ;;  %v5961_v3 = vpop.f32.mrf.mxu1  ;;  %v7542_v11 = vpop.f32.mrf.mxu0 }
 0x34b   : > { %v6364_v1 = vld [vmem:[#allocation2 + $0x3b8] sm:$0xff]  ;;  %7814 = vst.msk [vmem:[#allocation2 + $0x3a0] sm:$0xff] %vm1373_vm3, %v7686_v63  ;;  %6240 = vst.msk [vmem:[#allocation2 + $0x3d8] sm:$0xff] %vm1373_vm3, %v6112_v0  ;;  %v6110_v6 = vadd.f32 %v5961_v3, %v4785_v2  ;;  %v7938_v35 = vld [vmem:[#allocation2 + $0x380] sm:$0xff] }
 0x34c   : > { %v7689_v5 = vadd.f32 %v10510_v36, %v6364_v1  ;;  %v10387_v10 = vpop.f32.mrf.mxu1  ;;  %v10517_v28 = vpop.f32.mrf.mxu0  ;;  %v7941_v43 = vld [vmem:[#allocation2 + $0x398] sm:$0xff] }
 0x34d   : > { %v6362_v7 = vld [vmem:[#allocation2 + $0x3a8] sm:$0xff]  ;;  %6238 = vst.msk [vmem:[#allocation2 + $0x3c8] sm:$0xff] %vm1373_vm3, %v6110_v6  ;;  %v6115_v9 = vadd.f32 %v10387_v10, %v4790_v8 }
 0x34e   : > { %7817 = vst.msk [vmem:[#allocation2 + $0x3b8] sm:$0xff] %vm1373_vm3, %v7689_v5  ;;  %v7687_v13 = vadd.f32 %v7526_v45, %v6362_v7  ;;  %v5974_v17 = vpop.f32.mrf.mxu1  ;;  %v6367_v20 = vld [vmem:[#allocation2 + $0x3d0] sm:$0xff]  ;;  %v7555_v46 = vpop.f32.mrf.mxu0  ;;  %v7939_v49 = vld [vmem:[#allocation2 + $0x388] sm:$0xff] }
 0x34f   : > { %v8136_v14 = vld [vmem:[#allocation2 + $0x1b0] ss:$2 sm:$0xff]  ;;  %v8200_v15 = vld [vmem:[#allocation2 + $0x1b1] ss:$2 sm:$0xff]  ;;  %6243 = vst.msk [vmem:[#allocation2 + $0x3f0] sm:$0xff] %vm1373_vm3, %v6115_v9  ;;  %v6113_v21 = vadd.f32 %v5974_v17, %v4788_v16  ;;  %v7692_v26 = vadd.f32 %v10513_v54, %v6367_v20 }
 0x350   : > { %v8236_v18 = vmax.f32 %v8136_v14, %v8200_v15  ;;  %7815 = vst.msk [vmem:[#allocation2 + $0x3a8] sm:$0xff] %vm1373_vm3, %v7687_v13  ;;  %v7944_v25 = vld [vmem:[#allocation2 + $0x3b0] sm:$0xff]  ;;  %v10388_v27 = vpop.f32.mrf.mxu1  ;;  %v6365_v32 = vld [vmem:[#allocation2 + $0x3c0] sm:$0xff]  ;;  %v10518_v55 = vpop.f32.mrf.mxu0 }
 0x351   : > { %v8134_v23 = vld [vmem:[#allocation2 + $0x1a0] ss:$2 sm:$0xff]  ;;  %v8198_v12 = vld [vmem:[#allocation2 + $0x1a1] ss:$2 sm:$0xff]  ;;  %v8012_v31 = vmax.f32 %v7940_v19, %v7944_v25  ;;  %6241 = vst.msk [vmem:[#allocation2 + $0x3e0] sm:$0xff] %vm1373_vm3, %v6113_v21  ;;  %v6116_v33 = vadd.f32 %v10388_v27, %v4791_v22  ;;  %7820 = vst.msk [vmem:[#allocation2 + $0x3d0] sm:$0xff] %vm1373_vm3, %v7692_v26  ;;  %v7690_v37 = vadd.f32 %v7539_v62, %v6365_v32 }
 0x352   : > { %v8275_v29 = vadd.f32 %v12352_v24, %v8236_v18  ;;  %v8235_v30 = vmax.f32 %v8134_v23, %v8198_v12  ;;  %v7942_v36 = vld [vmem:[#allocation2 + $0x3a0] sm:$0xff]  ;;  %v6368_v38 = vld [vmem:[#allocation2 + $0x3d8] sm:$0xff]  ;;  %v5977_v39 = vpop.f32.mrf.mxu1  ;;  %v7558_v61 = vpop.f32.mrf.mxu0 }
 0x353   : > { %8076 = vst.msk [vmem:[#allocation2 + $0x1d0] sm:$0xff] %vm1373_vm3, %v8012_v31  ;;  %v8010_v41 = vmax.f32 %v7938_v35, %v7942_v36  ;;  %v7693_v58 = vadd.f32 %v10514_v4, %v6368_v38  ;;  %6244 = vst.msk [vmem:[#allocation2 + $0x3f8] sm:$0xff] %vm1373_vm3, %v6116_v33  ;;  %v6114_v42 = vadd.f32 %v5977_v39, %v4789_v34 }
 0x354   : > { %8307 = vst.msk [vmem:[%s12016_s9 + $0xd8] sm:$0xff] %vm1373_vm3, %v8275_v29  ;;  %v8274_v40 = vadd.f32 %v12352_v24, %v8235_v30  ;;  %7818 = vst.msk [vmem:[#allocation2 + $0x3c0] sm:$0xff] %vm1373_vm3, %v7690_v37  ;;  %v6366_v45 = vld [vmem:[#allocation2 + $0x3c8] sm:$0xff] }
 0x355   : > { %v7945_v44 = vld [vmem:[#allocation2 + $0x3b8] sm:$0xff]  ;;  %8074 = vst.msk [vmem:[#allocation2 + $0x1c0] sm:$0xff] %vm1373_vm3, %v8010_v41  ;;  %7821 = vst.msk [vmem:[#allocation2 + $0x3d8] sm:$0xff] %vm1373_vm3, %v7693_v58  ;;  %v7691_v48 = vadd.f32 %v7542_v11, %v6366_v45 }
 0x356   : > { %8306 = vst.msk [vmem:[%s12016_s9 + $0xd0] sm:$0xff] %vm1373_vm3, %v8274_v40  ;;  %v8013_v47 = vmax.f32 %v7941_v43, %v7945_v44  ;;  %6242 = vst.msk [vmem:[#allocation2 + $0x3e8] sm:$0xff] %vm1373_vm3, %v6114_v42  ;;  %v6371_v51 = vld [vmem:[#allocation2 + $0x3f0] sm:$0xff] }
 0x357   : > { %v7943_v50 = vld [vmem:[#allocation2 + $0x3a8] sm:$0xff]  ;;  %7819 = vst.msk [vmem:[#allocation2 + $0x3c8] sm:$0xff] %vm1373_vm3, %v7691_v48  ;;  %v7696_v53 = vadd.f32 %v10517_v28, %v6371_v51 }
 0x358   : > { %8077 = vst.msk [vmem:[#allocation2 + $0x1d8] sm:$0xff] %vm1373_vm3, %v8013_v47  ;;  %v8011_v52 = vmax.f32 %v7939_v49, %v7943_v50  ;;  %v6369_v54 = vld [vmem:[#allocation2 + $0x3e0] sm:$0xff]  ;;  %v7948_v2 = vld [vmem:[#allocation2 + $0x3d0] sm:$0xff] }
 0x359   : > { %7824 = vst.msk [vmem:[#allocation2 + $0x3f0] sm:$0xff] %vm1373_vm3, %v7696_v53  ;;  %v7694_v56 = vadd.f32 %v7555_v46, %v6369_v54 }
 0x35a   : > { %8075 = vst.msk [vmem:[#allocation2 + $0x1c8] sm:$0xff] %vm1373_vm3, %v8011_v52  ;;  %v6372_v57 = vld [vmem:[#allocation2 + $0x3f8] sm:$0xff] }
 0x35b   : > { %7822 = vst.msk [vmem:[#allocation2 + $0x3e0] sm:$0xff] %vm1373_vm3, %v7694_v56  ;;  %v7697_v59 = vadd.f32 %v10518_v55, %v6372_v57  ;;  %v7946_v10 = vld [vmem:[#allocation2 + $0x3c0] sm:$0xff] }
 0x35c   : > { %v7949_v14 = vld [vmem:[#allocation2 + $0x3d8] sm:$0xff] }
 0x35d   : > { %v6370_v60 = vld [vmem:[#allocation2 + $0x3e8] sm:$0xff]  ;;  %7825 = vst.msk [vmem:[#allocation2 + $0x3f8] sm:$0xff] %vm1373_vm3, %v7697_v59 }
 0x35e   : > { %v7695_v62 = vadd.f32 %v7558_v61, %v6370_v60  ;;  %v7947_v17 = vld [vmem:[#allocation2 + $0x3c8] sm:$0xff] }
 0x35f   : > { %v8140_v63 = vld [vmem:[#allocation2 + $0x1d0] ss:$2 sm:$0xff]  ;;  %v8204_v0 = vld [vmem:[#allocation2 + $0x1d1] ss:$2 sm:$0xff] }
 0x360   : > { %v8238_v1 = vmax.f32 %v8140_v63, %v8204_v0  ;;  %7823 = vst.msk [vmem:[#allocation2 + $0x3e8] sm:$0xff] %vm1373_vm3, %v7695_v62  ;;  %v7952_v5 = vld [vmem:[#allocation2 + $0x3f0] sm:$0xff] }
 0x361   : > { %v8138_v3 = vld [vmem:[#allocation2 + $0x1c0] ss:$2 sm:$0xff]  ;;  %v8202_v4 = vld [vmem:[#allocation2 + $0x1c1] ss:$2 sm:$0xff]  ;;  %v8016_v8 = vmax.f32 %v7948_v2, %v7952_v5 }
 0x362   : > { %v8277_v6 = vadd.f32 %v12352_v24, %v8238_v1  ;;  %v8237_v7 = vmax.f32 %v8138_v3, %v8202_v4  ;;  %v7950_v11 = vld [vmem:[#allocation2 + $0x3e0] sm:$0xff] }
 0x363   : > { %8080 = vst.msk [vmem:[#allocation2 + $0x1f0] sm:$0xff] %vm1373_vm3, %v8016_v8  ;;  %v8014_v9 = vmax.f32 %v7946_v10, %v7950_v11 }
 0x364   : > { %8309 = vst.msk [vmem:[%s12016_s9 + $0xe8] sm:$0xff] %vm1373_vm3, %v8277_v6  ;;  %v8276_v13 = vadd.f32 %v12352_v24, %v8237_v7  ;;  %v7953_v15 = vld [vmem:[#allocation2 + $0x3f8] sm:$0xff] }
 0x365   : > { %8078 = vst.msk [vmem:[#allocation2 + $0x1e0] sm:$0xff] %vm1373_vm3, %v8014_v9  ;;  %v8017_v16 = vmax.f32 %v7949_v14, %v7953_v15 }
 0x366   : > { %8308 = vst.msk [vmem:[%s12016_s9 + $0xe0] sm:$0xff] %vm1373_vm3, %v8276_v13 }
 0x367   : > { %v7951_v18 = vld [vmem:[#allocation2 + $0x3e8] sm:$0xff]  ;;  %8081 = vst.msk [vmem:[#allocation2 + $0x1f8] sm:$0xff] %vm1373_vm3, %v8017_v16 }
 0x368   : > { %v8015_v19 = vmax.f32 %v7947_v17, %v7951_v18 }
 0x36a   : > { %8079 = vst.msk [vmem:[#allocation2 + $0x1e8] sm:$0xff] %vm1373_vm3, %v8015_v19 }
 0x36e   : > { %v8144_v20 = vld [vmem:[#allocation2 + $0x1f0] ss:$2 sm:$0xff]  ;;  %v8208_v21 = vld [vmem:[#allocation2 + $0x1f1] ss:$2 sm:$0xff] }
 0x36f   : > { %v8240_v22 = vmax.f32 %v8144_v20, %v8208_v21 }
 0x371   : > { %v8142_v23 = vld [vmem:[#allocation2 + $0x1e0] ss:$2 sm:$0xff]  ;;  %v8206_v12 = vld [vmem:[#allocation2 + $0x1e1] ss:$2 sm:$0xff]  ;;  %v8279_v25 = vadd.f32 %v12352_v24, %v8240_v22 }
 0x372   : > { %v8239_v26 = vmax.f32 %v8142_v23, %v8206_v12 }
 0x373   : > { %8311 = vst.msk [vmem:[%s12016_s9 + $0xf8] sm:$0xff] %vm1373_vm3, %v8279_v25 }
 0x374   : > { %v8278_v27 = vadd.f32 %v12352_v24, %v8239_v26 }
 0x376   : > { %8310 = vst.msk [vmem:[%s12016_s9 + $0xf0] sm:$0xff] %vm1373_vm3, %v8278_v27 }
 0x377 PF: > { %s13_s12 = sadd.s32 1, %s10864_s12  }
 0x378   : > { %p10_p5 = scmp.ge.s32.totalorder %s13_s12, 4  }
 0x37a   :  { %12 = sbr.rel (!%p10_p5) target bundleno = 1 (0x1), region = 133 }

// kernel: forward.7
= control target key start
LH: loop header
LB: loop body
LE: loop exit
PB: predicated region body
PF: predicated region fallthrough
CT: control target
= control target key end

     0   :  { %v163_v28 = vlaneseq  ;;  %v1131_v36 = vmov 1966171168   ;;  %s1394_s0 = inlined_call_operand.vmem [shape: bf16[2,1024], index: 0, kind: input, shape index: {}]   ;;  %s1395_s1 = inlined_call_operand.vmem [shape: bf16[1024,64], index: 1, kind: input, shape index: {}]   ;;  %s1396_s2 = inlined_call_operand.vmem [shape: f32[1,64], index: 2, kind: input, shape index: {}]   ;;  %s1397_s3 = inlined_call_operand.vmem [shape: bf16[64,10], index: 3, kind: input, shape index: {}]   ;;  %s1398_s4 = inlined_call_operand.vmem [shape: f32[1,10], index: 4, kind: input, shape index: {}]   ;;  %s1399_s5 = inlined_call_operand.hbm [shape: f32[2,10], index: 5, kind: output, shape index: {}]  }
   0x1   :  { %v1040_v0 = vld [vmem:[%s1395_s1 + $0x78] sm:$0xff]   ;;  %v1044_v4 = vld [vmem:[%s1395_s1 + $0x70] sm:$0xff]   ;;  %v1048_v8 = vld [vmem:[%s1395_s1 + $0x68] sm:$0xff]   ;;  %v161_v37 = vunpack.c.l.s4 %v1131_v36 }
   0x2   :  { %v1041_v1 = vld [vmem:[%s1395_s1 + $0xf8] sm:$0xff]   ;;  %931 = vmatprep.subr.bf16.mxu0 %v1040_v0  ;;  %v1045_v5 = vld [vmem:[%s1395_s1 + $0xf0] sm:$0xff]   ;;  %v1049_v9 = vld [vmem:[%s1395_s1 + $0xe8] sm:$0xff]   ;;  %v164_v33 = vshrl.u32 %v163_v28, 7 }
   0x3   :  { %v1042_v2 = vld [vmem:[%s1395_s1 + $0x38] sm:$0xff]   ;;  %953 = vmatprep.subr.bf16.mxu1 %v1041_v1  ;;  %v1046_v6 = vld [vmem:[%s1395_s1 + $0x30] sm:$0xff]   ;;  %v1050_v10 = vld [vmem:[%s1395_s1 + $0x28] sm:$0xff]   ;;  %v162_v40 = vunpack.c.0.s8 %v161_v37 }
   0x4   :  { %v1043_v3 = vld [vmem:[%s1395_s1 + $0xb8] sm:$0xff]   ;;  %932 = vmatpush3.bf16.msra.mxu0 %v1042_v2  ;;  %v1047_v7 = vld [vmem:[%s1395_s1 + $0xb0] sm:$0xff]   ;;  %v1051_v11 = vld [vmem:[%s1395_s1 + $0xa8] sm:$0xff]  }
   0x5   :  { %954 = vmatpush3.bf16.msra.mxu1 %v1043_v3  ;;  %933 = vmatprep.subr.bf16.mxu0 %v1044_v4  ;;  %v1052_v12 = vld [vmem:[%s1395_s1 + $0x60] sm:$0xff]   ;;  %v1056_v16 = vld [vmem:[%s1395_s1 + $0x58] sm:$0xff]   ;;  %v1060_v20 = vld [vmem:[%s1395_s1 + $0x50] sm:$0xff]   ;;  %v1270_v41 = vsub.s32 %v162_v40, %v164_v33 }
   0x6   :  { %955 = vmatprep.subr.bf16.mxu1 %v1045_v5  ;;  %v1053_v13 = vld [vmem:[%s1395_s1 + $0xe0] sm:$0xff]   ;;  %v1057_v17 = vld [vmem:[%s1395_s1 + $0xd8] sm:$0xff]   ;;  %v1061_v21 = vld [vmem:[%s1395_s1 + $0xd0] sm:$0xff]  }
   0x7   :  { %v1054_v14 = vld [vmem:[%s1395_s1 + $0x20] sm:$0xff]   ;;  %v1058_v18 = vld [vmem:[%s1395_s1 + $0x18] sm:$0xff]   ;;  %v1062_v22 = vld [vmem:[%s1395_s1 + $0x10] sm:$0xff]  }
   0x8   :  { %934 = vmatpush3.bf16.msra.mxu0 %v1046_v6  ;;  %v1055_v15 = vld [vmem:[%s1395_s1 + $0xa0] sm:$0xff]   ;;  %v1059_v19 = vld [vmem:[%s1395_s1 + $0x98] sm:$0xff]   ;;  %v1063_v23 = vld [vmem:[%s1395_s1 + $0x90] sm:$0xff]  }
   0x9   :  { %956 = vmatpush3.bf16.msra.mxu1 %v1047_v7  ;;  %935 = vmatprep.subr.bf16.mxu0 %v1048_v8  ;;  %v1064_v24 = vld [vmem:[%s1395_s1 + $0x48] sm:$0xff]   ;;  %v1068_v29 = vld [vmem:[%s1395_s1 + $0x40] sm:$0xff]   ;;  %v1073_v35 = vld [vmem:[%s1395_s1 + $0x178] sm:$0xff]  }
   0xa   :  { %957 = vmatprep.subr.bf16.mxu1 %v1049_v9  ;;  %v1065_v25 = vld [vmem:[%s1395_s1 + $0xc8] sm:$0xff]   ;;  %v1069_v30 = vld [vmem:[%s1395_s1 + $0xc0] sm:$0xff]   ;;  %v1074_v38 = vld [vmem:[%s1395_s1 + $0x1f8] sm:$0xff]  }
   0xb   :  { %v1066_v26 = vld [vmem:[%s1395_s1 + $0x8] sm:$0xff]   ;;  %v1070_v31 = vld [vmem:[%s1395_s1] sm:$0xff]   ;;  %v1075_v47 = vld [vmem:[%s1395_s1 + $0x138] sm:$0xff]  }
   0xc   :  { %936 = vmatpush3.bf16.msra.mxu0 %v1050_v10  ;;  %v1067_v27 = vld [vmem:[%s1395_s1 + $0x88] sm:$0xff]   ;;  %v1071_v32 = vld [vmem:[%s1395_s1 + $0x80] sm:$0xff]   ;;  %v1076_v49 = vld [vmem:[%s1395_s1 + $0x1b8] sm:$0xff]  }
   0xd   :  { %958 = vmatpush3.bf16.msra.mxu1 %v1051_v11  ;;  %937 = vmatprep.subr.bf16.mxu0 %v1052_v12  ;;  %v22_v34 = vld [vmem:[%s1394_s0] sm:$0xff]  ;;  %v1077_v52 = vld [vmem:[%s1395_s1 + $0x170] sm:$0xff]   ;;  %v1081_v58 = vld [vmem:[%s1395_s1 + $0x168] sm:$0xff]  }
   0xe   :  { %959 = vmatprep.subr.bf16.mxu1 %v1053_v13  ;;  %v159_v39 = vcombine.high %v22_v34, %v22_v34  ;;  %v166_v42 = vrot.slane %v22_v34, %v1270_v41  ;;  %v1078_v54 = vld [vmem:[%s1395_s1 + $0x1f0] sm:$0xff]   ;;  %v1082_v59 = vld [vmem:[%s1395_s1 + $0x1e8] sm:$0xff]   ;;  %v1085_v62 = vld [vmem:[%s1395_s1 + $0x160] sm:$0xff]  }
   0xf   :  { %v1079_v55 = vld [vmem:[%s1395_s1 + $0x130] sm:$0xff]   ;;  %v1083_v60 = vld [vmem:[%s1395_s1 + $0x128] sm:$0xff]   ;;  %v1086_v63 = vld [vmem:[%s1395_s1 + $0x1e0] sm:$0xff]  }
  0x10   :  { %938 = vmatpush3.bf16.msra.mxu0 %v1054_v14  ;;  %v1274_v43 = vrot.slane %v159_v39, %v1270_v41  ;;  %v174_v44 = vcombine.high %v166_v42, %v166_v42  ;;  %v182_v45 = vrot.slane %v166_v42, %v1270_v41  ;;  %v1080_v57 = vld [vmem:[%s1395_s1 + $0x1b0] sm:$0xff]   ;;  %v1084_v61 = vld [vmem:[%s1395_s1 + $0x1a8] sm:$0xff]   ;;  %v1087_v0 = vld [vmem:[%s1395_s1 + $0x120] sm:$0xff]  }
  0x11   :  { %960 = vmatpush3.bf16.msra.mxu1 %v1055_v15  ;;  %939 = vmatprep.subr.bf16.mxu0 %v1056_v16  ;;  %v1088_v1 = vld [vmem:[%s1395_s1 + $0x1a0] sm:$0xff]   ;;  %v1089_v2 = vld [vmem:[%s1395_s1 + $0x158] sm:$0xff]   ;;  %v1093_v6 = vld [vmem:[%s1395_s1 + $0x150] sm:$0xff]  }
  0x12   :  { %961 = vmatprep.subr.bf16.mxu1 %v1057_v17  ;;  %v175_v46 = vcombine.high %v1274_v43, %v1274_v43  ;;  %v196_v48 = vrot.slane %v174_v44, %v1270_v41  ;;  %v204_v51 = vcombine.high %v182_v45, %v182_v45  ;;  %v1090_v3 = vld [vmem:[%s1395_s1 + $0x1d8] sm:$0xff]   ;;  %v1094_v7 = vld [vmem:[%s1395_s1 + $0x1d0] sm:$0xff]   ;;  %v1097_v10 = vld [vmem:[%s1395_s1 + $0x148] sm:$0xff]  }
  0x13   :  { %v1091_v4 = vld [vmem:[%s1395_s1 + $0x118] sm:$0xff]   ;;  %v1095_v8 = vld [vmem:[%s1395_s1 + $0x110] sm:$0xff]   ;;  %v1098_v11 = vld [vmem:[%s1395_s1 + $0x1c8] sm:$0xff]  }
  0x14   :  { %940 = vmatpush3.bf16.msra.mxu0 %v1058_v18  ;;  %v203_v50 = vrot.slane %v175_v46, %v1270_v41  ;;  %632 = vmatprep.mubr.bf16.mxu0 %v196_v48  ;;  %v206_v53 = vcombine.high %v196_v48, %v196_v48  ;;  %v1092_v5 = vld [vmem:[%s1395_s1 + $0x198] sm:$0xff]   ;;  %v1096_v9 = vld [vmem:[%s1395_s1 + $0x190] sm:$0xff]   ;;  %v1099_v12 = vld [vmem:[%s1395_s1 + $0x108] sm:$0xff]  }
  0x15   :  { %962 = vmatpush3.bf16.msra.mxu1 %v1059_v19  ;;  %941 = vmatprep.subr.bf16.mxu0 %v1060_v20 }
  0x16   :  { %963 = vmatprep.subr.bf16.mxu1 %v1061_v21  ;;  %v207_v56 = vcombine.high %v203_v50, %v203_v50  ;;  %672 = vmatprep.mubr.bf16.mxu1 %v206_v53 }
  0x18   :  { %942 = vmatpush3.bf16.msra.mxu0 %v1062_v22 }
  0x19   :  { %964 = vmatpush3.bf16.msra.mxu1 %v1063_v23  ;;  %943 = vmatprep.subr.bf16.mxu0 %v1064_v24 }
  0x1a   :  { %965 = vmatprep.subr.bf16.mxu1 %v1065_v25 }
  0x1c   :  { %944 = vmatpush3.bf16.msra.mxu0 %v1066_v26 }
  0x1d   :  { %966 = vmatpush3.bf16.msra.mxu1 %v1067_v27  ;;  %945 = vmatprep.subr.bf16.mxu0 %v1068_v29 }
  0x1e   :  { %967 = vmatprep.subr.bf16.mxu1 %v1069_v30 }
  0x20   :  { %946 = vmatpush3.bf16.msra.mxu0 %v1070_v31 }
  0x21   :  { %968 = vmatpush3.bf16.msra.mxu1 %v1071_v32  ;;  %975 = vmatprep.subr.bf16.mxu0 %v1073_v35 }
  0x22   :  { %997 = vmatprep.subr.bf16.mxu1 %v1074_v38 }
  0x23   :  { %633 = vmatmul.mubr.bf16.vlgmr.msra.gmra.mxu0 %v182_v45 }
  0x24   :  { %976 = vmatpush3.bf16.msra.mxu0 %v1075_v47  ;;  %673 = vmatmul.mubr.bf16.vlgmr.msra.gmra.mxu1 %v204_v51 }
  0x25   :  { %977 = vmatprep.subr.bf16.mxu0 %v1077_v52  ;;  %998 = vmatpush3.bf16.msra.mxu1 %v1076_v49 }
  0x26   :  { %712 = vmatprep.mubr.bf16.mxu0 %v203_v50  ;;  %999 = vmatprep.subr.bf16.mxu1 %v1078_v54 }
  0x27   :  { %752 = vmatprep.mubr.bf16.mxu1 %v207_v56 }
  0x28   :  { %978 = vmatpush3.bf16.msra.mxu0 %v1079_v55 }
  0x29   :  { %979 = vmatprep.subr.bf16.mxu0 %v1081_v58  ;;  %1000 = vmatpush3.bf16.msra.mxu1 %v1080_v57 }
  0x2a   :  { %1001 = vmatprep.subr.bf16.mxu1 %v1082_v59 }
  0x2c   :  { %980 = vmatpush3.bf16.msra.mxu0 %v1083_v60 }
  0x2d   :  { %981 = vmatprep.subr.bf16.mxu0 %v1085_v62  ;;  %1002 = vmatpush3.bf16.msra.mxu1 %v1084_v61 }
  0x2e   :  { %1003 = vmatprep.subr.bf16.mxu1 %v1086_v63 }
  0x30   :  { %982 = vmatpush3.bf16.msra.mxu0 %v1087_v0 }
  0x31   :  { %983 = vmatprep.subr.bf16.mxu0 %v1089_v2  ;;  %1004 = vmatpush3.bf16.msra.mxu1 %v1088_v1 }
  0x32   :  { %1005 = vmatprep.subr.bf16.mxu1 %v1090_v3 }
  0x34   :  { %984 = vmatpush3.bf16.msra.mxu0 %v1091_v4 }
  0x35   :  { %985 = vmatprep.subr.bf16.mxu0 %v1093_v6  ;;  %1006 = vmatpush3.bf16.msra.mxu1 %v1092_v5 }
  0x36   :  { %1007 = vmatprep.subr.bf16.mxu1 %v1094_v7 }
  0x38   :  { %986 = vmatpush3.bf16.msra.mxu0 %v1095_v8 }
  0x39   :  { %10 = vsyncpa [#allocation3], 0  ;;  %987 = vmatprep.subr.bf16.mxu0 %v1097_v10  ;;  %v1101_v13 = vld [vmem:[%s1395_s1 + $0x140] sm:$0xff]   ;;  %1008 = vmatpush3.bf16.msra.mxu1 %v1096_v9  ;;  %v1100_v14 = vld [vmem:[%s1395_s1 + $0x188] sm:$0xff]   ;;  %v189_v17 = vrot.slane %v1274_v43, %v1270_v41  ;;  %v1132_v21 = vmov 0.0   ;;  %vm1133_vm0 = vmmov 0  }
  0x3a   :  { %1009 = vmatprep.subr.bf16.mxu1 %v1098_v11  ;;  %v1102_v15 = vld [vmem:[%s1395_s1 + $0x1c0] sm:$0xff]   ;;  %v1105_v20 = vld [vmem:[%s1397_s3 + $0x18] sm:$0xff]   ;;  %v1106_v22 = vld [vmem:[%s1397_s3 + $0x10] sm:$0xff]   ;;  %vm800_vm1 = vcmask 523264   ;;  %s1134_s29 = smov [#allocation2]   ;;  %vm844_vm2 = vcmask 74752  }
  0x3b   :  { %v1103_v16 = vld [vmem:[%s1395_s1 + $0x100] sm:$0xff]   ;;  %v205_v19 = vcombine.high %v189_v17, %v189_v17  ;;  %v1107_v23 = vld [vmem:[%s1397_s3 + $0x8] sm:$0xff]   ;;  %s852_s30 = sshll.u32 %s1134_s29, 4  ;;  %s853_s30 = int_to_ptr.vmem [resolvable:$true] %s852_s30 }
  0x3c   :  { %988 = vmatpush3.bf16.msra.mxu0 %v1099_v12  ;;  %v1104_v18 = vld [vmem:[%s1395_s1 + $0x180] sm:$0xff]   ;;  %s1109_s6 = scalar_lea.vmem %s853_s30, 32  ;;  %p1114_p1 = scmp.lt.s32.totalorder %s853_s30, %s853_s30 }
  0x3d   :  { %989 = vmatprep.subr.bf16.mxu0 %v1101_v13  ;;  %1010 = vmatpush3.bf16.msra.mxu1 %v1100_v14  ;;  %v1108_v24 = vld [vmem:[%s1397_s3] sm:$0xff]   ;;  %p1110_p0 = scmp.ne.s32.totalorder %s853_s30, %s1109_s6  ;;  %p1115_p2 = scmp.lt.s32.totalorder %s1109_s6, %s1109_s6 }
  0x3e   :  { %1011 = vmatprep.subr.bf16.mxu1 %v1102_v15  ;;  %v860_v34 = vld [vmem:[%s1396_s2] ss:$0 sm:$0xff] }
  0x3f   :  { %v925_v51 = vld [vmem:[%s1398_s4] ss:$0 sm:$0xff]  ;;  %p1116_p3 = por %p1115_p2, %p1114_p1 }
  0x40   :  { %990 = vmatpush3.bf16.msra.mxu0 %v1103_v16 }
  0x41   :  { %1012 = vmatpush3.bf16.msra.mxu1 %v1104_v18  ;;  %1024 = vmatprep.subr.bf16.mxu0 %v1132_v21  ;;  %p1117_p4 = pnand %p1116_p3, %p1110_p0 }
  0x43   :  { %713 = vmatmul.mubr.bf16.vlgmr.msra.gmra.mxu0 %v189_v17 }
  0x44   :  { %753 = vmatmul.mubr.bf16.vlgmr.msra.gmra.mxu1 %v205_v19  ;;  %1025 = vmatpush3.bf16.msra.mxu0 %v1105_v20 }
  0x45   :  { %1026 = vmatprep.subr.bf16.mxu0 %v1132_v21  ;;  %1032 = vmatprep.mubr.msk.bf16.mxu0 %vm1133_vm0, %v1132_v21 }
  0x48   :  { %1027 = vmatpush3.bf16.msra.mxu0 %v1106_v22 }
  0x49   :  { %1028 = vmatprep.subr.bf16.mxu0 %v1132_v21 }
  0x4c   :  { %1029 = vmatpush3.bf16.msra.mxu0 %v1107_v23 }
  0x4d   :  { %1030 = vmatprep.subr.bf16.mxu0 %v1132_v21 }
  0x50   :  { %1031 = vmatpush3.bf16.msra.mxu0 %v1108_v24 }
  0xe3   :  { %v947_v25 = vpop.f32.mrf.mxu0 }
  0xe4   :  { %v969_v26 = vpop.f32.mrf.mxu1 }
  0xe5   :  { %v948_v27 = vpop.f32.mrf.mxu0 }
  0xe6   :  { %v970_v28 = vpop.f32.mrf.mxu1  ;;  %v949_v33 = vadd.f32 %v948_v27, %v947_v25 }
  0xe7   :  { %v950_v29 = vpop.f32.mrf.mxu0  ;;  %v971_v36 = vadd.f32 %v970_v28, %v969_v26 }
  0xe8   :  { %v972_v30 = vpop.f32.mrf.mxu1  ;;  %v635_v35 = vadd.f32 %v949_v33, %v860_v34 }
  0xe9   :  { %v951_v31 = vpop.f32.mrf.mxu0 }
  0xea   :  { %v973_v32 = vpop.f32.mrf.mxu1  ;;  %v675_v40 = vadd.f32 %v971_v36, %v635_v35 }
 0x103   :  { %v991_v37 = vpop.f32.mrf.mxu0 }
 0x104   :  { %v1013_v38 = vpop.f32.mrf.mxu1 }
 0x105   :  { %v992_v39 = vpop.f32.mrf.mxu0 }
 0x106   :  { %v993_v41 = vadd.f32 %v992_v39, %v991_v37  ;;  %v1014_v42 = vpop.f32.mrf.mxu1 }
 0x107   :  { %v994_v43 = vpop.f32.mrf.mxu0  ;;  %v1015_v45 = vadd.f32 %v1014_v42, %v1013_v38 }
 0x108   :  { %v715_v44 = vadd.f32 %v993_v41, %v675_v40  ;;  %v1016_v46 = vpop.f32.mrf.mxu1 }
 0x109   :  { %v995_v47 = vpop.f32.mrf.mxu0 }
 0x10a   :  { %v755_v48 = vadd.f32 %v1015_v45, %v715_v44  ;;  %v1017_v49 = vpop.f32.mrf.mxu1 }
 0x10c   :  { %v760_v50 = vpack.c.bf16 %v755_v48, %v755_v48 }
 0x10e   :  { %1033 = vmatmul.mubr.msk.bf16.vlgmr.msra.gmra.mxu0 %vm800_vm1, %v760_v50 }
 0x1ce   :  { %v838_v52 = vpop.f32.mrf.mxu0 }
 0x1cf   :  { %v839_v53 = vadd.f32 %v925_v51, %v838_v52 }
 0x1d0   :  { %v1034_v54 = vpop.f32.mrf.mxu0 }
 0x1d1   :  { %845 = vst.msk [vmem:[#allocation2] sm:$0x3] %vm844_vm2, %v839_v53 }
 0x1d2   :  { %v841_v55 = vpop.f32.mrf.mxu0 }
 0x1d3   :  { %1120 = shalt.err (!%p1117_p4)
}
 0x1d4   :  { %855 = dma.vmem_to_hbm [thread:$0]  %s853_s30, 32, %s1399_s5, [#allocation3]   ;;  %v1035_v56 = vpop.f32.mrf.mxu0 }
 0x1d5   :  { %1129 = dma.done.wait [#allocation3], 32  }
 0x1d6   :  { %1130 = vsyncadd [#allocation3], 4294967264 }
 0x1d7   :  { %859 = vsyncpa [#allocation3], 1 }

</bundles_post_ra>
